<compile_context>
chip_gen: v6e
topology: v6e:2x2x1
jax: 0.10.0
libtpu: 0.0.40
codegen_flags: <defaults>
</compile_context>

<pallas_src>
import jax
import jax.numpy as jnp
from jax.experimental import pallas as pl
from jax.experimental.pallas import tpu as pltpu

EPS = 1e-5                      # PyTorch BatchNorm1d default eps
MATMUL_DTYPE = jnp.bfloat16     # matmul operands; accumulation stays float32
CPAD = 128                      # lane padding of the 10 output channels per tap


# --------------------------------------------------------------------------
# The single fused kernel.
# --------------------------------------------------------------------------
def _bar_color_fused_kernel(
    x_ref, nf_ref, nl_ref,
    w0_ref, g0_ref, bt0_ref,
    w1m_ref, w1s_ref, g1_ref, bt1_ref,
    w2_ref, g2_ref, bt2_ref,
    w3m_ref, w3s_ref, g3_ref, bt3_ref,
    w4m_ref, w4s_ref, g4_ref, bt4_ref,
    w5_ref, b5_ref,
    o_ref,
):
    f32 = jnp.float32

    nf = nf_ref[...]   # (BL,1): 1.0 except rows with i == 0      (per-batch)
    nl = nl_ref[...]   # (BL,1): 1.0 except rows with i == L0 - 1 (per-batch)

    def mm(x, w_ref):
        # One MXU matmul; bf16 operands, f32 accumulation.
        return jnp.dot(x.astype(MATMUL_DTYPE), w_ref[...],
                       preferred_element_type=f32)

    def tile_lanes(v, g):
        # (1, C) -> (1, g*C); plain lane concat (tiny, <=5 vregs).
        return v if g == 1 else jnp.concatenate([v] * g, axis=1)

    def fold_groups(v, g, c):
        # (1, g*C) -> (1, C): per-channel sum over the g lane groups.
        acc = v[:, 0:c]
        for k in range(1, g):
            acc = acc + v[:, k * c:(k + 1) * c]
        return acc

    def bn_relu(act, gamma_ref, beta_t_ref, g, c):
        # Training-mode BatchNorm (biased batch var) + ReLU on the full array.
        n = float(g * act.shape[0])
        mean = fold_groups(jnp.sum(act, axis=0, keepdims=True), g, c) / n
        d = act - tile_lanes(mean, g)                       # centered two-pass var
        var = fold_groups(jnp.sum(d * d, axis=0, keepdims=True), g, c) / n
        scale = gamma_ref[...] * jax.lax.rsqrt(var + EPS)
        return jnp.maximum(d * tile_lanes(scale, g) + beta_t_ref[...], 0.0)

    def convt_s1p1(act, wm_ref, ws_ref, g, cin):
        # y[p] = x[p+1] W0 + x[p] W1 + x[p-1] W2, p = g*i + tap.
        # Tap-local terms live in the block-tridiagonal main weight; the two
        # cross-row terms come from rolled boundary lane groups (XLU roll +
        # per-batch boundary mask) through one small packed matmul.
        bl = act.shape[0]
        main = mm(act, wm_ref)
        lo = pltpu.roll(act[:, (g - 1) * cin:g * cin], 1, 0) * nf       # x[p-1]
        hi = pltpu.roll(act[:, 0:cin], bl - 1, 0) * nl                  # x[p+1]
        return main + mm(jnp.concatenate([lo, hi], axis=1), ws_ref)

    # ------------------------------ network ------------------------------
    a = mm(x_ref[...], w0_ref)                      # L0: ConvT k3 s3  32->32, G 1->3
    a = bn_relu(a, g0_ref, bt0_ref, 3, 32)
    a = convt_s1p1(a, w1m_ref, w1s_ref, 3, 32)      # L1: ConvT k3 s1 p1 32->32
    a = bn_relu(a, g1_ref, bt1_ref, 3, 32)
    a = mm(a, w2_ref)                               # L2: ConvT k3 s3  32->64, G 3->9
    a = bn_relu(a, g2_ref, bt2_ref, 9, 64)
    a = convt_s1p1(a, w3m_ref, w3s_ref, 9, 64)      # L3: ConvT k3 s1 p1 64->64
    a = bn_relu(a, g3_ref, bt3_ref, 9, 64)
    a = convt_s1p1(a, w4m_ref, w4s_ref, 9, 64)      # L4: ConvT k3 s1 p1 64->32
    a = bn_relu(a, g4_ref, bt4_ref, 9, 32)
    # L5: ConvT k1 32->10, padded to 128 lanes per tap -> lane-dense store.
    o_ref[...] = mm(a, w5_ref) + b5_ref[...]


# --------------------------------------------------------------------------
# Wrapper-side weight packing (block-structured matrices, built once, bf16).
# --------------------------------------------------------------------------
def _z(r, c):
    return jnp.zeros((r, c), jnp.float32)


def pack_stride3(w, g_in):
    """ConvT(k3,s3) weight (Cin,Cout,3) -> (g_in*Cin, 3*g_in*Cout).

    Block [gin, 3*gin + j] = w[:, :, j]; output tap g' = 3*gin + j.
    """
    cin, cout, _ = w.shape
    rows = []
    for gi in range(g_in):
        blocks = [w[:, :, go - 3 * gi] if 3 * gi <= go < 3 * gi + 3 else _z(cin, cout)
                  for go in range(3 * g_in)]
        rows.append(jnp.concatenate(blocks, axis=1))
    return jnp.concatenate(rows, axis=0).astype(MATMUL_DTYPE)


def pack_s1p1_main(w, g):
    """ConvT(k3,s1,p1) tap-local weight (Cin,Cout,3) -> (g*Cin, g*Cout).

    Block [gin, gout] = W1 if gin==gout, W0 if gin==gout+1, W2 if gin==gout-1.
    """
    cin, cout, _ = w.shape
    rows = []
    for gi in range(g):
        blocks = []
        for go in range(g):
            if gi == go:
                blocks.append(w[:, :, 1])
            elif gi == go + 1:
                blocks.append(w[:, :, 0])
            elif gi == go - 1:
                blocks.append(w[:, :, 2])
            else:
                blocks.append(_z(cin, cout))
        rows.append(jnp.concatenate(blocks, axis=1))
    return jnp.concatenate(rows, axis=0).astype(MATMUL_DTYPE)


def pack_s1p1_shift(w, g):
    """ConvT(k3,s1,p1) cross-row weight (Cin,Cout,3) -> (2*Cin, g*Cout).

    Rows [0:Cin]     : rolled-down last input group  -> output tap 0   via W2.
    Rows [Cin:2*Cin] : rolled-up   first input group -> output tap g-1 via W0.
    """
    cin, cout, _ = w.shape
    top = jnp.concatenate([w[:, :, 2]] + [_z(cin, cout)] * (g - 1), axis=1)
    bot = jnp.concatenate([_z(cin, cout)] * (g - 1) + [w[:, :, 0]], axis=1)
    return jnp.concatenate([top, bot], axis=0).astype(MATMUL_DTYPE)


def pack_pointwise(w, g, pad):
    """ConvT(k1) weight (Cin,Cout,1) -> (g*Cin, g*pad), Cout padded to `pad` lanes."""
    cin, cout, _ = w.shape
    wp = jnp.concatenate([w[:, :, 0], _z(cin, pad - cout)], axis=1)
    rows = []
    for gi in range(g):
        blocks = [wp if go == gi else _z(cin, pad) for go in range(g)]
        rows.append(jnp.concatenate(blocks, axis=1))
    return jnp.concatenate(rows, axis=0).astype(MATMUL_DTYPE)


# --------------------------------------------------------------------------
# Parameters (deterministic, synthetic).  PyTorch ConvTranspose1d weight layout
# is (Cin, Cout, K); BatchNorm1d default init is gamma=1, beta=0.
# NOTE: conv biases of layers 0-4 are kept for module fidelity but are
# mathematically inert under training-mode batch-stat BN and never enter the
# kernel (they WOULD matter in eval mode with running stats).
# --------------------------------------------------------------------------
def init_params(key):
    specs = [
        (32, 32, 3, True),   # ConvT k3 s3
        (32, 32, 3, True),   # ConvT k3 s1 p1
        (32, 64, 3, True),   # ConvT k3 s3
        (64, 64, 3, True),   # ConvT k3 s1 p1
        (64, 32, 3, True),   # ConvT k3 s1 p1
        (32, 10, 1, False),  # ConvT k1
    ]
    params = []
    for i, (cin, cout, k, has_bn) in enumerate(specs):
        kw, kb = jax.random.split(jax.random.fold_in(key, i))
        p = {
            "w": 0.1 * jax.random.normal(kw, (cin, cout, k), jnp.float32),
            "b": 0.1 * jax.random.normal(kb, (cout,), jnp.float32),
        }
        if has_bn:
            p["gamma"] = jnp.ones((cout,), jnp.float32)
            p["beta"] = jnp.zeros((cout,), jnp.float32)
        params.append(p)
    return params


# --------------------------------------------------------------------------
# Forward pass matching bar_color_conv.forward.
# --------------------------------------------------------------------------
def bar_color_conv_forward(h, params):
    f32 = jnp.float32
    B, C, L0, _ = h.shape
    BL = B * L0

    # h.sum(dim=3) + (B,C,L)->(B*L,C) layout: cheap XLA glue outside the kernel.
    x0 = jnp.transpose(jnp.sum(h.astype(f32), axis=3), (0, 2, 1)).reshape(BL, C)

    # Per-batch boundary masks along the base-length axis (row = b*L0 + i),
    # hoisted to the wrapper so the kernel needs no iota/modulo.
    ii = jnp.arange(BL, dtype=jnp.int32) % L0
    nf = (ii != 0).astype(f32).reshape(BL, 1)        # zero where i == 0
    nl = (ii != L0 - 1).astype(f32).reshape(BL, 1)   # zero where i == L0-1

    p0, p1, p2, p3, p4, p5 = params

    def gamma(p):
        return p["gamma"].reshape(1, -1).astype(f32)

    def beta_t(p, g):                                # beta pre-tiled to (1, g*C)
        return jnp.tile(p["beta"].reshape(1, -1).astype(f32), (1, g))

    b5_pad = jnp.concatenate(
        [p5["b"].astype(f32), jnp.zeros((CPAD - p5["b"].shape[0],), f32)]
    ).reshape(1, CPAD)
    b5t = jnp.tile(b5_pad, (1, 9))                   # (1, 9*128)

    ins = [
        x0, nf, nl,
        pack_stride3(p0["w"], 1), gamma(p0), beta_t(p0, 3),
        pack_s1p1_main(p1["w"], 3), pack_s1p1_shift(p1["w"], 3), gamma(p1), beta_t(p1, 3),
        pack_stride3(p2["w"], 3), gamma(p2), beta_t(p2, 9),
        pack_s1p1_main(p3["w"], 9), pack_s1p1_shift(p3["w"], 9), gamma(p3), beta_t(p3, 9),
        pack_s1p1_main(p4["w"], 9), pack_s1p1_shift(p4["w"], 9), gamma(p4), beta_t(p4, 9),
        pack_pointwise(p5["w"], 9, CPAD), b5t,
    ]

    y = pl.pallas_call(
        _bar_color_fused_kernel,
        out_shape=jax.ShapeDtypeStruct((BL, 9 * CPAD), f32),
        in_specs=[pl.BlockSpec(memory_space=pltpu.MemorySpace.VMEM)] * len(ins),
        out_specs=pl.BlockSpec(memory_space=pltpu.MemorySpace.VMEM),
    )(*ins)

    # Tiny XLA glue on the single lane-dense kernel output:
    # row r = b*L0 + i, lane l = tap*128 + c  ->  y_full[b, c, 9*i + tap].
    y = y.reshape(B, L0, 9, CPAD)[..., :10]                    # (B, L0, 9, 10)
    y = jnp.transpose(y, (0, 3, 1, 2)).reshape(B, 10, 9 * L0)  # (B, 10, 324)
    y = y[:, :, 4:-4]                                          # crop [4:-4]
    return jnp.stack([y[:, :5, :], y[:, 5:, :]], axis=2)       # (B, 5, 2, 316)


if __name__ == "__main__":
    key = jax.random.PRNGKey(0)
    kh, kp = jax.random.split(key)

    # h: (B, C=32, L=36, W) — 32*36 = 1152 matches the module's required input dim.
    B, C, L0, W = 2, 32, 36, 16
    h = jax.random.normal(kh, (B, C, L0, W), jnp.float32)
    params = init_params(kp)

    out = jax.jit(bar_color_conv_forward)(h, params)
    out = jax.block_until_ready(out)

    assert out.shape == (B, 5, 2, 9 * L0 - 8), out.shape  # (2, 5, 2, 316)
    assert bool(jnp.all(jnp.isfinite(out)))
    print("KERNEL_OK")
</pallas_src>

<mosaic_0001>
module attributes {stable_mosaic.version = 11 : i64} {
  func.func @_bar_color_fused_kernel(%arg0: memref<72x32xf32, #tpu.memory_space<vmem>>, %arg1: memref<72x1xf32, #tpu.memory_space<vmem>>, %arg2: memref<72x1xf32, #tpu.memory_space<vmem>>, %arg3: memref<32x96xbf16, #tpu.memory_space<vmem>>, %arg4: memref<1x32xf32, #tpu.memory_space<vmem>>, %arg5: memref<1x96xf32, #tpu.memory_space<vmem>>, %arg6: memref<96x96xbf16, #tpu.memory_space<vmem>>, %arg7: memref<64x96xbf16, #tpu.memory_space<vmem>>, %arg8: memref<1x32xf32, #tpu.memory_space<vmem>>, %arg9: memref<1x96xf32, #tpu.memory_space<vmem>>, %arg10: memref<96x576xbf16, #tpu.memory_space<vmem>>, %arg11: memref<1x64xf32, #tpu.memory_space<vmem>>, %arg12: memref<1x576xf32, #tpu.memory_space<vmem>>, %arg13: memref<576x576xbf16, #tpu.memory_space<vmem>>, %arg14: memref<128x576xbf16, #tpu.memory_space<vmem>>, %arg15: memref<1x64xf32, #tpu.memory_space<vmem>>, %arg16: memref<1x576xf32, #tpu.memory_space<vmem>>, %arg17: memref<576x288xbf16, #tpu.memory_space<vmem>>, %arg18: memref<128x288xbf16, #tpu.memory_space<vmem>>, %arg19: memref<1x32xf32, #tpu.memory_space<vmem>>, %arg20: memref<1x288xf32, #tpu.memory_space<vmem>>, %arg21: memref<288x1152xbf16, #tpu.memory_space<vmem>>, %arg22: memref<1x1152xf32, #tpu.memory_space<vmem>>, %arg23: memref<72x1152xf32, #tpu.memory_space<vmem>>) attributes {dimension_semantics = [], scalar_prefetch = 0 : i64, scratch_operands = 0 : i64, tpu.core_type = #tpu.core_type<tc>} {
    %c0 = arith.constant 0 : index
    %c0_0 = arith.constant 0 : index
    %0 = vector.load %arg1[%c0, %c0_0] : memref<72x1xf32, #tpu.memory_space<vmem>>, vector<72x1xf32>
    %c0_1 = arith.constant 0 : index
    %c0_2 = arith.constant 0 : index
    %1 = vector.load %arg2[%c0_1, %c0_2] : memref<72x1xf32, #tpu.memory_space<vmem>>, vector<72x1xf32>
    %c0_3 = arith.constant 0 : index
    %c0_4 = arith.constant 0 : index
    %2 = vector.load %arg0[%c0_3, %c0_4] : memref<72x32xf32, #tpu.memory_space<vmem>>, vector<72x32xf32>
    %3 = arith.truncf %2 : vector<72x32xf32> to vector<72x32xbf16>
    %c0_5 = arith.constant 0 : index
    %c0_6 = arith.constant 0 : index
    %4 = vector.load %arg3[%c0_5, %c0_6] : memref<32x96xbf16, #tpu.memory_space<vmem>>, vector<32x96xbf16>
    %cst = arith.constant dense<0.000000e+00> : vector<72x96xf32>
    %5 = tpu.matmul %3, %4, %cst {dimension_numbers = #tpu.dot_dimension_numbers<[1], [0], [0], [1], [0, 0, 1, 1], [], []>} : vector<72x32xbf16>, vector<32x96xbf16>, vector<72x96xf32> -> vector<72x96xf32>
    %cst_7 = arith.constant dense<0.000000e+00> : vector<96xf32>
    %6 = vector.multi_reduction <add>, %5, %cst_7 [0] : vector<72x96xf32> to vector<96xf32>
    %7 = vector.shape_cast %6 : vector<96xf32> to vector<1x96xf32>
    %8 = vector.extract_strided_slice %7 {offsets = [0, 0], sizes = [1, 32], strides = [1, 1]} : vector<1x96xf32> to vector<1x32xf32>
    %9 = vector.extract_strided_slice %7 {offsets = [0, 32], sizes = [1, 32], strides = [1, 1]} : vector<1x96xf32> to vector<1x32xf32>
    %10 = arith.addf %8, %9 : vector<1x32xf32>
    %11 = vector.extract_strided_slice %7 {offsets = [0, 64], sizes = [1, 32], strides = [1, 1]} : vector<1x96xf32> to vector<1x32xf32>
    %12 = arith.addf %10, %11 : vector<1x32xf32>
    %cst_8 = arith.constant 2.160000e+02 : f32
    %13 = vector.broadcast %cst_8 : f32 to vector<1x32xf32>
    %14 = arith.divf %12, %13 : vector<1x32xf32>
    %15 = tpu.concatenate %14, %14, %14 in 1 : vector<1x32xf32>, vector<1x32xf32>, vector<1x32xf32> -> vector<1x96xf32>
    %16 = vector.broadcast %15 : vector<1x96xf32> to vector<72x96xf32>
    %17 = arith.subf %5, %16 : vector<72x96xf32>
    %18 = arith.mulf %17, %17 : vector<72x96xf32>
    %cst_9 = arith.constant dense<0.000000e+00> : vector<96xf32>
    %19 = vector.multi_reduction <add>, %18, %cst_9 [0] : vector<72x96xf32> to vector<96xf32>
    %20 = vector.shape_cast %19 : vector<96xf32> to vector<1x96xf32>
    %21 = vector.extract_strided_slice %20 {offsets = [0, 0], sizes = [1, 32], strides = [1, 1]} : vector<1x96xf32> to vector<1x32xf32>
    %22 = vector.extract_strided_slice %20 {offsets = [0, 32], sizes = [1, 32], strides = [1, 1]} : vector<1x96xf32> to vector<1x32xf32>
    %23 = arith.addf %21, %22 : vector<1x32xf32>
    %24 = vector.extract_strided_slice %20 {offsets = [0, 64], sizes = [1, 32], strides = [1, 1]} : vector<1x96xf32> to vector<1x32xf32>
    %25 = arith.addf %23, %24 : vector<1x32xf32>
    %cst_10 = arith.constant 2.160000e+02 : f32
    %26 = vector.broadcast %cst_10 : f32 to vector<1x32xf32>
    %27 = arith.divf %25, %26 : vector<1x32xf32>
    %c0_11 = arith.constant 0 : index
    %c0_12 = arith.constant 0 : index
    %28 = vector.load %arg4[%c0_11, %c0_12] : memref<1x32xf32, #tpu.memory_space<vmem>>, vector<1x32xf32>
    %cst_13 = arith.constant 9.99999974E-6 : f32
    %29 = vector.broadcast %cst_13 : f32 to vector<1x32xf32>
    %30 = arith.addf %27, %29 : vector<1x32xf32>
    %31 = math.rsqrt %30 : vector<1x32xf32>
    %32 = arith.mulf %28, %31 : vector<1x32xf32>
    %33 = tpu.concatenate %32, %32, %32 in 1 : vector<1x32xf32>, vector<1x32xf32>, vector<1x32xf32> -> vector<1x96xf32>
    %34 = vector.broadcast %33 : vector<1x96xf32> to vector<72x96xf32>
    %35 = arith.mulf %17, %34 : vector<72x96xf32>
    %c0_14 = arith.constant 0 : index
    %c0_15 = arith.constant 0 : index
    %36 = vector.load %arg5[%c0_14, %c0_15] : memref<1x96xf32, #tpu.memory_space<vmem>>, vector<1x96xf32>
    %37 = vector.broadcast %36 : vector<1x96xf32> to vector<72x96xf32>
    %38 = arith.addf %35, %37 : vector<72x96xf32>
    %cst_16 = arith.constant 0.000000e+00 : f32
    %39 = vector.broadcast %cst_16 : f32 to vector<72x96xf32>
    %40 = arith.maximumf %38, %39 : vector<72x96xf32>
    %41 = arith.truncf %40 : vector<72x96xf32> to vector<72x96xbf16>
    %c0_17 = arith.constant 0 : index
    %c0_18 = arith.constant 0 : index
    %42 = vector.load %arg6[%c0_17, %c0_18] : memref<96x96xbf16, #tpu.memory_space<vmem>>, vector<96x96xbf16>
    %cst_19 = arith.constant dense<0.000000e+00> : vector<72x96xf32>
    %43 = tpu.matmul %41, %42, %cst_19 {dimension_numbers = #tpu.dot_dimension_numbers<[1], [0], [0], [1], [0, 0, 1, 1], [], []>} : vector<72x96xbf16>, vector<96x96xbf16>, vector<72x96xf32> -> vector<72x96xf32>
    %44 = vector.extract_strided_slice %40 {offsets = [0, 64], sizes = [72, 32], strides = [1, 1]} : vector<72x96xf32> to vector<72x32xf32>
    %c1_i32 = arith.constant 1 : i32
    %45 = tpu.dynamic_rotate %44 by %c1_i32 dim 0 : vector<72x32xf32>, i32 -> vector<72x32xf32>
    %46 = vector.broadcast %0 : vector<72x1xf32> to vector<72x32xf32>
    %47 = arith.mulf %45, %46 : vector<72x32xf32>
    %48 = vector.extract_strided_slice %40 {offsets = [0, 0], sizes = [72, 32], strides = [1, 1]} : vector<72x96xf32> to vector<72x32xf32>
    %c71_i32 = arith.constant 71 : i32
    %49 = tpu.dynamic_rotate %48 by %c71_i32 dim 0 : vector<72x32xf32>, i32 -> vector<72x32xf32>
    %50 = vector.broadcast %1 : vector<72x1xf32> to vector<72x32xf32>
    %51 = arith.mulf %49, %50 : vector<72x32xf32>
    %52 = tpu.concatenate %47, %51 in 1 : vector<72x32xf32>, vector<72x32xf32> -> vector<72x64xf32>
    %53 = arith.truncf %52 : vector<72x64xf32> to vector<72x64xbf16>
    %c0_20 = arith.constant 0 : index
    %c0_21 = arith.constant 0 : index
    %54 = vector.load %arg7[%c0_20, %c0_21] : memref<64x96xbf16, #tpu.memory_space<vmem>>, vector<64x96xbf16>
    %cst_22 = arith.constant dense<0.000000e+00> : vector<72x96xf32>
    %55 = tpu.matmul %53, %54, %cst_22 {dimension_numbers = #tpu.dot_dimension_numbers<[1], [0], [0], [1], [0, 0, 1, 1], [], []>} : vector<72x64xbf16>, vector<64x96xbf16>, vector<72x96xf32> -> vector<72x96xf32>
    %56 = arith.addf %43, %55 : vector<72x96xf32>
    %cst_23 = arith.constant dense<0.000000e+00> : vector<96xf32>
    %57 = vector.multi_reduction <add>, %56, %cst_23 [0] : vector<72x96xf32> to vector<96xf32>
    %58 = vector.shape_cast %57 : vector<96xf32> to vector<1x96xf32>
    %59 = vector.extract_strided_slice %58 {offsets = [0, 0], sizes = [1, 32], strides = [1, 1]} : vector<1x96xf32> to vector<1x32xf32>
    %60 = vector.extract_strided_slice %58 {offsets = [0, 32], sizes = [1, 32], strides = [1, 1]} : vector<1x96xf32> to vector<1x32xf32>
    %61 = arith.addf %59, %60 : vector<1x32xf32>
    %62 = vector.extract_strided_slice %58 {offsets = [0, 64], sizes = [1, 32], strides = [1, 1]} : vector<1x96xf32> to vector<1x32xf32>
    %63 = arith.addf %61, %62 : vector<1x32xf32>
    %cst_24 = arith.constant 2.160000e+02 : f32
    %64 = vector.broadcast %cst_24 : f32 to vector<1x32xf32>
    %65 = arith.divf %63, %64 : vector<1x32xf32>
    %66 = tpu.concatenate %65, %65, %65 in 1 : vector<1x32xf32>, vector<1x32xf32>, vector<1x32xf32> -> vector<1x96xf32>
    %67 = vector.broadcast %66 : vector<1x96xf32> to vector<72x96xf32>
    %68 = arith.subf %56, %67 : vector<72x96xf32>
    %69 = arith.mulf %68, %68 : vector<72x96xf32>
    %cst_25 = arith.constant dense<0.000000e+00> : vector<96xf32>
    %70 = vector.multi_reduction <add>, %69, %cst_25 [0] : vector<72x96xf32> to vector<96xf32>
    %71 = vector.shape_cast %70 : vector<96xf32> to vector<1x96xf32>
    %72 = vector.extract_strided_slice %71 {offsets = [0, 0], sizes = [1, 32], strides = [1, 1]} : vector<1x96xf32> to vector<1x32xf32>
    %73 = vector.extract_strided_slice %71 {offsets = [0, 32], sizes = [1, 32], strides = [1, 1]} : vector<1x96xf32> to vector<1x32xf32>
    %74 = arith.addf %72, %73 : vector<1x32xf32>
    %75 = vector.extract_strided_slice %71 {offsets = [0, 64], sizes = [1, 32], strides = [1, 1]} : vector<1x96xf32> to vector<1x32xf32>
    %76 = arith.addf %74, %75 : vector<1x32xf32>
    %cst_26 = arith.constant 2.160000e+02 : f32
    %77 = vector.broadcast %cst_26 : f32 to vector<1x32xf32>
    %78 = arith.divf %76, %77 : vector<1x32xf32>
    %c0_27 = arith.constant 0 : index
    %c0_28 = arith.constant 0 : index
    %79 = vector.load %arg8[%c0_27, %c0_28] : memref<1x32xf32, #tpu.memory_space<vmem>>, vector<1x32xf32>
    %cst_29 = arith.constant 9.99999974E-6 : f32
    %80 = vector.broadcast %cst_29 : f32 to vector<1x32xf32>
    %81 = arith.addf %78, %80 : vector<1x32xf32>
    %82 = math.rsqrt %81 : vector<1x32xf32>
    %83 = arith.mulf %79, %82 : vector<1x32xf32>
    %84 = tpu.concatenate %83, %83, %83 in 1 : vector<1x32xf32>, vector<1x32xf32>, vector<1x32xf32> -> vector<1x96xf32>
    %85 = vector.broadcast %84 : vector<1x96xf32> to vector<72x96xf32>
    %86 = arith.mulf %68, %85 : vector<72x96xf32>
    %c0_30 = arith.constant 0 : index
    %c0_31 = arith.constant 0 : index
    %87 = vector.load %arg9[%c0_30, %c0_31] : memref<1x96xf32, #tpu.memory_space<vmem>>, vector<1x96xf32>
    %88 = vector.broadcast %87 : vector<1x96xf32> to vector<72x96xf32>
    %89 = arith.addf %86, %88 : vector<72x96xf32>
    %cst_32 = arith.constant 0.000000e+00 : f32
    %90 = vector.broadcast %cst_32 : f32 to vector<72x96xf32>
    %91 = arith.maximumf %89, %90 : vector<72x96xf32>
    %92 = arith.truncf %91 : vector<72x96xf32> to vector<72x96xbf16>
    %c0_33 = arith.constant 0 : index
    %c0_34 = arith.constant 0 : index
    %93 = vector.load %arg10[%c0_33, %c0_34] : memref<96x576xbf16, #tpu.memory_space<vmem>>, vector<96x576xbf16>
    %cst_35 = arith.constant dense<0.000000e+00> : vector<72x576xf32>
    %94 = tpu.matmul %92, %93, %cst_35 {dimension_numbers = #tpu.dot_dimension_numbers<[1], [0], [0], [1], [0, 0, 1, 1], [], []>} : vector<72x96xbf16>, vector<96x576xbf16>, vector<72x576xf32> -> vector<72x576xf32>
    %cst_36 = arith.constant dense<0.000000e+00> : vector<576xf32>
    %95 = vector.multi_reduction <add>, %94, %cst_36 [0] : vector<72x576xf32> to vector<576xf32>
    %96 = vector.shape_cast %95 : vector<576xf32> to vector<1x576xf32>
    %97 = vector.extract_strided_slice %96 {offsets = [0, 0], sizes = [1, 64], strides = [1, 1]} : vector<1x576xf32> to vector<1x64xf32>
    %98 = vector.extract_strided_slice %96 {offsets = [0, 64], sizes = [1, 64], strides = [1, 1]} : vector<1x576xf32> to vector<1x64xf32>
    %99 = arith.addf %97, %98 : vector<1x64xf32>
    %100 = vector.extract_strided_slice %96 {offsets = [0, 128], sizes = [1, 64], strides = [1, 1]} : vector<1x576xf32> to vector<1x64xf32>
    %101 = arith.addf %99, %100 : vector<1x64xf32>
    %102 = vector.extract_strided_slice %96 {offsets = [0, 192], sizes = [1, 64], strides = [1, 1]} : vector<1x576xf32> to vector<1x64xf32>
    %103 = arith.addf %101, %102 : vector<1x64xf32>
    %104 = vector.extract_strided_slice %96 {offsets = [0, 256], sizes = [1, 64], strides = [1, 1]} : vector<1x576xf32> to vector<1x64xf32>
    %105 = arith.addf %103, %104 : vector<1x64xf32>
    %106 = vector.extract_strided_slice %96 {offsets = [0, 320], sizes = [1, 64], strides = [1, 1]} : vector<1x576xf32> to vector<1x64xf32>
    %107 = arith.addf %105, %106 : vector<1x64xf32>
    %108 = vector.extract_strided_slice %96 {offsets = [0, 384], sizes = [1, 64], strides = [1, 1]} : vector<1x576xf32> to vector<1x64xf32>
    %109 = arith.addf %107, %108 : vector<1x64xf32>
    %110 = vector.extract_strided_slice %96 {offsets = [0, 448], sizes = [1, 64], strides = [1, 1]} : vector<1x576xf32> to vector<1x64xf32>
    %111 = arith.addf %109, %110 : vector<1x64xf32>
    %112 = vector.extract_strided_slice %96 {offsets = [0, 512], sizes = [1, 64], strides = [1, 1]} : vector<1x576xf32> to vector<1x64xf32>
    %113 = arith.addf %111, %112 : vector<1x64xf32>
    %cst_37 = arith.constant 6.480000e+02 : f32
    %114 = vector.broadcast %cst_37 : f32 to vector<1x64xf32>
    %115 = arith.divf %113, %114 : vector<1x64xf32>
    %116 = tpu.concatenate %115, %115, %115, %115, %115, %115, %115, %115, %115 in 1 : vector<1x64xf32>, vector<1x64xf32>, vector<1x64xf32>, vector<1x64xf32>, vector<1x64xf32>, vector<1x64xf32>, vector<1x64xf32>, vector<1x64xf32>, vector<1x64xf32> -> vector<1x576xf32>
    %117 = vector.broadcast %116 : vector<1x576xf32> to vector<72x576xf32>
    %118 = arith.subf %94, %117 : vector<72x576xf32>
    %119 = arith.mulf %118, %118 : vector<72x576xf32>
    %cst_38 = arith.constant dense<0.000000e+00> : vector<576xf32>
    %120 = vector.multi_reduction <add>, %119, %cst_38 [0] : vector<72x576xf32> to vector<576xf32>
    %121 = vector.shape_cast %120 : vector<576xf32> to vector<1x576xf32>
    %122 = vector.extract_strided_slice %121 {offsets = [0, 0], sizes = [1, 64], strides = [1, 1]} : vector<1x576xf32> to vector<1x64xf32>
    %123 = vector.extract_strided_slice %121 {offsets = [0, 64], sizes = [1, 64], strides = [1, 1]} : vector<1x576xf32> to vector<1x64xf32>
    %124 = arith.addf %122, %123 : vector<1x64xf32>
    %125 = vector.extract_strided_slice %121 {offsets = [0, 128], sizes = [1, 64], strides = [1, 1]} : vector<1x576xf32> to vector<1x64xf32>
    %126 = arith.addf %124, %125 : vector<1x64xf32>
    %127 = vector.extract_strided_slice %121 {offsets = [0, 192], sizes = [1, 64], strides = [1, 1]} : vector<1x576xf32> to vector<1x64xf32>
    %128 = arith.addf %126, %127 : vector<1x64xf32>
    %129 = vector.extract_strided_slice %121 {offsets = [0, 256], sizes = [1, 64], strides = [1, 1]} : vector<1x576xf32> to vector<1x64xf32>
    %130 = arith.addf %128, %129 : vector<1x64xf32>
    %131 = vector.extract_strided_slice %121 {offsets = [0, 320], sizes = [1, 64], strides = [1, 1]} : vector<1x576xf32> to vector<1x64xf32>
    %132 = arith.addf %130, %131 : vector<1x64xf32>
    %133 = vector.extract_strided_slice %121 {offsets = [0, 384], sizes = [1, 64], strides = [1, 1]} : vector<1x576xf32> to vector<1x64xf32>
    %134 = arith.addf %132, %133 : vector<1x64xf32>
    %135 = vector.extract_strided_slice %121 {offsets = [0, 448], sizes = [1, 64], strides = [1, 1]} : vector<1x576xf32> to vector<1x64xf32>
    %136 = arith.addf %134, %135 : vector<1x64xf32>
    %137 = vector.extract_strided_slice %121 {offsets = [0, 512], sizes = [1, 64], strides = [1, 1]} : vector<1x576xf32> to vector<1x64xf32>
    %138 = arith.addf %136, %137 : vector<1x64xf32>
    %cst_39 = arith.constant 6.480000e+02 : f32
    %139 = vector.broadcast %cst_39 : f32 to vector<1x64xf32>
    %140 = arith.divf %138, %139 : vector<1x64xf32>
    %c0_40 = arith.constant 0 : index
    %c0_41 = arith.constant 0 : index
    %141 = vector.load %arg11[%c0_40, %c0_41] : memref<1x64xf32, #tpu.memory_space<vmem>>, vector<1x64xf32>
    %cst_42 = arith.constant 9.99999974E-6 : f32
    %142 = vector.broadcast %cst_42 : f32 to vector<1x64xf32>
    %143 = arith.addf %140, %142 : vector<1x64xf32>
    %144 = math.rsqrt %143 : vector<1x64xf32>
    %145 = arith.mulf %141, %144 : vector<1x64xf32>
    %146 = tpu.concatenate %145, %145, %145, %145, %145, %145, %145, %145, %145 in 1 : vector<1x64xf32>, vector<1x64xf32>, vector<1x64xf32>, vector<1x64xf32>, vector<1x64xf32>, vector<1x64xf32>, vector<1x64xf32>, vector<1x64xf32>, vector<1x64xf32> -> vector<1x576xf32>
    %147 = vector.broadcast %146 : vector<1x576xf32> to vector<72x576xf32>
    %148 = arith.mulf %118, %147 : vector<72x576xf32>
    %c0_43 = arith.constant 0 : index
    %c0_44 = arith.constant 0 : index
    %149 = vector.load %arg12[%c0_43, %c0_44] : memref<1x576xf32, #tpu.memory_space<vmem>>, vector<1x576xf32>
    %150 = vector.broadcast %149 : vector<1x576xf32> to vector<72x576xf32>
    %151 = arith.addf %148, %150 : vector<72x576xf32>
    %cst_45 = arith.constant 0.000000e+00 : f32
    %152 = vector.broadcast %cst_45 : f32 to vector<72x576xf32>
    %153 = arith.maximumf %151, %152 : vector<72x576xf32>
    %154 = arith.truncf %153 : vector<72x576xf32> to vector<72x576xbf16>
    %c0_46 = arith.constant 0 : index
    %c0_47 = arith.constant 0 : index
    %155 = vector.load %arg13[%c0_46, %c0_47] : memref<576x576xbf16, #tpu.memory_space<vmem>>, vector<576x576xbf16>
    %cst_48 = arith.constant dense<0.000000e+00> : vector<72x576xf32>
    %156 = tpu.matmul %154, %155, %cst_48 {dimension_numbers = #tpu.dot_dimension_numbers<[1], [0], [0], [1], [0, 0, 1, 1], [], []>} : vector<72x576xbf16>, vector<576x576xbf16>, vector<72x576xf32> -> vector<72x576xf32>
    %157 = vector.extract_strided_slice %153 {offsets = [0, 512], sizes = [72, 64], strides = [1, 1]} : vector<72x576xf32> to vector<72x64xf32>
    %c1_i32_49 = arith.constant 1 : i32
    %158 = tpu.dynamic_rotate %157 by %c1_i32_49 dim 0 : vector<72x64xf32>, i32 -> vector<72x64xf32>
    %159 = vector.broadcast %0 : vector<72x1xf32> to vector<72x64xf32>
    %160 = arith.mulf %158, %159 : vector<72x64xf32>
    %161 = vector.extract_strided_slice %153 {offsets = [0, 0], sizes = [72, 64], strides = [1, 1]} : vector<72x576xf32> to vector<72x64xf32>
    %c71_i32_50 = arith.constant 71 : i32
    %162 = tpu.dynamic_rotate %161 by %c71_i32_50 dim 0 : vector<72x64xf32>, i32 -> vector<72x64xf32>
    %163 = vector.broadcast %1 : vector<72x1xf32> to vector<72x64xf32>
    %164 = arith.mulf %162, %163 : vector<72x64xf32>
    %165 = tpu.concatenate %160, %164 in 1 : vector<72x64xf32>, vector<72x64xf32> -> vector<72x128xf32>
    %166 = arith.truncf %165 : vector<72x128xf32> to vector<72x128xbf16>
    %c0_51 = arith.constant 0 : index
    %c0_52 = arith.constant 0 : index
    %167 = vector.load %arg14[%c0_51, %c0_52] : memref<128x576xbf16, #tpu.memory_space<vmem>>, vector<128x576xbf16>
    %cst_53 = arith.constant dense<0.000000e+00> : vector<72x576xf32>
    %168 = tpu.matmul %166, %167, %cst_53 {dimension_numbers = #tpu.dot_dimension_numbers<[1], [0], [0], [1], [0, 0, 1, 1], [], []>} : vector<72x128xbf16>, vector<128x576xbf16>, vector<72x576xf32> -> vector<72x576xf32>
    %169 = arith.addf %156, %168 : vector<72x576xf32>
    %cst_54 = arith.constant dense<0.000000e+00> : vector<576xf32>
    %170 = vector.multi_reduction <add>, %169, %cst_54 [0] : vector<72x576xf32> to vector<576xf32>
    %171 = vector.shape_cast %170 : vector<576xf32> to vector<1x576xf32>
    %172 = vector.extract_strided_slice %171 {offsets = [0, 0], sizes = [1, 64], strides = [1, 1]} : vector<1x576xf32> to vector<1x64xf32>
    %173 = vector.extract_strided_slice %171 {offsets = [0, 64], sizes = [1, 64], strides = [1, 1]} : vector<1x576xf32> to vector<1x64xf32>
    %174 = arith.addf %172, %173 : vector<1x64xf32>
    %175 = vector.extract_strided_slice %171 {offsets = [0, 128], sizes = [1, 64], strides = [1, 1]} : vector<1x576xf32> to vector<1x64xf32>
    %176 = arith.addf %174, %175 : vector<1x64xf32>
    %177 = vector.extract_strided_slice %171 {offsets = [0, 192], sizes = [1, 64], strides = [1, 1]} : vector<1x576xf32> to vector<1x64xf32>
    %178 = arith.addf %176, %177 : vector<1x64xf32>
    %179 = vector.extract_strided_slice %171 {offsets = [0, 256], sizes = [1, 64], strides = [1, 1]} : vector<1x576xf32> to vector<1x64xf32>
    %180 = arith.addf %178, %179 : vector<1x64xf32>
    %181 = vector.extract_strided_slice %171 {offsets = [0, 320], sizes = [1, 64], strides = [1, 1]} : vector<1x576xf32> to vector<1x64xf32>
    %182 = arith.addf %180, %181 : vector<1x64xf32>
    %183 = vector.extract_strided_slice %171 {offsets = [0, 384], sizes = [1, 64], strides = [1, 1]} : vector<1x576xf32> to vector<1x64xf32>
    %184 = arith.addf %182, %183 : vector<1x64xf32>
    %185 = vector.extract_strided_slice %171 {offsets = [0, 448], sizes = [1, 64], strides = [1, 1]} : vector<1x576xf32> to vector<1x64xf32>
    %186 = arith.addf %184, %185 : vector<1x64xf32>
    %187 = vector.extract_strided_slice %171 {offsets = [0, 512], sizes = [1, 64], strides = [1, 1]} : vector<1x576xf32> to vector<1x64xf32>
    %188 = arith.addf %186, %187 : vector<1x64xf32>
    %cst_55 = arith.constant 6.480000e+02 : f32
    %189 = vector.broadcast %cst_55 : f32 to vector<1x64xf32>
    %190 = arith.divf %188, %189 : vector<1x64xf32>
    %191 = tpu.concatenate %190, %190, %190, %190, %190, %190, %190, %190, %190 in 1 : vector<1x64xf32>, vector<1x64xf32>, vector<1x64xf32>, vector<1x64xf32>, vector<1x64xf32>, vector<1x64xf32>, vector<1x64xf32>, vector<1x64xf32>, vector<1x64xf32> -> vector<1x576xf32>
    %192 = vector.broadcast %191 : vector<1x576xf32> to vector<72x576xf32>
    %193 = arith.subf %169, %192 : vector<72x576xf32>
    %194 = arith.mulf %193, %193 : vector<72x576xf32>
    %cst_56 = arith.constant dense<0.000000e+00> : vector<576xf32>
    %195 = vector.multi_reduction <add>, %194, %cst_56 [0] : vector<72x576xf32> to vector<576xf32>
    %196 = vector.shape_cast %195 : vector<576xf32> to vector<1x576xf32>
    %197 = vector.extract_strided_slice %196 {offsets = [0, 0], sizes = [1, 64], strides = [1, 1]} : vector<1x576xf32> to vector<1x64xf32>
    %198 = vector.extract_strided_slice %196 {offsets = [0, 64], sizes = [1, 64], strides = [1, 1]} : vector<1x576xf32> to vector<1x64xf32>
    %199 = arith.addf %197, %198 : vector<1x64xf32>
    %200 = vector.extract_strided_slice %196 {offsets = [0, 128], sizes = [1, 64], strides = [1, 1]} : vector<1x576xf32> to vector<1x64xf32>
    %201 = arith.addf %199, %200 : vector<1x64xf32>
    %202 = vector.extract_strided_slice %196 {offsets = [0, 192], sizes = [1, 64], strides = [1, 1]} : vector<1x576xf32> to vector<1x64xf32>
    %203 = arith.addf %201, %202 : vector<1x64xf32>
    %204 = vector.extract_strided_slice %196 {offsets = [0, 256], sizes = [1, 64], strides = [1, 1]} : vector<1x576xf32> to vector<1x64xf32>
    %205 = arith.addf %203, %204 : vector<1x64xf32>
    %206 = vector.extract_strided_slice %196 {offsets = [0, 320], sizes = [1, 64], strides = [1, 1]} : vector<1x576xf32> to vector<1x64xf32>
    %207 = arith.addf %205, %206 : vector<1x64xf32>
    %208 = vector.extract_strided_slice %196 {offsets = [0, 384], sizes = [1, 64], strides = [1, 1]} : vector<1x576xf32> to vector<1x64xf32>
    %209 = arith.addf %207, %208 : vector<1x64xf32>
    %210 = vector.extract_strided_slice %196 {offsets = [0, 448], sizes = [1, 64], strides = [1, 1]} : vector<1x576xf32> to vector<1x64xf32>
    %211 = arith.addf %209, %210 : vector<1x64xf32>
    %212 = vector.extract_strided_slice %196 {offsets = [0, 512], sizes = [1, 64], strides = [1, 1]} : vector<1x576xf32> to vector<1x64xf32>
    %213 = arith.addf %211, %212 : vector<1x64xf32>
    %cst_57 = arith.constant 6.480000e+02 : f32
    %214 = vector.broadcast %cst_57 : f32 to vector<1x64xf32>
    %215 = arith.divf %213, %214 : vector<1x64xf32>
    %c0_58 = arith.constant 0 : index
    %c0_59 = arith.constant 0 : index
    %216 = vector.load %arg15[%c0_58, %c0_59] : memref<1x64xf32, #tpu.memory_space<vmem>>, vector<1x64xf32>
    %cst_60 = arith.constant 9.99999974E-6 : f32
    %217 = vector.broadcast %cst_60 : f32 to vector<1x64xf32>
    %218 = arith.addf %215, %217 : vector<1x64xf32>
    %219 = math.rsqrt %218 : vector<1x64xf32>
    %220 = arith.mulf %216, %219 : vector<1x64xf32>
    %221 = tpu.concatenate %220, %220, %220, %220, %220, %220, %220, %220, %220 in 1 : vector<1x64xf32>, vector<1x64xf32>, vector<1x64xf32>, vector<1x64xf32>, vector<1x64xf32>, vector<1x64xf32>, vector<1x64xf32>, vector<1x64xf32>, vector<1x64xf32> -> vector<1x576xf32>
    %222 = vector.broadcast %221 : vector<1x576xf32> to vector<72x576xf32>
    %223 = arith.mulf %193, %222 : vector<72x576xf32>
    %c0_61 = arith.constant 0 : index
    %c0_62 = arith.constant 0 : index
    %224 = vector.load %arg16[%c0_61, %c0_62] : memref<1x576xf32, #tpu.memory_space<vmem>>, vector<1x576xf32>
    %225 = vector.broadcast %224 : vector<1x576xf32> to vector<72x576xf32>
    %226 = arith.addf %223, %225 : vector<72x576xf32>
    %cst_63 = arith.constant 0.000000e+00 : f32
    %227 = vector.broadcast %cst_63 : f32 to vector<72x576xf32>
    %228 = arith.maximumf %226, %227 : vector<72x576xf32>
    %229 = arith.truncf %228 : vector<72x576xf32> to vector<72x576xbf16>
    %c0_64 = arith.constant 0 : index
    %c0_65 = arith.constant 0 : index
    %230 = vector.load %arg17[%c0_64, %c0_65] : memref<576x288xbf16, #tpu.memory_space<vmem>>, vector<576x288xbf16>
    %cst_66 = arith.constant dense<0.000000e+00> : vector<72x288xf32>
    %231 = tpu.matmul %229, %230, %cst_66 {dimension_numbers = #tpu.dot_dimension_numbers<[1], [0], [0], [1], [0, 0, 1, 1], [], []>} : vector<72x576xbf16>, vector<576x288xbf16>, vector<72x288xf32> -> vector<72x288xf32>
    %232 = vector.extract_strided_slice %228 {offsets = [0, 512], sizes = [72, 64], strides = [1, 1]} : vector<72x576xf32> to vector<72x64xf32>
    %c1_i32_67 = arith.constant 1 : i32
    %233 = tpu.dynamic_rotate %232 by %c1_i32_67 dim 0 : vector<72x64xf32>, i32 -> vector<72x64xf32>
    %234 = vector.broadcast %0 : vector<72x1xf32> to vector<72x64xf32>
    %235 = arith.mulf %233, %234 : vector<72x64xf32>
    %236 = vector.extract_strided_slice %228 {offsets = [0, 0], sizes = [72, 64], strides = [1, 1]} : vector<72x576xf32> to vector<72x64xf32>
    %c71_i32_68 = arith.constant 71 : i32
    %237 = tpu.dynamic_rotate %236 by %c71_i32_68 dim 0 : vector<72x64xf32>, i32 -> vector<72x64xf32>
    %238 = vector.broadcast %1 : vector<72x1xf32> to vector<72x64xf32>
    %239 = arith.mulf %237, %238 : vector<72x64xf32>
    %240 = tpu.concatenate %235, %239 in 1 : vector<72x64xf32>, vector<72x64xf32> -> vector<72x128xf32>
    %241 = arith.truncf %240 : vector<72x128xf32> to vector<72x128xbf16>
    %c0_69 = arith.constant 0 : index
    %c0_70 = arith.constant 0 : index
    %242 = vector.load %arg18[%c0_69, %c0_70] : memref<128x288xbf16, #tpu.memory_space<vmem>>, vector<128x288xbf16>
    %cst_71 = arith.constant dense<0.000000e+00> : vector<72x288xf32>
    %243 = tpu.matmul %241, %242, %cst_71 {dimension_numbers = #tpu.dot_dimension_numbers<[1], [0], [0], [1], [0, 0, 1, 1], [], []>} : vector<72x128xbf16>, vector<128x288xbf16>, vector<72x288xf32> -> vector<72x288xf32>
    %244 = arith.addf %231, %243 : vector<72x288xf32>
    %cst_72 = arith.constant dense<0.000000e+00> : vector<288xf32>
    %245 = vector.multi_reduction <add>, %244, %cst_72 [0] : vector<72x288xf32> to vector<288xf32>
    %246 = vector.shape_cast %245 : vector<288xf32> to vector<1x288xf32>
    %247 = vector.extract_strided_slice %246 {offsets = [0, 0], sizes = [1, 32], strides = [1, 1]} : vector<1x288xf32> to vector<1x32xf32>
    %248 = vector.extract_strided_slice %246 {offsets = [0, 32], sizes = [1, 32], strides = [1, 1]} : vector<1x288xf32> to vector<1x32xf32>
    %249 = arith.addf %247, %248 : vector<1x32xf32>
    %250 = vector.extract_strided_slice %246 {offsets = [0, 64], sizes = [1, 32], strides = [1, 1]} : vector<1x288xf32> to vector<1x32xf32>
    %251 = arith.addf %249, %250 : vector<1x32xf32>
    %252 = vector.extract_strided_slice %246 {offsets = [0, 96], sizes = [1, 32], strides = [1, 1]} : vector<1x288xf32> to vector<1x32xf32>
    %253 = arith.addf %251, %252 : vector<1x32xf32>
    %254 = vector.extract_strided_slice %246 {offsets = [0, 128], sizes = [1, 32], strides = [1, 1]} : vector<1x288xf32> to vector<1x32xf32>
    %255 = arith.addf %253, %254 : vector<1x32xf32>
    %256 = vector.extract_strided_slice %246 {offsets = [0, 160], sizes = [1, 32], strides = [1, 1]} : vector<1x288xf32> to vector<1x32xf32>
    %257 = arith.addf %255, %256 : vector<1x32xf32>
    %258 = vector.extract_strided_slice %246 {offsets = [0, 192], sizes = [1, 32], strides = [1, 1]} : vector<1x288xf32> to vector<1x32xf32>
    %259 = arith.addf %257, %258 : vector<1x32xf32>
    %260 = vector.extract_strided_slice %246 {offsets = [0, 224], sizes = [1, 32], strides = [1, 1]} : vector<1x288xf32> to vector<1x32xf32>
    %261 = arith.addf %259, %260 : vector<1x32xf32>
    %262 = vector.extract_strided_slice %246 {offsets = [0, 256], sizes = [1, 32], strides = [1, 1]} : vector<1x288xf32> to vector<1x32xf32>
    %263 = arith.addf %261, %262 : vector<1x32xf32>
    %cst_73 = arith.constant 6.480000e+02 : f32
    %264 = vector.broadcast %cst_73 : f32 to vector<1x32xf32>
    %265 = arith.divf %263, %264 : vector<1x32xf32>
    %266 = tpu.concatenate %265, %265, %265, %265, %265, %265, %265, %265, %265 in 1 : vector<1x32xf32>, vector<1x32xf32>, vector<1x32xf32>, vector<1x32xf32>, vector<1x32xf32>, vector<1x32xf32>, vector<1x32xf32>, vector<1x32xf32>, vector<1x32xf32> -> vector<1x288xf32>
    %267 = vector.broadcast %266 : vector<1x288xf32> to vector<72x288xf32>
    %268 = arith.subf %244, %267 : vector<72x288xf32>
    %269 = arith.mulf %268, %268 : vector<72x288xf32>
    %cst_74 = arith.constant dense<0.000000e+00> : vector<288xf32>
    %270 = vector.multi_reduction <add>, %269, %cst_74 [0] : vector<72x288xf32> to vector<288xf32>
    %271 = vector.shape_cast %270 : vector<288xf32> to vector<1x288xf32>
    %272 = vector.extract_strided_slice %271 {offsets = [0, 0], sizes = [1, 32], strides = [1, 1]} : vector<1x288xf32> to vector<1x32xf32>
    %273 = vector.extract_strided_slice %271 {offsets = [0, 32], sizes = [1, 32], strides = [1, 1]} : vector<1x288xf32> to vector<1x32xf32>
    %274 = arith.addf %272, %273 : vector<1x32xf32>
    %275 = vector.extract_strided_slice %271 {offsets = [0, 64], sizes = [1, 32], strides = [1, 1]} : vector<1x288xf32> to vector<1x32xf32>
    %276 = arith.addf %274, %275 : vector<1x32xf32>
    %277 = vector.extract_strided_slice %271 {offsets = [0, 96], sizes = [1, 32], strides = [1, 1]} : vector<1x288xf32> to vector<1x32xf32>
    %278 = arith.addf %276, %277 : vector<1x32xf32>
    %279 = vector.extract_strided_slice %271 {offsets = [0, 128], sizes = [1, 32], strides = [1, 1]} : vector<1x288xf32> to vector<1x32xf32>
    %280 = arith.addf %278, %279 : vector<1x32xf32>
    %281 = vector.extract_strided_slice %271 {offsets = [0, 160], sizes = [1, 32], strides = [1, 1]} : vector<1x288xf32> to vector<1x32xf32>
    %282 = arith.addf %280, %281 : vector<1x32xf32>
    %283 = vector.extract_strided_slice %271 {offsets = [0, 192], sizes = [1, 32], strides = [1, 1]} : vector<1x288xf32> to vector<1x32xf32>
    %284 = arith.addf %282, %283 : vector<1x32xf32>
    %285 = vector.extract_strided_slice %271 {offsets = [0, 224], sizes = [1, 32], strides = [1, 1]} : vector<1x288xf32> to vector<1x32xf32>
    %286 = arith.addf %284, %285 : vector<1x32xf32>
    %287 = vector.extract_strided_slice %271 {offsets = [0, 256], sizes = [1, 32], strides = [1, 1]} : vector<1x288xf32> to vector<1x32xf32>
    %288 = arith.addf %286, %287 : vector<1x32xf32>
    %cst_75 = arith.constant 6.480000e+02 : f32
    %289 = vector.broadcast %cst_75 : f32 to vector<1x32xf32>
    %290 = arith.divf %288, %289 : vector<1x32xf32>
    %c0_76 = arith.constant 0 : index
    %c0_77 = arith.constant 0 : index
    %291 = vector.load %arg19[%c0_76, %c0_77] : memref<1x32xf32, #tpu.memory_space<vmem>>, vector<1x32xf32>
    %cst_78 = arith.constant 9.99999974E-6 : f32
    %292 = vector.broadcast %cst_78 : f32 to vector<1x32xf32>
    %293 = arith.addf %290, %292 : vector<1x32xf32>
    %294 = math.rsqrt %293 : vector<1x32xf32>
    %295 = arith.mulf %291, %294 : vector<1x32xf32>
    %296 = tpu.concatenate %295, %295, %295, %295, %295, %295, %295, %295, %295 in 1 : vector<1x32xf32>, vector<1x32xf32>, vector<1x32xf32>, vector<1x32xf32>, vector<1x32xf32>, vector<1x32xf32>, vector<1x32xf32>, vector<1x32xf32>, vector<1x32xf32> -> vector<1x288xf32>
    %297 = vector.broadcast %296 : vector<1x288xf32> to vector<72x288xf32>
    %298 = arith.mulf %268, %297 : vector<72x288xf32>
    %c0_79 = arith.constant 0 : index
    %c0_80 = arith.constant 0 : index
    %299 = vector.load %arg20[%c0_79, %c0_80] : memref<1x288xf32, #tpu.memory_space<vmem>>, vector<1x288xf32>
    %300 = vector.broadcast %299 : vector<1x288xf32> to vector<72x288xf32>
    %301 = arith.addf %298, %300 : vector<72x288xf32>
    %cst_81 = arith.constant 0.000000e+00 : f32
    %302 = vector.broadcast %cst_81 : f32 to vector<72x288xf32>
    %303 = arith.maximumf %301, %302 : vector<72x288xf32>
    %304 = arith.truncf %303 : vector<72x288xf32> to vector<72x288xbf16>
    %c0_82 = arith.constant 0 : index
    %c0_83 = arith.constant 0 : index
    %305 = vector.load %arg21[%c0_82, %c0_83] : memref<288x1152xbf16, #tpu.memory_space<vmem>>, vector<288x1152xbf16>
    %cst_84 = arith.constant dense<0.000000e+00> : vector<72x1152xf32>
    %306 = tpu.matmul %304, %305, %cst_84 {dimension_numbers = #tpu.dot_dimension_numbers<[1], [0], [0], [1], [0, 0, 1, 1], [], []>} : vector<72x288xbf16>, vector<288x1152xbf16>, vector<72x1152xf32> -> vector<72x1152xf32>
    %c0_85 = arith.constant 0 : index
    %c0_86 = arith.constant 0 : index
    %307 = vector.load %arg22[%c0_85, %c0_86] : memref<1x1152xf32, #tpu.memory_space<vmem>>, vector<1x1152xf32>
    %308 = vector.broadcast %307 : vector<1x1152xf32> to vector<72x1152xf32>
    %309 = arith.addf %306, %308 : vector<72x1152xf32>
    %c0_87 = arith.constant 0 : index
    %c0_88 = arith.constant 0 : index
    %310 = vector.load %arg23[%c0_87, %c0_88] : memref<72x1152xf32, #tpu.memory_space<vmem>>, vector<72x1152xf32>
    tpu.vector_store %arg23[%c0_87, %c0_88], %309 {strides = array<i32>} : memref<72x1152xf32, #tpu.memory_space<vmem>>, vector<72x1152xf32>,
    return
  }
}

</mosaic_0001>

<bundles_post_ra>
// kernel: bar_color_conv_forward.1
= control target key start
LH: loop header
LB: loop body
LE: loop exit
PB: predicated region body
PF: predicated region fallthrough
CT: control target
= control target key end

     0   :  { %v16789_v0 = vmov 0.0   ;;  %vm10975_vm0 = vmmov 0   ;;  %vm123_vm1 = vcmask 261120   ;;  %vm211_vm2 = vcmask 785408   ;;  %s10978_s28 = smov 32   ;;  %s16757_s3 = inlined_call_operand.vmem [shape: bf16[32,96], index: 3, kind: input, shape index: {}]   ;;  %s16758_s0 = inlined_call_operand.vmem [shape: f32[72,32], index: 0, kind: input, shape index: {}]   ;;  %s16759_s6 = inlined_call_operand.vmem [shape: bf16[96,96], index: 6, kind: input, shape index: {}]   ;;  %s16760_s4 = inlined_call_operand.vmem [shape: f32[1,32], index: 4, kind: input, shape index: {}]   ;;  %s16761_s2 = inlined_call_operand.vmem [shape: f32[72,1], index: 2, kind: input, shape index: {}]   ;;  %s16762_s1 = inlined_call_operand.vmem [shape: f32[72,1], index: 1, kind: input, shape index: {}]   ;;  %s16763_s7 = inlined_call_operand.vmem [shape: bf16[64,96], index: 7, kind: input, shape index: {}]   ;;  %s16764_s5 = inlined_call_operand.vmem [shape: f32[1,96], index: 5, kind: input, shape index: {}]   ;;  %s16765_s10 = inlined_call_operand.vmem [shape: bf16[96,576], index: 10, kind: input, shape index: {}]   ;;  %s16766_s8 = inlined_call_operand.vmem [shape: f32[1,32], index: 8, kind: input, shape index: {}]   ;;  %s16767_s9 = inlined_call_operand.vmem [shape: f32[1,96], index: 9, kind: input, shape index: {}]   ;;  %s16768_s11 = inlined_call_operand.vmem [shape: f32[1,64], index: 11, kind: input, shape index: {}]   ;;  %s16769_s12 = inlined_call_operand.vmem [shape: f32[1,576], index: 12, kind: input, shape index: {}]   ;;  %s16770_s14 = inlined_call_operand.vmem [shape: bf16[128,576], index: 14, kind: input, shape index: {}]   ;;  %s16771_s13 = inlined_call_operand.vmem [shape: bf16[576,576], index: 13, kind: input, shape index: {}]   ;;  %s16772_s15 = inlined_call_operand.vmem [shape: f32[1,64], index: 15, kind: input, shape index: {}]   ;;  %s16773_s16 = inlined_call_operand.vmem [shape: f32[1,576], index: 16, kind: input, shape index: {}]   ;;  %s16774_s18 = inlined_call_operand.vmem [shape: bf16[128,288], index: 18, kind: input, shape index: {}]   ;;  %s16775_s17 = inlined_call_operand.vmem [shape: bf16[576,288], index: 17, kind: input, shape index: {}]   ;;  %s16776_s21 = inlined_call_operand.vmem [shape: bf16[288,1152], index: 21, kind: input, shape index: {}]   ;;  %s16777_s19 = inlined_call_operand.vmem [shape: f32[1,32], index: 19, kind: input, shape index: {}]   ;;  %s16778_s20 = inlined_call_operand.vmem [shape: f32[1,288], index: 20, kind: input, shape index: {}]   ;;  %s16779_s22 = inlined_call_operand.vmem [shape: f32[1,1152], index: 22, kind: input, shape index: {}]   ;;  %s16780_s23 = inlined_call_operand.vmem [shape: f32[72,1152], index: 23, kind: output, shape index: {}]  }
   0x1   :  { %16915 = sst [smem:[#allocation75_spill]] %s16757_s3  ;;  %9854 = vmatprep.subr.bf16.mxu0 %v16789_v0  ;;  %9858 = vmatprep.mubr.msk.bf16.mxu0 %vm10975_vm0, %v16789_v0  ;;  %vm254_vm3 = vcmask 523264  }
   0x2   :  { %16916 = sst [smem:[#allocation76_spill]] %s16758_s0  ;;  %9878 = vmatprep.subr.bf16.mxu1 %v16789_v0  ;;  %9886 = vmatprep.mubr.msk.bf16.mxu1 %vm10975_vm0, %v16789_v0 }
   0x3   :  { %16917 = sst [smem:[#allocation77_spill]] %s16759_s6 }
   0x4   :  { %16918 = sst [smem:[#allocation78_spill]] %s16760_s4 }
   0x5   :  { %16919 = sst [smem:[#allocation79_spill]] %s16761_s2 }
   0x6   :  { %16920 = sst [smem:[#allocation80_spill]] %s16762_s1 }
   0x7   :  { %16921 = sst [smem:[#allocation81_spill]] %s16763_s7 }
   0x8   :  { %16922 = sst [smem:[#allocation82_spill]] %s16764_s5  ;;  %s10977_s5 = smov 64  }
   0x9   :  { %s16923_s24 = sld [smem:[#allocation75_spill]] }
   0xa   :  { %s16924_s6 = sld [smem:[#allocation76_spill]] }
   0xb   :  { %s16927_s3 = sld [smem:[#allocation77_spill]] }
   0xc   :  { %s16928_s4 = sld [smem:[#allocation78_spill]] }
   0xd   :  { %s16929_s1 = sld [smem:[#allocation79_spill]] }
   0xe   :  { %s16930_s2 = sld [smem:[#allocation80_spill]] }
   0xf   :  { %v10190_v1 = vld [vmem:[%s16923_s24 + $0x8] sm:$0xff]   ;;  %v10191_v2 = vld [vmem:[%s16923_s24] sm:$0xff]   ;;  %s16931_s27 = sld [smem:[#allocation81_spill]] }
  0x10   :  { %9855 = vmatpush3.bf16.msra.mxu0 %v10190_v1  ;;  %v93_v3 = vld [vmem:[%s16924_s6] sm:$0xff]  ;;  %v94_v4 = vld [vmem:[%s16924_s6 + $0x8] sm:$0xff]  ;;  %v95_v6 = vld [vmem:[%s16924_s6 + $0x10] sm:$0xff]  ;;  %s16932_s25 = sld [smem:[#allocation82_spill]] }
  0x11   :  { %9856 = vmatprep.subr.bf16.mxu0 %v16789_v0  ;;  %v102_v5 = vpack.c.bf16 %v94_v4, %v93_v3  ;;  %v96_v7 = vld [vmem:[%s16924_s6 + $0x18] sm:$0xff]  ;;  %v97_v9 = vld [vmem:[%s16924_s6 + $0x20] sm:$0xff]  ;;  %v98_v10 = vld [vmem:[%s16924_s6 + $0x28] sm:$0xff] }
  0x12   :  { %v103_v8 = vpack.c.bf16 %v96_v7, %v95_v6  ;;  %v104_v11 = vpack.c.bf16 %v98_v10, %v97_v9  ;;  %v99_v12 = vld [vmem:[%s16924_s6 + $0x30] sm:$0xff]  ;;  %v100_v13 = vld [vmem:[%s16924_s6 + $0x38] sm:$0xff]  ;;  %v101_v15 = vld [vmem:[%s16924_s6 + $0x40] sm:$0xff]  ;;  %s10976_s6 = smov 96  }
  0x13   :  { %v105_v14 = vpack.c.bf16 %v100_v13, %v99_v12  ;;  %v106_v16 = vpack.c.bf16 %v101_v15, %v101_v15 }
  0x14   :  { %9857 = vmatpush3.bf16.msra.mxu0 %v10191_v2  ;;  %v256_v2 = vlaneseq }
  0x15   :  { %9906 = vmatprep.subr.bf16.mxu0 %v16789_v0 }
  0x16   :  { %v11178_v3 = vshrl.u32 %v256_v2, 7 }
  0x17   :  { %9859 = vmatmul.mubr.msk.bf16.vlgmr.msra.gmra.mxu0 %vm123_vm1, %v102_v5 }
  0x18   :  { %9862 = vmatprep.mubr.msk.bf16.mxu0 %vm10975_vm0, %v16789_v0  ;;  %16925 = vst [vmem:[#allocation2_spill] sm:$0xff] %v11178_v3  ;;  %v11181_v5 = vsub.s32 0, %v11178_v3  ;;  %vm503_vm4 = vcmp.lt.s32.totalorder %v11178_v3, 7  ;;  %vm430_vm5 = vcmp.lt.s32.totalorder %v11178_v3, 1 }
  0x1a   :  { %16926 = vst [vmem:[#allocation3_spill] sm:$0xff] %v11181_v5 }
  0x1f   :  { %9863 = vmatmul.mubr.msk.bf16.gmra.mxu0 %vm123_vm1, %v103_v8 }
  0x20   :  { %9866 = vmatprep.mubr.msk.bf16.mxu0 %vm10975_vm0, %v16789_v0 }
  0x27   :  { %9867 = vmatmul.mubr.msk.bf16.gmra.mxu0 %vm123_vm1, %v104_v11 }
  0x28   :  { %9870 = vmatprep.mubr.msk.bf16.mxu0 %vm10975_vm0, %v16789_v0 }
  0x2f   :  { %9871 = vmatmul.mubr.msk.bf16.gmra.mxu0 %vm123_vm1, %v105_v14 }
  0x30   :  { %9874 = vmatprep.mubr.msk.bf16.mxu0 %vm10975_vm0, %v16789_v0 }
  0x37   :  { %9875 = vmatmul.mubr.msk.bf16.gmra.mxu0 %vm123_vm1, %v106_v16 }
  0x38   :  { %9918 = vmatprep.mubr.msk.bf16.mxu0 %vm10975_vm0, %v16789_v0 }
  0xd7   :  { %v11156_v17 = vpop.f32.mrf.mxu0 }
  0xd8   :  { %v212_v28 = vsel %vm211_vm2, %v11156_v17, 0.0 }
  0xd9   :  { %v9860_v18 = vpop.f32.mrf.mxu0 }
  0xdb   :  { %v11158_v19 = vpop.f32.mrf.mxu0 }
  0xdc   :  { %v213_v26 = vsel %vm211_vm2, %v11158_v19, 0.0 }
  0xdd   :  { %v9861_v20 = vpop.f32.mrf.mxu0  ;;  %v214_v30 = vadd.f32 %v213_v26, %v212_v28 }
  0xdf   :  { %v11160_v21 = vpop.f32.mrf.mxu0 }
  0xe0   :  { %v215_v29 = vsel %vm211_vm2, %v11160_v21, 0.0 }
  0xe1   :  { %v9864_v22 = vpop.f32.mrf.mxu0  ;;  %v216_v33 = vadd.f32 %v215_v29, %v214_v30 }
  0xe3   :  { %v184_v23 = vpop.f32.mrf.mxu0 }
  0xe4   :  { %v217_v32 = vsel %vm211_vm2, %v184_v23, 0.0 }
  0xe5   :  { %v9865_v24 = vpop.f32.mrf.mxu0  ;;  %v218_v36 = vadd.f32 %v217_v32, %v216_v33 }
  0xe7   :  { %v189_v25 = vpop.f32.mrf.mxu0 }
  0xe8   :  { %v219_v35 = vsel %vm211_vm2, %v189_v25, 0.0 }
  0xe9   :  { %v9868_v27 = vpop.f32.mrf.mxu0  ;;  %v220_v39 = vadd.f32 %v219_v35, %v218_v36 }
  0xeb   :  { %v192_v31 = vpop.f32.mrf.mxu0 }
  0xec   :  { %v221_v38 = vsel %vm211_vm2, %v192_v31, 0.0 }
  0xed   :  { %v9869_v34 = vpop.f32.mrf.mxu0  ;;  %v222_v42 = vadd.f32 %v221_v38, %v220_v39 }
  0xef   :  { %v197_v37 = vpop.f32.mrf.mxu0 }
  0xf0   :  { %v223_v41 = vsel %vm211_vm2, %v197_v37, 0.0 }
  0xf1   :  { %v9872_v40 = vpop.f32.mrf.mxu0  ;;  %v224_v45 = vadd.f32 %v223_v41, %v222_v42 }
  0xf3   :  { %v200_v43 = vpop.f32.mrf.mxu0 }
  0xf4   :  { %v225_v44 = vsel %vm211_vm2, %v200_v43, 0.0 }
  0xf5   :  { %v9873_v46 = vpop.f32.mrf.mxu0  ;;  %v226_v47 = vadd.f32 %v225_v44, %v224_v45 }
  0xf7   :  { %v205_v48 = vpop.f32.mrf.mxu0 }
  0xf8   :  { %v227_v49 = vsel %vm211_vm2, %v205_v48, 0.0 }
  0xf9   :  { %v228_v50 = vadd.f32 %v227_v49, %v226_v47  ;;  %v9876_v51 = vpop.f32.mrf.mxu0 }
  0xfa   :  { %v16787_v51 = vmov 0  }
  0xfb   :  { %v229_v52 = vrot.slane %v228_v50, 4  ;;  %v208_v53 = vpop.f32.mrf.mxu0  ;;  %10129 = vset.pattern.permute.xlu1 %v16787_v51  ;;  %10128 = vset.pattern.permute.xlu0 %v16787_v51 }
  0xfc   :  { %v10193_v53 = vld [vmem:[%s16927_s3 + $0x20] sm:$0xff]  }
  0xfd   :  { %v230_v54 = vadd.f32 %v229_v52, %v228_v50  ;;  %v9877_v55 = vpop.f32.mrf.mxu0  ;;  %v10192_v52 = vld [vmem:[%s16927_s3 + $0x28] sm:$0xff]  }
  0xfe   :  { %9907 = vmatpush3.bf16.msra.mxu0 %v10192_v52 }
  0xff   :  { %v231_v56 = vrot.slane %v230_v54, 2  ;;  %9908 = vmatprep.subr.bf16.mxu0 %v16789_v0 }
 0x101   :  { %v232_v57 = vadd.f32 %v231_v56, %v230_v54  ;;  %v10194_v54 = vld [vmem:[%s16927_s3 + $0x18] sm:$0xff]  }
 0x102   :  { %9909 = vmatpush3.bf16.msra.mxu0 %v10193_v53 }
 0x103   :  { %v233_v58 = vrot.slane %v232_v57, 1  ;;  %9910 = vmatprep.subr.bf16.mxu0 %v16789_v0 }
 0x105   :  { %v234_v59 = vadd.f32 %v233_v58, %v232_v57 }
 0x106   :  { %9911 = vmatpush3.bf16.msra.mxu0 %v10194_v54 }
 0x107   :  { %236 = vrot.lane.b32.xlu0 %v234_v59, %s10976_s6  ;;  %9912 = vmatprep.subr.bf16.mxu0 %v16789_v0 }
 0x10b   :  { %240 = vrot.lane.b32.xlu0 %v234_v59, %s10977_s5 }
 0x179   :  { %v237_v60 = vpop.permute.xlu0 %236 }
 0x17a   :  { %v239_v61 = vadd.f32 %v237_v60, %v234_v59 }
 0x17d   :  { %v241_v62 = vpop.permute.xlu0 %240 }
 0x17e   :  { %v243_v63 = vadd.f32 %v241_v62, %v239_v61  ;;  %v10195_v61 = vld [vmem:[%s16927_s3 + $0x10] sm:$0xff]   ;;  %v10196_v62 = vld [vmem:[%s16927_s3 + $0x8] sm:$0xff]  }
 0x17f   :  { %9913 = vmatpush3.bf16.msra.mxu0 %v10195_v61 }
 0x180   :  { %v245_v1 = vmul.f32 0.0046296297, %v243_v63  ;;  %9914 = vmatprep.subr.bf16.mxu0 %v16789_v0  ;;  %v311_v63 = vld [vmem:[%s16928_s4] sm:$0x1] }
 0x182   :  { %247 = vrot.lane.b32.xlu1 %v245_v1, %s10978_s28 }
 0x183   :  { %9915 = vmatpush3.bf16.msra.mxu0 %v10196_v62 }
 0x184   :  { %9916 = vmatprep.subr.bf16.mxu0 %v16789_v0 }
 0x186   :  { %250 = vrot.lane.b32.xlu1 %v245_v1, %s10977_s5 }
 0x1f4   :  { %v248_v4 = vpop.permute.xlu1 %247 }
 0x1f5   :  { %v253_v6 = vsel %vm123_vm1, %v245_v1, %v248_v4  ;;  %v10197_v1 = vld [vmem:[%s16927_s3] sm:$0xff]  }
 0x1f6   :  { %9917 = vmatpush3.bf16.msra.mxu0 %v10197_v1 }
 0x1f8   :  { %v251_v7 = vpop.permute.xlu1 %250 }
 0x1f9   :  { %v255_v8 = vsel %vm254_vm3, %v253_v6, %v251_v7  ;;  %v85_v7 = vld [vmem:[%s16929_s1 + $0x8] sm:$0xff] }
 0x1fa   :  { %v259_v9 = vrot.slane %v255_v8, %v11181_v5  ;;  %v84_v8 = vld [vmem:[%s16929_s1] sm:$0xff] }
 0x1fc   :  { %v11187_v10 = vsub.f32 %v11156_v17, %v259_v9  ;;  %v11190_v11 = vsub.f32 %v11158_v19, %v259_v9  ;;  %v11193_v12 = vsub.f32 %v11160_v21, %v259_v9  ;;  %v11195_v13 = vsub.f32 %v184_v23, %v259_v9 }
 0x1fd   :  { %v11197_v14 = vsub.f32 %v189_v25, %v259_v9  ;;  %v11205_v18 = vsub.f32 %v192_v31, %v259_v9  ;;  %v11211_v23 = vsub.f32 %v197_v37, %v259_v9  ;;  %v11216_v27 = vsub.f32 %v200_v43, %v259_v9 }
 0x1fe   :  { %v269_v15 = vmul.f32 %v11187_v10, %v11187_v10  ;;  %v270_v16 = vmul.f32 %v11190_v11, %v11190_v11  ;;  %v271_v17 = vmul.f32 %v11193_v12, %v11193_v12  ;;  %v272_v19 = vmul.f32 %v11195_v13, %v11195_v13 }
 0x1ff   :  { %v273_v24 = vmul.f32 %v11197_v14, %v11197_v14  ;;  %v274_v28 = vmul.f32 %v11205_v18, %v11205_v18  ;;  %v11221_v31 = vsub.f32 %v205_v48, %v259_v9  ;;  %v275_v32 = vmul.f32 %v11211_v23, %v11211_v23  ;;  %v86_v9 = vld [vmem:[%s16929_s1 + $0x10] sm:$0xff] }
 0x200   :  { %v278_v20 = vsel %vm211_vm2, %v269_v15, 0.0  ;;  %v279_v21 = vsel %vm211_vm2, %v270_v16, 0.0  ;;  %v281_v25 = vsel %vm211_vm2, %v271_v17, 0.0  ;;  %v283_v29 = vsel %vm211_vm2, %v272_v19, 0.0  ;;  %v87_v15 = vld [vmem:[%s16929_s1 + $0x18] sm:$0xff]  ;;  %v88_v16 = vld [vmem:[%s16929_s1 + $0x20] sm:$0xff] }
 0x201   :  { %v280_v22 = vadd.f32 %v279_v21, %v278_v20  ;;  %v285_v33 = vsel %vm211_vm2, %v273_v24, 0.0  ;;  %v276_v35 = vmul.f32 %v11216_v27, %v11216_v27  ;;  %v287_v36 = vsel %vm211_vm2, %v274_v28, 0.0  ;;  %v89_v17 = vld [vmem:[%s16929_s1 + $0x28] sm:$0xff]  ;;  %v90_v19 = vld [vmem:[%s16929_s1 + $0x30] sm:$0xff]  ;;  %v91_v20 = vld [vmem:[%s16929_s1 + $0x38] sm:$0xff] }
 0x202   :  { %v277_v38 = vmul.f32 %v11221_v31, %v11221_v31  ;;  %v289_v39 = vsel %vm211_vm2, %v275_v32, 0.0  ;;  %v92_v21 = vld [vmem:[%s16929_s1 + $0x40] sm:$0xff]  ;;  %v76_v24 = vld [vmem:[%s16930_s2 + $0x8] sm:$0xff]  ;;  %v10198_v28 = vld [vmem:[%s16931_s27 + $0x18] sm:$0xff]  }
 0x203   :  { %v282_v26 = vadd.f32 %v281_v25, %v280_v22  ;;  %v291_v41 = vsel %vm211_vm2, %v276_v35, 0.0  ;;  %v75_v22 = vld [vmem:[%s16930_s2] sm:$0xff]  ;;  %v77_v25 = vld [vmem:[%s16930_s2 + $0x10] sm:$0xff]  ;;  %9879 = vmatpush3.bf16.msra.mxu1 %v10198_v28 }
 0x204   :  { %v293_v43 = vsel %vm211_vm2, %v277_v38, 0.0  ;;  %9880 = vmatprep.subr.bf16.mxu1 %v16789_v0 }
 0x205   :  { %v284_v30 = vadd.f32 %v283_v29, %v282_v26  ;;  %v78_v26 = vld [vmem:[%s16930_s2 + $0x18] sm:$0xff] }
 0x207   :  { %v286_v34 = vadd.f32 %v285_v33, %v284_v30  ;;  %v10199_v33 = vld [vmem:[%s16931_s27 + $0x10] sm:$0xff]  }
 0x208   :  { %9881 = vmatpush3.bf16.msra.mxu1 %v10199_v33 }
 0x209   :  { %v288_v37 = vadd.f32 %v287_v36, %v286_v34  ;;  %v11319_v36 = vld [vmem:[%s16932_s25] ss:$0 sm:$0xff]  ;;  %9882 = vmatprep.subr.bf16.mxu1 %v16789_v0 }
 0x20b   :  { %v290_v40 = vadd.f32 %v289_v39, %v288_v37 }
 0x20d   :  { %v292_v42 = vadd.f32 %v291_v41, %v290_v40  ;;  %v10200_v41 = vld [vmem:[%s16931_s27 + $0x8] sm:$0xff]  }
 0x20e   :  { %9883 = vmatpush3.bf16.msra.mxu1 %v10200_v41  ;;  %v81_v41 = vld [vmem:[%s16930_s2 + $0x30] sm:$0xff] }
 0x20f   :  { %v294_v44 = vadd.f32 %v293_v43, %v292_v42  ;;  %9884 = vmatprep.subr.bf16.mxu1 %v16789_v0 }
 0x211   :  { %v295_v45 = vrot.slane %v294_v44, 4 }
 0x213   :  { %v296_v46 = vadd.f32 %v295_v45, %v294_v44 }
 0x215   :  { %v297_v47 = vrot.slane %v296_v46, 2 }
 0x217   :  { %v298_v48 = vadd.f32 %v297_v47, %v296_v46 }
 0x219   :  { %v299_v49 = vrot.slane %v298_v48, 1 }
 0x21b   :  { %v300_v50 = vadd.f32 %v299_v49, %v298_v48 }
 0x21d   :  { %306 = vrot.lane.b32.xlu1 %v300_v50, %s10977_s5  ;;  %302 = vrot.lane.b32.xlu0 %v300_v50, %s10976_s6 }
 0x28f   :  { %v303_v55 = vpop.permute.xlu0 %302  ;;  %v307_v57 = vpop.permute.xlu1 %306 }
 0x290   :  { %v305_v56 = vadd.f32 %v303_v55, %v300_v50 }
 0x292   :  { %v309_v58 = vadd.f32 %v307_v57, %v305_v56 }
 0x294   :  { %v310_v59 = vmul.f32 0.0046296297, %v309_v58 }
 0x296   :  { %v312_v60 = vadd.f32 1e-05, %v310_v59 }
 0x298   :  { %10962 = vrsqrt.f32 %v312_v60 }
 0x2a5   :  { %v10963_v2 = vpop.eup %10962 }
 0x2a6   :  { %v314_v4 = vmul.f32 %v10963_v2, %v311_v63 }
 0x2a8   :  { %v319_v6 = vrot.slane %v314_v4, %v11181_v5 }
 0x2aa   :  { %323 = vrot.lane.b32.xlu1 %v319_v6, %s10977_s5  ;;  %320 = vrot.lane.b32.xlu0 %v319_v6, %s10978_s28 }
 0x2ae   :  { %520 = vperm.xlu1 %10129, %v85_v7   ;;  %515 = vperm.xlu0 %10128, %v84_v8  }
 0x2b2   :  { %525 = vperm.xlu1 %10129, %v86_v9   ;;  %530 = vperm.xlu0 %10128, %v87_v15  }
 0x2b6   :  { %535 = vperm.xlu1 %10129, %v88_v16   ;;  %540 = vperm.xlu0 %10128, %v89_v17   ;;  %v80_v16 = vld [vmem:[%s16930_s2 + $0x28] sm:$0xff]  ;;  %v79_v17 = vld [vmem:[%s16930_s2 + $0x20] sm:$0xff] }
 0x2ba   :  { %545 = vperm.xlu1 %10129, %v90_v19   ;;  %550 = vperm.xlu0 %10128, %v91_v20  }
 0x2be   :  { %555 = vperm.xlu1 %10129, %v92_v21   ;;  %442 = vperm.xlu0 %10128, %v75_v22  }
 0x2c2   :  { %447 = vperm.xlu1 %10129, %v76_v24   ;;  %452 = vperm.xlu0 %10128, %v77_v25  }
 0x2c6   :  { %457 = vperm.xlu1 %10129, %v78_v26  }
 0x31c   :  { %v324_v29 = vpop.permute.xlu1 %323  ;;  %v321_v30 = vpop.permute.xlu0 %320 }
 0x31d   :  { %v326_v32 = vsel %vm123_vm1, %v314_v4, %v321_v30 }
 0x31e   :  { %v327_v34 = vsel %vm254_vm3, %v326_v32, %v324_v29 }
 0x31f   :  { %v331_v35 = vrot.slane %v327_v34, %v11181_v5 }
 0x321   :  { %v333_v37 = vmul.f32 %v331_v35, %v11190_v11  ;;  %v332_v38 = vmul.f32 %v331_v35, %v11187_v10  ;;  %v334_v39 = vmul.f32 %v331_v35, %v11193_v12  ;;  %v335_v40 = vmul.f32 %v331_v35, %v11195_v13 }
 0x322   :  { %v340_v42 = vmul.f32 %v331_v35, %v11221_v31  ;;  %v336_v10 = vmul.f32 %v331_v35, %v11197_v14  ;;  %v10201_v31 = vld [vmem:[%s16931_s27] sm:$0xff]   ;;  %v337_v48 = vmul.f32 %v331_v35, %v11205_v18  ;;  %v338_v54 = vmul.f32 %v331_v35, %v11211_v23 }
 0x323   :  { %v349_v43 = vadd.f32 %v11319_v36, %v333_v37  ;;  %v348_v44 = vadd.f32 %v11319_v36, %v332_v38  ;;  %v350_v45 = vadd.f32 %v11319_v36, %v334_v39  ;;  %v351_v11 = vadd.f32 %v11319_v36, %v335_v40  ;;  %9885 = vmatpush3.bf16.msra.mxu1 %v10201_v31 }
 0x324   :  { %v356_v47 = vadd.f32 %v11319_v36, %v340_v42  ;;  %v352_v53 = vadd.f32 %v11319_v36, %v336_v10  ;;  %v353_v61 = vadd.f32 %v11319_v36, %v337_v48  ;;  %v354_v1 = vadd.f32 %v11319_v36, %v338_v54 }
 0x325   :  { %v358_v12 = vmax.f32 %v349_v43, 0.0  ;;  %v11336_v13 = vmax.f32 %v348_v44, 0.0  ;;  %v359_v46 = vmax.f32 %v350_v45, 0.0  ;;  %v360_v58 = vmax.f32 %v351_v11, 0.0 }
 0x326   :  { %v11362_v59 = vmax.f32 %v356_v47, 0.0  ;;  %v361_v62 = vmax.f32 %v352_v53, 0.0  ;;  %v362_v2 = vmax.f32 %v353_v61, 0.0  ;;  %v363_v15 = vmax.f32 %v354_v1, 0.0  ;;  %v83_v47 = vld [vmem:[%s16930_s2 + $0x40] sm:$0xff] }
 0x327   :  { %394 = vrot.lane.b32.xlu1 %v358_v12, %s10977_s5  ;;  %v495_v49 = vrot.slane %v358_v12, 1  ;;  %392 = vrot.lane.b32.xlu0 %v11336_v13, %s10977_s5  ;;  %v366_v14 = vpack.c.bf16 %v358_v12, %v11336_v13  ;;  %v494_v50 = vrot.slane %v11336_v13, 1  ;;  %v496_v52 = vrot.slane %v359_v46, 1 }
 0x328   :  { %v367_v4 = vpack.c.bf16 %v360_v58, %v359_v46  ;;  %v497_v6 = vrot.slane %v360_v58, 1  ;;  %v498_v8 = vrot.slane %v361_v62, 1  ;;  %v339_v19 = vmul.f32 %v331_v35, %v11216_v27  ;;  %v82_v35 = vld [vmem:[%s16930_s2 + $0x38] sm:$0xff] }
 0x329   :  { %v11351_v55 = vpop.permute.xlu1 %520  ;;  %v510_v18 = vsel %vm503_vm4, %v495_v49, %v496_v52  ;;  %9919 = vmatmul.mubr.msk.bf16.vlgmr.msra.gmra.mxu0 %vm211_vm2, %v366_v14  ;;  %v511_v56 = vsel %vm503_vm4, %v494_v50, %v495_v49  ;;  %v11360_v57 = vpop.permute.xlu0 %515  ;;  %v499_v20 = vrot.slane %v362_v2, 1  ;;  %v500_v24 = vrot.slane %v363_v15, 1 }
 0x32a   :  { %16933 = vst [vmem:[#allocation4_spill] sm:$0xff] %v11351_v55  ;;  %16934 = vst [vmem:[#allocation5_spill] sm:$0xff] %v11360_v57  ;;  %v559_v23 = vmul.f32 %v11351_v55, %v510_v18  ;;  %v558_v60 = vmul.f32 %v11360_v57, %v511_v56  ;;  %9922 = vmatprep.mubr.msk.bf16.mxu0 %vm10975_vm0, %v16789_v0  ;;  %v509_v21 = vsel %vm503_vm4, %v496_v52, %v497_v6 }
 0x32b   :  { %398 = vrot.lane.b32.xlu1 %v360_v58, %s10977_s5  ;;  %408 = vrot.lane.b32.xlu0 %v11362_v59, %s10977_s5  ;;  %v508_v22 = vsel %vm503_vm4, %v497_v6, %v498_v8  ;;  %v355_v25 = vadd.f32 %v11319_v36, %v339_v19  ;;  %v368_v30 = vpack.c.bf16 %v362_v2, %v361_v62  ;;  %v502_v39 = vrot.slane %v11362_v59, 1 }
 0x32c   :  { %v10130_v63 = vpack.i.bf16 %v559_v23, %v558_v60  ;;  %v507_v32 = vsel %vm503_vm4, %v498_v8, %v499_v20  ;;  %v506_v33 = vsel %vm503_vm4, %v499_v20, %v500_v24  ;;  %v370_v49 = vpack.c.bf16 %v11362_v59, %v11362_v59 }
 0x32d   :  { %v11375_v7 = vpop.permute.xlu1 %525  ;;  %v11377_v9 = vpop.permute.xlu0 %530  ;;  %v364_v34 = vmax.f32 %v355_v25, 0.0  ;;  %v512_v14 = vsel %vm503_vm4, %v502_v39, %v494_v50 }
 0x32e   :  { %16935 = vst [vmem:[#allocation6_spill] sm:$0xff] %v11375_v7  ;;  %16936 = vst [vmem:[#allocation7_spill] sm:$0xff] %v11377_v9  ;;  %v560_v26 = vmul.f32 %v11375_v7, %v509_v21  ;;  %v561_v27 = vmul.f32 %v11377_v9, %v508_v22 }
 0x32f   :  { %396 = vrot.lane.b32.xlu0 %v359_v46, %s10977_s5  ;;  %10131 = vrot.lane.b32.xlu1 %v10130_v63, %s10978_s28  ;;  %v501_v40 = vrot.slane %v364_v34, 1  ;;  %v369_v45 = vpack.c.bf16 %v364_v34, %v363_v15 }
 0x330   :  { %v10135_v38 = vpack.i.bf16 %v561_v27, %v560_v26 }
 0x331   :  { %9923 = vmatmul.mubr.msk.bf16.gmra.mxu0 %vm211_vm2, %v367_v4  ;;  %v11396_v28 = vpop.permute.xlu1 %535  ;;  %v11398_v29 = vpop.permute.xlu0 %540  ;;  %v505_v11 = vsel %vm503_vm4, %v500_v24, %v501_v40  ;;  %v504_v10 = vsel %vm503_vm4, %v501_v40, %v502_v39 }
 0x332   :  { %9926 = vmatprep.mubr.msk.bf16.mxu0 %vm10975_vm0, %v16789_v0  ;;  %16937 = vst [vmem:[#allocation8_spill] sm:$0xff] %v11396_v28  ;;  %16938 = vst [vmem:[#allocation9_spill] sm:$0xff] %v11398_v29  ;;  %v562_v36 = vmul.f32 %v11396_v28, %v507_v32  ;;  %v563_v37 = vmul.f32 %v11398_v29, %v506_v33 }
 0x333   :  { %467 = vperm.xlu0 %10128, %v80_v16   ;;  %462 = vperm.xlu1 %10129, %v79_v17  }
 0x334   :  { %v10140_v42 = vpack.i.bf16 %v563_v37, %v562_v36 }
 0x335   :  { %v11419_v43 = vpop.permute.xlu1 %545  ;;  %v11421_v44 = vpop.permute.xlu0 %550 }
 0x336   :  { %16939 = vst [vmem:[#allocation10_spill] sm:$0xff] %v11419_v43  ;;  %16940 = vst [vmem:[#allocation11_spill] sm:$0xff] %v11421_v44  ;;  %v564_v12 = vmul.f32 %v11419_v43, %v505_v11  ;;  %v565_v46 = vmul.f32 %v11421_v44, %v504_v10 }
 0x337   :  { %402 = vrot.lane.b32.xlu0 %v362_v2, %s10977_s5  ;;  %400 = vrot.lane.b32.xlu1 %v361_v62, %s10977_s5 }
 0x338   :  { %v10145_v31 = vpack.i.bf16 %v565_v46, %v564_v12 }
 0x339   :  { %9927 = vmatmul.mubr.msk.bf16.gmra.mxu0 %vm211_vm2, %v368_v30  ;;  %v11438_v48 = vpop.permute.xlu1 %555  ;;  %v11451_v53 = vpop.permute.xlu0 %442 }
 0x33a   :  { %9930 = vmatprep.mubr.msk.bf16.mxu0 %vm10975_vm0, %v16789_v0  ;;  %16941 = vst [vmem:[#allocation12_spill] sm:$0xff] %v11438_v48  ;;  %v566_v52 = vmul.f32 %v11438_v48, %v512_v14  ;;  %16942 = vst [vmem:[#allocation13_spill] sm:$0xff] %v11451_v53 }
 0x33b   :  { %477 = vperm.xlu1 %10129, %v82_v35   ;;  %10136 = vrot.lane.b32.xlu0 %v10135_v38, %s10978_s28 }
 0x33d   :  { %v11453_v54 = vpop.permute.xlu1 %447  ;;  %v11455_v18 = vpop.permute.xlu0 %452 }
 0x33e   :  { %16943 = vst [vmem:[#allocation14_spill] sm:$0xff] %v11453_v54  ;;  %16944 = vst [vmem:[#allocation15_spill] sm:$0xff] %v11455_v18 }
 0x33f   :  { %472 = vperm.xlu0 %10128, %v81_v41   ;;  %10141 = vrot.lane.b32.xlu1 %v10140_v42, %s10978_s28 }
 0x341   :  { %9931 = vmatmul.mubr.msk.bf16.gmra.mxu0 %vm211_vm2, %v369_v45  ;;  %v11457_v56 = vpop.permute.xlu1 %457 }
 0x342   :  { %9934 = vmatprep.mubr.msk.bf16.mxu0 %vm10975_vm0, %v16789_v0  ;;  %16945 = vst [vmem:[#allocation16_spill] sm:$0xff] %v11457_v56 }
 0x343   :  { %404 = vrot.lane.b32.xlu0 %v363_v15, %s10977_s5  ;;  %406 = vrot.lane.b32.xlu1 %v364_v34, %s10977_s5 }
 0x347   :  { %482 = vperm.xlu1 %10129, %v83_v47   ;;  %10146 = vrot.lane.b32.xlu0 %v10145_v31, %s10978_s28 }
 0x349   :  { %9935 = vmatmul.mubr.msk.bf16.gmra.mxu0 %vm211_vm2, %v370_v49 }
 0x34a   :  { %1336 = vmatprep.mubr.bf16.mxu0 %v16787_v51 }
 0x34b   :  { %592 = vrot.lane.b32.xlu0 %v566_v52, %s10978_s28 }
 0x399   :  { %v395_v13 = vpop.permute.xlu1 %394  ;;  %v393_v58 = vpop.permute.xlu0 %392 }
 0x39a   :  { %v420_v59 = vrot.slane %v395_v13, 7  ;;  %v419_v50 = vrot.slane %v393_v58, 7 }
 0x39c   :  { %v438_v62 = vsel %vm430_vm5, %v419_v50, %v420_v59 }
 0x39d   :  { %v399_v23 = vpop.permute.xlu1 %398  ;;  %v11460_v60 = vpop.permute.xlu0 %408  ;;  %v486_v4 = vmul.f32 %v11453_v54, %v438_v62 }
 0x39e   :  { %v427_v61 = vrot.slane %v11460_v60, 7  ;;  %v422_v24 = vrot.slane %v399_v23, 7 }
 0x3a0   :  { %v439_v63 = vsel %vm430_vm5, %v427_v61, %v419_v50 }
 0x3a1   :  { %v485_v1 = vmul.f32 %v11451_v53, %v439_v63  ;;  %v10132_v2 = vpop.permute.xlu1 %10131  ;;  %v397_v19 = vpop.permute.xlu0 %396 }
 0x3a2   :  { %v10134_v6 = vunpack.i.h.bf16 %v10132_v2  ;;  %v10133_v8 = vunpack.i.l.bf16 %v10132_v2  ;;  %v421_v22 = vrot.slane %v397_v19, 7 }
 0x3a4   :  { %v603_v15 = vsel %vm123_vm1, %v485_v1, %v10133_v8  ;;  %v604_v16 = vsel %vm123_vm1, %v486_v4, %v10134_v6  ;;  %v436_v27 = vsel %vm430_vm5, %v421_v22, %v422_v24  ;;  %v437_v30 = vsel %vm430_vm5, %v420_v59, %v421_v22 }
 0x3a5   :  { %v612_v17 = vpack.c.bf16 %v604_v16, %v603_v15  ;;  %v487_v36 = vmul.f32 %v11455_v18, %v437_v30  ;;  %v488_v37 = vmul.f32 %v11457_v56, %v436_v27 }
 0x3a7   :  { %9887 = vmatmul.mubr.msk.bf16.vlgmr.msra.gmra.mxu1 %vm254_vm3, %v612_v17 }
 0x3a8   :  { %9890 = vmatprep.mubr.msk.bf16.mxu1 %vm10975_vm0, %v16789_v0 }
 0x3ae   :  { %v11476_v20 = vpop.permute.xlu1 %462  ;;  %v11478_v21 = vpop.permute.xlu0 %467 }
 0x3af   :  { %16946 = vst [vmem:[#allocation17_spill] sm:$0xff] %v11476_v20  ;;  %16947 = vst [vmem:[#allocation18_spill] sm:$0xff] %v11478_v21 }
 0x3b2   :  { %v401_v25 = vpop.permute.xlu1 %400  ;;  %v403_v26 = vpop.permute.xlu0 %402 }
 0x3b3   :  { %v423_v32 = vrot.slane %v401_v25, 7  ;;  %v424_v33 = vrot.slane %v403_v26, 7 }
 0x3b5   :  { %v435_v42 = vsel %vm430_vm5, %v422_v24, %v423_v32  ;;  %v434_v45 = vsel %vm430_vm5, %v423_v32, %v424_v33 }
 0x3b6   :  { %v11484_v34 = vpop.permute.xlu1 %477  ;;  %v10137_v35 = vpop.permute.xlu0 %10136  ;;  %v489_v31 = vmul.f32 %v11476_v20, %v435_v42  ;;  %v490_v49 = vmul.f32 %v11478_v21, %v434_v45 }
 0x3b7   :  { %16948 = vst [vmem:[#allocation19_spill] sm:$0xff] %v11484_v34  ;;  %v10139_v38 = vunpack.i.h.bf16 %v10137_v35  ;;  %v10138_v39 = vunpack.i.l.bf16 %v10137_v35 }
 0x3b9   :  { %v606_v40 = vsel %vm123_vm1, %v488_v37, %v10139_v38  ;;  %v605_v41 = vsel %vm123_vm1, %v487_v36, %v10138_v39 }
 0x3ba   :  { %v613_v11 = vpack.c.bf16 %v606_v40, %v605_v41  ;;  %v10142_v10 = vpop.permute.xlu1 %10141  ;;  %v11494_v12 = vpop.permute.xlu0 %472 }
 0x3bb   :  { %16949 = vst [vmem:[#allocation20_spill] sm:$0xff] %v11494_v12  ;;  %v10144_v46 = vunpack.i.h.bf16 %v10142_v10  ;;  %v10143_v47 = vunpack.i.l.bf16 %v10142_v10 }
 0x3bc   :  { %9891 = vmatmul.mubr.msk.bf16.gmra.mxu1 %vm254_vm3, %v613_v11 }
 0x3bd   :  { %9894 = vmatprep.mubr.msk.bf16.mxu1 %vm10975_vm0, %v16789_v0  ;;  %v607_v13 = vsel %vm123_vm1, %v489_v31, %v10143_v47  ;;  %v608_v58 = vsel %vm123_vm1, %v490_v49, %v10144_v46 }
 0x3be   :  { %v407_v14 = vpop.permute.xlu1 %406  ;;  %v405_v52 = vpop.permute.xlu0 %404  ;;  %v614_v63 = vpack.c.bf16 %v608_v58, %v607_v13 }
 0x3bf   :  { %v426_v59 = vrot.slane %v407_v14, 7  ;;  %v425_v50 = vrot.slane %v405_v52, 7 }
 0x3c1   :  { %v432_v23 = vsel %vm430_vm5, %v425_v50, %v426_v59  ;;  %v433_v62 = vsel %vm430_vm5, %v424_v33, %v425_v50  ;;  %v431_v19 = vsel %vm430_vm5, %v426_v59, %v427_v61 }
 0x3c2   :  { %v10147_v1 = vpop.permute.xlu0 %10146  ;;  %v491_v2 = vmul.f32 %v11494_v12, %v433_v62  ;;  %v492_v4 = vmul.f32 %v11484_v34, %v432_v23  ;;  %v11514_v17 = vpop.permute.xlu1 %482 }
 0x3c3   :  { %v10149_v6 = vunpack.i.h.bf16 %v10147_v1  ;;  %v10148_v8 = vunpack.i.l.bf16 %v10147_v1  ;;  %16950 = vst [vmem:[#allocation21_spill] sm:$0xff] %v11514_v17  ;;  %v493_v25 = vmul.f32 %v11514_v17, %v431_v19 }
 0x3c4   :  { %9895 = vmatmul.mubr.msk.bf16.gmra.mxu1 %vm254_vm3, %v614_v63 }
 0x3c5   :  { %9898 = vmatprep.mubr.msk.bf16.mxu1 %vm10975_vm0, %v16789_v0  ;;  %v610_v15 = vsel %vm123_vm1, %v492_v4, %v10149_v6  ;;  %v609_v16 = vsel %vm123_vm1, %v491_v2, %v10148_v8 }
 0x3c6   :  { %v615_v22 = vpack.c.bf16 %v610_v15, %v609_v16  ;;  %v593_v24 = vpop.permute.xlu0 %592 }
 0x3c7   :  { %v611_v26 = vsel %vm123_vm1, %v493_v25, %v593_v24 }
 0x3c8   :  { %v616_v27 = vpack.c.bf16 %v611_v26, %v611_v26 }
 0x3cc   :  { %9899 = vmatmul.mubr.msk.bf16.gmra.mxu1 %vm254_vm3, %v615_v22 }
 0x3cd   :  { %9902 = vmatprep.mubr.msk.bf16.mxu1 %vm10975_vm0, %v16789_v0 }
 0x3d4   :  { %9903 = vmatmul.mubr.msk.bf16.gmra.mxu1 %vm254_vm3, %v616_v27 }
 0x3d5   :  { %1255 = vmatprep.mubr.bf16.mxu1 %v16787_v51 }
 0x3e9   :  { %v821_v60 = vpop.f32.mrf.mxu0 }
 0x3eb   :  { %v9920_v30 = vpop.f32.mrf.mxu0 }
 0x3ed   :  { %v824_v32 = vpop.f32.mrf.mxu0 }
 0x3ef   :  { %v9921_v61 = vpop.f32.mrf.mxu0 }
 0x3f1   :  { %v829_v33 = vpop.f32.mrf.mxu0 }
 0x3f3   :  { %v9924_v35 = vpop.f32.mrf.mxu0 }
 0x3f5   :  { %v832_v36 = vpop.f32.mrf.mxu0 }
 0x3f7   :  { %v9925_v37 = vpop.f32.mrf.mxu0 }
 0x3f9   :  { %v837_v38 = vpop.f32.mrf.mxu0 }
 0x3fb   :  { %v9928_v39 = vpop.f32.mrf.mxu0 }
 0x3fd   :  { %v840_v40 = vpop.f32.mrf.mxu0 }
 0x3ff   :  { %v9929_v41 = vpop.f32.mrf.mxu0 }
 0x401   :  { %v845_v42 = vpop.f32.mrf.mxu0 }
 0x403   :  { %v9932_v45 = vpop.f32.mrf.mxu0 }
 0x405   :  { %v848_v11 = vpop.f32.mrf.mxu0 }
 0x407   :  { %v9933_v10 = vpop.f32.mrf.mxu0 }
 0x409   :  { %v853_v46 = vpop.f32.mrf.mxu0 }
 0x40b   :  { %v9936_v47 = vpop.f32.mrf.mxu0 }
 0x40d   :  { %v856_v31 = vpop.f32.mrf.mxu0 }
 0x40f   :  { %v9937_v49 = vpop.f32.mrf.mxu0 }
 0x467   :  { %v698_v14 = vpop.f32.mrf.mxu1 }
 0x468   :  { %v822_v2 = vadd.f32 %v821_v60, %v698_v14 }
 0x469   :  { %v9888_v52 = vpop.f32.mrf.mxu1 }
 0x46a   :  { %v859_v19 = vsel %vm211_vm2, %v822_v2, 0.0 }
 0x46b   :  { %v701_v13 = vpop.f32.mrf.mxu1 }
 0x46c   :  { %v825_v63 = vadd.f32 %v824_v32, %v701_v13 }
 0x46d   :  { %v9889_v58 = vpop.f32.mrf.mxu1 }
 0x46e   :  { %v860_v8 = vsel %vm211_vm2, %v825_v63, 0.0 }
 0x46f   :  { %v861_v25 = vadd.f32 %v860_v8, %v859_v19 }
 0x47c   :  { %v706_v59 = vpop.f32.mrf.mxu1 }
 0x47d   :  { %v830_v4 = vadd.f32 %v829_v33, %v706_v59 }
 0x47e   :  { %v9892_v50 = vpop.f32.mrf.mxu1 }
 0x47f   :  { %v862_v22 = vsel %vm211_vm2, %v830_v4, 0.0 }
 0x480   :  { %v709_v23 = vpop.f32.mrf.mxu1  ;;  %v863_v61 = vadd.f32 %v862_v22, %v861_v25 }
 0x481   :  { %v833_v15 = vadd.f32 %v832_v36, %v709_v23 }
 0x482   :  { %v9893_v62 = vpop.f32.mrf.mxu1 }
 0x483   :  { %v864_v27 = vsel %vm211_vm2, %v833_v15, 0.0 }
 0x484   :  { %v714_v1 = vpop.f32.mrf.mxu1  ;;  %v865_v35 = vadd.f32 %v864_v27, %v863_v61 }
 0x485   :  { %v838_v24 = vadd.f32 %v837_v38, %v714_v1 }
 0x486   :  { %v9896_v6 = vpop.f32.mrf.mxu1 }
 0x487   :  { %v866_v60 = vsel %vm211_vm2, %v838_v24, 0.0 }
 0x488   :  { %v717_v16 = vpop.f32.mrf.mxu1  ;;  %v867_v39 = vadd.f32 %v866_v60, %v865_v35 }
 0x489   :  { %v841_v30 = vadd.f32 %v840_v40, %v717_v16 }
 0x48a   :  { %v9897_v26 = vpop.f32.mrf.mxu1 }
 0x48b   :  { %v868_v36 = vsel %vm211_vm2, %v841_v30, 0.0 }
 0x48c   :  { %v722_v32 = vpop.f32.mrf.mxu1  ;;  %v869_v38 = vadd.f32 %v868_v36, %v867_v39 }
 0x48d   :  { %v846_v33 = vadd.f32 %v845_v42, %v722_v32 }
 0x48e   :  { %v9900_v37 = vpop.f32.mrf.mxu1 }
 0x48f   :  { %v870_v45 = vsel %vm211_vm2, %v846_v33, 0.0 }
 0x490   :  { %v725_v41 = vpop.f32.mrf.mxu1  ;;  %v871_v49 = vadd.f32 %v870_v45, %v869_v38 }
 0x491   :  { %v849_v10 = vadd.f32 %v848_v11, %v725_v41 }
 0x492   :  { %v9901_v47 = vpop.f32.mrf.mxu1 }
 0x493   :  { %v872_v31 = vsel %vm211_vm2, %v849_v10, 0.0 }
 0x494   :  { %v730_v40 = vpop.f32.mrf.mxu1  ;;  %v873_v52 = vadd.f32 %v872_v31, %v871_v49 }
 0x495   :  { %v854_v14 = vadd.f32 %v853_v46, %v730_v40 }
 0x496   :  { %v9904_v13 = vpop.f32.mrf.mxu1 }
 0x497   :  { %v874_v42 = vsel %vm211_vm2, %v854_v14, 0.0 }
 0x498   :  { %v875_v58 = vadd.f32 %v874_v42, %v873_v52  ;;  %v733_v59 = vpop.f32.mrf.mxu1 }
 0x49a   :  { %v876_v50 = vrot.slane %v875_v58, 4  ;;  %v9905_v23 = vpop.f32.mrf.mxu1 }
 0x49c   :  { %v877_v62 = vadd.f32 %v876_v50, %v875_v58 }
 0x49e   :  { %v878_v1 = vrot.slane %v877_v62, 2 }
 0x4a0   :  { %v879_v6 = vadd.f32 %v878_v1, %v877_v62 }
 0x4a2   :  { %v880_v8 = vrot.slane %v879_v6, 1 }
 0x4a4   :  { %v881_v11 = vadd.f32 %v880_v8, %v879_v6 }
 0x4a6   :  { %887 = vrot.lane.b32.xlu0 %v881_v11, %s10977_s5  ;;  %883 = vrot.lane.b32.xlu1 %v881_v11, %s10976_s6 }
 0x518   :  { %v884_v16 = vpop.permute.xlu1 %883  ;;  %v888_v46 = vpop.permute.xlu0 %887 }
 0x519   :  { %v886_v19 = vadd.f32 %v884_v16, %v881_v11 }
 0x51b   :  { %v890_v22 = vadd.f32 %v888_v46, %v886_v19 }
 0x51d   :  { %v891_v25 = vmul.f32 0.0046296297, %v890_v22 }
 0x51f   :  { %896 = vrot.lane.b32.xlu0 %v891_v25, %s10977_s5  ;;  %893 = vrot.lane.b32.xlu1 %v891_v25, %s10978_s28 }
 0x591   :  { %v897_v26 = vpop.permute.xlu0 %896  ;;  %v894_v27 = vpop.permute.xlu1 %893 }
 0x592   :  { %v899_v61 = vsel %vm123_vm1, %v891_v25, %v894_v27 }
 0x593   :  { %v900_v32 = vsel %vm254_vm3, %v899_v61, %v897_v26 }
 0x594   :  { %v904_v60 = vrot.slane %v900_v32, %v11181_v5 }
 0x596   :  { %v11543_v35 = vsub.f32 %v822_v2, %v904_v60  ;;  %v11545_v37 = vsub.f32 %v825_v63, %v904_v60  ;;  %v11547_v36 = vsub.f32 %v830_v4, %v904_v60  ;;  %v11549_v39 = vsub.f32 %v833_v15, %v904_v60 }
 0x597   :  { %v11551_v41 = vsub.f32 %v838_v24, %v904_v60  ;;  %v11559_v31 = vsub.f32 %v841_v30, %v904_v60  ;;  %v11565_v24 = vsub.f32 %v846_v33, %v904_v60  ;;  %v11570_v13 = vsub.f32 %v849_v10, %v904_v60 }
 0x598   :  { %v914_v45 = vmul.f32 %v11543_v35, %v11543_v35  ;;  %v915_v38 = vmul.f32 %v11545_v37, %v11545_v37  ;;  %v916_v47 = vmul.f32 %v11547_v36, %v11547_v36  ;;  %v917_v63 = vmul.f32 %v11549_v39, %v11549_v39 }
 0x599   :  { %v918_v49 = vmul.f32 %v11551_v41, %v11551_v41  ;;  %v919_v30 = vmul.f32 %v11559_v31, %v11559_v31  ;;  %v11575_v59 = vsub.f32 %v854_v14, %v904_v60  ;;  %v920_v33 = vmul.f32 %v11565_v24, %v11565_v24  ;;  %v10202_v60 = vld [vmem:[%s16765_s10 + $0xc8] ss:$20 sps:$4 sm:$0xff]  }
 0x59a   :  { %v923_v2 = vsel %vm211_vm2, %v914_v45, 0.0  ;;  %v924_v4 = vsel %vm211_vm2, %v915_v38, 0.0  ;;  %v926_v40 = vsel %vm211_vm2, %v916_v47, 0.0  ;;  %v928_v42 = vsel %vm211_vm2, %v917_v63, 0.0  ;;  %v10204_v45 = vld [vmem:[%s16765_s10 + $0xcc] ss:$20 sps:$4 sm:$0xff]  }
 0x59b   :  { %v925_v15 = vadd.f32 %v924_v4, %v923_v2  ;;  %v930_v50 = vsel %vm211_vm2, %v918_v49, 0.0  ;;  %v921_v62 = vmul.f32 %v11570_v13, %v11570_v13  ;;  %v932_v10 = vsel %vm211_vm2, %v919_v30, 0.0  ;;  %v10207_v38 = vld [vmem:[%s16765_s10 + $0xa4] ss:$20 sps:$4 sm:$0xff]   ;;  %1227 = vmatprep.subr.bf16.mxu1 %v10204_v45  ;;  %v10210_v63 = vld [vmem:[%s16765_s10 + $0xd4] ss:$20 sps:$4 sm:$0xff]  }
 0x59c   :  { %v922_v6 = vmul.f32 %v11575_v59, %v11575_v59  ;;  %v934_v8 = vsel %vm211_vm2, %v920_v33, 0.0  ;;  %v10208_v47 = vld [vmem:[%s16765_s10 + $0xd0] ss:$20 sps:$4 sm:$0xff]   ;;  %1228 = vmatpush1.bf16.msra.mxu1 %v10202_v60  ;;  %v10205_v2 = vld [vmem:[%s16765_s10 + $0xa0] ss:$20 sps:$4 sm:$0xff]   ;;  %1308 = vmatprep.subr.bf16.mxu0 %v10210_v63 }
 0x59d   :  { %v927_v52 = vadd.f32 %v926_v40, %v925_v15  ;;  %v936_v14 = vsel %vm211_vm2, %v921_v62, 0.0  ;;  %1229 = vmatprep.subr.bf16.mxu1 %v10207_v38  ;;  %v10213_v4 = vld [vmem:[%s16765_s10 + $0x7c] ss:$20 sps:$4 sm:$0xff]   ;;  %1309 = vmatpush1.bf16.msra.mxu0 %v10208_v47  ;;  %v10216_v49 = vld [vmem:[%s16765_s10 + $0xac] ss:$20 sps:$4 sm:$0xff]  }
 0x59e   :  { %v938_v19 = vsel %vm211_vm2, %v922_v6, 0.0  ;;  %v10214_v15 = vld [vmem:[%s16765_s10 + $0xa8] ss:$20 sps:$4 sm:$0xff]   ;;  %v10211_v40 = vld [vmem:[%s16765_s10 + $0x78] ss:$20 sps:$4 sm:$0xff]   ;;  %1310 = vmatprep.subr.bf16.mxu0 %v10216_v49 }
 0x59f   :  { %v929_v58 = vadd.f32 %v928_v42, %v927_v52  ;;  %v10219_v52 = vld [vmem:[%s16765_s10 + $0x54] ss:$20 sps:$4 sm:$0xff]   ;;  %v10222_v30 = vld [vmem:[%s16765_s10 + $0x84] ss:$20 sps:$4 sm:$0xff]   ;;  %v10225_v33 = vld [vmem:[%s16765_s10 + $0x2c] ss:$20 sps:$4 sm:$0xff]  }
 0x5a0   :  { %1230 = vmatpush1.bf16.msra.mxu1 %v10205_v2  ;;  %v10217_v42 = vld [vmem:[%s16765_s10 + $0x50] ss:$20 sps:$4 sm:$0xff]  }
 0x5a1   :  { %v931_v23 = vadd.f32 %v930_v50, %v929_v58  ;;  %1231 = vmatprep.subr.bf16.mxu1 %v10213_v4  ;;  %1311 = vmatpush1.bf16.msra.mxu0 %v10214_v15  ;;  %v10220_v58 = vld [vmem:[%s16765_s10 + $0x80] ss:$20 sps:$4 sm:$0xff]   ;;  %v10223_v50 = vld [vmem:[%s16765_s10 + $0x28] ss:$20 sps:$4 sm:$0xff]  }
 0x5a2   :  { %1312 = vmatprep.subr.bf16.mxu0 %v10222_v30  ;;  %v8924_v4 = vld [vmem:[%s16767_s9] ss:$0 sm:$0xff] }
 0x5a3   :  { %v933_v1 = vadd.f32 %v932_v10, %v931_v23 }
 0x5a4   :  { %1232 = vmatpush1.bf16.msra.mxu1 %v10211_v40 }
 0x5a5   :  { %v935_v11 = vadd.f32 %v934_v8, %v933_v1  ;;  %1233 = vmatprep.subr.bf16.mxu1 %v10219_v52  ;;  %1313 = vmatpush1.bf16.msra.mxu0 %v10220_v58 }
 0x5a7   :  { %v937_v16 = vadd.f32 %v936_v14, %v935_v11  ;;  %v10226_v11 = vld [vmem:[%s16765_s10 + $0x58] ss:$20 sps:$4 sm:$0xff]   ;;  %v10228_v14 = vld [vmem:[%s16765_s10 + $0x5c] ss:$20 sps:$4 sm:$0xff]  }
 0x5a8   :  { %1234 = vmatpush1.bf16.msra.mxu1 %v10217_v42  ;;  %1314 = vmatprep.subr.bf16.mxu0 %v10228_v14  ;;  %v10240_v14 = vld [vmem:[%s16765_s10 + $0x88] ss:$20 sps:$4 sm:$0xff]  }
 0x5a9   :  { %v939_v46 = vadd.f32 %v938_v19, %v937_v16  ;;  %1235 = vmatprep.subr.bf16.mxu1 %v10225_v33  ;;  %v10231_v16 = vld [vmem:[%s16765_s10 + $0x34] ss:$20 sps:$4 sm:$0xff]   ;;  %1315 = vmatpush1.bf16.msra.mxu0 %v10226_v11 }
 0x5aa   :  { %v10232_v19 = vld [vmem:[%s16765_s10] ss:$20 sps:$4 sm:$0xff]   ;;  %1316 = vmatprep.subr.bf16.mxu0 %v10231_v16 }
 0x5ab   :  { %v940_v22 = vrot.slane %v939_v46, 4 }
 0x5ac   :  { %1236 = vmatpush1.bf16.msra.mxu1 %v10223_v50 }
 0x5ad   :  { %v941_v25 = vadd.f32 %v940_v22, %v939_v46  ;;  %v10234_v46 = vld [vmem:[%s16765_s10 + $0x4] ss:$20 sps:$4 sm:$0xff]  }
 0x5ae   :  { %v10229_v22 = vld [vmem:[%s16765_s10 + $0x30] ss:$20 sps:$4 sm:$0xff]   ;;  %1237 = vmatprep.subr.bf16.mxu1 %v10234_v46  ;;  %v10241_v46 = vld [vmem:[%s16765_s10 + $0x60] ss:$20 sps:$4 sm:$0xff]  }
 0x5af   :  { %v942_v26 = vrot.slane %v941_v25, 2  ;;  %1317 = vmatpush1.bf16.msra.mxu0 %v10229_v22 }
 0x5b0   :  { %1238 = vmatpush1.bf16.msra.mxu1 %v10232_v19 }
 0x5b1   :  { %v943_v27 = vadd.f32 %v942_v26, %v941_v25  ;;  %v956_v25 = vld [vmem:[%s16766_s8] sm:$0x1]  ;;  %9938 = vmatprep.subr.bf16.mxu1 %v16789_v0 }
 0x5b2   :  { %v10237_v26 = vld [vmem:[%s16765_s10 + $0xc] ss:$20 sps:$4 sm:$0xff]  }
 0x5b3   :  { %v944_v61 = vrot.slane %v943_v27, 1  ;;  %1318 = vmatprep.subr.bf16.mxu0 %v10237_v26 }
 0x5b5   :  { %v945_v32 = vadd.f32 %v944_v61, %v943_v27 }
 0x5b7   :  { %951 = vrot.lane.b32.xlu0 %v945_v32, %s10977_s5  ;;  %947 = vrot.lane.b32.xlu1 %v945_v32, %s10976_s6 }
 0x629   :  { %v948_v23 = vpop.permute.xlu1 %947  ;;  %v952_v10 = vpop.permute.xlu0 %951 }
 0x62a   :  { %v950_v62 = vadd.f32 %v948_v23, %v945_v32  ;;  %v10235_v32 = vld [vmem:[%s16765_s10 + $0x8] ss:$20 sps:$4 sm:$0xff]  }
 0x62b   :  { %1319 = vmatpush1.bf16.msra.mxu0 %v10235_v32  ;;  %v10243_v32 = vld [vmem:[%s16765_s10 + $0x10] ss:$20 sps:$4 sm:$0xff]  }
 0x62c   :  { %v954_v1 = vadd.f32 %v952_v10, %v950_v62  ;;  %v10238_v10 = vld [vmem:[%s16765_s10 + $0xd8] ss:$20 sps:$4 sm:$0xff]  }
 0x62e   :  { %v955_v6 = vmul.f32 0.0046296297, %v954_v1  ;;  %v10239_v1 = vld [vmem:[%s16765_s10 + $0xb0] ss:$20 sps:$4 sm:$0xff]  }
 0x630   :  { %v957_v8 = vadd.f32 1e-05, %v955_v6 }
 0x632   :  { %10964 = vrsqrt.f32 %v957_v8 }
 0x63f   :  { %v10965_v27 = vpop.eup %10964 }
 0x640   :  { %v959_v61 = vmul.f32 %v10965_v27, %v956_v25  ;;  %v10242_v27 = vld [vmem:[%s16765_s10 + $0x38] ss:$20 sps:$4 sm:$0xff]  }
 0x642   :  { %v964_v60 = vrot.slane %v959_v61, %v11181_v5 }
 0x644   :  { %968 = vrot.lane.b32.xlu0 %v964_v60, %s10977_s5  ;;  %965 = vrot.lane.b32.xlu1 %v964_v60, %s10978_s28 }
 0x6b6   :  { %v969_v45 = vpop.permute.xlu0 %968  ;;  %v966_v38 = vpop.permute.xlu1 %965 }
 0x6b7   :  { %v971_v47 = vsel %vm123_vm1, %v959_v61, %v966_v38 }
 0x6b8   :  { %v972_v63 = vsel %vm254_vm3, %v971_v47, %v969_v45 }
 0x6b9   :  { %v976_v2 = vrot.slane %v972_v63, %v11181_v5 }
 0x6bb   :  { %v977_v15 = vmul.f32 %v976_v2, %v11543_v35  ;;  %v978_v49 = vmul.f32 %v976_v2, %v11545_v37  ;;  %v979_v30 = vmul.f32 %v976_v2, %v11547_v36  ;;  %v980_v42 = vmul.f32 %v976_v2, %v11549_v39 }
 0x6bc   :  { %v981_v36 = vmul.f32 %v976_v2, %v11551_v41  ;;  %v982_v39 = vmul.f32 %v976_v2, %v11559_v31  ;;  %v983_v16 = vmul.f32 %v976_v2, %v11565_v24  ;;  %v984_v19 = vmul.f32 %v976_v2, %v11570_v13 }
 0x6bd   :  { %v993_v40 = vadd.f32 %v8924_v4, %v977_v15  ;;  %v994_v52 = vadd.f32 %v8924_v4, %v978_v49  ;;  %v995_v23 = vadd.f32 %v8924_v4, %v979_v30  ;;  %v996_v62 = vadd.f32 %v8924_v4, %v980_v42 }
 0x6be   :  { %v997_v8 = vadd.f32 %v8924_v4, %v981_v36  ;;  %v998_v11 = vadd.f32 %v8924_v4, %v982_v39  ;;  %v999_v25 = vadd.f32 %v8924_v4, %v983_v16  ;;  %v1000_v26 = vadd.f32 %v8924_v4, %v984_v19 }
 0x6bf   :  { %v1002_v58 = vmax.f32 %v993_v40, 0.0  ;;  %v1003_v33 = vmax.f32 %v994_v52, 0.0  ;;  %v1004_v35 = vmax.f32 %v995_v23, 0.0  ;;  %v1005_v37 = vmax.f32 %v996_v62, 0.0 }
 0x6c0   :  { %v1006_v41 = vmax.f32 %v997_v8, 0.0  ;;  %v1007_v31 = vmax.f32 %v998_v11, 0.0  ;;  %v1008_v24 = vmax.f32 %v999_v25, 0.0  ;;  %v1009_v13 = vmax.f32 %v1000_v26, 0.0 }
 0x6c1   :  { %v1011_v50 = vpack.c.bf16 %v1003_v33, %v1002_v58  ;;  %v1012_v6 = vpack.c.bf16 %v1005_v37, %v1004_v35  ;;  %v985_v61 = vmul.f32 %v976_v2, %v11575_v59 }
 0x6c2   :  { %v1013_v22 = vpack.c.bf16 %v1007_v31, %v1006_v41  ;;  %v1014_v60 = vpack.c.bf16 %v1009_v13, %v1008_v24 }
 0x6c3   :  { %8955 = vmatmul.mubr.msk.bf16.vlgmr.msra.gmra.mxu1 %vm211_vm2, %v1011_v50  ;;  %8960 = vmatmul.mubr.msk.bf16.vlgmr.msra.gmra.mxu0 %vm211_vm2, %v1011_v50  ;;  %v1001_v45 = vadd.f32 %v8924_v4, %v985_v61 }
 0x6c4   :  { %1265 = vmatprep.mubr.bf16.mxu1 %v16787_v51  ;;  %1346 = vmatprep.mubr.bf16.mxu0 %v16787_v51 }
 0x6c5   :  { %9939 = vmatpush3.bf16.msra.mxu1 %v10238_v10  ;;  %v1010_v38 = vmax.f32 %v1001_v45, 0.0 }
 0x6c6   :  { %9940 = vmatprep.subr.bf16.mxu1 %v16789_v0 }
 0x6c7   :  { %v1015_v59 = vpack.c.bf16 %v1010_v38, %v1010_v38 }
 0x6c9   :  { %9941 = vmatpush3.bf16.msra.mxu1 %v10239_v1 }
 0x6ca   :  { %9942 = vmatprep.subr.bf16.mxu1 %v16789_v0 }
 0x6cb   :  { %8956 = vmatmul.mubr.msk.bf16.gmra.mxu1 %vm211_vm2, %v1012_v6  ;;  %8961 = vmatmul.mubr.msk.bf16.gmra.mxu0 %vm211_vm2, %v1012_v6 }
 0x6cc   :  { %1275 = vmatprep.mubr.bf16.mxu1 %v16787_v51  ;;  %1356 = vmatprep.mubr.bf16.mxu0 %v16787_v51 }
 0x6cd   :  { %9943 = vmatpush3.bf16.msra.mxu1 %v10240_v14 }
 0x6ce   :  { %9944 = vmatprep.subr.bf16.mxu1 %v16789_v0 }
 0x6d1   :  { %9945 = vmatpush3.bf16.msra.mxu1 %v10241_v46 }
 0x6d2   :  { %9946 = vmatprep.subr.bf16.mxu1 %v16789_v0 }
 0x6d3   :  { %8957 = vmatmul.mubr.msk.bf16.gmra.mxu1 %vm211_vm2, %v1013_v22  ;;  %8962 = vmatmul.mubr.msk.bf16.gmra.mxu0 %vm211_vm2, %v1013_v22 }
 0x6d4   :  { %1285 = vmatprep.mubr.bf16.mxu1 %v16787_v51  ;;  %1366 = vmatprep.mubr.bf16.mxu0 %v16787_v51 }
 0x6d5   :  { %9947 = vmatpush3.bf16.msra.mxu1 %v10242_v27 }
 0x6d6   :  { %9948 = vmatprep.subr.bf16.mxu1 %v16789_v0 }
 0x6d9   :  { %9949 = vmatpush3.bf16.msra.mxu1 %v10243_v32 }
 0x6db   :  { %8958 = vmatmul.mubr.msk.bf16.gmra.mxu1 %vm211_vm2, %v1014_v60  ;;  %8963 = vmatmul.mubr.msk.bf16.gmra.mxu0 %vm211_vm2, %v1014_v60 }
 0x6dc   :  { %1295 = vmatprep.mubr.bf16.mxu1 %v16787_v51  ;;  %1376 = vmatprep.mubr.bf16.mxu0 %v16787_v51 }
 0x6e3   :  { %8959 = vmatmul.mubr.msk.bf16.gmra.mxu1 %vm211_vm2, %v1015_v59  ;;  %8964 = vmatmul.mubr.msk.bf16.gmra.mxu0 %vm211_vm2, %v1015_v59 }
 0x6e4   :  { %9950 = vmatprep.mubr.msk.bf16.mxu1 %vm10975_vm0, %v16789_v0  ;;  %2585 = vmatprep.mubr.bf16.mxu0 %v16787_v51 }
 0x6eb   :  { %9951 = vmatmul.mubr.msk.bf16.vlgmr.msra.gmra.mxu1 %vm211_vm2, %v1011_v50 }
 0x6ec   :  { %9954 = vmatprep.mubr.msk.bf16.mxu1 %vm10975_vm0, %v16789_v0 }
 0x6f3   :  { %9955 = vmatmul.mubr.msk.bf16.gmra.mxu1 %vm211_vm2, %v1012_v6 }
 0x6f4   :  { %9958 = vmatprep.mubr.msk.bf16.mxu1 %vm10975_vm0, %v16789_v0 }
 0x6fb   :  { %9959 = vmatmul.mubr.msk.bf16.gmra.mxu1 %vm211_vm2, %v1013_v22 }
 0x6fc   :  { %9962 = vmatprep.mubr.msk.bf16.mxu1 %vm10975_vm0, %v16789_v0 }
 0x703   :  { %9963 = vmatmul.mubr.msk.bf16.gmra.mxu1 %vm211_vm2, %v1014_v60 }
 0x704   :  { %9966 = vmatprep.mubr.msk.bf16.mxu1 %vm10975_vm0, %v16789_v0 }
 0x70b   :  { %9967 = vmatmul.mubr.msk.bf16.gmra.mxu1 %vm211_vm2, %v1015_v59 }
 0x70c   :  { %2666 = vmatprep.mubr.bf16.mxu1 %v16787_v51 }
 0x783   :  { %v11742_v47 = vpop.f32.mrf.mxu1  ;;  %v11744_v63 = vpop.f32.mrf.mxu0 }
 0x785   :  { %v11746_v2 = vpop.f32.mrf.mxu1  ;;  %v11748_v4 = vpop.f32.mrf.mxu0 }
 0x787   :  { %v11750_v15 = vpop.f32.mrf.mxu1  ;;  %v11752_v49 = vpop.f32.mrf.mxu0 }
 0x788   :  { %v1457_v1 = vadd.f32 %v11750_v15, %v11742_v47  ;;  %v1485_v6 = vadd.f32 %v11752_v49, %v11744_v63 }
 0x789   :  { %v11754_v40 = vpop.f32.mrf.mxu1  ;;  %v11756_v52 = vpop.f32.mrf.mxu0 }
 0x78a   :  { %v1471_v14 = vadd.f32 %v11754_v40, %v11746_v2  ;;  %v1499_v41 = vadd.f32 %v11756_v52, %v11748_v4 }
 0x78b   :  { %v11758_v30 = vpop.f32.mrf.mxu1  ;;  %v11760_v42 = vpop.f32.mrf.mxu0 }
 0x78c   :  { %v1458_v31 = vadd.f32 %v1457_v1, %v11758_v30  ;;  %v1486_v16 = vadd.f32 %v1485_v6, %v11760_v42 }
 0x78d   :  { %v11762_v58 = vpop.f32.mrf.mxu1  ;;  %v11764_v33 = vpop.f32.mrf.mxu0 }
 0x78e   :  { %v1472_v22 = vadd.f32 %v1471_v14, %v11762_v58  ;;  %v1500_v25 = vadd.f32 %v1499_v41, %v11764_v33 }
 0x78f   :  { %v11766_v50 = vpop.f32.mrf.mxu1  ;;  %v11768_v23 = vpop.f32.mrf.mxu0 }
 0x790   :  { %v1459_v26 = vadd.f32 %v1458_v31, %v11766_v50  ;;  %v1487_v27 = vadd.f32 %v1486_v16, %v11768_v23 }
 0x791   :  { %v11770_v62 = vpop.f32.mrf.mxu1  ;;  %v11772_v10 = vpop.f32.mrf.mxu0 }
 0x792   :  { %v1473_v61 = vadd.f32 %v1472_v22, %v11770_v62  ;;  %v1501_v32 = vadd.f32 %v1500_v25, %v11772_v10 }
 0x793   :  { %v11774_v35 = vpop.f32.mrf.mxu1  ;;  %v11776_v37 = vpop.f32.mrf.mxu0 }
 0x794   :  { %v1460_v60 = vadd.f32 %v1459_v26, %v11774_v35  ;;  %v1488_v45 = vadd.f32 %v1487_v27, %v11776_v37 }
 0x795   :  { %v11778_v36 = vpop.f32.mrf.mxu1  ;;  %v11780_v39 = vpop.f32.mrf.mxu0 }
 0x796   :  { %v1474_v1 = vadd.f32 %v1473_v61, %v11778_v36  ;;  %v1502_v6 = vadd.f32 %v1501_v32, %v11780_v39 }
 0x797   :  { %v11786_v8 = vpop.f32.mrf.mxu1  ;;  %v11788_v11 = vpop.f32.mrf.mxu0 }
 0x798   :  { %v1461_v14 = vadd.f32 %v1460_v60, %v11786_v8  ;;  %v1489_v41 = vadd.f32 %v1488_v45, %v11788_v11 }
 0x799   :  { %v11796_v19 = vpop.f32.mrf.mxu1  ;;  %v11798_v46 = vpop.f32.mrf.mxu0 }
 0x79a   :  { %v1475_v22 = vadd.f32 %v1474_v1, %v11796_v19  ;;  %v1503_v25 = vadd.f32 %v1502_v6, %v11798_v46 }
 0x79b   :  { %v11804_v24 = vpop.f32.mrf.mxu1  ;;  %v11806_v13 = vpop.f32.mrf.mxu0 }
 0x79c   :  { %v1462_v26 = vadd.f32 %v1461_v14, %v11804_v24  ;;  %v1490_v27 = vadd.f32 %v1489_v41, %v11806_v13 }
 0x79d   :  { %v11812_v38 = vpop.f32.mrf.mxu1  ;;  %v11814_v59 = vpop.f32.mrf.mxu0 }
 0x79e   :  { %v1476_v32 = vadd.f32 %v1475_v22, %v11812_v38  ;;  %v1504_v60 = vadd.f32 %v1503_v25, %v11814_v59 }
 0x79f   :  { %v11820_v31 = vpop.f32.mrf.mxu1  ;;  %v11822_v16 = vpop.f32.mrf.mxu0 }
 0x7a0   :  { %v1463_v45 = vadd.f32 %v1462_v26, %v11820_v31  ;;  %v1491_v0 = vadd.f32 %v1490_v27, %v11822_v16 }
 0x7a1   :  { %v11828_v51 = vpop.f32.mrf.mxu1  ;;  %v11830_v61 = vpop.f32.mrf.mxu0 }
 0x7a2   :  { %v1477_v6 = vadd.f32 %v1476_v32, %v11828_v51  ;;  %v1505_v14 = vadd.f32 %v1504_v60, %v11830_v61 }
 0x7a3   :  { %v11836_v17 = vpop.f32.mrf.mxu1  ;;  %v11838_v1 = vpop.f32.mrf.mxu0 }
 0x7a4   :  { %v1464_v41 = vadd.f32 %v1463_v45, %v11836_v17  ;;  %v1492_v34 = vadd.f32 %v1491_v0, %v11838_v1 }
 0x7a5   :  { %v11844_v12 = vpop.f32.mrf.mxu1  ;;  %v11846_v22 = vpop.f32.mrf.mxu0 }
 0x7a6   :  { %v1465_v25 = vrot.slane %v1464_v41, 4  ;;  %v1493_v26 = vrot.slane %v1492_v34, 4  ;;  %v1478_v27 = vadd.f32 %v1477_v6, %v11844_v12  ;;  %v1506_v21 = vadd.f32 %v1505_v14, %v11846_v22 }
 0x7a7   :  { %v1301_v20 = vpop.f32.mrf.mxu1  ;;  %v1382_v56 = vpop.f32.mrf.mxu0 }
 0x7a8   :  { %v1466_v18 = vadd.f32 %v1465_v25, %v1464_v41  ;;  %v1494_v32 = vadd.f32 %v1493_v26, %v1492_v34  ;;  %v1479_v54 = vrot.slane %v1478_v27, 4  ;;  %v1507_v60 = vrot.slane %v1506_v21, 4 }
 0x7a9   :  { %v1302_v53 = vpop.f32.mrf.mxu1  ;;  %v1383_v45 = vpop.f32.mrf.mxu0 }
 0x7aa   :  { %v1467_v48 = vrot.slane %v1466_v18, 2  ;;  %v1495_v0 = vrot.slane %v1494_v32, 2  ;;  %v1480_v29 = vadd.f32 %v1479_v54, %v1478_v27  ;;  %v1508_v28 = vadd.f32 %v1507_v60, %v1506_v21 }
 0x7ab   :  { %v11850_v44 = vpop.f32.mrf.mxu1 }
 0x7ac   :  { %16951 = vst [vmem:[#allocation22_spill] sm:$0xff] %v11850_v44  ;;  %v1468_v43 = vadd.f32 %v1467_v48, %v1466_v18  ;;  %v1496_v55 = vadd.f32 %v1495_v0, %v1494_v32  ;;  %v1481_v57 = vrot.slane %v1480_v29, 2  ;;  %v1509_v6 = vrot.slane %v1508_v28, 2 }
 0x7ad   :  { %v9952_v9 = vpop.f32.mrf.mxu1 }
 0x7ae   :  { %v1482_v14 = vadd.f32 %v1481_v57, %v1480_v29  ;;  %v1510_v20 = vadd.f32 %v1509_v6, %v1508_v28  ;;  %v1469_v56 = vrot.slane %v1468_v43, 1  ;;  %v1497_v53 = vrot.slane %v1496_v55, 1 }
 0x7af   :  { %v11852_v41 = vpop.f32.mrf.mxu1 }
 0x7b0   :  { %16952 = vst [vmem:[#allocation23_spill] sm:$0xff] %v11852_v41  ;;  %v1470_v34 = vadd.f32 %v1469_v56, %v1468_v43  ;;  %v1483_v25 = vrot.slane %v1482_v14, 1  ;;  %v1511_v21 = vrot.slane %v1510_v20, 1  ;;  %v1498_v48 = vadd.f32 %v1497_v53, %v1496_v55 }
 0x7b1   :  { %v9953_v26 = vpop.f32.mrf.mxu1  ;;  %v1514_v53 = vsel %vm254_vm3, %v11852_v41, 0.0 }
 0x7b2   :  { %1537 = vrot.lane.b32.xlu1 %v1470_v34, %s10977_s5  ;;  %v1484_v54 = vadd.f32 %v1483_v25, %v1482_v14  ;;  %v1512_v57 = vadd.f32 %v1511_v21, %v1510_v20  ;;  %v1513_v26 = vsel %vm254_vm3, %v11850_v44, 0.0 }
 0x7b3   :  { %v11855_v27 = vpop.f32.mrf.mxu1 }
 0x7b4   :  { %16953 = vst [vmem:[#allocation24_spill] sm:$0xff] %v11855_v27  ;;  %1543 = vrot.lane.b32.xlu0 %v1484_v54, %s10977_s5  ;;  %v1516_v21 = vsel %vm254_vm3, %v11855_v27, 0.0 }
 0x7b5   :  { %v9956_v18 = vpop.f32.mrf.mxu1 }
 0x7b6   :  { %1549 = vrot.lane.b32.xlu1 %v1498_v48, %s10977_s5  ;;  %v1515_v18 = vadd.f32 %v1514_v53, %v1513_v26 }
 0x7b7   :  { %v11859_v9 = vpop.f32.mrf.mxu1 }
 0x7b8   :  { %16954 = vst [vmem:[#allocation25_spill] sm:$0xff] %v11859_v9  ;;  %1555 = vrot.lane.b32.xlu0 %v1512_v57, %s10977_s5 }
 0x7b9   :  { %v9957_v28 = vpop.f32.mrf.mxu1 }
 0x7ba   :  { %v1518_v28 = vsel %vm254_vm3, %v11859_v9, 0.0 }
 0x7bb   :  { %v11862_v29 = vpop.f32.mrf.mxu1 }
 0x7bc   :  { %16955 = vst [vmem:[#allocation26_spill] sm:$0xff] %v11862_v29 }
 0x7bd   :  { %v9960_v43 = vpop.f32.mrf.mxu1 }
 0x7be   :  { %v1517_v43 = vadd.f32 %v1516_v21, %v1515_v18 }
 0x7bf   :  { %v11864_v32 = vpop.f32.mrf.mxu1 }
 0x7c0   :  { %16956 = vst [vmem:[#allocation27_spill] sm:$0xff] %v11864_v32 }
 0x7c1   :  { %v9961_v60 = vpop.f32.mrf.mxu1 }
 0x7c2   :  { %v1520_v60 = vsel %vm254_vm3, %v11862_v29, 0.0 }
 0x7c3   :  { %v11866_v45 = vpop.f32.mrf.mxu1 }
 0x7c4   :  { %16957 = vst [vmem:[#allocation28_spill] sm:$0xff] %v11866_v45 }
 0x7c5   :  { %v9964_v0 = vpop.f32.mrf.mxu1 }
 0x7c6   :  { %v1519_v0 = vadd.f32 %v1518_v28, %v1517_v43 }
 0x7c7   :  { %v11868_v6 = vpop.f32.mrf.mxu1 }
 0x7c8   :  { %16958 = vst [vmem:[#allocation29_spill] sm:$0xff] %v11868_v6  ;;  %v1526_v7 = vsel %vm254_vm3, %v11868_v6, 0.0 }
 0x7c9   :  { %v9965_v55 = vpop.f32.mrf.mxu1 }
 0x7ca   :  { %v1522_v55 = vsel %vm254_vm3, %v11864_v32, 0.0 }
 0x7cb   :  { %v11870_v14 = vpop.f32.mrf.mxu1 }
 0x7cc   :  { %16959 = vst [vmem:[#allocation30_spill] sm:$0xff] %v11870_v14  ;;  %v1528_v26 = vsel %vm254_vm3, %v11870_v14, 0.0 }
 0x7cd   :  { %v9968_v20 = vpop.f32.mrf.mxu1 }
 0x7ce   :  { %v1521_v20 = vadd.f32 %v1520_v60, %v1519_v0 }
 0x7cf   :  { %v1454_v56 = vpop.f32.mrf.mxu1 }
 0x7d0   :  { %v1524_v56 = vsel %vm254_vm3, %v11866_v45, 0.0 }
 0x7d1   :  { %v9969_v25 = vpop.f32.mrf.mxu1 }
 0x7d2   :  { %v1523_v25 = vadd.f32 %v1522_v55, %v1521_v20 }
 0x7d4   :  { %v1525_v53 = vadd.f32 %v1524_v56, %v1523_v25 }
 0x7d6   :  { %v1527_v21 = vadd.f32 %v1526_v7, %v1525_v53 }
 0x7d8   :  { %v1529_v18 = vadd.f32 %v1528_v26, %v1527_v21 }
 0x7da   :  { %v1530_v3 = vrot.slane %v1529_v18, 4 }
 0x7dc   :  { %v1531_v29 = vadd.f32 %v1530_v3, %v1529_v18 }
 0x7de   :  { %v1532_v43 = vrot.slane %v1531_v29, 2 }
 0x7e0   :  { %v1533_v27 = vadd.f32 %v1532_v43, %v1531_v29 }
 0x7e2   :  { %v1534_v41 = vrot.slane %v1533_v27, 1 }
 0x7e4   :  { %v1535_v25 = vadd.f32 %v1534_v41, %v1533_v27 }
 0x824   :  { %v1538_v28 = vpop.permute.xlu1 %1537 }
 0x825   :  { %v1540_v9 = vadd.f32 %v1538_v28, %v1470_v34 }
 0x826   :  { %v1544_v60 = vpop.permute.xlu0 %1543 }
 0x827   :  { %v1541_v32 = vadd.f32 %v1540_v9, %v1484_v54 }
 0x828   :  { %v1550_v55 = vpop.permute.xlu1 %1549 }
 0x829   :  { %v1546_v0 = vadd.f32 %v1544_v60, %v1541_v32 }
 0x82a   :  { %v1556_v56 = vpop.permute.xlu0 %1555 }
 0x82b   :  { %v1547_v45 = vadd.f32 %v1546_v0, %v1498_v48 }
 0x82d   :  { %v1552_v20 = vadd.f32 %v1550_v55, %v1547_v45 }
 0x82f   :  { %v1553_v6 = vadd.f32 %v1552_v20, %v1512_v57 }
 0x831   :  { %v1558_v44 = vadd.f32 %v1556_v56, %v1553_v6 }
 0x833   :  { %v1559_v14 = vadd.f32 %v1558_v44, %v1535_v25 }
 0x835   :  { %v11890_v7 = vmul.f32 0.0015432099, %v1559_v14 }
 0x837   :  { %1563 = vrot.lane.b32.xlu1 %v11890_v7, %s10977_s5 }
 0x8a9   :  { %v1564_v3 = vpop.permute.xlu1 %1563 }
 0x8aa   :  { %v1566_v34 = vsel %vm254_vm3, %v11890_v7, %v1564_v3 }
 0x8ab   :  { %v11897_v54 = vrot.slane %v1566_v34, %v11181_v5 }
 0x8ad   :  { %v11901_v48 = vsub.f32 %v11746_v2, %v11897_v54  ;;  %v11905_v41 = vsub.f32 %v11754_v40, %v11897_v54  ;;  %v11909_v44 = vsub.f32 %v11742_v47, %v11897_v54  ;;  %v11913_v27 = vsub.f32 %v11744_v63, %v11897_v54 }
 0x8ae   :  { %v11917_v57 = vsub.f32 %v11748_v4, %v11897_v54  ;;  %v11921_v2 = vsub.f32 %v11750_v15, %v11897_v54  ;;  %v11925_v40 = vsub.f32 %v11752_v49, %v11897_v54  ;;  %v11929_v47 = vsub.f32 %v11756_v52, %v11897_v54 }
 0x8af   :  { %v11933_v63 = vsub.f32 %v11758_v30, %v11897_v54  ;;  %v11937_v4 = vsub.f32 %v11762_v58, %v11897_v54  ;;  %v11941_v15 = vsub.f32 %v11760_v42, %v11897_v54  ;;  %v11945_v49 = vsub.f32 %v11764_v33, %v11897_v54 }
 0x8b0   :  { %v11949_v52 = vsub.f32 %v11766_v50, %v11897_v54  ;;  %v11953_v30 = vsub.f32 %v11770_v62, %v11897_v54  ;;  %v11957_v58 = vsub.f32 %v11768_v23, %v11897_v54  ;;  %v11961_v42 = vsub.f32 %v11772_v10, %v11897_v54 }
 0x8b1   :  { %v1621_v33 = vmul.f32 %v11901_v48, %v11901_v48  ;;  %v1626_v9 = vmul.f32 %v11905_v41, %v11905_v41  ;;  %v11969_v50 = vsub.f32 %v11774_v35, %v11897_v54  ;;  %v11973_v62 = vsub.f32 %v11778_v36, %v11897_v54 }
 0x8b2   :  { %v11977_v23 = vsub.f32 %v11776_v37, %v11897_v54  ;;  %v11981_v10 = vsub.f32 %v11780_v39, %v11897_v54  ;;  %v11985_v29 = vsub.f32 %v11786_v8, %v11897_v54  ;;  %v11989_v35 = vsub.f32 %v11796_v19, %v11897_v54 }
 0x8b3   :  { %v1631_v36 = vmul.f32 %v11937_v4, %v11937_v4  ;;  %v1679_v32 = vadd.f32 %v1626_v9, %v1621_v33  ;;  %v11995_v37 = vsub.f32 %v11788_v11, %v11897_v54  ;;  %v11999_v39 = vsub.f32 %v11798_v46, %v11897_v54 }
 0x8b4   :  { %16960 = vst [vmem:[#allocation31_spill] sm:$0xff] %v11977_v23  ;;  %v12003_v8 = vsub.f32 %v11804_v24, %v11897_v54  ;;  %v12007_v19 = vsub.f32 %v11812_v38, %v11897_v54  ;;  %v12011_v45 = vsub.f32 %v11806_v13, %v11897_v54  ;;  %v12015_v11 = vsub.f32 %v11814_v59, %v11897_v54 }
 0x8b5   :  { %16961 = vst [vmem:[#allocation32_spill] sm:$0xff] %v11995_v37  ;;  %v1636_v46 = vmul.f32 %v11953_v30, %v11953_v30  ;;  %v1680_v6 = vadd.f32 %v1679_v32, %v1631_v36  ;;  %v1641_v24 = vmul.f32 %v11973_v62, %v11973_v62  ;;  %v1620_v14 = vmul.f32 %v11909_v44, %v11909_v44 }
 0x8b6   :  { %16962 = vst [vmem:[#allocation33_spill] sm:$0xff] %v12011_v45  ;;  %16963 = vst [vmem:[#allocation34_spill] sm:$0xff] %v12015_v11  ;;  %v1622_v38 = vmul.f32 %v11913_v27, %v11913_v27  ;;  %v1623_v13 = vmul.f32 %v11917_v57, %v11917_v57  ;;  %v1625_v59 = vmul.f32 %v11921_v2, %v11921_v2 }
 0x8b7   :  { %v1681_v53 = vadd.f32 %v1680_v6, %v1636_v46  ;;  %v1627_v26 = vmul.f32 %v11925_v40, %v11925_v40  ;;  %v1628_v21 = vmul.f32 %v11929_v47, %v11929_v47  ;;  %v12035_v18 = vsub.f32 %v11820_v31, %v11897_v54 }
 0x8b8   :  { %v12039_v28 = vsub.f32 %v11828_v51, %v11897_v54  ;;  %v12043_v43 = vsub.f32 %v11822_v16, %v11897_v54  ;;  %v12047_v60 = vsub.f32 %v11830_v61, %v11897_v54  ;;  %v12051_v0 = vsub.f32 %v11836_v17, %v11897_v54 }
 0x8b9   :  { %v12055_v31 = vsub.f32 %v11844_v12, %v11897_v54  ;;  %v1646_v51 = vmul.f32 %v11989_v35, %v11989_v35  ;;  %v1682_v55 = vadd.f32 %v1681_v53, %v1641_v24  ;;  %v1651_v16 = vmul.f32 %v12007_v19, %v12007_v19 }
 0x8ba   :  { %16964 = vst [vmem:[#allocation35_spill] sm:$0xff] %v12043_v43  ;;  %16965 = vst [vmem:[#allocation36_spill] sm:$0xff] %v12047_v60  ;;  %v1630_v20 = vmul.f32 %v11933_v63, %v11933_v63  ;;  %v1632_v61 = vmul.f32 %v11941_v15, %v11941_v15  ;;  %v1633_v17 = vmul.f32 %v11945_v49, %v11945_v49 }
 0x8bb   :  { %v1683_v56 = vadd.f32 %v1682_v55, %v1646_v51  ;;  %v1665_v25 = vadd.f32 %v1625_v59, %v1620_v14  ;;  %v1693_v12 = vadd.f32 %v1627_v26, %v1622_v38  ;;  %v1707_v3 = vadd.f32 %v1628_v21, %v1623_v13 }
 0x8bc   :  { %v1656_v34 = vmul.f32 %v12039_v28, %v12039_v28  ;;  %v1635_v33 = vmul.f32 %v11949_v52, %v11949_v52  ;;  %v1637_v9 = vmul.f32 %v11957_v58, %v11957_v58  ;;  %v1638_v36 = vmul.f32 %v11961_v42, %v11961_v42 }
 0x8bd   :  { %v1684_v32 = vadd.f32 %v1683_v56, %v1651_v16  ;;  %v1666_v46 = vadd.f32 %v1665_v25, %v1630_v20  ;;  %v1708_v6 = vadd.f32 %v1707_v3, %v1633_v17  ;;  %v1694_v24 = vadd.f32 %v1693_v12, %v1632_v61 }
 0x8be   :  { %v1661_v14 = vmul.f32 %v12055_v31, %v12055_v31  ;;  %v1640_v38 = vmul.f32 %v11969_v50, %v11969_v50  ;;  %v1642_v13 = vmul.f32 %v11977_v23, %v11977_v23  ;;  %v1643_v53 = vmul.f32 %v11981_v10, %v11981_v10 }
 0x8bf   :  { %v1685_v59 = vadd.f32 %v1684_v32, %v1656_v34  ;;  %v1667_v26 = vadd.f32 %v1666_v46, %v1635_v33  ;;  %v1709_v21 = vadd.f32 %v1708_v6, %v1638_v36  ;;  %v1695_v51 = vadd.f32 %v1694_v24, %v1637_v9 }
 0x8c0   :  { %v12085_v55 = vsub.f32 %v11838_v1, %v11897_v54  ;;  %v1645_v16 = vmul.f32 %v11985_v29, %v11985_v29  ;;  %v1647_v20 = vmul.f32 %v11995_v37, %v11995_v37  ;;  %v1648_v61 = vmul.f32 %v11999_v39, %v11999_v39 }
 0x8c1   :  { %v1686_v17 = vadd.f32 %v1685_v59, %v1661_v14  ;;  %v1668_v56 = vadd.f32 %v1667_v26, %v1640_v38  ;;  %v1710_v25 = vadd.f32 %v1709_v21, %v1643_v53  ;;  %v1696_v12 = vadd.f32 %v1695_v51, %v1642_v13 }
 0x8c2   :  { %16966 = vst [vmem:[#allocation37_spill] sm:$0xff] %v12085_v55  ;;  %v12095_v3 = vsub.f32 %v11846_v22, %v11897_v54  ;;  %v1650_v1 = vmul.f32 %v12003_v8, %v12003_v8  ;;  %v1652_v34 = vmul.f32 %v12011_v45, %v12011_v45  ;;  %v1653_v33 = vmul.f32 %v12015_v11, %v12015_v11 }
 0x8c3   :  { %v1687_v9 = vrot.slane %v1686_v17, 4  ;;  %v1669_v36 = vadd.f32 %v1668_v56, %v1645_v16  ;;  %v1711_v32 = vadd.f32 %v1710_v25, %v1648_v61  ;;  %v1697_v46 = vadd.f32 %v1696_v12, %v1647_v20 }
 0x8c4   :  { %16967 = vst [vmem:[#allocation38_spill] sm:$0xff] %v12095_v3  ;;  %v1655_v6 = vmul.f32 %v12035_v18, %v12035_v18  ;;  %v1657_v22 = vmul.f32 %v12043_v43, %v12043_v43  ;;  %v1658_v54 = vmul.f32 %v12047_v60, %v12047_v60  ;;  %v1660_v53 = vmul.f32 %v12051_v0, %v12051_v0 }
 0x8c5   :  { %v1688_v24 = vadd.f32 %v1687_v9, %v1686_v17  ;;  %v1670_v14 = vadd.f32 %v1669_v36, %v1650_v1  ;;  %v1712_v38 = vadd.f32 %v1711_v32, %v1653_v33  ;;  %v1698_v13 = vadd.f32 %v1697_v46, %v1652_v34 }
 0x8c6   :  { %v1662_v59 = vmul.f32 %v12085_v55, %v12085_v55  ;;  %v1663_v26 = vmul.f32 %v12095_v3, %v12095_v3 }
 0x8c7   :  { %v1689_v21 = vrot.slane %v1688_v24, 2  ;;  %v1671_v51 = vadd.f32 %v1670_v14, %v1655_v6  ;;  %v1713_v16 = vadd.f32 %v1712_v38, %v1658_v54  ;;  %v1699_v20 = vadd.f32 %v1698_v13, %v1657_v22 }
 0x8c9   :  { %v1690_v61 = vadd.f32 %v1689_v21, %v1688_v24  ;;  %v1672_v56 = vadd.f32 %v1671_v51, %v1660_v53  ;;  %v1714_v25 = vadd.f32 %v1713_v16, %v1663_v26  ;;  %v1700_v17 = vadd.f32 %v1699_v20, %v1662_v59  ;;  %v16968_v21 = vld [vmem:[#allocation22_spill] sm:$0xff]  ;;  %v16970_v20 = vld [vmem:[#allocation24_spill] sm:$0xff] }
 0x8ca   :  { %v1574_v26 = vrot.slane %v11890_v7, %v11181_v5  ;;  %v16971_v7 = vld [vmem:[#allocation25_spill] sm:$0xff] }
 0x8cb   :  { %v1691_v12 = vrot.slane %v1690_v61, 1  ;;  %v1673_v1 = vrot.slane %v1672_v56, 4  ;;  %v1715_v34 = vrot.slane %v1714_v25, 4  ;;  %v1701_v33 = vrot.slane %v1700_v17, 4 }
 0x8cc   :  { %v12122_v51 = vsub.f32 %v16968_v21, %v1574_v26 }
 0x8cd   :  { %v1692_v9 = vadd.f32 %v1691_v12, %v1690_v61  ;;  %v1674_v36 = vadd.f32 %v1673_v1, %v1672_v56  ;;  %v1716_v32 = vadd.f32 %v1715_v34, %v1714_v25  ;;  %v1702_v46 = vadd.f32 %v1701_v33, %v1700_v17  ;;  %v16972_v34 = vld [vmem:[#allocation26_spill] sm:$0xff] }
 0x8ce   :  { %v12132_v61 = vsub.f32 %v16970_v20, %v1574_v26  ;;  %v1594_v17 = vsub.f32 %v16971_v7, %v1574_v26  ;;  %v1599_v33 = vsub.f32 %v16972_v34, %v1574_v26  ;;  %v16975_v20 = vld [vmem:[#allocation29_spill] sm:$0xff] }
 0x8cf   :  { %1751 = vrot.lane.b32.xlu1 %v1692_v9, %s10977_s5  ;;  %v1675_v55 = vrot.slane %v1674_v36, 2  ;;  %v1717_v3 = vrot.slane %v1716_v32, 2  ;;  %v1703_v43 = vrot.slane %v1702_v46, 2 }
 0x8d0   :  { %v1634_v12 = vmul.f32 %v12132_v61, %v12132_v61 }
 0x8d1   :  { %v1676_v6 = vadd.f32 %v1675_v55, %v1674_v36  ;;  %v1718_v54 = vadd.f32 %v1717_v3, %v1716_v32  ;;  %v1704_v22 = vadd.f32 %v1703_v43, %v1702_v46  ;;  %v16969_v55 = vld [vmem:[#allocation23_spill] sm:$0xff]  ;;  %v1624_v3 = vmul.f32 %v12122_v51, %v12122_v51 }
 0x8d2   :  { %v12125_v43 = vsub.f32 %v16969_v55, %v1574_v26  ;;  %v1639_v36 = vmul.f32 %v1594_v17, %v1594_v17  ;;  %v1724_v32 = vsel %vm254_vm3, %v1634_v12, 0.0 }
 0x8d3   :  { %v1677_v24 = vrot.slane %v1676_v6, 1  ;;  %v1719_v14 = vrot.slane %v1718_v54, 1  ;;  %v1705_v53 = vrot.slane %v1704_v22, 1  ;;  %v1721_v56 = vsel %vm254_vm3, %v1624_v3, 0.0 }
 0x8d4   :  { %v1629_v16 = vmul.f32 %v12125_v43, %v12125_v43 }
 0x8d5   :  { %v1678_v38 = vadd.f32 %v1677_v24, %v1676_v6  ;;  %v1720_v13 = vadd.f32 %v1719_v14, %v1718_v54  ;;  %v1706_v59 = vadd.f32 %v1705_v53, %v1704_v22  ;;  %v16973_v6 = vld [vmem:[#allocation27_spill] sm:$0xff]  ;;  %v1644_v22 = vmul.f32 %v1599_v33, %v1599_v33  ;;  %v16974_v53 = vld [vmem:[#allocation28_spill] sm:$0xff] }
 0x8d6   :  { %v1722_v25 = vsel %vm254_vm3, %v1629_v16, 0.0  ;;  %v1604_v54 = vsub.f32 %v16973_v6, %v1574_v26  ;;  %v1726_v24 = vsel %vm254_vm3, %v1639_v36, 0.0  ;;  %v12144_v21 = vsub.f32 %v16974_v53, %v1574_v26 }
 0x8d7   :  { %1745 = vrot.lane.b32.xlu0 %v1678_v38, %s10977_s5  ;;  %1763 = vrot.lane.b32.xlu1 %v1720_v13, %s10977_s5  ;;  %v1723_v1 = vadd.f32 %v1722_v25, %v1721_v56  ;;  %v1728_v3 = vsel %vm254_vm3, %v1644_v22, 0.0  ;;  %v1614_v56 = vsub.f32 %v16975_v20, %v1574_v26 }
 0x8d8   :  { %v1649_v55 = vmul.f32 %v1604_v54, %v1604_v54  ;;  %v1654_v25 = vmul.f32 %v12144_v21, %v12144_v21 }
 0x8d9   :  { %v1725_v46 = vadd.f32 %v1724_v32, %v1723_v1  ;;  %v16976_v1 = vld [vmem:[#allocation30_spill] sm:$0xff]  ;;  %v1659_v36 = vmul.f32 %v1614_v56, %v1614_v56 }
 0x8da   :  { %v1730_v7 = vsel %vm254_vm3, %v1649_v55, 0.0  ;;  %v12152_v34 = vsub.f32 %v16976_v1, %v1574_v26  ;;  %v1732_v32 = vsel %vm254_vm3, %v1654_v25, 0.0 }
 0x8db   :  { %1757 = vrot.lane.b32.xlu0 %v1706_v59, %s10977_s5  ;;  %v1727_v14 = vadd.f32 %v1726_v24, %v1725_v46  ;;  %v1734_v22 = vsel %vm254_vm3, %v1659_v36, 0.0 }
 0x8dc   :  { %v1664_v6 = vmul.f32 %v12152_v34, %v12152_v34 }
 0x8dd   :  { %v1729_v16 = vadd.f32 %v1728_v3, %v1727_v14 }
 0x8de   :  { %v1736_v14 = vsel %vm254_vm3, %v1664_v6, 0.0 }
 0x8df   :  { %v1731_v12 = vadd.f32 %v1730_v7, %v1729_v16 }
 0x8e1   :  { %v1733_v46 = vadd.f32 %v1732_v32, %v1731_v12 }
 0x8e3   :  { %v1735_v24 = vadd.f32 %v1734_v22, %v1733_v46 }
 0x8e5   :  { %v1737_v53 = vadd.f32 %v1736_v14, %v1735_v24  ;;  %v16977_v14 = vld [vmem:[#allocation2_spill] sm:$0xff] }
 0x8e7   :  { %v1738_v3 = vrot.slane %v1737_v53, 4 }
 0x8e9   :  { %v1739_v20 = vadd.f32 %v1738_v3, %v1737_v53  ;;  %v12163_v53 = vsub.s32 4, %v16977_v14 }
 0x8eb   :  { %v1740_v7 = vrot.slane %v1739_v20, 2  ;;  %16978 = vst [vmem:[#allocation22_spill] sm:$0xff] %v12163_v53 }
 0x8ed   :  { %v1741_v60 = vadd.f32 %v1740_v7, %v1739_v20 }
 0x8ef   :  { %v1742_v32 = vrot.slane %v1741_v60, 1 }
 0x8f1   :  { %v1743_v36 = vadd.f32 %v1742_v32, %v1741_v60 }
 0x941   :  { %v1752_v1 = vpop.permute.xlu1 %1751 }
 0x949   :  { %v1746_v55 = vpop.permute.xlu0 %1745  ;;  %v1764_v23 = vpop.permute.xlu1 %1763 }
 0x94a   :  { %v1748_v16 = vadd.f32 %v1746_v55, %v1678_v38  ;;  %v1769_v38 = vld [vmem:[%s16768_s11] sm:$0x1] }
 0x94c   :  { %v1749_v26 = vadd.f32 %v1748_v16, %v1692_v9 }
 0x94d   :  { %v1758_v12 = vpop.permute.xlu0 %1757 }
 0x94e   :  { %v1754_v45 = vadd.f32 %v1752_v1, %v1749_v26 }
 0x950   :  { %v1755_v25 = vadd.f32 %v1754_v45, %v1706_v59  ;;  %v12168_v45 = vld [vmem:[%s16769_s12] sm:$0x1f] }
 0x952   :  { %v1760_v11 = vadd.f32 %v1758_v12, %v1755_v25 }
 0x954   :  { %v1761_v37 = vadd.f32 %v1760_v11, %v1720_v13 }
 0x956   :  { %v1766_v46 = vadd.f32 %v1764_v23, %v1761_v37  ;;  %v12178_v37 = vrot.slane %v12168_v45, %v12163_v53 }
 0x958   :  { %v1767_v22 = vadd.f32 %v1766_v46, %v1743_v36 }
 0x95a   :  { %v1768_v6 = vmul.f32 0.0015432099, %v1767_v22 }
 0x95c   :  { %v1770_v24 = vadd.f32 1e-05, %v1768_v6 }
 0x95e   :  { %10966 = vrsqrt.f32 %v1770_v24 }
 0x96b   :  { %v10967_v9 = vpop.eup %10966 }
 0x96c   :  { %v12170_v11 = vmul.f32 %v10967_v9, %v1769_v38 }
 0x96e   :  { %v12174_v23 = vrot.slane %v12170_v11, %v11181_v5 }
 0x970   :  { %1778 = vrot.lane.b32.xlu0 %v12174_v23, %s10977_s5  ;;  %v1794_v60 = vmul.f32 %v12174_v23, %v12122_v51  ;;  %v1799_v13 = vmul.f32 %v12174_v23, %v12125_v43  ;;  %v1804_v59 = vmul.f32 %v12174_v23, %v12132_v61  ;;  %v1809_v3 = vmul.f32 %v12174_v23, %v1594_v17 }
 0x971   :  { %v1814_v20 = vmul.f32 %v12174_v23, %v1599_v33  ;;  %v1819_v55 = vmul.f32 %v12174_v23, %v1604_v54  ;;  %v1829_v51 = vmul.f32 %v12174_v23, %v1614_v56  ;;  %v1824_v36 = vmul.f32 %v12174_v23, %v12144_v21 }
 0x972   :  { %v12192_v16 = vadd.f32 %v12178_v37, %v1794_v60  ;;  %v12195_v7 = vadd.f32 %v12178_v37, %v1799_v13  ;;  %v12199_v26 = vadd.f32 %v12178_v37, %v1804_v59  ;;  %v12202_v43 = vadd.f32 %v12178_v37, %v1809_v3  ;;  %v10244_v60 = vld [vmem:[%s16770_s14 + $0x118] ss:$20 sps:$4 sm:$0xff]   ;;  %v10246_v13 = vld [vmem:[%s16770_s14 + $0x11c] ss:$20 sps:$4 sm:$0xff]   ;;  %v10249_v59 = vld [vmem:[%s16770_s14 + $0xf4] ss:$20 sps:$4 sm:$0xff]  }
 0x973   :  { %v12205_v61 = vadd.f32 %v12178_v37, %v1814_v20  ;;  %v12208_v17 = vadd.f32 %v12178_v37, %v1819_v55  ;;  %v12213_v1 = vadd.f32 %v12178_v37, %v1829_v51  ;;  %v12223_v22 = vadd.f32 %v12178_v37, %v1824_v36  ;;  %2553 = vmatprep.subr.bf16.mxu0 %v10246_v13  ;;  %v10250_v3 = vld [vmem:[%s16770_s14 + $0x120] ss:$20 sps:$4 sm:$0xff]   ;;  %v10252_v20 = vld [vmem:[%s16770_s14 + $0x124] ss:$20 sps:$4 sm:$0xff]   ;;  %v10258_v13 = vld [vmem:[%s16770_s14 + $0xfc] ss:$20 sps:$4 sm:$0xff]  }
 0x974   :  { %v16853_v33 = vmax.f32 %v12192_v16, 0.0  ;;  %v16852_v54 = vmax.f32 %v12195_v7, 0.0  ;;  %v16851_v56 = vmax.f32 %v12199_v26, 0.0  ;;  %v16850_v25 = vmax.f32 %v12202_v43, 0.0  ;;  %2554 = vmatpush1.bf16.msra.mxu0 %v10244_v60  ;;  %v10247_v55 = vld [vmem:[%s16770_s14 + $0xf0] ss:$20 sps:$4 sm:$0xff]   ;;  %2634 = vmatprep.subr.bf16.mxu1 %v10252_v20 }
 0x975   :  { %v16849_v12 = vmax.f32 %v12205_v61, 0.0  ;;  %v16848_v32 = vmax.f32 %v12208_v17, 0.0  ;;  %v16847_v46 = vmax.f32 %v12213_v1, 0.0  ;;  %v16846_v38 = vmax.f32 %v12223_v22, 0.0  ;;  %2555 = vmatprep.subr.bf16.mxu0 %v10249_v59  ;;  %v10255_v51 = vld [vmem:[%s16770_s14 + $0xcc] ss:$20 sps:$4 sm:$0xff]   ;;  %2635 = vmatpush1.bf16.msra.mxu1 %v10250_v3 }
 0x976   :  { %v12229_v6 = vpack.c.bf16 %v16852_v54, %v16853_v33  ;;  %v12235_v24 = vpack.c.bf16 %v16850_v25, %v16851_v56  ;;  %v10256_v36 = vld [vmem:[%s16770_s14 + $0xf8] ss:$20 sps:$4 sm:$0xff]   ;;  %v10253_v60 = vld [vmem:[%s16770_s14 + $0xc8] ss:$20 sps:$4 sm:$0xff]   ;;  %2636 = vmatprep.subr.bf16.mxu1 %v10258_v13  ;;  %v10262_v20 = vld [vmem:[%s16770_s14 + $0xd0] ss:$20 sps:$4 sm:$0xff]  }
 0x977   :  { %v12241_v21 = vpack.c.bf16 %v16848_v32, %v16849_v12  ;;  %v12248_v9 = vpack.c.bf16 %v16847_v46, %v16846_v38  ;;  %v10261_v59 = vld [vmem:[%s16770_s14 + $0xa4] ss:$20 sps:$4 sm:$0xff]   ;;  %v10264_v3 = vld [vmem:[%s16770_s14 + $0xd4] ss:$20 sps:$4 sm:$0xff]   ;;  %v10279_v38 = vld [vmem:[%s16770_s14 + $0x5c] ss:$20 sps:$4 sm:$0xff]  }
 0x978   :  { %2556 = vmatpush1.bf16.msra.mxu0 %v10247_v55  ;;  %v10267_v55 = vld [vmem:[%s16770_s14 + $0xac] ss:$20 sps:$4 sm:$0xff]   ;;  %v10280_v46 = vld [vmem:[%s16770_s14 + $0x28] ss:$20 sps:$4 sm:$0xff]  }
 0x979   :  { %16979 = vst [vmem:[#allocation23_spill] sm:$0xff] %v12241_v21  ;;  %16980 = vst [vmem:[#allocation24_spill] sm:$0xff] %v12248_v9  ;;  %2557 = vmatprep.subr.bf16.mxu0 %v10255_v51  ;;  %2637 = vmatpush1.bf16.msra.mxu1 %v10256_v36  ;;  %v10259_v13 = vld [vmem:[%s16770_s14 + $0xa0] ss:$20 sps:$4 sm:$0xff]   ;;  %v10270_v51 = vld [vmem:[%s16770_s14 + $0x7c] ss:$20 sps:$4 sm:$0xff]  }
 0x97a   :  { %2638 = vmatprep.subr.bf16.mxu1 %v10264_v3  ;;  %v10265_v36 = vld [vmem:[%s16770_s14 + $0xa8] ss:$20 sps:$4 sm:$0xff]   ;;  %v10268_v3 = vld [vmem:[%s16770_s14 + $0x78] ss:$20 sps:$4 sm:$0xff]   ;;  %v16981_v12 = vld [vmem:[#allocation6_spill] sm:$0xff] }
 0x97b   :  { %v16987_v9 = vld [vmem:[#allocation11_spill] sm:$0xff] }
 0x97c   :  { %2558 = vmatpush1.bf16.msra.mxu0 %v10253_v60  ;;  %v10273_v60 = vld [vmem:[%s16770_s14 + $0x84] ss:$20 sps:$4 sm:$0xff]  }
 0x97d   :  { %2559 = vmatprep.subr.bf16.mxu0 %v10261_v59  ;;  %2639 = vmatpush1.bf16.msra.mxu1 %v10262_v20  ;;  %v10271_v59 = vld [vmem:[%s16770_s14 + $0x80] ss:$20 sps:$4 sm:$0xff]  }
 0x97e   :  { %2640 = vmatprep.subr.bf16.mxu1 %v10267_v55  ;;  %v10276_v20 = vld [vmem:[%s16770_s14 + $0x54] ss:$20 sps:$4 sm:$0xff]   ;;  %v10274_v55 = vld [vmem:[%s16770_s14 + $0x50] ss:$20 sps:$4 sm:$0xff]  }
 0x980   :  { %2560 = vmatpush1.bf16.msra.mxu0 %v10259_v13  ;;  %v10282_v13 = vld [vmem:[%s16770_s14 + $0x2c] ss:$20 sps:$4 sm:$0xff]  }
 0x981   :  { %2561 = vmatprep.subr.bf16.mxu0 %v10270_v51  ;;  %2641 = vmatpush1.bf16.msra.mxu1 %v10265_v36  ;;  %v10277_v51 = vld [vmem:[%s16770_s14 + $0x58] ss:$20 sps:$4 sm:$0xff]   ;;  %v10285_v36 = vld [vmem:[%s16770_s14 + $0x34] ss:$20 sps:$4 sm:$0xff]  }
 0x982   :  { %2642 = vmatprep.subr.bf16.mxu1 %v10273_v60 }
 0x984   :  { %2562 = vmatpush1.bf16.msra.mxu0 %v10268_v3  ;;  %v10283_v3 = vld [vmem:[%s16770_s14 + $0x30] ss:$20 sps:$4 sm:$0xff]  }
 0x985   :  { %2563 = vmatprep.subr.bf16.mxu0 %v10276_v20  ;;  %2643 = vmatpush1.bf16.msra.mxu1 %v10271_v59 }
 0x986   :  { %2644 = vmatprep.subr.bf16.mxu1 %v10279_v38  ;;  %v1840_v38 = vrot.slane %v12168_v45, %v11181_v5 }
 0x988   :  { %2564 = vmatpush1.bf16.msra.mxu0 %v10274_v55 }
 0x989   :  { %2565 = vmatprep.subr.bf16.mxu0 %v10282_v13  ;;  %2645 = vmatpush1.bf16.msra.mxu1 %v10277_v51 }
 0x98a   :  { %2646 = vmatprep.subr.bf16.mxu1 %v10285_v36 }
 0x98c   :  { %2566 = vmatpush1.bf16.msra.mxu0 %v10280_v46 }
 0x98d   :  { %2647 = vmatpush1.bf16.msra.mxu1 %v10283_v3 }
 0x9e2   :  { %v1779_v60 = vpop.permute.xlu0 %1778 }
 0x9e3   :  { %v1781_v20 = vsel %vm254_vm3, %v12170_v11, %v1779_v60 }
 0x9e4   :  { %v12337_v59 = vrot.slane %v1781_v20, %v11181_v5 }
 0x9e6   :  { %v1800_v55 = vmul.f32 %v12337_v59, %v11933_v63  ;;  %v1805_v13 = vmul.f32 %v12337_v59, %v11949_v52  ;;  %v1810_v46 = vmul.f32 %v12337_v59, %v11969_v50  ;;  %v1790_v3 = vmul.f32 %v12337_v59, %v11909_v44 }
 0x9e7   :  { %v1795_v45 = vmul.f32 %v12337_v59, %v11921_v2  ;;  %v1820_v63 = vmul.f32 %v12337_v59, %v12003_v8  ;;  %v1815_v20 = vmul.f32 %v12337_v59, %v11985_v29  ;;  %v1830_v44 = vmul.f32 %v12337_v59, %v12051_v0  ;;  %v10291_v0 = vld [vmem:[%s16770_s14 + $0xc] ss:$20 sps:$4 sm:$0xff]  }
 0x9e8   :  { %v12347_v51 = vadd.f32 %v1840_v38, %v1800_v55  ;;  %v12349_v36 = vadd.f32 %v1840_v38, %v1805_v13  ;;  %v12351_v11 = vadd.f32 %v1840_v38, %v1810_v46  ;;  %v1825_v55 = vmul.f32 %v12337_v59, %v12035_v18  ;;  %v16982_v18 = vld [vmem:[#allocation7_spill] sm:$0xff]  ;;  %2648 = vmatprep.subr.bf16.mxu1 %v10291_v0 }
 0x9e9   :  { %v1862_v46 = vadd.f32 %v1840_v38, %v1790_v3  ;;  %v1892_v29 = vadd.f32 %v1840_v38, %v1820_v63  ;;  %v1887_v54 = vadd.f32 %v1840_v38, %v1815_v20  ;;  %v10286_v3 = vld [vmem:[%s16770_s14] ss:$20 sps:$4 sm:$0xff]  }
 0x9ea   :  { %v1917_v52 = vmax.f32 %v12347_v51, 0.0  ;;  %v1922_v60 = vmax.f32 %v12349_v36, 0.0  ;;  %v16854_v50 = vmax.f32 %v12351_v11, 0.0  ;;  %v1867_v51 = vadd.f32 %v1840_v38, %v1795_v45  ;;  %v10288_v45 = vld [vmem:[%s16770_s14 + $0x4] ss:$20 sps:$4 sm:$0xff]  }
 0x9eb   :  { %v1897_v33 = vadd.f32 %v1840_v38, %v1825_v55  ;;  %v1907_v20 = vmax.f32 %v1862_v46, 0.0  ;;  %2567 = vmatprep.subr.bf16.mxu0 %v10288_v45 }
 0x9ec   :  { %v2222_v13 = vrot.slane %v1917_v52, 1  ;;  %v2223_v2 = vrot.slane %v1922_v60, 1  ;;  %v2224_v8 = vrot.slane %v16854_v50, 1  ;;  %v1902_v50 = vadd.f32 %v1840_v38, %v1830_v44  ;;  %2568 = vmatpush1.bf16.msra.mxu0 %v10286_v3 }
 0x9ed   :  { %v2220_v38 = vrot.slane %v1907_v20, 1  ;;  %v1932_v44 = vmax.f32 %v1887_v54, 0.0 }
 0x9ee   :  { %v2233_v36 = vsel %vm503_vm4, %v2223_v2, %v2224_v8  ;;  %v2234_v32 = vsel %vm503_vm4, %v2222_v13, %v2223_v2  ;;  %v1912_v2 = vmax.f32 %v1867_v51, 0.0 }
 0x9ef   :  { %v2240_v25 = vmul.f32 %v2234_v32, %v16981_v12  ;;  %v2241_v56 = vmul.f32 %v2233_v36, %v16982_v18  ;;  %v10289_v32 = vld [vmem:[%s16770_s14 + $0x8] ss:$20 sps:$4 sm:$0xff]   ;;  %v1937_v36 = vmax.f32 %v1892_v29, 0.0  ;;  %v1942_v18 = vmax.f32 %v1897_v33, 0.0 }
 0x9f0   :  { %2649 = vmatpush1.bf16.msra.mxu1 %v10289_v32  ;;  %v2221_v55 = vrot.slane %v1912_v2, 1  ;;  %v12389_v12 = vmax.f32 %v1902_v50, 0.0  ;;  %v12391_v53 = vpack.c.bf16 %v1912_v2, %v1907_v20  ;;  %v16984_v33 = vld [vmem:[#allocation5_spill] sm:$0xff]  ;;  %v16985_v50 = vld [vmem:[#allocation4_spill] sm:$0xff]  ;;  %v2225_v32 = vrot.slane %v1932_v44, 1 }
 0x9f1   :  { %v10155_v63 = vpack.i.bf16 %v2241_v56, %v2240_v25  ;;  %v2226_v5 = vrot.slane %v1937_v36, 1  ;;  %v10294_v56 = vld [vmem:[%s16771_s13 + $0x11c] ss:$20 sps:$4 sm:$0xff]   ;;  %v16983_v25 = vmov 0.0   ;;  %v2227_v54 = vrot.slane %v1942_v18, 1 }
 0x9f2   :  { %9970 = vmatprep.subr.bf16.mxu0 %v16983_v25  ;;  %v2235_v46 = vsel %vm503_vm4, %v2221_v55, %v2222_v13  ;;  %v2236_v51 = vsel %vm503_vm4, %v2220_v38, %v2221_v55  ;;  %v2228_v3 = vrot.slane %v12389_v12, 1  ;;  %3738 = vmatprep.subr.bf16.mxu1 %v10294_v56  ;;  %v16986_v13 = vld [vmem:[#allocation10_spill] sm:$0xff]  ;;  %v16988_v56 = vld [vmem:[#allocation8_spill] sm:$0xff] }
 0x9f3   :  { %10156 = vrot.lane.b32.xlu0 %v10155_v63, %s10977_s5  ;;  %v2238_v29 = vmul.f32 %v2236_v51, %v16984_v33  ;;  %v2239_v0 = vmul.f32 %v2235_v46, %v16985_v50  ;;  %v2230_v45 = vsel %vm503_vm4, %v2226_v5, %v2227_v54  ;;  %v2231_v51 = vsel %vm503_vm4, %v2225_v32, %v2226_v5  ;;  %v16989_v33 = vld [vmem:[#allocation9_spill] sm:$0xff] }
 0x9f4   :  { %v2229_v20 = vsel %vm503_vm4, %v2227_v54, %v2228_v3  ;;  %v2244_v2 = vmul.f32 %v2230_v45, %v16986_v13  ;;  %v2232_v46 = vsel %vm503_vm4, %v2224_v8, %v2225_v32  ;;  %v2243_v21 = vmul.f32 %v2231_v51, %v16989_v33  ;;  %v16991_v32 = vld [vmem:[#allocation12_spill] sm:$0xff]  ;;  %v16996_v51 = vld [vmem:[#allocation13_spill] sm:$0xff] }
 0x9f5   :  { %v10150_v63 = vpack.i.bf16 %v2239_v0, %v2238_v29  ;;  %v2245_v55 = vmul.f32 %v2229_v20, %v16987_v9  ;;  %v2242_v50 = vmul.f32 %v2232_v46, %v16988_v56  ;;  %v12417_v0 = vpack.c.bf16 %v1922_v60, %v1917_v52 }
 0x9f6   :  { %v2237_v45 = vsel %vm503_vm4, %v2228_v3, %v2220_v38  ;;  %v16990_v5 = vmax.f32 %v12351_v11, 0.0  ;;  %v12427_v8 = vpack.c.bf16 %v1942_v18, %v1937_v36  ;;  %v16992_v38 = vmax.f32 %v12192_v16, 0.0 }
 0x9f7   :  { %10151 = vrot.lane.b32.xlu1 %v10150_v63, %s10977_s5  ;;  %v10165_v29 = vpack.i.bf16 %v2245_v55, %v2244_v2  ;;  %v10160_v54 = vpack.i.bf16 %v2243_v21, %v2242_v50  ;;  %v2246_v63 = vmul.f32 %v2237_v45, %v16991_v32  ;;  %v1834_v21 = vmul.f32 %v12174_v23, %v12152_v34 }
 0x9f8   :  { %v12424_v20 = vpack.c.bf16 %v1932_v44, %v16990_v5  ;;  %v2193_v11 = vrot.slane %v16992_v38, 7  ;;  %v16993_v44 = vmax.f32 %v12195_v7, 0.0  ;;  %v16995_v16 = vmax.f32 %v12202_v43, 0.0 }
 0x9f9   :  { %10166 = vrot.lane.b32.xlu0 %v10165_v29, %s10977_s5  ;;  %v1906_v52 = vadd.f32 %v12178_v37, %v1834_v21  ;;  %v16994_v37 = vmax.f32 %v12199_v26, 0.0  ;;  %v16997_v29 = vld [vmem:[#allocation14_spill] sm:$0xff]  ;;  %v10292_v21 = vld [vmem:[%s16771_s13 + $0x118] ss:$20 sps:$4 sm:$0xff]   ;;  %v10295_v26 = vld [vmem:[%s16770_s14 + $0x128] ss:$20 sps:$4 sm:$0xff]  }
 0x9fa   :  { %v2194_v50 = vrot.slane %v16993_v44, 7  ;;  %v2196_v2 = vrot.slane %v16995_v16, 7 }
 0x9fb   :  { %10161 = vrot.lane.b32.xlu1 %v10160_v54, %s10977_s5  ;;  %v12434_v60 = vmax.f32 %v1906_v52, 0.0  ;;  %v2195_v3 = vrot.slane %v16994_v37, 7  ;;  %v10298_v52 = vld [vmem:[%s16771_s13 + $0xf4] ss:$20 sps:$4 sm:$0xff]  }
 0x9fc   :  { %v2209_v36 = vsel %vm430_vm5, %v2193_v11, %v2194_v50  ;;  %v16998_v37 = vld [vmem:[#allocation15_spill] sm:$0xff] }
 0x9fd   :  { %v2201_v18 = vrot.slane %v12434_v60, 7  ;;  %v2212_v54 = vmul.f32 %v2209_v36, %v16997_v29  ;;  %v2207_v38 = vsel %vm430_vm5, %v2195_v3, %v2196_v2 }
 0x9ff   :  { %2272 = vrot.lane.b32.xlu1 %v2246_v63, %s10977_s5  ;;  %v2210_v34 = vsel %vm430_vm5, %v2201_v18, %v2193_v11  ;;  %v2208_v11 = vsel %vm430_vm5, %v2194_v50, %v2195_v3  ;;  %v10302_v3 = vld [vmem:[%s16771_s13 + $0xcc] ss:$20 sps:$4 sm:$0xff]  }
 0xa00   :  { %v2211_v46 = vmul.f32 %v2210_v34, %v16996_v51  ;;  %v10296_v34 = vld [vmem:[%s16771_s13 + $0xf0] ss:$20 sps:$4 sm:$0xff]   ;;  %v2213_v16 = vmul.f32 %v2208_v11, %v16998_v37 }
 0xa65   :  { %v10157_v45 = vpop.permute.xlu0 %10156 }
 0xa66   :  { %v10159_v44 = vunpack.i.h.bf16 %v10157_v45  ;;  %v10158_v36 = vunpack.i.l.bf16 %v10157_v45 }
 0xa69   :  { %v10152_v23 = vpop.permute.xlu1 %10151 }
 0xa6a   :  { %v10154_v55 = vunpack.i.h.bf16 %v10152_v23  ;;  %v10153_v7 = vunpack.i.l.bf16 %v10152_v23  ;;  %v10299_v23 = vld [vmem:[%s16770_s14 + $0x100] ss:$20 sps:$4 sm:$0xff]  }
 0xa6c   :  { %v2283_v5 = vsel %vm254_vm3, %v2211_v46, %v10153_v7  ;;  %v2284_v63 = vsel %vm254_vm3, %v2212_v54, %v10154_v55  ;;  %v16999_v55 = vld [vmem:[#allocation16_spill] sm:$0xff]  ;;  %v17000_v7 = vmax.f32 %v12205_v61, 0.0  ;;  %v17001_v54 = vmax.f32 %v12208_v17, 0.0  ;;  %v10303_v61 = vld [vmem:[%s16770_s14 + $0xd8] ss:$20 sps:$4 sm:$0xff]  }
 0xa6d   :  { %v12461_v43 = vpack.c.bf16 %v2284_v63, %v2283_v5  ;;  %v2214_v50 = vmul.f32 %v2207_v38, %v16999_v55  ;;  %v17002_v5 = vmov 0   ;;  %v2285_v63 = vsel %vm254_vm3, %v2213_v16, %v10158_v36  ;;  %v10306_v38 = vld [vmem:[%s16771_s13 + $0xa4] ss:$20 sps:$4 sm:$0xff]  }
 0xa6e   :  { %v2197_v46 = vrot.slane %v17000_v7, 7  ;;  %v2198_v45 = vrot.slane %v17001_v54, 7  ;;  %v17003_v16 = vld [vmem:[#allocation17_spill] sm:$0xff] }
 0xa6f   :  { %2586 = vmatmul.mubr.bf16.vlgmr.msra.gmra.mxu0 %v12461_v43  ;;  %2667 = vmatmul.mubr.bf16.vlgmr.msra.gmra.mxu1 %v12461_v43 }
 0xa70   :  { %3739 = vmatpush1.bf16.msra.mxu1 %v10292_v21  ;;  %9971 = vmatpush3.bf16.msra.mxu0 %v10295_v26  ;;  %v2286_v21 = vsel %vm254_vm3, %v2214_v50, %v10159_v44  ;;  %v10162_v26 = vpop.permute.xlu1 %10161  ;;  %v2205_v11 = vsel %vm430_vm5, %v2197_v46, %v2198_v45  ;;  %v2206_v44 = vsel %vm430_vm5, %v2196_v2, %v2197_v46  ;;  %v10310_v2 = vld [vmem:[%s16770_s14 + $0xb0] ss:$20 sps:$4 sm:$0xff]   ;;  %v17005_v46 = vmax.f32 %v12213_v1, 0.0  ;;  %v10167_v1 = vpop.permute.xlu0 %10166 }
 0xa71   :  { %3740 = vmatprep.subr.bf16.mxu1 %v10298_v52  ;;  %9972 = vmatprep.subr.bf16.mxu0 %v16983_v25  ;;  %v10300_v52 = vld [vmem:[%s16771_s13 + $0xc8] ss:$20 sps:$4 sm:$0xff]   ;;  %v12498_v17 = vpack.c.bf16 %v2286_v21, %v2285_v63  ;;  %v10164_v36 = vunpack.i.h.bf16 %v10162_v26  ;;  %v2215_v50 = vmul.f32 %v2206_v44, %v17003_v16  ;;  %v17006_v21 = vmax.f32 %v12223_v22, 0.0  ;;  %v10547_v16 = vld [vmem:[%s16771_s13 + $0x538] ss:$20 sps:$4 sm:$0xff]  }
 0xa72   :  { %2595 = vmatprep.mubr.bf16.mxu0 %v17002_v5  ;;  %2676 = vmatprep.mubr.bf16.mxu1 %v17002_v5  ;;  %v2200_v54 = vrot.slane %v17005_v46, 7  ;;  %v10309_v63 = vld [vmem:[%s16771_s13 + $0x7c] ss:$20 sps:$4 sm:$0xff]  }
 0xa73   :  { %v10314_v22 = vld [vmem:[%s16770_s14 + $0x88] ss:$20 sps:$4 sm:$0xff]   ;;  %v17008_v46 = vld [vmem:[#allocation20_spill] sm:$0xff] }
 0xa74   :  { %3741 = vmatpush1.bf16.msra.mxu1 %v10296_v34  ;;  %9973 = vmatpush3.bf16.msra.mxu0 %v10299_v23  ;;  %v10163_v34 = vunpack.i.l.bf16 %v10162_v26  ;;  %v10304_v23 = vld [vmem:[%s16771_s13 + $0xa0] ss:$20 sps:$4 sm:$0xff]   ;;  %v2199_v26 = vrot.slane %v17006_v21, 7  ;;  %v17009_v21 = vld [vmem:[#allocation19_spill] sm:$0xff] }
 0xa75   :  { %3742 = vmatprep.subr.bf16.mxu1 %v10302_v3  ;;  %9974 = vmatprep.subr.bf16.mxu0 %v16983_v25  ;;  %v17004_v3 = vld [vmem:[#allocation18_spill] sm:$0xff] }
 0xa76   :  { %v2216_v7 = vmul.f32 %v2205_v11, %v17004_v3  ;;  %v12537_v11 = vsub.s32 1, %v16977_v14 }
 0xa77   :  { %2596 = vmatmul.mubr.bf16.gmra.mxu0 %v12498_v17  ;;  %2677 = vmatmul.mubr.bf16.gmra.mxu1 %v12498_v17 }
 0xa78   :  { %3743 = vmatpush1.bf16.msra.mxu1 %v10300_v52  ;;  %9975 = vmatpush3.bf16.msra.mxu0 %v10303_v61  ;;  %v2287_v52 = vsel %vm254_vm3, %v2215_v50, %v10163_v34  ;;  %v2288_v61 = vsel %vm254_vm3, %v2216_v7, %v10164_v36  ;;  %17007 = vst [vmem:[#allocation25_spill] sm:$0xff] %v12537_v11  ;;  %v10313_v36 = vld [vmem:[%s16771_s13 + $0x54] ss:$20 sps:$4 sm:$0xff]   ;;  %v10169_v50 = vunpack.i.h.bf16 %v10167_v1  ;;  %v10168_v7 = vunpack.i.l.bf16 %v10167_v1 }
 0xa79   :  { %3744 = vmatprep.subr.bf16.mxu1 %v10306_v38  ;;  %2605 = vmatprep.mubr.bf16.mxu0 %v17002_v5  ;;  %v10307_v38 = vld [vmem:[%s16771_s13 + $0x78] ss:$20 sps:$4 sm:$0xff]   ;;  %v12539_v44 = vpack.c.bf16 %v2288_v61, %v2287_v52  ;;  %v2203_v34 = vsel %vm430_vm5, %v2199_v26, %v2200_v54  ;;  %v1791_v1 = vmul.f32 %v12337_v59, %v11901_v48  ;;  %v10315_v48 = vld [vmem:[%s16771_s13 + $0x28] ss:$20 sps:$4 sm:$0xff]  }
 0xa7a   :  { %2686 = vmatprep.mubr.bf16.mxu1 %v17002_v5  ;;  %9976 = vmatprep.subr.bf16.mxu0 %v16983_v25  ;;  %v2218_v52 = vmul.f32 %v2203_v34, %v17009_v21 }
 0xa7c   :  { %3745 = vmatpush1.bf16.msra.mxu1 %v10304_v23  ;;  %9977 = vmatpush3.bf16.msra.mxu0 %v10310_v2  ;;  %v2204_v23 = vsel %vm430_vm5, %v2198_v45, %v2199_v26  ;;  %v10311_v2 = vld [vmem:[%s16771_s13 + $0x50] ss:$20 sps:$4 sm:$0xff]   ;;  %v10318_v45 = vld [vmem:[%s16770_s14 + $0x60] ss:$20 sps:$4 sm:$0xff]  }
 0xa7d   :  { %3746 = vmatprep.subr.bf16.mxu1 %v10309_v63  ;;  %9978 = vmatprep.subr.bf16.mxu0 %v16983_v25  ;;  %v2217_v63 = vmul.f32 %v2204_v23, %v17008_v46  ;;  %v12562_v26 = vld [vmem:[%s16769_s12] sm:$0x1f]  ;;  %v2290_v23 = vsel %vm254_vm3, %v2218_v52, %v10169_v50  ;;  %v2273_v52 = vpop.permute.xlu1 %2272 }
 0xa7e   :  { %v12566_v61 = vrot.slane %v12562_v26, %v12537_v11  ;;  %v10321_v50 = vld [vmem:[%s16771_s13 + $0x4] ss:$20 sps:$4 sm:$0xff]  }
 0xa7f   :  { %2606 = vmatmul.mubr.bf16.gmra.mxu0 %v12539_v44  ;;  %2687 = vmatmul.mubr.bf16.gmra.mxu1 %v12539_v44  ;;  %v2289_v34 = vsel %vm254_vm3, %v2217_v63, %v10168_v7  ;;  %v10536_v11 = vld [vmem:[%s16771_s13 + $0x498] ss:$20 sps:$4 sm:$0xff]  }
 0xa80   :  { %3747 = vmatpush1.bf16.msra.mxu1 %v10307_v38  ;;  %9979 = vmatpush3.bf16.msra.mxu0 %v10314_v22  ;;  %v10317_v38 = vld [vmem:[%s16771_s13 + $0x2c] ss:$20 sps:$4 sm:$0xff]   ;;  %v1796_v22 = vmul.f32 %v12337_v59, %v11905_v41  ;;  %v12587_v41 = vpack.c.bf16 %v2290_v23, %v2289_v34  ;;  %v1863_v7 = vadd.f32 %v12566_v61, %v1791_v1  ;;  %v10325_v1 = vld [vmem:[%s16771_s13 + $0x25c] ss:$20 sps:$4 sm:$0xff]  }
 0xa81   :  { %3748 = vmatprep.subr.bf16.mxu1 %v10313_v36  ;;  %2615 = vmatprep.mubr.bf16.mxu0 %v17002_v5  ;;  %v2202_v36 = vsel %vm430_vm5, %v2200_v54, %v2201_v18  ;;  %v17010_v18 = vld [vmem:[#allocation21_spill] sm:$0xff]  ;;  %v10329_v23 = vld [vmem:[%s16770_s14 + $0x10] ss:$20 sps:$4 sm:$0xff]  }
 0xa82   :  { %2696 = vmatprep.mubr.bf16.mxu1 %v17002_v5  ;;  %9980 = vmatprep.subr.bf16.mxu0 %v16983_v25  ;;  %v1868_v63 = vadd.f32 %v12566_v61, %v1796_v22  ;;  %v2219_v54 = vmul.f32 %v2202_v36, %v17010_v18  ;;  %v1908_v22 = vmax.f32 %v1863_v7, 0.0 }
 0xa84   :  { %3749 = vmatpush1.bf16.msra.mxu1 %v10311_v2  ;;  %9981 = vmatpush3.bf16.msra.mxu0 %v10318_v45  ;;  %v10322_v2 = vld [vmem:[%s16770_s14 + $0x38] ss:$20 sps:$4 sm:$0xff]   ;;  %v10319_v45 = vld [vmem:[%s16771_s13] ss:$20 sps:$4 sm:$0xff]   ;;  %v1913_v34 = vmax.f32 %v1868_v63, 0.0 }
 0xa85   :  { %3750 = vmatprep.subr.bf16.mxu1 %v10317_v38  ;;  %9982 = vmatprep.subr.bf16.mxu0 %v16983_v25  ;;  %v2291_v38 = vsel %vm254_vm3, %v2219_v54, %v2273_v52  ;;  %v10326_v63 = vld [vmem:[%s16771_s13 + $0x230] ss:$20 sps:$4 sm:$0xff]   ;;  %v10332_v52 = vld [vmem:[%s16771_s13 + $0x20c] ss:$20 sps:$4 sm:$0xff]   ;;  %v10330_v54 = vld [vmem:[%s16771_s13 + $0x208] ss:$20 sps:$4 sm:$0xff]  }
 0xa86   :  { %v12617_v36 = vpack.c.bf16 %v2291_v38, %v2291_v38  ;;  %v12622_v7 = vpack.c.bf16 %v1913_v34, %v1908_v22  ;;  %v10341_v38 = vld [vmem:[%s16771_s13 + $0x374] ss:$20 sps:$4 sm:$0xff]   ;;  %v10339_v34 = vld [vmem:[%s16771_s13 + $0x370] ss:$20 sps:$4 sm:$0xff]  }
 0xa87   :  { %2616 = vmatmul.mubr.bf16.gmra.mxu0 %v12587_v41  ;;  %2697 = vmatmul.mubr.bf16.gmra.mxu1 %v12587_v41  ;;  %v10336_v22 = vld [vmem:[%s16771_s13 + $0x1e0] ss:$20 sps:$4 sm:$0xff]  }
 0xa88   :  { %3751 = vmatpush1.bf16.msra.mxu1 %v10315_v48  ;;  %2625 = vmatprep.mubr.bf16.mxu0 %v17002_v5  ;;  %v10323_v48 = vld [vmem:[%s16771_s13 + $0x258] ss:$20 sps:$4 sm:$0xff]  }
 0xa89   :  { %3752 = vmatprep.subr.bf16.mxu1 %v10321_v50  ;;  %2706 = vmatprep.mubr.bf16.mxu1 %v17002_v5  ;;  %v10328_v50 = vld [vmem:[%s16771_s13 + $0x234] ss:$20 sps:$4 sm:$0xff]  }
 0xa8a   :  { %9983 = vmatpush3.bf16.msra.mxu0 %v10322_v2  ;;  %v10335_v2 = vld [vmem:[%s16771_s13 + $0x39c] ss:$20 sps:$4 sm:$0xff]  }
 0xa8b   :  { %9984 = vmatprep.subr.bf16.mxu0 %v16983_v25 }
 0xa8c   :  { %3753 = vmatpush1.bf16.msra.mxu1 %v10319_v45  ;;  %v10333_v45 = vld [vmem:[%s16771_s13 + $0x398] ss:$20 sps:$4 sm:$0xff]  }
 0xa8d   :  { %3754 = vmatprep.subr.bf16.mxu1 %v10325_v1  ;;  %v10338_v1 = vld [vmem:[%s16771_s13 + $0x1e4] ss:$20 sps:$4 sm:$0xff]  }
 0xa8e   :  { %9985 = vmatpush3.bf16.msra.mxu0 %v10329_v23  ;;  %v10344_v23 = vld [vmem:[%s16771_s13 + $0x1bc] ss:$20 sps:$4 sm:$0xff]  }
 0xa8f   :  { %2626 = vmatmul.mubr.bf16.gmra.mxu0 %v12617_v36  ;;  %2707 = vmatmul.mubr.bf16.gmra.mxu1 %v12617_v36 }
 0xa90   :  { %3755 = vmatpush2.bf16.msra.mxu1 %v10323_v48  ;;  %3770 = vmatprep.mubr.bf16.mxu1 %v12622_v7  ;;  %v10342_v48 = vld [vmem:[%s16771_s13 + $0x1b8] ss:$20 sps:$4 sm:$0xff]  }
 0xa91   :  { %3756 = vmatprep.subr.bf16.mxu1 %v10328_v50  ;;  %9986 = vmatprep.mubr.msk.bf16.mxu0 %vm10975_vm0, %v16983_v25  ;;  %v10345_v50 = vld [vmem:[%s16771_s13 + $0x348] ss:$20 sps:$4 sm:$0xff]  }
 0xa92   :  { %3819 = vmatprep.subr.bf16.mxu0 %v10335_v2  ;;  %v10350_v2 = vld [vmem:[%s16771_s13 + $0x194] ss:$20 sps:$4 sm:$0xff]  }
 0xa94   :  { %3757 = vmatpush2.bf16.msra.mxu1 %v10326_v63  ;;  %v10353_v63 = vld [vmem:[%s16771_s13 + $0x324] ss:$20 sps:$4 sm:$0xff]  }
 0xa95   :  { %3758 = vmatprep.subr.bf16.mxu1 %v10332_v52  ;;  %v10348_v52 = vld [vmem:[%s16771_s13 + $0x190] ss:$20 sps:$4 sm:$0xff]  }
 0xa97   :  { %9987 = vmatmul.mubr.bf16.vlgmr.msra.gmra.mxu0 %v12461_v43  ;;  %v10347_v43 = vld [vmem:[%s16771_s13 + $0x34c] ss:$20 sps:$4 sm:$0xff]  }
 0xa98   :  { %3759 = vmatpush2.bf16.msra.mxu1 %v10330_v54  ;;  %3820 = vmatpush1.bf16.msra.mxu0 %v10333_v45  ;;  %v10351_v54 = vld [vmem:[%s16771_s13 + $0x320] ss:$20 sps:$4 sm:$0xff]  }
 0xa99   :  { %3760 = vmatprep.subr.bf16.mxu1 %v10338_v1  ;;  %3821 = vmatprep.subr.bf16.mxu0 %v10341_v38  ;;  %v10356_v45 = vld [vmem:[%s16771_s13 + $0x16c] ss:$20 sps:$4 sm:$0xff]   ;;  %v1801_v1 = vmul.f32 %v12337_v59, %v11937_v4  ;;  %v1806_v38 = vmul.f32 %v12337_v59, %v11953_v30  ;;  %v10362_v4 = vld [vmem:[%s16771_s13 + $0x144] ss:$20 sps:$4 sm:$0xff]   ;;  %v10365_v30 = vld [vmem:[%s16771_s13 + $0x2d4] ss:$20 sps:$4 sm:$0xff]  }
 0xa9a   :  { %9990 = vmatprep.mubr.msk.bf16.mxu0 %vm10975_vm0, %v16983_v25 }
 0xa9c   :  { %3761 = vmatpush2.bf16.msra.mxu1 %v10336_v22  ;;  %3822 = vmatpush1.bf16.msra.mxu0 %v10339_v34  ;;  %v10354_v22 = vld [vmem:[%s16771_s13 + $0x168] ss:$20 sps:$4 sm:$0xff]   ;;  %v10357_v34 = vld [vmem:[%s16771_s13 + $0x2f8] ss:$20 sps:$4 sm:$0xff]  }
 0xa9d   :  { %3762 = vmatprep.subr.bf16.mxu1 %v10344_v23  ;;  %3823 = vmatprep.subr.bf16.mxu0 %v10347_v43  ;;  %v1873_v23 = vadd.f32 %v12566_v61, %v1801_v1  ;;  %v1878_v43 = vadd.f32 %v12566_v61, %v1806_v38  ;;  %v1793_v38 = vmul.f32 %v12337_v59, %v11917_v57 }
 0xa9f   :  { %9991 = vmatmul.mubr.bf16.gmra.mxu0 %v12498_v17  ;;  %v10359_v17 = vld [vmem:[%s16771_s13 + $0x2fc] ss:$20 sps:$4 sm:$0xff]  }
 0xaa0   :  { %3763 = vmatpush2.bf16.msra.mxu1 %v10342_v48  ;;  %3824 = vmatpush1.bf16.msra.mxu0 %v10345_v50  ;;  %v12711_v48 = vsub.s32 3, %v16977_v14  ;;  %v10360_v50 = vld [vmem:[%s16771_s13 + $0x140] ss:$20 sps:$4 sm:$0xff]  }
 0xaa1   :  { %3764 = vmatprep.subr.bf16.mxu1 %v10350_v2  ;;  %3825 = vmatprep.subr.bf16.mxu0 %v10353_v63  ;;  %v10363_v2 = vld [vmem:[%s16771_s13 + $0x2d0] ss:$20 sps:$4 sm:$0xff]   ;;  %v10368_v63 = vld [vmem:[%s16771_s13 + $0x2ac] ss:$20 sps:$4 sm:$0xff]  }
 0xaa2   :  { %9994 = vmatprep.mubr.msk.bf16.mxu0 %vm10975_vm0, %v16983_v25  ;;  %17011 = vst [vmem:[#allocation26_spill] sm:$0xff] %v12711_v48  ;;  %v12734_v1 = vrot.slane %v12562_v26, %v12711_v48 }
 0xaa4   :  { %3765 = vmatpush2.bf16.msra.mxu1 %v10348_v52  ;;  %3826 = vmatpush1.bf16.msra.mxu0 %v10351_v54  ;;  %v1811_v52 = vmul.f32 %v12337_v59, %v11973_v62  ;;  %v1816_v54 = vmul.f32 %v12337_v59, %v11989_v35  ;;  %v10366_v62 = vld [vmem:[%s16771_s13 + $0x2a8] ss:$20 sps:$4 sm:$0xff]   ;;  %v10371_v35 = vld [vmem:[%s16771_s13 + $0x284] ss:$20 sps:$4 sm:$0xff]  }
 0xaa5   :  { %3766 = vmatprep.subr.bf16.mxu1 %v10356_v45  ;;  %3827 = vmatprep.subr.bf16.mxu0 %v10359_v17  ;;  %v1918_v45 = vmax.f32 %v1873_v23, 0.0  ;;  %v1923_v17 = vmax.f32 %v1878_v43, 0.0  ;;  %v10392_v43 = vld [vmem:[%s16771_s13 + $0x554] ss:$20 sps:$4 sm:$0xff]  }
 0xaa6   :  { %v1888_v57 = vadd.f32 %v12566_v61, %v1816_v54  ;;  %v10390_v54 = vld [vmem:[%s16771_s13 + $0x550] ss:$20 sps:$4 sm:$0xff]  }
 0xaa7   :  { %9995 = vmatmul.mubr.bf16.gmra.mxu0 %v12539_v44  ;;  %v10386_v44 = vld [vmem:[%s16771_s13 + $0x57c] ss:$20 sps:$4 sm:$0xff]  }
 0xaa8   :  { %3767 = vmatpush2.bf16.msra.mxu1 %v10354_v22  ;;  %3828 = vmatpush1.bf16.msra.mxu0 %v10357_v34  ;;  %v1798_v22 = vmul.f32 %v12337_v59, %v11929_v47  ;;  %v1883_v34 = vadd.f32 %v12566_v61, %v1811_v52  ;;  %v10384_v47 = vld [vmem:[%s16771_s13 + $0x578] ss:$20 sps:$4 sm:$0xff]   ;;  %v1933_v52 = vmax.f32 %v1888_v57, 0.0  ;;  %v10396_v57 = vld [vmem:[%s16771_s13 + $0x528] ss:$20 sps:$4 sm:$0xff]  }
 0xaa9   :  { %3768 = vmatprep.subr.bf16.mxu1 %v10362_v4  ;;  %3829 = vmatprep.subr.bf16.mxu0 %v10365_v30  ;;  %v12747_v4 = vpack.c.bf16 %v1923_v17, %v1918_v45  ;;  %v1865_v30 = vadd.f32 %v12734_v1, %v1793_v38  ;;  %v10372_v38 = vld [vmem:[%s16771_s13 + $0x4d8] ss:$20 sps:$4 sm:$0xff]  }
 0xaaa   :  { %9998 = vmatprep.mubr.msk.bf16.mxu0 %vm10975_vm0, %v16983_v25  ;;  %v1870_v23 = vadd.f32 %v12734_v1, %v1798_v22 }
 0xaab   :  { %v1910_v45 = vmax.f32 %v1865_v30, 0.0  ;;  %v10404_v30 = vld [vmem:[%s16771_s13 + $0x504] ss:$20 sps:$4 sm:$0xff]  }
 0xaac   :  { %3769 = vmatpush2.bf16.msra.mxu1 %v10360_v50  ;;  %3830 = vmatpush1.bf16.msra.mxu0 %v10363_v2  ;;  %v10369_v50 = vld [vmem:[%s16771_s13 + $0x280] ss:$20 sps:$4 sm:$0xff]   ;;  %v1821_v2 = vmul.f32 %v12337_v59, %v12007_v19  ;;  %v1915_v17 = vmax.f32 %v1870_v23, 0.0  ;;  %v1831_v23 = vmul.f32 %v12337_v59, %v12055_v31 }
 0xaad   :  { %3831 = vmatprep.subr.bf16.mxu0 %v10368_v63  ;;  %3908 = vmatprep.subr.bf16.mxu1 %v10386_v44  ;;  %v1826_v63 = vmul.f32 %v12337_v59, %v12039_v28  ;;  %v1928_v44 = vmax.f32 %v1883_v34, 0.0  ;;  %v10377_v19 = vld [vmem:[%s16771_s13 + $0x4b4] ss:$20 sps:$4 sm:$0xff]  }
 0xaae   :  { %v1893_v28 = vadd.f32 %v12566_v61, %v1821_v2  ;;  %v12791_v34 = vpack.c.bf16 %v1915_v17, %v1910_v45  ;;  %v10383_v2 = vld [vmem:[%s16771_s13 + $0x464] ss:$20 sps:$4 sm:$0xff]   ;;  %v10389_v45 = vld [vmem:[%s16771_s13 + $0x43c] ss:$20 sps:$4 sm:$0xff]  }
 0xaaf   :  { %3771 = vmatmul.mubr.bf16.vlgmr.msra.gmra.mxu1 %v12391_v53  ;;  %9999 = vmatmul.mubr.bf16.gmra.mxu0 %v12587_v41  ;;  %v10374_v41 = vld [vmem:[%s16771_s13 + $0x4dc] ss:$20 sps:$4 sm:$0xff]   ;;  %v12783_v22 = vpack.c.bf16 %v1933_v52, %v1928_v44  ;;  %v1903_v44 = vadd.f32 %v12566_v61, %v1831_v23  ;;  %v10410_v52 = vld [vmem:[%s16771_s13 + $0x3a4] ss:$20 sps:$4 sm:$0xff]   ;;  %v1808_v23 = vmul.f32 %v12337_v59, %v11961_v42 }
 0xab0   :  { %3780 = vmatprep.mubr.bf16.mxu1 %v12747_v4  ;;  %3832 = vmatpush1.bf16.msra.mxu0 %v10366_v62  ;;  %v1898_v62 = vadd.f32 %v12566_v61, %v1826_v63  ;;  %v10402_v63 = vld [vmem:[%s16771_s13 + $0x500] ss:$20 sps:$4 sm:$0xff]   ;;  %v10387_v17 = vld [vmem:[%s16771_s13 + $0x438] ss:$20 sps:$4 sm:$0xff]  }
 0xab1   :  { %3833 = vmatprep.subr.bf16.mxu0 %v10371_v35  ;;  %10002 = vmatprep.mubr.msk.bf16.mxu0 %vm10975_vm0, %v16983_v25  ;;  %v10398_v35 = vld [vmem:[%s16771_s13 + $0x52c] ss:$20 sps:$4 sm:$0xff]   ;;  %v1948_v61 = vmax.f32 %v1903_v44, 0.0 }
 0xab2   :  { %3909 = vmatpush1.bf16.msra.mxu1 %v10384_v47  ;;  %v10375_v47 = vld [vmem:[%s16771_s13 + $0x4b0] ss:$20 sps:$4 sm:$0xff]  }
 0xab3   :  { %3910 = vmatprep.subr.bf16.mxu1 %v10392_v43  ;;  %v1938_v43 = vmax.f32 %v1893_v28, 0.0  ;;  %v12841_v28 = vpack.c.bf16 %v1948_v61, %v1948_v61 }
 0xab4   :  { %3834 = vmatpush1.bf16.msra.mxu0 %v10369_v50  ;;  %v1943_v50 = vmax.f32 %v1898_v62, 0.0  ;;  %v10393_v62 = vld [vmem:[%s16771_s13 + $0x410] ss:$20 sps:$4 sm:$0xff]  }
 0xab5   :  { %3835 = vmatprep.subr.bf16.mxu0 %v10374_v41  ;;  %v10378_v41 = vld [vmem:[%s16771_s13 + $0x488] ss:$20 sps:$4 sm:$0xff]  }
 0xab6   :  { %3911 = vmatpush1.bf16.msra.mxu1 %v10390_v54  ;;  %v12818_v31 = vpack.c.bf16 %v1943_v50, %v1938_v43  ;;  %v10381_v54 = vld [vmem:[%s16771_s13 + $0x460] ss:$20 sps:$4 sm:$0xff]   ;;  %v12870_v43 = vpack.c.bf16 %v12389_v12, %v12389_v12  ;;  %v1880_v50 = vadd.f32 %v12734_v1, %v1808_v23  ;;  %v1802_v12 = vmul.f32 %v12337_v59, %v11941_v15  ;;  %v10414_v23 = vld [vmem:[%s16771_s13 + $0x378] ss:$20 sps:$4 sm:$0xff]  }
 0xab7   :  { %3781 = vmatmul.mubr.bf16.gmra.mxu1 %v12417_v0  ;;  %10003 = vmatmul.mubr.bf16.gmra.mxu0 %v12617_v36  ;;  %v10380_v36 = vld [vmem:[%s16771_s13 + $0x48c] ss:$20 sps:$4 sm:$0xff]  }
 0xab8   :  { %3790 = vmatprep.mubr.bf16.mxu1 %v12783_v22  ;;  %3836 = vmatpush2.bf16.msra.mxu0 %v10372_v38  ;;  %v12836_v38 = vsub.s32 2, %v16977_v14  ;;  %v10408_v15 = vld [vmem:[%s16771_s13 + $0x3a0] ss:$20 sps:$4 sm:$0xff]  }
 0xab9   :  { %3851 = vmatprep.mubr.bf16.mxu0 %v12791_v34  ;;  %3837 = vmatprep.subr.bf16.mxu0 %v10377_v19  ;;  %v10395_v19 = vld [vmem:[%s16771_s13 + $0x414] ss:$20 sps:$4 sm:$0xff]  }
 0xaba   :  { %3912 = vmatprep.subr.bf16.mxu1 %v10398_v35  ;;  %17012 = vst [vmem:[#allocation27_spill] sm:$0xff] %v12836_v38  ;;  %v12850_v35 = vrot.slane %v12562_v26, %v12836_v38  ;;  %v10399_v26 = vld [vmem:[%s16771_s13 + $0x3e8] ss:$20 sps:$4 sm:$0xff]  }
 0xabb   :  { %3913 = vmatpush1.bf16.msra.mxu1 %v10396_v57  ;;  %v1792_v57 = vmul.f32 %v12337_v59, %v11913_v27 }
 0xabc   :  { %3838 = vmatpush2.bf16.msra.mxu0 %v10375_v47  ;;  %3914 = vmatprep.subr.bf16.mxu1 %v10404_v30  ;;  %v1797_v47 = vmul.f32 %v12337_v59, %v11925_v40  ;;  %v10401_v30 = vld [vmem:[%s16771_s13 + $0x3ec] ss:$20 sps:$4 sm:$0xff]  }
 0xabd   :  { %3839 = vmatprep.subr.bf16.mxu0 %v10380_v36  ;;  %v1803_v36 = vmul.f32 %v12337_v59, %v11945_v49  ;;  %v1864_v27 = vadd.f32 %v12850_v35, %v1792_v57  ;;  %v10407_v49 = vld [vmem:[%s16771_s13 + $0x3c4] ss:$20 sps:$4 sm:$0xff]  }
 0xabe   :  { %v1869_v40 = vadd.f32 %v12850_v35, %v1797_v47 }
 0xabf   :  { %3791 = vmatmul.mubr.bf16.gmra.mxu1 %v12424_v20  ;;  %v1875_v42 = vadd.f32 %v12734_v1, %v1803_v36 }
 0xac0   :  { %3800 = vmatprep.mubr.bf16.mxu1 %v12818_v31  ;;  %3840 = vmatpush2.bf16.msra.mxu0 %v10378_v41  ;;  %v10405_v41 = vld [vmem:[%s16771_s13 + $0x3c0] ss:$20 sps:$4 sm:$0xff]   ;;  %v1914_v44 = vmax.f32 %v1869_v40, 0.0 }
 0xac1   :  { %3841 = vmatprep.subr.bf16.mxu0 %v10383_v2  ;;  %3915 = vmatpush1.bf16.msra.mxu1 %v10402_v63  ;;  %v1807_v2 = vmul.f32 %v12337_v59, %v11957_v58  ;;  %v1909_v63 = vmax.f32 %v1864_v27, 0.0  ;;  %v1920_v61 = vmax.f32 %v1875_v42, 0.0  ;;  %v1874_v58 = vadd.f32 %v12850_v35, %v1802_v12  ;;  %v17014_v40 = vld [vmem:[#allocation32_spill] sm:$0xff]  ;;  %v10417_v42 = vld [vmem:[%s16771_s13 + $0xf8] ss:$20 sps:$4 sm:$0xff]  }
 0xac2   :  { %4062 = vmatprep.subr.bf16.mxu1 %v10410_v52  ;;  %v10413_v52 = vld [vmem:[%s16771_s13 + $0x124] ss:$20 sps:$4 sm:$0xff]  }
 0xac4   :  { %3842 = vmatpush2.bf16.msra.mxu0 %v10381_v54  ;;  %v1813_v54 = vmul.f32 %v12337_v59, %v11981_v10  ;;  %v10411_v10 = vld [vmem:[%s16771_s13 + $0x120] ss:$20 sps:$4 sm:$0xff]  }
 0xac5   :  { %3843 = vmatprep.subr.bf16.mxu0 %v10389_v45  ;;  %v1818_v45 = vmul.f32 %v12337_v59, %v11999_v39  ;;  %v10416_v39 = vld [vmem:[%s16771_s13 + $0x37c] ss:$20 sps:$4 sm:$0xff]  }
 0xac6   :  { %v1885_v57 = vadd.f32 %v12734_v1, %v1813_v54  ;;  %v10425_v54 = vld [vmem:[%s16771_s13 + $0xd4] ss:$20 sps:$4 sm:$0xff]  }
 0xac7   :  { %3801 = vmatmul.mubr.bf16.gmra.mxu1 %v12427_v8  ;;  %v1890_v36 = vadd.f32 %v12734_v1, %v1818_v45 }
 0xac8   :  { %3810 = vmatprep.mubr.bf16.mxu1 %v12841_v28  ;;  %3844 = vmatpush2.bf16.msra.mxu0 %v10387_v17  ;;  %v1925_v17 = vmax.f32 %v1880_v50, 0.0  ;;  %v10422_v50 = vld [vmem:[%s16771_s13 + $0x354] ss:$20 sps:$4 sm:$0xff]   ;;  %v1930_v45 = vmax.f32 %v1885_v57, 0.0 }
 0xac9   :  { %3845 = vmatprep.subr.bf16.mxu0 %v10395_v19  ;;  %v1879_v19 = vadd.f32 %v12850_v35, %v1807_v2  ;;  %v17015_v2 = vld [vmem:[#allocation34_spill] sm:$0xff] }
 0xaca   :  { %v12907_v47 = vpack.c.bf16 %v1925_v17, %v1920_v61  ;;  %v1935_v61 = vmax.f32 %v1890_v36, 0.0  ;;  %v10420_v17 = vld [vmem:[%s16771_s13 + $0x350] ss:$20 sps:$4 sm:$0xff]   ;;  %v10431_v36 = vld [vmem:[%s16771_s13 + $0xac] ss:$20 sps:$4 sm:$0xff]  }
 0xacb   :  { %v1924_v12 = vmax.f32 %v1879_v19, 0.0 }
 0xacc   :  { %3846 = vmatpush2.bf16.msra.mxu0 %v10393_v62  ;;  %v12898_v62 = vpack.c.bf16 %v1914_v44, %v1909_v63  ;;  %v1823_v63 = vmul.f32 %v12337_v59, %v17015_v2  ;;  %v17016_v44 = vld [vmem:[#allocation36_spill] sm:$0xff] }
 0xacd   :  { %3847 = vmatprep.subr.bf16.mxu0 %v10401_v30  ;;  %v10419_v30 = vld [vmem:[%s16771_s13 + $0xfc] ss:$20 sps:$4 sm:$0xff]  }
 0xace   :  { %v1895_v57 = vadd.f32 %v12734_v1, %v1823_v63  ;;  %v17019_v63 = vld [vmem:[#allocation38_spill] sm:$0xff] }
 0xacf   :  { %3811 = vmatmul.mubr.bf16.gmra.mxu1 %v12870_v43 }
 0xad0   :  { %3848 = vmatpush2.bf16.msra.mxu0 %v10399_v26  ;;  %3932 = vmatprep.mubr.bf16.mxu1 %v17002_v5  ;;  %v17013_v26 = vld [vmem:[#allocation31_spill] sm:$0xff] }
 0xad1   :  { %3849 = vmatprep.subr.bf16.mxu0 %v10407_v49  ;;  %v1812_v27 = vmul.f32 %v12337_v59, %v17013_v26  ;;  %v1817_v49 = vmul.f32 %v12337_v59, %v17014_v40  ;;  %v10426_v26 = vld [vmem:[%s16771_s13 + $0x328] ss:$20 sps:$4 sm:$0xff]  }
 0xad4   :  { %3850 = vmatpush2.bf16.msra.mxu0 %v10405_v41  ;;  %v1919_v41 = vmax.f32 %v1874_v58, 0.0  ;;  %v1889_v58 = vadd.f32 %v12850_v35, %v1817_v49  ;;  %v17018_v49 = vld [vmem:[#allocation35_spill] sm:$0xff] }
 0xad5   :  { %3981 = vmatprep.subr.bf16.mxu0 %v10413_v52  ;;  %v1828_v52 = vmul.f32 %v12337_v59, %v17016_v44  ;;  %v1833_v44 = vmul.f32 %v12337_v59, %v17019_v63 }
 0xad6   :  { %v12943_v19 = vpack.c.bf16 %v1924_v12, %v1919_v41  ;;  %v10434_v41 = vld [vmem:[%s16771_s13 + $0x304] ss:$20 sps:$4 sm:$0xff]   ;;  %v1934_v2 = vmax.f32 %v1889_v58, 0.0 }
 0xad7   :  { %3852 = vmatmul.mubr.bf16.vlgmr.msra.gmra.mxu0 %v12898_v62  ;;  %9190 = vmatmul.mubr.msk.bf16.vlgmr.msra.gmra.mxu1 %vm254_vm3, %v12229_v6 }
 0xad8   :  { %4063 = vmatpush1.bf16.msra.mxu1 %v10408_v15  ;;  %3861 = vmatprep.mubr.bf16.mxu0 %v12907_v47  ;;  %v1884_v15 = vadd.f32 %v12850_v35, %v1812_v27  ;;  %v17017_v27 = vld [vmem:[#allocation33_spill] sm:$0xff] }
 0xad9   :  { %3982 = vmatpush1.bf16.msra.mxu0 %v10411_v10  ;;  %4064 = vmatprep.subr.bf16.mxu1 %v10416_v39  ;;  %v10423_v10 = vld [vmem:[%s16771_s13 + $0xd0] ss:$20 sps:$4 sm:$0xff]   ;;  %v10428_v39 = vld [vmem:[%s16771_s13 + $0x32c] ss:$20 sps:$4 sm:$0xff]   ;;  %v1822_v40 = vmul.f32 %v12337_v59, %v17017_v27 }
 0xada   :  { %3983 = vmatprep.subr.bf16.mxu0 %v10419_v30  ;;  %3942 = vmatprep.mubr.bf16.mxu1 %v17002_v5  ;;  %v12952_v30 = vpack.c.bf16 %v1935_v61, %v1930_v45  ;;  %v1929_v12 = vmax.f32 %v1884_v15, 0.0  ;;  %v10432_v61 = vld [vmem:[%s16771_s13 + $0x300] ss:$20 sps:$4 sm:$0xff]   ;;  %v10438_v27 = vld [vmem:[%s16771_s13 + $0x2d8] ss:$20 sps:$4 sm:$0xff]  }
 0xadc   :  { %4065 = vmatpush1.bf16.msra.mxu1 %v10414_v23  ;;  %v1900_v23 = vadd.f32 %v12734_v1, %v1828_v52  ;;  %v10437_v52 = vld [vmem:[%s16771_s13 + $0x84] ss:$20 sps:$4 sm:$0xff]   ;;  %v12986_v58 = vpack.c.bf16 %v1934_v2, %v1929_v12  ;;  %v10449_v12 = vld [vmem:[%s16771_s13 + $0x34] ss:$20 sps:$4 sm:$0xff]  }
 0xadd   :  { %3984 = vmatpush1.bf16.msra.mxu0 %v10417_v42  ;;  %4066 = vmatprep.subr.bf16.mxu1 %v10422_v50  ;;  %v1827_v42 = vmul.f32 %v12337_v59, %v17018_v49  ;;  %v10429_v50 = vld [vmem:[%s16771_s13 + $0xa8] ss:$20 sps:$4 sm:$0xff]   ;;  %v10444_v2 = vld [vmem:[%s16771_s13 + $0x2b0] ss:$20 sps:$4 sm:$0xff]  }
 0xade   :  { %3985 = vmatprep.subr.bf16.mxu0 %v10425_v54  ;;  %v1940_v54 = vmax.f32 %v1895_v57, 0.0  ;;  %v1945_v45 = vmax.f32 %v1900_v23, 0.0  ;;  %v1905_v23 = vadd.f32 %v12734_v1, %v1833_v44  ;;  %v10441_v1 = vld [vmem:[%s16771_s13 + $0x58] ss:$20 sps:$4 sm:$0xff]  }
 0xadf   :  { %3862 = vmatmul.mubr.bf16.gmra.mxu0 %v12943_v19  ;;  %9191 = vmatmul.mubr.msk.bf16.gmra.mxu1 %vm254_vm3, %v12235_v24  ;;  %v1899_v15 = vadd.f32 %v12850_v35, %v1827_v42 }
 0xae0   :  { %4067 = vmatpush1.bf16.msra.mxu1 %v10420_v17  ;;  %3871 = vmatprep.mubr.bf16.mxu0 %v12952_v30  ;;  %v1894_v17 = vadd.f32 %v12850_v35, %v1822_v40  ;;  %v12994_v57 = vpack.c.bf16 %v1945_v45, %v1940_v54  ;;  %v17021_v40 = vld [vmem:[#allocation37_spill] sm:$0xff]  ;;  %v10452_v54 = vld [vmem:[%s16771_s13 + $0x28c] ss:$20 sps:$4 sm:$0xff]  }
 0xae1   :  { %3986 = vmatpush1.bf16.msra.mxu0 %v10423_v10  ;;  %4068 = vmatprep.subr.bf16.mxu1 %v10428_v39  ;;  %v10435_v10 = vld [vmem:[%s16771_s13 + $0x80] ss:$20 sps:$4 sm:$0xff]   ;;  %v10440_v39 = vld [vmem:[%s16771_s13 + $0x2dc] ss:$20 sps:$4 sm:$0xff]   ;;  %v1832_v49 = vmul.f32 %v12337_v59, %v17021_v40  ;;  %v1950_v59 = vmax.f32 %v1905_v23, 0.0  ;;  %v13060_v40 = vpack.c.bf16 %v12434_v60, %v12434_v60 }
 0xae2   :  { %3987 = vmatprep.subr.bf16.mxu0 %v10431_v36  ;;  %3952 = vmatprep.mubr.bf16.mxu1 %v17002_v5  ;;  %v10443_v36 = vld [vmem:[%s16771_s13 + $0x5c] ss:$20 sps:$4 sm:$0xff]   ;;  %v1939_v42 = vmax.f32 %v1894_v17, 0.0  ;;  %v10456_v23 = vld [vmem:[%s16771_s13 + $0x4e0] ss:$20 sps:$4 sm:$0xff]  }
 0xae3   :  { %v1904_v63 = vadd.f32 %v12850_v35, %v1832_v49  ;;  %v13031_v45 = vpack.c.bf16 %v1950_v59, %v1950_v59  ;;  %v17022_v35 = vld [vmem:[#allocation24_spill] sm:$0xff]  ;;  %v10450_v17 = vld [vmem:[%s16771_s13 + $0x288] ss:$20 sps:$4 sm:$0xff]   ;;  %v10462_v60 = vld [vmem:[%s16771_s13 + $0x4b8] ss:$20 sps:$4 sm:$0xff]  }
 0xae4   :  { %4069 = vmatpush1.bf16.msra.mxu1 %v10426_v26  ;;  %v17020_v26 = vld [vmem:[#allocation23_spill] sm:$0xff]  ;;  %v10459_v49 = vld [vmem:[%s16771_s13 + $0x260] ss:$20 sps:$4 sm:$0xff]   ;;  %v10468_v59 = vld [vmem:[%s16771_s13 + $0x490] ss:$20 sps:$4 sm:$0xff]  }
 0xae5   :  { %3988 = vmatpush1.bf16.msra.mxu0 %v10429_v50  ;;  %4070 = vmatprep.subr.bf16.mxu1 %v10434_v41  ;;  %v1944_v50 = vmax.f32 %v1899_v15, 0.0  ;;  %v10446_v41 = vld [vmem:[%s16771_s13 + $0x2b4] ss:$20 sps:$4 sm:$0xff]   ;;  %v1949_v15 = vmax.f32 %v1904_v63, 0.0  ;;  %v10476_v63 = vld [vmem:[%s16771_s13 + $0x46c] ss:$20 sps:$4 sm:$0xff]  }
 0xae6   :  { %3989 = vmatprep.subr.bf16.mxu0 %v10437_v52  ;;  %v10447_v52 = vld [vmem:[%s16771_s13 + $0x30] ss:$20 sps:$4 sm:$0xff]  }
 0xae7   :  { %3872 = vmatmul.mubr.bf16.gmra.mxu0 %v12986_v58  ;;  %9192 = vmatmul.mubr.msk.bf16.gmra.mxu1 %vm254_vm3, %v17020_v26  ;;  %v13023_v44 = vpack.c.bf16 %v1944_v50, %v1939_v42  ;;  %v10464_v42 = vld [vmem:[%s16771_s13 + $0x4bc] ss:$20 sps:$4 sm:$0xff]  }
 0xae8   :  { %4071 = vmatpush1.bf16.msra.mxu1 %v10432_v61  ;;  %3881 = vmatprep.mubr.bf16.mxu0 %v12994_v57  ;;  %v10455_v61 = vld [vmem:[%s16771_s13 + $0xc] ss:$20 sps:$4 sm:$0xff]   ;;  %v10467_v50 = vld [vmem:[%s16771_s13 + $0x23c] ss:$20 sps:$4 sm:$0xff]  }
 0xae9   :  { %3990 = vmatpush1.bf16.msra.mxu0 %v10435_v10  ;;  %4072 = vmatprep.subr.bf16.mxu1 %v10440_v39  ;;  %v10453_v10 = vld [vmem:[%s16771_s13 + $0x8] ss:$20 sps:$4 sm:$0xff]   ;;  %v10458_v39 = vld [vmem:[%s16771_s13 + $0x4e4] ss:$20 sps:$4 sm:$0xff]  }
 0xaea   :  { %3991 = vmatprep.subr.bf16.mxu0 %v10443_v36  ;;  %3962 = vmatprep.mubr.bf16.mxu1 %v17002_v5  ;;  %v10461_v36 = vld [vmem:[%s16771_s13 + $0x264] ss:$20 sps:$4 sm:$0xff]  }
 0xaec   :  { %4073 = vmatpush1.bf16.msra.mxu1 %v10438_v27  ;;  %v13056_v27 = vpack.c.bf16 %v1949_v15, %v1949_v15  ;;  %v10485_v15 = vld [vmem:[%s16771_s13 + $0x1c4] ss:$20 sps:$4 sm:$0xff]  }
 0xaed   :  { %3992 = vmatpush1.bf16.msra.mxu0 %v10441_v1  ;;  %4074 = vmatprep.subr.bf16.mxu1 %v10446_v41  ;;  %v10465_v1 = vld [vmem:[%s16771_s13 + $0x238] ss:$20 sps:$4 sm:$0xff]   ;;  %v10470_v41 = vld [vmem:[%s16771_s13 + $0x494] ss:$20 sps:$4 sm:$0xff]  }
 0xaee   :  { %3993 = vmatprep.subr.bf16.mxu0 %v10449_v12  ;;  %v10473_v12 = vld [vmem:[%s16771_s13 + $0x214] ss:$20 sps:$4 sm:$0xff]  }
 0xaef   :  { %3882 = vmatmul.mubr.bf16.gmra.mxu0 %v13023_v44  ;;  %9193 = vmatmul.mubr.msk.bf16.gmra.mxu1 %vm254_vm3, %v17022_v35 }
 0xaf0   :  { %4075 = vmatpush1.bf16.msra.mxu1 %v10444_v2  ;;  %3891 = vmatprep.mubr.bf16.mxu0 %v13031_v45  ;;  %v10471_v2 = vld [vmem:[%s16771_s13 + $0x210] ss:$20 sps:$4 sm:$0xff]  }
 0xaf1   :  { %3994 = vmatpush1.bf16.msra.mxu0 %v10447_v52  ;;  %4076 = vmatprep.subr.bf16.mxu1 %v10452_v54  ;;  %v10479_v52 = vld [vmem:[%s16771_s13 + $0x1ec] ss:$20 sps:$4 sm:$0xff]   ;;  %v10474_v54 = vld [vmem:[%s16771_s13 + $0x468] ss:$20 sps:$4 sm:$0xff]  }
 0xaf2   :  { %3995 = vmatprep.subr.bf16.mxu0 %v10455_v61  ;;  %3972 = vmatprep.mubr.bf16.mxu1 %v17002_v5  ;;  %v10477_v61 = vld [vmem:[%s16771_s13 + $0x1e8] ss:$20 sps:$4 sm:$0xff]  }
 0xaf4   :  { %4077 = vmatpush1.bf16.msra.mxu1 %v10450_v17  ;;  %v10482_v17 = vld [vmem:[%s16771_s13 + $0x444] ss:$20 sps:$4 sm:$0xff]  }
 0xaf5   :  { %3996 = vmatpush1.bf16.msra.mxu0 %v10453_v10  ;;  %4078 = vmatprep.subr.bf16.mxu1 %v10458_v39  ;;  %v10480_v10 = vld [vmem:[%s16771_s13 + $0x440] ss:$20 sps:$4 sm:$0xff]  }
 0xaf6   :  { %3997 = vmatprep.subr.bf16.mxu0 %v10461_v36  ;;  %v10483_v39 = vld [vmem:[%s16771_s13 + $0x1c0] ss:$20 sps:$4 sm:$0xff]   ;;  %v10488_v36 = vld [vmem:[%s16771_s13 + $0x41c] ss:$20 sps:$4 sm:$0xff]  }
 0xaf7   :  { %3892 = vmatmul.mubr.bf16.gmra.mxu0 %v13056_v27  ;;  %9194 = vmatmul.mubr.msk.bf16.gmra.mxu1 %vm254_vm3, %v13060_v40 }
 0xaf8   :  { %4079 = vmatpush2.bf16.msra.mxu1 %v10456_v23  ;;  %4013 = vmatprep.mubr.bf16.mxu0 %v12622_v7  ;;  %v10491_v23 = vld [vmem:[%s16771_s13 + $0x19c] ss:$20 sps:$4 sm:$0xff]  }
 0xaf9   :  { %3998 = vmatpush2.bf16.msra.mxu0 %v10459_v49  ;;  %4094 = vmatprep.mubr.bf16.mxu1 %v12791_v34  ;;  %v10486_v49 = vld [vmem:[%s16771_s13 + $0x418] ss:$20 sps:$4 sm:$0xff]  }
 0xafa   :  { %4080 = vmatprep.subr.bf16.mxu1 %v10464_v42  ;;  %3999 = vmatprep.subr.bf16.mxu0 %v10467_v50  ;;  %v10489_v42 = vld [vmem:[%s16771_s13 + $0x198] ss:$20 sps:$4 sm:$0xff]   ;;  %v10494_v50 = vld [vmem:[%s16771_s13 + $0x3f4] ss:$20 sps:$4 sm:$0xff]  }
 0xafc   :  { %4081 = vmatpush2.bf16.msra.mxu1 %v10462_v60  ;;  %v10497_v60 = vld [vmem:[%s16771_s13 + $0x174] ss:$20 sps:$4 sm:$0xff]  }
 0xafd   :  { %4000 = vmatpush2.bf16.msra.mxu0 %v10465_v1  ;;  %4082 = vmatprep.subr.bf16.mxu1 %v10470_v41  ;;  %v10492_v1 = vld [vmem:[%s16771_s13 + $0x3f0] ss:$20 sps:$4 sm:$0xff]  }
 0xafe   :  { %4001 = vmatprep.subr.bf16.mxu0 %v10473_v12  ;;  %v10495_v41 = vld [vmem:[%s16771_s13 + $0x170] ss:$20 sps:$4 sm:$0xff]   ;;  %v10500_v12 = vld [vmem:[%s16771_s13 + $0x3cc] ss:$20 sps:$4 sm:$0xff]  }
 0xb00   :  { %4083 = vmatpush2.bf16.msra.mxu1 %v10468_v59  ;;  %v10503_v59 = vld [vmem:[%s16771_s13 + $0x14c] ss:$20 sps:$4 sm:$0xff]  }
 0xb01   :  { %4002 = vmatpush2.bf16.msra.mxu0 %v10471_v2  ;;  %4084 = vmatprep.subr.bf16.mxu1 %v10476_v63  ;;  %v10498_v2 = vld [vmem:[%s16771_s13 + $0x3c8] ss:$20 sps:$4 sm:$0xff]  }
 0xb02   :  { %4003 = vmatprep.subr.bf16.mxu0 %v10479_v52  ;;  %v10501_v63 = vld [vmem:[%s16771_s13 + $0x148] ss:$20 sps:$4 sm:$0xff]  }
 0xb03   :  { %v10507_v52 = vld [vmem:[%s16771_s13 + $0x268] ss:$20 sps:$4 sm:$0xff]  }
 0xb04   :  { %4085 = vmatpush2.bf16.msra.mxu1 %v10474_v54  ;;  %v10506_v54 = vld [vmem:[%s16771_s13 + $0x584] ss:$20 sps:$4 sm:$0xff]  }
 0xb05   :  { %4004 = vmatpush2.bf16.msra.mxu0 %v10477_v61  ;;  %4086 = vmatprep.subr.bf16.mxu1 %v10482_v17  ;;  %v10504_v61 = vld [vmem:[%s16771_s13 + $0x580] ss:$20 sps:$4 sm:$0xff]   ;;  %v10508_v17 = vld [vmem:[%s16771_s13 + $0x128] ss:$20 sps:$4 sm:$0xff]  }
 0xb06   :  { %4005 = vmatprep.subr.bf16.mxu0 %v10485_v15  ;;  %v10511_v15 = vld [vmem:[%s16771_s13 + $0x55c] ss:$20 sps:$4 sm:$0xff]  }
 0xb08   :  { %4087 = vmatpush2.bf16.msra.mxu1 %v10480_v10  ;;  %v10512_v10 = vld [vmem:[%s16771_s13 + $0x240] ss:$20 sps:$4 sm:$0xff]  }
 0xb09   :  { %4006 = vmatpush2.bf16.msra.mxu0 %v10483_v39  ;;  %4088 = vmatprep.subr.bf16.mxu1 %v10488_v36  ;;  %v10509_v39 = vld [vmem:[%s16771_s13 + $0x558] ss:$20 sps:$4 sm:$0xff]   ;;  %v10513_v36 = vld [vmem:[%s16771_s13 + $0x100] ss:$20 sps:$4 sm:$0xff]  }
 0xb0a   :  { %4007 = vmatprep.subr.bf16.mxu0 %v10491_v23  ;;  %v10519_v23 = vld [vmem:[%s16771_s13 + $0x534] ss:$20 sps:$4 sm:$0xff]  }
 0xb0c   :  { %4089 = vmatpush2.bf16.msra.mxu1 %v10486_v49  ;;  %v10514_v49 = vld [vmem:[%s16771_s13 + $0x218] ss:$20 sps:$4 sm:$0xff]  }
 0xb0d   :  { %4008 = vmatpush2.bf16.msra.mxu0 %v10489_v42  ;;  %4090 = vmatprep.subr.bf16.mxu1 %v10494_v50  ;;  %v10517_v42 = vld [vmem:[%s16771_s13 + $0x530] ss:$20 sps:$4 sm:$0xff]   ;;  %v10515_v50 = vld [vmem:[%s16771_s13 + $0xd8] ss:$20 sps:$4 sm:$0xff]  }
 0xb0e   :  { %4009 = vmatprep.subr.bf16.mxu0 %v10497_v60  ;;  %v10527_v60 = vld [vmem:[%s16771_s13 + $0x50c] ss:$20 sps:$4 sm:$0xff]  }
 0xb10   :  { %4091 = vmatpush2.bf16.msra.mxu1 %v10492_v1  ;;  %v10516_v1 = vld [vmem:[%s16771_s13 + $0x1f0] ss:$20 sps:$4 sm:$0xff]  }
 0xb11   :  { %4010 = vmatpush2.bf16.msra.mxu0 %v10495_v41  ;;  %4092 = vmatprep.subr.bf16.mxu1 %v10500_v12  ;;  %v10525_v41 = vld [vmem:[%s16771_s13 + $0x508] ss:$20 sps:$4 sm:$0xff]   ;;  %v10520_v12 = vld [vmem:[%s16771_s13 + $0xb0] ss:$20 sps:$4 sm:$0xff]  }
 0xb12   :  { %4011 = vmatprep.subr.bf16.mxu0 %v10503_v59  ;;  %v10532_v59 = vld [vmem:[%s16771_s13 + $0x4e8] ss:$20 sps:$4 sm:$0xff]  }
 0xb14   :  { %4093 = vmatpush2.bf16.msra.mxu1 %v10498_v2  ;;  %v10521_v2 = vld [vmem:[%s16771_s13 + $0x1c8] ss:$20 sps:$4 sm:$0xff]  }
 0xb15   :  { %4012 = vmatpush2.bf16.msra.mxu0 %v10501_v63  ;;  %9586 = vmatprep.subr.bf16.mxu1 %v10507_v52  ;;  %v10522_v63 = vld [vmem:[%s16771_s13 + $0x88] ss:$20 sps:$4 sm:$0xff]   ;;  %v10523_v52 = vld [vmem:[%s16771_s13 + $0x1a0] ss:$20 sps:$4 sm:$0xff]  }
 0xb16   :  { %4151 = vmatprep.subr.bf16.mxu0 %v10506_v54  ;;  %v10524_v54 = vld [vmem:[%s16771_s13 + $0x60] ss:$20 sps:$4 sm:$0xff]  }
 0xb17   :  { %4095 = vmatmul.mubr.bf16.vlgmr.msra.gmra.mxu1 %v12898_v62 }
 0xb18   :  { %4014 = vmatmul.mubr.bf16.vlgmr.msra.gmra.mxu0 %v12391_v53  ;;  %4104 = vmatprep.mubr.bf16.mxu1 %v12907_v47 }
 0xb19   :  { %4023 = vmatprep.mubr.bf16.mxu0 %v12747_v4  ;;  %4152 = vmatpush1.bf16.msra.mxu0 %v10504_v61  ;;  %v10528_v61 = vld [vmem:[%s16771_s13 + $0x178] ss:$20 sps:$4 sm:$0xff]  }
 0xb1a   :  { %9587 = vmatpush3.bf16.msra.mxu1 %v10508_v17  ;;  %4153 = vmatprep.subr.bf16.mxu0 %v10511_v15  ;;  %v10529_v17 = vld [vmem:[%s16771_s13 + $0x38] ss:$20 sps:$4 sm:$0xff]  }
 0xb1b   :  { %9588 = vmatprep.subr.bf16.mxu1 %v10512_v10 }
 0xb1d   :  { %4154 = vmatpush1.bf16.msra.mxu0 %v10509_v39  ;;  %v10530_v39 = vld [vmem:[%s16771_s13 + $0x150] ss:$20 sps:$4 sm:$0xff]  }
 0xb1e   :  { %9589 = vmatpush3.bf16.msra.mxu1 %v10513_v36  ;;  %4155 = vmatprep.subr.bf16.mxu0 %v10519_v23 }
 0xb1f   :  { %4105 = vmatmul.mubr.bf16.gmra.mxu1 %v12943_v19  ;;  %9590 = vmatprep.subr.bf16.mxu1 %v10514_v49  ;;  %v10531_v49 = vld [vmem:[%s16771_s13 + $0x10] ss:$20 sps:$4 sm:$0xff]  }
 0xb20   :  { %4024 = vmatmul.mubr.bf16.gmra.mxu0 %v12417_v0  ;;  %4114 = vmatprep.mubr.bf16.mxu1 %v12952_v30 }
 0xb21   :  { %4033 = vmatprep.mubr.bf16.mxu0 %v12783_v22  ;;  %4156 = vmatpush1.bf16.msra.mxu0 %v10517_v42 }
 0xb22   :  { %9591 = vmatpush3.bf16.msra.mxu1 %v10515_v50  ;;  %4157 = vmatprep.subr.bf16.mxu0 %v10527_v60 }
 0xb23   :  { %9592 = vmatprep.subr.bf16.mxu1 %v10516_v1 }
 0xb25   :  { %4158 = vmatpush1.bf16.msra.mxu0 %v10525_v41 }
 0xb26   :  { %9593 = vmatpush3.bf16.msra.mxu1 %v10520_v12  ;;  %9632 = vmatprep.subr.bf16.mxu0 %v10532_v59 }
 0xb27   :  { %4115 = vmatmul.mubr.bf16.gmra.mxu1 %v12986_v58  ;;  %9594 = vmatprep.subr.bf16.mxu1 %v10521_v2 }
 0xb28   :  { %4034 = vmatmul.mubr.bf16.gmra.mxu0 %v12424_v20  ;;  %4124 = vmatprep.mubr.bf16.mxu1 %v12994_v57 }
 0xb29   :  { %4043 = vmatprep.mubr.bf16.mxu0 %v12818_v31 }
 0xb2a   :  { %9595 = vmatpush3.bf16.msra.mxu1 %v10522_v63 }
 0xb2b   :  { %9596 = vmatprep.subr.bf16.mxu1 %v10523_v52 }
 0xb2e   :  { %9597 = vmatpush3.bf16.msra.mxu1 %v10524_v54 }
 0xb2f   :  { %4125 = vmatmul.mubr.bf16.gmra.mxu1 %v13023_v44  ;;  %v13236_v15 = vpop.f32.mrf.mxu0  ;;  %v13238_v10 = vpop.f32.mrf.mxu1  ;;  %9598 = vmatprep.subr.bf16.mxu1 %v10528_v61 }
 0xb30   :  { %17023 = vst [vmem:[#allocation28_spill] sm:$0xff] %v13238_v10  ;;  %4044 = vmatmul.mubr.bf16.gmra.mxu0 %v12427_v8  ;;  %4134 = vmatprep.mubr.bf16.mxu1 %v13031_v45 }
 0xb31   :  { %4053 = vmatprep.mubr.bf16.mxu0 %v12841_v28  ;;  %v13246_v36 = vpop.f32.mrf.mxu0  ;;  %v13248_v23 = vpop.f32.mrf.mxu1 }
 0xb32   :  { %17024 = vst [vmem:[#allocation29_spill] sm:$0xff] %v13248_v23  ;;  %9599 = vmatpush3.bf16.msra.mxu1 %v10529_v17  ;;  %v10533_v17 = vld [vmem:[%s16771_s13 + $0x3a8] ss:$20 sps:$4 sm:$0xff]  }
 0xb33   :  { %v13253_v42 = vpop.f32.mrf.mxu0  ;;  %v13255_v50 = vpop.f32.mrf.mxu1  ;;  %9600 = vmatprep.subr.bf16.mxu1 %v10530_v39  ;;  %v10541_v39 = vld [vmem:[%s16771_s13 + $0x588] ss:$20 sps:$4 sm:$0xff]  }
 0xb34   :  { %17025 = vst [vmem:[#allocation30_spill] sm:$0xff] %v13255_v50 }
 0xb35   :  { %v13257_v60 = vpop.f32.mrf.mxu0  ;;  %v13259_v1 = vpop.f32.mrf.mxu1 }
 0xb36   :  { %17026 = vst [vmem:[#allocation31_spill] sm:$0xff] %v13259_v1  ;;  %9601 = vmatpush3.bf16.msra.mxu1 %v10531_v49 }
 0xb37   :  { %4135 = vmatmul.mubr.bf16.gmra.mxu1 %v13056_v27  ;;  %v13262_v41 = vpop.f32.mrf.mxu0  ;;  %v13264_v12 = vpop.f32.mrf.mxu1  ;;  %10006 = vmatprep.subr.bf16.mxu1 %v16983_v25 }
 0xb38   :  { %17027 = vst [vmem:[#allocation32_spill] sm:$0xff] %v13264_v12  ;;  %4054 = vmatmul.mubr.bf16.gmra.mxu0 %v12870_v43  ;;  %4256 = vmatprep.mubr.bf16.mxu1 %v12622_v7  ;;  %v10534_v7 = vld [vmem:[%s16771_s13 + $0x4c0] ss:$20 sps:$4 sm:$0xff]  }
 0xb39   :  { %v13269_v59 = vpop.f32.mrf.mxu0  ;;  %v13271_v2 = vpop.f32.mrf.mxu1  ;;  %4175 = vmatprep.mubr.bf16.mxu0 %v17002_v5 }
 0xb3a   :  { %17028 = vst [vmem:[#allocation34_spill] sm:$0xff] %v13271_v2 }
 0xb3b   :  { %v13274_v63 = vpop.f32.mrf.mxu0  ;;  %v13276_v52 = vpop.f32.mrf.mxu1 }
 0xb3c   :  { %17029 = vst [vmem:[#allocation36_spill] sm:$0xff] %v13276_v52 }
 0xb3d   :  { %v13278_v54 = vpop.f32.mrf.mxu0  ;;  %v13280_v61 = vpop.f32.mrf.mxu1 }
 0xb3e   :  { %17030 = vst [vmem:[#allocation33_spill] sm:$0xff] %v13280_v61 }
 0xb3f   :  { %4257 = vmatmul.mubr.bf16.vlgmr.msra.gmra.mxu1 %v12391_v53  ;;  %v13292_v49 = vpop.f32.mrf.mxu0  ;;  %v13294_v38 = vpop.f32.mrf.mxu1  ;;  %v10535_v53 = vld [vmem:[%s16771_s13 + $0x380] ss:$20 sps:$4 sm:$0xff]  }
 0xb40   :  { %17031 = vst [vmem:[#allocation35_spill] sm:$0xff] %v13294_v38  ;;  %9195 = vmatmul.mubr.msk.bf16.vlgmr.msra.gmra.mxu0 %vm254_vm3, %v12229_v6  ;;  %4264 = vmatprep.mubr.bf16.mxu1 %v12747_v4  ;;  %v10544_v4 = vld [vmem:[%s16771_s13 + $0x560] ss:$20 sps:$4 sm:$0xff]  }
 0xb41   :  { %v13299_v18 = vpop.f32.mrf.mxu0  ;;  %v13301_v48 = vpop.f32.mrf.mxu1  ;;  %4185 = vmatprep.mubr.bf16.mxu0 %v17002_v5  ;;  %9633 = vmatpush3.bf16.msra.mxu0 %v10533_v17 }
 0xb42   :  { %17032 = vst [vmem:[#allocation38_spill] sm:$0xff] %v13301_v48  ;;  %9634 = vmatprep.subr.bf16.mxu0 %v10534_v7  ;;  %10007 = vmatpush3.bf16.msra.mxu1 %v10541_v39  ;;  %v10537_v7 = vld [vmem:[%s16771_s13 + $0x358] ss:$20 sps:$4 sm:$0xff]   ;;  %v10538_v39 = vld [vmem:[%s16771_s13 + $0x470] ss:$20 sps:$4 sm:$0xff]  }
 0xb43   :  { %v13313_v21 = vpop.f32.mrf.mxu0  ;;  %v13315_v46 = vpop.f32.mrf.mxu1  ;;  %10008 = vmatprep.subr.bf16.mxu1 %v16983_v25 }
 0xb44   :  { %17033 = vst [vmem:[#allocation23_spill] sm:$0xff] %v13315_v46 }
 0xb45   :  { %v13318_v17 = vpop.f32.mrf.mxu0  ;;  %v13320_v3 = vpop.f32.mrf.mxu1  ;;  %9635 = vmatpush3.bf16.msra.mxu0 %v10535_v53 }
 0xb46   :  { %17034 = vst [vmem:[#allocation37_spill] sm:$0xff] %v13320_v3  ;;  %9636 = vmatprep.subr.bf16.mxu0 %v10536_v11  ;;  %10009 = vmatpush3.bf16.msra.mxu1 %v10544_v4  ;;  %v10540_v4 = vld [vmem:[%s16771_s13 + $0x448] ss:$20 sps:$4 sm:$0xff]  }
 0xb47   :  { %4265 = vmatmul.mubr.bf16.gmra.mxu1 %v12417_v0  ;;  %v13332_v55 = vpop.f32.mrf.mxu0  ;;  %v13334_v37 = vpop.f32.mrf.mxu1  ;;  %10010 = vmatprep.subr.bf16.mxu1 %v16983_v25  ;;  %v10539_v0 = vld [vmem:[%s16771_s13 + $0x330] ss:$20 sps:$4 sm:$0xff]  }
 0xb48   :  { %17035 = vst [vmem:[#allocation24_spill] sm:$0xff] %v13334_v37  ;;  %9196 = vmatmul.mubr.msk.bf16.gmra.mxu0 %vm254_vm3, %v12235_v24  ;;  %4272 = vmatprep.mubr.bf16.mxu1 %v12783_v22  ;;  %v10550_v22 = vld [vmem:[%s16771_s13 + $0x510] ss:$20 sps:$4 sm:$0xff]  }
 0xb49   :  { %v13340_v11 = vpop.f32.mrf.mxu0  ;;  %v13342_v53 = vpop.f32.mrf.mxu1  ;;  %4195 = vmatprep.mubr.bf16.mxu0 %v17002_v5  ;;  %9637 = vmatpush3.bf16.msra.mxu0 %v10537_v7 }
 0xb4a   :  { %17036 = vst [vmem:[#allocation39_spill] sm:$0xff] %v13342_v53  ;;  %9638 = vmatprep.subr.bf16.mxu0 %v10538_v39  ;;  %10011 = vmatpush3.bf16.msra.mxu1 %v10547_v16  ;;  %v10542_v39 = vld [vmem:[%s16771_s13 + $0x308] ss:$20 sps:$4 sm:$0xff]   ;;  %v10543_v16 = vld [vmem:[%s16771_s13 + $0x420] ss:$20 sps:$4 sm:$0xff]  }
 0xb4b   :  { %v13354_v29 = vpop.f32.mrf.mxu0  ;;  %v13356_v51 = vpop.f32.mrf.mxu1  ;;  %10012 = vmatprep.subr.bf16.mxu1 %v16983_v25 }
 0xb4c   :  { %17037 = vst [vmem:[#allocation40_spill] sm:$0xff] %v13356_v51 }
 0xb4d   :  { %v13359_v7 = vpop.f32.mrf.mxu0  ;;  %v13361_v32 = vpop.f32.mrf.mxu1  ;;  %9639 = vmatpush3.bf16.msra.mxu0 %v10539_v0 }
 0xb4e   :  { %17038 = vst [vmem:[#allocation41_spill] sm:$0xff] %v13361_v32  ;;  %9640 = vmatprep.subr.bf16.mxu0 %v10540_v4  ;;  %10013 = vmatpush3.bf16.msra.mxu1 %v10550_v22  ;;  %v10546_v22 = vld [vmem:[%s16771_s13 + $0x3f8] ss:$20 sps:$4 sm:$0xff]  }
 0xb4f   :  { %4273 = vmatmul.mubr.bf16.gmra.mxu1 %v12424_v20  ;;  %v13370_v9 = vpop.f32.mrf.mxu0  ;;  %v13372_v33 = vpop.f32.mrf.mxu1  ;;  %10034 = vmatprep.subr.bf16.mxu1 %v16983_v25  ;;  %v10545_v20 = vld [vmem:[%s16771_s13 + $0x2e0] ss:$20 sps:$4 sm:$0xff]  }
 0xb50   :  { %17039 = vst [vmem:[#allocation42_spill] sm:$0xff] %v13372_v33  ;;  %9197 = vmatmul.mubr.msk.bf16.gmra.mxu0 %vm254_vm3, %v17020_v26  ;;  %4280 = vmatprep.mubr.bf16.mxu1 %v12818_v31 }
 0xb51   :  { %v13378_v0 = vpop.f32.mrf.mxu0  ;;  %v13380_v4 = vpop.f32.mrf.mxu1  ;;  %4205 = vmatprep.mubr.bf16.mxu0 %v17002_v5  ;;  %9641 = vmatpush3.bf16.msra.mxu0 %v10542_v39  ;;  %v10549_v39 = vld [vmem:[%s16771_s13 + $0x3d0] ss:$20 sps:$4 sm:$0xff]  }
 0xb52   :  { %17040 = vst [vmem:[#allocation43_spill] sm:$0xff] %v13380_v4  ;;  %9642 = vmatprep.subr.bf16.mxu0 %v10543_v16  ;;  %v10548_v4 = vld [vmem:[%s16771_s13 + $0x2b8] ss:$20 sps:$4 sm:$0xff]  }
 0xb53   :  { %v2631_v56 = vpop.f32.mrf.mxu0  ;;  %v2712_v13 = vpop.f32.mrf.mxu1 }
 0xb54   :  { %v10551_v13 = vld [vmem:[%s16771_s13 + $0x290] ss:$20 sps:$4 sm:$0xff]  }
 0xb55   :  { %v2632_v14 = vpop.f32.mrf.mxu0  ;;  %v2713_v31 = vpop.f32.mrf.mxu1  ;;  %9643 = vmatpush3.bf16.msra.mxu0 %v10545_v20 }
 0xb56   :  { %9644 = vmatprep.subr.bf16.mxu0 %v10546_v22 }
 0xb57   :  { %4281 = vmatmul.mubr.bf16.gmra.mxu1 %v12427_v8  ;;  %v13396_v16 = vpop.f32.mrf.mxu0 }
 0xb58   :  { %17041 = vst [vmem:[#allocation44_spill] sm:$0xff] %v13396_v16  ;;  %9198 = vmatmul.mubr.msk.bf16.gmra.mxu0 %vm254_vm3, %v17022_v35  ;;  %4288 = vmatprep.mubr.bf16.mxu1 %v12841_v28 }
 0xb59   :  { %v9988_v14 = vpop.f32.mrf.mxu0  ;;  %4215 = vmatprep.mubr.bf16.mxu0 %v17002_v5  ;;  %9645 = vmatpush3.bf16.msra.mxu0 %v10548_v4 }
 0xb5a   :  { %9646 = vmatprep.subr.bf16.mxu0 %v10549_v39 }
 0xb5b   :  { %v13405_v56 = vpop.f32.mrf.mxu0 }
 0xb5c   :  { %17042 = vst [vmem:[#allocation45_spill] sm:$0xff] %v13405_v56 }
 0xb5d   :  { %v9989_v20 = vpop.f32.mrf.mxu0  ;;  %9647 = vmatpush3.bf16.msra.mxu0 %v10551_v13 }
 0xb5f   :  { %4289 = vmatmul.mubr.bf16.gmra.mxu1 %v12870_v43  ;;  %v13408_v8 = vpop.f32.mrf.mxu0 }
 0xb60   :  { %17043 = vst [vmem:[#allocation46_spill] sm:$0xff] %v13408_v8  ;;  %9199 = vmatmul.mubr.msk.bf16.gmra.mxu0 %vm254_vm3, %v13060_v40  ;;  %10014 = vmatprep.mubr.msk.bf16.mxu1 %vm10975_vm0, %v16983_v25 }
 0xb61   :  { %4328 = vmatprep.mubr.bf16.mxu0 %v12791_v34  ;;  %v9992_v28 = vpop.f32.mrf.mxu0 }
 0xb63   :  { %v13415_v4 = vpop.f32.mrf.mxu0 }
 0xb64   :  { %17044 = vst [vmem:[#allocation47_spill] sm:$0xff] %v13415_v4 }
 0xb65   :  { %v9993_v22 = vpop.f32.mrf.mxu0 }
 0xb67   :  { %10015 = vmatmul.mubr.msk.bf16.vlgmr.msra.gmra.mxu1 %vm254_vm3, %v12229_v6  ;;  %v13419_v31 = vpop.f32.mrf.mxu0 }
 0xb68   :  { %17045 = vst [vmem:[#allocation48_spill] sm:$0xff] %v13419_v31  ;;  %4329 = vmatmul.mubr.bf16.vlgmr.msra.gmra.mxu0 %v12898_v62  ;;  %10018 = vmatprep.mubr.msk.bf16.mxu1 %vm10975_vm0, %v16983_v25 }
 0xb69   :  { %4336 = vmatprep.mubr.bf16.mxu0 %v12907_v47  ;;  %v9996_v43 = vpop.f32.mrf.mxu0 }
 0xb6b   :  { %v13425_v39 = vpop.f32.mrf.mxu0 }
 0xb6c   :  { %17046 = vst [vmem:[#allocation49_spill] sm:$0xff] %v13425_v39 }
 0xb6d   :  { %v9997_v34 = vpop.f32.mrf.mxu0 }
 0xb6f   :  { %10019 = vmatmul.mubr.msk.bf16.gmra.mxu1 %vm254_vm3, %v12235_v24  ;;  %v3772_v14 = vpop.f32.mrf.mxu1  ;;  %v13429_v13 = vpop.f32.mrf.mxu0 }
 0xb70   :  { %17047 = vst [vmem:[#allocation50_spill] sm:$0xff] %v13429_v13  ;;  %4337 = vmatmul.mubr.bf16.gmra.mxu0 %v12943_v19  ;;  %10022 = vmatprep.mubr.msk.bf16.mxu1 %vm10975_vm0, %v16983_v25  ;;  %v3773_v48 = vadd.f32 %v3772_v14, %v13236_v15 }
 0xb71   :  { %4344 = vmatprep.mubr.bf16.mxu0 %v12952_v30  ;;  %v3774_v6 = vpop.f32.mrf.mxu1  ;;  %v10000_v62 = vpop.f32.mrf.mxu0 }
 0xb72   :  { %v3775_v52 = vadd.f32 %v3774_v6, %v13246_v36 }
 0xb73   :  { %v3776_v47 = vpop.f32.mrf.mxu1  ;;  %v13435_v20 = vpop.f32.mrf.mxu0 }
 0xb74   :  { %17048 = vst [vmem:[#allocation51_spill] sm:$0xff] %v13435_v20  ;;  %v3777_v3 = vadd.f32 %v3776_v47, %v13253_v42 }
 0xb75   :  { %v3778_v28 = vpop.f32.mrf.mxu1  ;;  %v10001_v22 = vpop.f32.mrf.mxu0 }
 0xb76   :  { %v3779_v46 = vadd.f32 %v3778_v28, %v13257_v60 }
 0xb77   :  { %10023 = vmatmul.mubr.msk.bf16.gmra.mxu1 %vm254_vm3, %v17020_v26  ;;  %v3782_v24 = vpop.f32.mrf.mxu1  ;;  %v13439_v43 = vpop.f32.mrf.mxu0 }
 0xb78   :  { %17049 = vst [vmem:[#allocation52_spill] sm:$0xff] %v13439_v43  ;;  %4345 = vmatmul.mubr.bf16.gmra.mxu0 %v12986_v58  ;;  %10026 = vmatprep.mubr.msk.bf16.mxu1 %vm10975_vm0, %v16983_v25  ;;  %v3783_v38 = vadd.f32 %v3782_v24, %v13262_v41 }
 0xb79   :  { %4352 = vmatprep.mubr.bf16.mxu0 %v12994_v57  ;;  %v3784_v19 = vpop.f32.mrf.mxu1  ;;  %v10004_v30 = vpop.f32.mrf.mxu0 }
 0xb7a   :  { %v3785_v2 = vadd.f32 %v3784_v19, %v13269_v59 }
 0xb7b   :  { %v3786_v34 = vpop.f32.mrf.mxu1  ;;  %v2784_v62 = vpop.f32.mrf.mxu0 }
 0xb7c   :  { %v3787_v10 = vadd.f32 %v3786_v34, %v13274_v63 }
 0xb7d   :  { %v3788_v20 = vpop.f32.mrf.mxu1  ;;  %v10005_v13 = vpop.f32.mrf.mxu0 }
 0xb7e   :  { %v3789_v60 = vadd.f32 %v3788_v20, %v13278_v54 }
 0xb7f   :  { %10027 = vmatmul.mubr.msk.bf16.gmra.mxu1 %vm254_vm3, %v17022_v35  ;;  %v3792_v26 = vpop.f32.mrf.mxu1 }
 0xb80   :  { %4353 = vmatmul.mubr.bf16.gmra.mxu0 %v13023_v44  ;;  %10030 = vmatprep.mubr.msk.bf16.mxu1 %vm10975_vm0, %v16983_v25  ;;  %v3793_v41 = vadd.f32 %v3792_v26, %v13292_v49 }
 0xb81   :  { %4360 = vmatprep.mubr.bf16.mxu0 %v13031_v45  ;;  %v3794_v58 = vpop.f32.mrf.mxu1 }
 0xb82   :  { %v3795_v59 = vadd.f32 %v3794_v58, %v13299_v18 }
 0xb83   :  { %v3796_v22 = vpop.f32.mrf.mxu1 }
 0xb85   :  { %v3798_v57 = vpop.f32.mrf.mxu1 }
 0xb87   :  { %10031 = vmatmul.mubr.msk.bf16.gmra.mxu1 %vm254_vm3, %v13060_v40  ;;  %v13453_v30 = vpop.f32.mrf.mxu1 }
 0xb88   :  { %4361 = vmatmul.mubr.bf16.gmra.mxu0 %v13056_v27  ;;  %10050 = vmatprep.mubr.msk.bf16.mxu1 %vm10975_vm0, %v16983_v25  ;;  %v3803_v54 = vadd.f32 %v13453_v30, %v13332_v55 }
 0xb89   :  { %v13458_v35 = vpop.f32.mrf.mxu1  ;;  %5399 = vmatprep.mubr.bf16.mxu0 %v17002_v5 }
 0xb8b   :  { %v13461_v44 = vpop.f32.mrf.mxu1 }
 0xb8d   :  { %v13463_v45 = vpop.f32.mrf.mxu1 }
 0xb8f   :  { %v13465_v13 = vpop.f32.mrf.mxu1 }
 0xb91   :  { %v13467_v62 = vpop.f32.mrf.mxu1 }
 0xb92   :  { %17050 = vst [vmem:[#allocation53_spill] sm:$0xff] %v13467_v62 }
 0xb93   :  { %v3816_v40 = vpop.f32.mrf.mxu1 }
 0xb95   :  { %v3817_v43 = vpop.f32.mrf.mxu1 }
 0xb97   :  { %v3853_v39 = vpop.f32.mrf.mxu0  ;;  %v3934_v31 = vpop.f32.mrf.mxu1 }
 0xb98   :  { %v3854_v50 = vadd.f32 %v3853_v39, %v3773_v48 }
 0xb99   :  { %v3855_v27 = vpop.f32.mrf.mxu0  ;;  %v3936_v4 = vpop.f32.mrf.mxu1 }
 0xb9a   :  { %v3856_v47 = vadd.f32 %v3855_v27, %v3775_v52  ;;  %v13484_v48 = vadd.f32 %v3934_v31, %v3854_v50 }
 0xb9b   :  { %v3857_v8 = vpop.f32.mrf.mxu0  ;;  %v3938_v25 = vpop.f32.mrf.mxu1 }
 0xb9c   :  { %v3858_v61 = vadd.f32 %v3857_v8, %v3777_v3  ;;  %17053 = vst [vmem:[#allocation56_spill] sm:$0xff] %v13484_v48  ;;  %v13489_v52 = vadd.f32 %v3936_v4, %v3856_v47 }
 0xb9d   :  { %v3859_v56 = vpop.f32.mrf.mxu0  ;;  %v3940_v16 = vpop.f32.mrf.mxu1 }
 0xb9e   :  { %v3860_v12 = vadd.f32 %v3859_v56, %v3779_v46  ;;  %v13478_v3 = vadd.f32 %v3938_v25, %v3858_v61  ;;  %17055 = vst [vmem:[#allocation58_spill] sm:$0xff] %v13489_v52 }
 0xb9f   :  { %v3863_v33 = vpop.f32.mrf.mxu0  ;;  %v3944_v5 = vpop.f32.mrf.mxu1 }
 0xba0   :  { %v3864_v42 = vadd.f32 %v3863_v33, %v3783_v38  ;;  %17051 = vst [vmem:[#allocation54_spill] sm:$0xff] %v13478_v3  ;;  %v13481_v46 = vadd.f32 %v3940_v16, %v3860_v12  ;;  %v3797_v33 = vadd.f32 %v3796_v22, %v13313_v21  ;;  %v4440_v21 = vadd.f32 %v13478_v3, %v13484_v48  ;;  %v17079_v3 = vld [vmem:[#allocation32_spill] sm:$0xff] }
 0xba1   :  { %v3865_v32 = vpop.f32.mrf.mxu0  ;;  %v3946_v51 = vpop.f32.mrf.mxu1 }
 0xba2   :  { %v3866_v28 = vadd.f32 %v3865_v32, %v3785_v2  ;;  %17052 = vst [vmem:[#allocation55_spill] sm:$0xff] %v13481_v46  ;;  %v13486_v38 = vadd.f32 %v3944_v5, %v3864_v42  ;;  %v3799_v2 = vadd.f32 %v3798_v57, %v13318_v17  ;;  %v4454_v61 = vadd.f32 %v13481_v46, %v13489_v52  ;;  %v17080_v52 = vld [vmem:[#allocation34_spill] sm:$0xff] }
 0xba3   :  { %v3867_v53 = vpop.f32.mrf.mxu0  ;;  %v3948_v37 = vpop.f32.mrf.mxu1 }
 0xba4   :  { %v3868_v36 = vadd.f32 %v3867_v53, %v3787_v10  ;;  %17054 = vst [vmem:[#allocation57_spill] sm:$0xff] %v13486_v38  ;;  %v13491_v25 = vadd.f32 %v3946_v51, %v3866_v28  ;;  %v4441_v53 = vadd.f32 %v4440_v21, %v13486_v38 }
 0xba5   :  { %v3869_v40 = vpop.f32.mrf.mxu0  ;;  %v3950_v43 = vpop.f32.mrf.mxu1 }
 0xba6   :  { %v3870_v56 = vadd.f32 %v3869_v40, %v3789_v60  ;;  %17056 = vst [vmem:[#allocation59_spill] sm:$0xff] %v13491_v25  ;;  %v13497_v50 = vadd.f32 %v3948_v37, %v3868_v36  ;;  %v4455_v37 = vadd.f32 %v4454_v61, %v13491_v25  ;;  %v17078_v25 = vld [vmem:[#allocation31_spill] sm:$0xff] }
 0xba7   :  { %v3873_v1 = vpop.f32.mrf.mxu0  ;;  %v3954_v23 = vpop.f32.mrf.mxu1 }
 0xba8   :  { %v3874_v32 = vadd.f32 %v3873_v1, %v3793_v41  ;;  %17057 = vst [vmem:[#allocation60_spill] sm:$0xff] %v13497_v50  ;;  %v3805_v1 = vadd.f32 %v13458_v35, %v13340_v11  ;;  %v13503_v51 = vadd.f32 %v3950_v43, %v3870_v56  ;;  %v3807_v11 = vadd.f32 %v13461_v44, %v13354_v29  ;;  %v17066_v43 = vld [vmem:[#allocation53_spill] sm:$0xff] }
 0xba9   :  { %v3875_v62 = vpop.f32.mrf.mxu0  ;;  %v3956_v15 = vpop.f32.mrf.mxu1  ;;  %v4442_v6 = vadd.f32 %v4441_v53, %v13497_v50  ;;  %v3813_v29 = vadd.f32 %v13465_v13, %v13370_v9  ;;  %v3815_v42 = vadd.f32 %v17066_v43, %v13378_v0 }
 0xbaa   :  { %v3876_v10 = vadd.f32 %v3875_v62, %v3795_v59  ;;  %17058 = vst [vmem:[#allocation61_spill] sm:$0xff] %v13503_v51  ;;  %v13506_v16 = vadd.f32 %v3954_v23, %v3874_v32  ;;  %v3809_v23 = vadd.f32 %v13463_v45, %v13359_v7  ;;  %v4456_v19 = vadd.f32 %v4455_v37, %v13503_v51  ;;  %v17077_v51 = vld [vmem:[#allocation29_spill] sm:$0xff] }
 0xbab   :  { %v3877_v8 = vpop.f32.mrf.mxu0  ;;  %v3958_v63 = vpop.f32.mrf.mxu1 }
 0xbac   :  { %v3878_v5 = vadd.f32 %v3877_v8, %v3797_v33  ;;  %17059 = vst [vmem:[#allocation62_spill] sm:$0xff] %v13506_v16  ;;  %v13509_v31 = vadd.f32 %v3956_v15, %v3876_v10  ;;  %v4443_v58 = vadd.f32 %v4442_v6, %v13506_v16  ;;  %v17076_v16 = vld [vmem:[#allocation28_spill] sm:$0xff] }
 0xbad   :  { %v3879_v18 = vpop.f32.mrf.mxu0  ;;  %v3960_v12 = vpop.f32.mrf.mxu1 }
 0xbae   :  { %v3880_v55 = vadd.f32 %v3879_v18, %v3799_v2  ;;  %17060 = vst [vmem:[#allocation63_spill] sm:$0xff] %v13509_v31  ;;  %v13514_v20 = vadd.f32 %v3958_v63, %v3878_v5  ;;  %v4457_v35 = vadd.f32 %v4456_v19, %v13509_v31 }
 0xbaf   :  { %v3883_v49 = vpop.f32.mrf.mxu0  ;;  %v3964_v17 = vpop.f32.mrf.mxu1 }
 0xbb0   :  { %v3884_v4 = vadd.f32 %v3883_v49, %v3803_v54  ;;  %17061 = vst [vmem:[#allocation64_spill] sm:$0xff] %v13514_v20  ;;  %v13520_v22 = vadd.f32 %v3960_v12, %v3880_v55  ;;  %v4444_v7 = vadd.f32 %v4443_v58, %v13514_v20 }
 0xbb1   :  { %v3885_v39 = vpop.f32.mrf.mxu0  ;;  %v3966_v14 = vpop.f32.mrf.mxu1 }
 0xbb2   :  { %v3886_v24 = vadd.f32 %v3885_v39, %v3805_v1  ;;  %17062 = vst [vmem:[#allocation65_spill] sm:$0xff] %v13520_v22  ;;  %v13522_v57 = vadd.f32 %v3964_v17, %v3884_v4  ;;  %v4458_v28 = vadd.f32 %v4457_v35, %v13520_v22 }
 0xbb3   :  { %v3887_v34 = vpop.f32.mrf.mxu0  ;;  %v3968_v26 = vpop.f32.mrf.mxu1 }
 0xbb4   :  { %17063 = vst [vmem:[#allocation66_spill] sm:$0xff] %v13522_v57  ;;  %v3888_v30 = vadd.f32 %v3887_v34, %v3807_v11  ;;  %v13528_v45 = vadd.f32 %v3966_v14, %v3886_v24  ;;  %v4445_v9 = vadd.f32 %v4444_v7, %v13522_v57 }
 0xbb5   :  { %v3889_v44 = vpop.f32.mrf.mxu0  ;;  %v3970_v62 = vpop.f32.mrf.mxu1 }
 0xbb6   :  { %17064 = vst [vmem:[#allocation67_spill] sm:$0xff] %v13528_v45  ;;  %v13530_v27 = vadd.f32 %v3968_v26, %v3888_v30  ;;  %v3890_v40 = vadd.f32 %v3889_v44, %v3809_v23  ;;  %v4459_v59 = vadd.f32 %v4458_v28, %v13528_v45 }
 0xbb7   :  { %v3893_v60 = vpop.f32.mrf.mxu0  ;;  %v3974_v47 = vpop.f32.mrf.mxu1 }
 0xbb8   :  { %17065 = vst [vmem:[#allocation68_spill] sm:$0xff] %v13530_v27  ;;  %v13536_v13 = vadd.f32 %v3970_v62, %v3890_v40  ;;  %v3894_v15 = vadd.f32 %v3893_v60, %v3813_v29  ;;  %v4446_v56 = vadd.f32 %v4445_v9, %v13530_v27 }
 0xbb9   :  { %v3895_v41 = vpop.f32.mrf.mxu0  ;;  %v3976_v36 = vpop.f32.mrf.mxu1 }
 0xbba   :  { %17067 = vst [vmem:[#allocation53_spill] sm:$0xff] %v13536_v13  ;;  %v13540_v8 = vadd.f32 %v3974_v47, %v3894_v15  ;;  %v3896_v63 = vadd.f32 %v3895_v41, %v3815_v42  ;;  %v4460_v32 = vadd.f32 %v4459_v59, %v13536_v13 }
 0xbbb   :  { %v3897_v33 = vpop.f32.mrf.mxu0  ;;  %v3978_v0 = vpop.f32.mrf.mxu1 }
 0xbbc   :  { %17068 = vst [vmem:[#allocation69_spill] sm:$0xff] %v13540_v8  ;;  %v4447_v2 = vadd.f32 %v4446_v56, %v13540_v8  ;;  %v13544_v10 = vadd.f32 %v3976_v36, %v3896_v63 }
 0xbbd   :  { %v3898_v18 = vpop.f32.mrf.mxu0  ;;  %v3979_v12 = vpop.f32.mrf.mxu1 }
 0xbbe   :  { %17069 = vst [vmem:[#allocation70_spill] sm:$0xff] %v13544_v10  ;;  %v4448_v54 = vrot.slane %v4447_v2, 4  ;;  %v4461_v21 = vadd.f32 %v4460_v32, %v13544_v10 }
 0xbc0   :  { %v4449_v5 = vadd.f32 %v4448_v54, %v4447_v2  ;;  %v4462_v1 = vrot.slane %v4461_v21, 4 }
 0xbc2   :  { %v4450_v61 = vrot.slane %v4449_v5, 2  ;;  %v4463_v49 = vadd.f32 %v4462_v1, %v4461_v21 }
 0xbc4   :  { %v4464_v17 = vrot.slane %v4463_v49, 2  ;;  %v4451_v53 = vadd.f32 %v4450_v61, %v4449_v5 }
 0xbc6   :  { %v4452_v55 = vrot.slane %v4451_v53, 1  ;;  %v4465_v4 = vadd.f32 %v4464_v17, %v4463_v49 }
 0xbc8   :  { %v13547_v37 = vadd.f32 %v4452_v55, %v4451_v53  ;;  %v4466_v39 = vrot.slane %v4465_v4, 1 }
 0xbca   :  { %17070 = vst [vmem:[#allocation71_spill] sm:$0xff] %v13547_v37  ;;  %4520 = vrot.lane.b32.xlu0 %v13547_v37, %s10977_s5  ;;  %v13551_v14 = vadd.f32 %v4466_v39, %v4465_v4 }
 0xbcc   :  { %17071 = vst [vmem:[#allocation72_spill] sm:$0xff] %v13551_v14  ;;  %4526 = vrot.lane.b32.xlu1 %v13551_v14, %s10977_s5 }
 0xbd7   :  { %v13555_v11 = vpop.f32.mrf.mxu1 }
 0xbd8   :  { %v4015_v6 = vpop.f32.mrf.mxu0 }
 0xbd9   :  { %v13557_v24 = vpop.f32.mrf.mxu1 }
 0xbda   :  { %v4017_v23 = vpop.f32.mrf.mxu0 }
 0xbdb   :  { %v4100_v19 = vpop.f32.mrf.mxu1  ;;  %v4018_v50 = vadd.f32 %v4017_v23, %v17077_v51 }
 0xbdc   :  { %v4019_v34 = vpop.f32.mrf.mxu0 }
 0xbdd   :  { %v13559_v26 = vpop.f32.mrf.mxu1 }
 0xbde   :  { %v4021_v58 = vpop.f32.mrf.mxu0 }
 0xbdf   :  { %v13561_v30 = vpop.f32.mrf.mxu1  ;;  %v4022_v38 = vadd.f32 %v4021_v58, %v17078_v25  ;;  %v4099_v25 = vadd.f32 %v13557_v24, %v4018_v50  ;;  %v17087_v24 = vld [vmem:[#allocation24_spill] sm:$0xff] }
 0xbe0   :  { %v4025_v29 = vpop.f32.mrf.mxu0 }
 0xbe1   :  { %v13563_v35 = vpop.f32.mrf.mxu1  ;;  %v4026_v48 = vadd.f32 %v4025_v29, %v17079_v3  ;;  %v4103_v3 = vadd.f32 %v13559_v26, %v4022_v38  ;;  %v17084_v29 = vld [vmem:[#allocation38_spill] sm:$0xff] }
 0xbe2   :  { %v4027_v44 = vpop.f32.mrf.mxu0 }
 0xbe3   :  { %v13565_v62 = vpop.f32.mrf.mxu1  ;;  %v4028_v14 = vadd.f32 %v4027_v44, %v17080_v52  ;;  %v4107_v52 = vadd.f32 %v13561_v30, %v4026_v48  ;;  %v17086_v48 = vld [vmem:[#allocation37_spill] sm:$0xff] }
 0xbe4   :  { %v4029_v7 = vpop.f32.mrf.mxu0 }
 0xbe5   :  { %v13567_v40 = vpop.f32.mrf.mxu1 }
 0xbe6   :  { %v4031_v43 = vpop.f32.mrf.mxu0 }
 0xbe7   :  { %v13569_v42 = vpop.f32.mrf.mxu1 }
 0xbe8   :  { %v4035_v60 = vpop.f32.mrf.mxu0 }
 0xbe9   :  { %v13571_v47 = vpop.f32.mrf.mxu1 }
 0xbea   :  { %v4037_v28 = vpop.f32.mrf.mxu0 }
 0xbeb   :  { %v13573_v9 = vpop.f32.mrf.mxu1  ;;  %v4038_v44 = vadd.f32 %v4037_v28, %v17084_v29 }
 0xbec   :  { %v4039_v15 = vpop.f32.mrf.mxu0 }
 0xbed   :  { %v13575_v41 = vpop.f32.mrf.mxu1 }
 0xbee   :  { %v13577_v36 = vpop.f32.mrf.mxu0 }
 0xbef   :  { %v13579_v59 = vpop.f32.mrf.mxu1 }
 0xbf0   :  { %v4045_v56 = vpop.f32.mrf.mxu0 }
 0xbf1   :  { %v13581_v63 = vpop.f32.mrf.mxu1  ;;  %v4046_v26 = vadd.f32 %v4045_v56, %v17087_v24  ;;  %v17089_v56 = vld [vmem:[#allocation40_spill] sm:$0xff] }
 0xbf2   :  { %v13583_v33 = vpop.f32.mrf.mxu0 }
 0xbf3   :  { %v13585_v0 = vpop.f32.mrf.mxu1 }
 0xbf4   :  { %v13587_v32 = vpop.f32.mrf.mxu0 }
 0xbf5   :  { %v13589_v2 = vpop.f32.mrf.mxu1 }
 0xbf6   :  { %v13591_v18 = vpop.f32.mrf.mxu0 }
 0xbf7   :  { %v13593_v12 = vpop.f32.mrf.mxu1 }
 0xbf8   :  { %v13595_v54 = vpop.f32.mrf.mxu0 }
 0xbf9   :  { %v13597_v21 = vpop.f32.mrf.mxu1 }
 0xbfa   :  { %v13599_v5 = vpop.f32.mrf.mxu0 }
 0xbfb   :  { %v4140_v1 = vpop.f32.mrf.mxu1 }
 0xbfc   :  { %v4059_v61 = vpop.f32.mrf.mxu0 }
 0xbfd   :  { %v4141_v49 = vpop.f32.mrf.mxu1  ;;  %v17074_v61 = vld [vmem:[#allocation30_spill] sm:$0xff] }
 0xbfe   :  { %v4060_v17 = vpop.f32.mrf.mxu0  ;;  %v4020_v49 = vadd.f32 %v4019_v34, %v17074_v61  ;;  %v17082_v61 = vld [vmem:[#allocation33_spill] sm:$0xff] }
 0xbff   :  { %v9602_v53 = vpop.f32.mrf.mxu1 }
 0xc00   :  { %v4177_v55 = vpop.f32.mrf.mxu0 }
 0xc01   :  { %v9603_v4 = vpop.f32.mrf.mxu1 }
 0xc02   :  { %v13601_v39 = vadd.f32 %v9603_v4, %v9602_v53  ;;  %v4179_v10 = vpop.f32.mrf.mxu0  ;;  %v4016_v53 = vadd.f32 %v4015_v6, %v17076_v16 }
 0xc03   :  { %v13603_v8 = vpop.f32.mrf.mxu1  ;;  %v13647_v28 = vadd.f32 %v4179_v10, %v4099_v25 }
 0xc04   :  { %17072 = vst [vmem:[#allocation73_spill] sm:$0xff] %v13601_v39  ;;  %v4181_v13 = vpop.f32.mrf.mxu0  ;;  %v17083_v39 = vld [vmem:[#allocation35_spill] sm:$0xff]  ;;  %v4097_v6 = vadd.f32 %v13555_v11, %v4016_v53 }
 0xc05   :  { %v13605_v27 = vpop.f32.mrf.mxu1  ;;  %v4036_v16 = vadd.f32 %v4035_v60, %v17083_v39 }
 0xc06   :  { %v4183_v45 = vpop.f32.mrf.mxu0  ;;  %v13633_v11 = vadd.f32 %v4177_v55, %v4097_v6 }
 0xc07   :  { %v9608_v57 = vpop.f32.mrf.mxu1  ;;  %v13635_v39 = vadd.f32 %v4183_v45, %v4103_v3  ;;  %v4117_v30 = vadd.f32 %v13569_v42, %v4036_v16  ;;  %v4119_v42 = vadd.f32 %v13571_v47, %v4038_v44  ;;  %v4127_v47 = vadd.f32 %v13579_v59, %v4046_v26 }
 0xc08   :  { %v4187_v22 = vpop.f32.mrf.mxu0 }
 0xc09   :  { %v9609_v20 = vpop.f32.mrf.mxu1  ;;  %v13637_v50 = vadd.f32 %v4187_v22, %v4107_v52 }
 0xc0a   :  { %v13607_v31 = vadd.f32 %v9609_v20, %v9608_v57  ;;  %v4189_v1 = vpop.f32.mrf.mxu0  ;;  %v17081_v57 = vld [vmem:[#allocation36_spill] sm:$0xff] }
 0xc0b   :  { %v13610_v17 = vpop.f32.mrf.mxu1  ;;  %v4030_v37 = vadd.f32 %v4029_v7, %v17081_v57 }
 0xc0c   :  { %17073 = vst [vmem:[#allocation74_spill] sm:$0xff] %v13607_v31  ;;  %17075 = vst [vmem:[#allocation30_spill] sm:$0xff] %v13610_v17  ;;  %v4191_v4 = vpop.f32.mrf.mxu0  ;;  %v4101_v31 = vadd.f32 %v4100_v19, %v4020_v49  ;;  %v4032_v17 = vadd.f32 %v4031_v43, %v17082_v61  ;;  %v17085_v19 = vld [vmem:[#allocation23_spill] sm:$0xff]  ;;  %v4109_v43 = vadd.f32 %v13563_v35, %v4028_v14 }
 0xc0d   :  { %v13616_v46 = vpop.f32.mrf.mxu1  ;;  %v4040_v7 = vadd.f32 %v4039_v15, %v17085_v19  ;;  %v4111_v38 = vadd.f32 %v13565_v62, %v4030_v37  ;;  %v17088_v15 = vld [vmem:[#allocation39_spill] sm:$0xff] }
 0xc0e   :  { %v4193_v20 = vpop.f32.mrf.mxu0  ;;  %v13624_v23 = vadd.f32 %v4181_v13, %v4101_v31  ;;  %v4042_v13 = vadd.f32 %v13577_v36, %v17086_v48  ;;  %v4113_v14 = vadd.f32 %v13567_v40, %v4032_v17  ;;  %v13651_v45 = vadd.f32 %v4189_v1, %v4109_v43  ;;  %v17092_v43 = vld [vmem:[#allocation43_spill] sm:$0xff] }
 0xc0f   :  { %v9614_v34 = vpop.f32.mrf.mxu1  ;;  %v13653_v37 = vadd.f32 %v4191_v4, %v4111_v38  ;;  %v4048_v36 = vadd.f32 %v13583_v33, %v17088_v15  ;;  %v4050_v40 = vadd.f32 %v13587_v32, %v17089_v56  ;;  %v4121_v10 = vadd.f32 %v13573_v9, %v4040_v7 }
 0xc10   :  { %v4197_v51 = vpop.f32.mrf.mxu0  ;;  %v4468_v22 = vadd.f32 %v13624_v23, %v13633_v11  ;;  %v4482_v17 = vadd.f32 %v13635_v39, %v13647_v28  ;;  %v13666_v53 = vadd.f32 %v4193_v20, %v4113_v14  ;;  %v4123_v32 = vadd.f32 %v13575_v41, %v4042_v13 }
 0xc11   :  { %v9615_v58 = vpop.f32.mrf.mxu1  ;;  %v13668_v4 = vadd.f32 %v4197_v51, %v4117_v30  ;;  %v17091_v51 = vld [vmem:[#allocation42_spill] sm:$0xff]  ;;  %v4131_v59 = vadd.f32 %v13585_v0, %v4050_v40 }
 0xc12   :  { %v13631_v49 = vadd.f32 %v9615_v58, %v9614_v34  ;;  %v4199_v60 = vpop.f32.mrf.mxu0  ;;  %v4469_v1 = vadd.f32 %v4468_v22, %v13637_v50  ;;  %v17090_v34 = vld [vmem:[#allocation41_spill] sm:$0xff]  ;;  %v4483_v9 = vadd.f32 %v4482_v17, %v13651_v45  ;;  %v4056_v3 = vadd.f32 %v13595_v54, %v17091_v51 }
 0xc13   :  { %v13640_v31 = vpop.f32.mrf.mxu1  ;;  %v4052_v33 = vadd.f32 %v13591_v18, %v17090_v34  ;;  %v13676_v6 = vadd.f32 %v4199_v60, %v4119_v42  ;;  %v4129_v18 = vadd.f32 %v13581_v63, %v4048_v36  ;;  %v4058_v54 = vadd.f32 %v13599_v5, %v17092_v43 }
 0xc14   :  { %v4201_v35 = vpop.f32.mrf.mxu0  ;;  %v4470_v16 = vadd.f32 %v4469_v1, %v13653_v37  ;;  %v4484_v58 = vadd.f32 %v4483_v9, %v13666_v53 }
 0xc15   :  { %v13655_v62 = vpop.f32.mrf.mxu1  ;;  %v13678_v25 = vadd.f32 %v4201_v35, %v4121_v10  ;;  %v4133_v38 = vadd.f32 %v13589_v2, %v4052_v33  ;;  %v4137_v2 = vadd.f32 %v13593_v12, %v4056_v3  ;;  %v4139_v42 = vadd.f32 %v13597_v21, %v4058_v54 }
 0xc16   :  { %v4203_v55 = vpop.f32.mrf.mxu0  ;;  %v4471_v29 = vadd.f32 %v4470_v16, %v13668_v4  ;;  %v4485_v63 = vadd.f32 %v4484_v58, %v13676_v6  ;;  %v17093_v58 = vld [vmem:[#allocation44_spill] sm:$0xff] }
 0xc17   :  { %v9620_v57 = vpop.f32.mrf.mxu1  ;;  %v13688_v44 = vadd.f32 %v4203_v55, %v4123_v32 }
 0xc18   :  { %v4207_v61 = vpop.f32.mrf.mxu0  ;;  %v4472_v0 = vadd.f32 %v4471_v29, %v13678_v25  ;;  %v17094_v29 = vld [vmem:[#allocation73_spill] sm:$0xff] }
 0xc19   :  { %v9621_v20 = vpop.f32.mrf.mxu1  ;;  %v13690_v19 = vadd.f32 %v4207_v61, %v4127_v47  ;;  %v4486_v14 = vadd.f32 %v4485_v63, %v13688_v44  ;;  %v4259_v43 = vadd.f32 %v17094_v29, %v17093_v58 }
 0xc1a   :  { %v13682_v52 = vadd.f32 %v9621_v20, %v9620_v57  ;;  %v4209_v41 = vpop.f32.mrf.mxu0 }
 0xc1b   :  { %v13692_v7 = vpop.f32.mrf.mxu1  ;;  %v13699_v48 = vadd.f32 %v4209_v41, %v4129_v18  ;;  %v4473_v30 = vadd.f32 %v4472_v0, %v13690_v19  ;;  %v9607_v41 = vadd.f32 %v13605_v27, %v13603_v8 }
 0xc1c   :  { %v4211_v60 = vpop.f32.mrf.mxu0 }
 0xc1d   :  { %v13701_v13 = vadd.f32 %v4211_v60, %v4131_v59  ;;  %v13703_v24 = vpop.f32.mrf.mxu1  ;;  %v4487_v15 = vadd.f32 %v4486_v14, %v13699_v48 }
 0xc1e   :  { %v4213_v26 = vpop.f32.mrf.mxu0 }
 0xc1f   :  { %v13707_v35 = vadd.f32 %v4213_v26, %v4133_v38  ;;  %v9626_v5 = vpop.f32.mrf.mxu1  ;;  %v4474_v36 = vadd.f32 %v4473_v30, %v13701_v13 }
 0xc20   :  { %v4217_v22 = vpop.f32.mrf.mxu0 }
 0xc21   :  { %v13712_v56 = vadd.f32 %v4217_v22, %v4137_v2  ;;  %v9627_v40 = vpop.f32.mrf.mxu1  ;;  %v4488_v17 = vadd.f32 %v4487_v15, %v13707_v35  ;;  %v17095_v2 = vld [vmem:[#allocation45_spill] sm:$0xff] }
 0xc22   :  { %v13715_v10 = vadd.f32 %v9627_v40, %v9626_v5  ;;  %v4219_v55 = vpop.f32.mrf.mxu0  ;;  %v4262_v22 = vadd.f32 %v9607_v41, %v17095_v2 }
 0xc23   :  { %v4475_v1 = vadd.f32 %v4474_v36, %v13712_v56  ;;  %v13719_v57 = vadd.f32 %v4219_v55, %v4139_v42  ;;  %v9629_v12 = vpop.f32.mrf.mxu1 }
 0xc24   :  { %v4221_v34 = vpop.f32.mrf.mxu0 }
 0xc25   :  { %v4476_v33 = vrot.slane %v4475_v1, 4  ;;  %v4489_v32 = vadd.f32 %v4488_v17, %v13719_v57  ;;  %v9630_v47 = vpop.f32.mrf.mxu1 }
 0xc26   :  { %v4222_v61 = vpop.f32.mrf.mxu0 }
 0xc27   :  { %v4477_v9 = vadd.f32 %v4476_v33, %v4475_v1  ;;  %v4490_v16 = vrot.slane %v4489_v32, 4  ;;  %v4402_v20 = vpop.f32.mrf.mxu1  ;;  %v17096_v33 = vld [vmem:[#allocation46_spill] sm:$0xff] }
 0xc28   :  { %v9648_v21 = vpop.f32.mrf.mxu0  ;;  %v17098_v61 = vld [vmem:[#allocation30_spill] sm:$0xff] }
 0xc29   :  { %v4478_v51 = vrot.slane %v4477_v9, 2  ;;  %v4491_v3 = vadd.f32 %v4490_v16, %v4489_v32  ;;  %v10016_v18 = vpop.f32.mrf.mxu1  ;;  %v17097_v32 = vld [vmem:[#allocation74_spill] sm:$0xff] }
 0xc2a   :  { %v9649_v59 = vpop.f32.mrf.mxu0  ;;  %v4267_v47 = vadd.f32 %v17097_v32, %v17096_v33 }
 0xc2b   :  { %v4492_v54 = vrot.slane %v4491_v3, 2  ;;  %v9650_v60 = vadd.f32 %v9649_v59, %v9648_v21  ;;  %v4405_v38 = vpop.f32.mrf.mxu1  ;;  %v4479_v63 = vadd.f32 %v4478_v51, %v4477_v9  ;;  %v9613_v9 = vadd.f32 %v13616_v46, %v17098_v61  ;;  %v17099_v59 = vld [vmem:[#allocation47_spill] sm:$0xff]  ;;  %v17102_v61 = vld [vmem:[#allocation50_spill] sm:$0xff] }
 0xc2c   :  { %v9651_v0 = vpop.f32.mrf.mxu0 }
 0xc2d   :  { %v4331_v26 = vadd.f32 %v9650_v60, %v4259_v43  ;;  %v10017_v14 = vpop.f32.mrf.mxu1  ;;  %v4480_v30 = vrot.slane %v4479_v63, 1  ;;  %v4493_v5 = vadd.f32 %v4492_v54, %v4491_v3  ;;  %v4270_v58 = vadd.f32 %v9613_v9, %v17099_v59  ;;  %v17103_v59 = vld [vmem:[#allocation51_spill] sm:$0xff] }
 0xc2e   :  { %v9652_v15 = vpop.f32.mrf.mxu0  ;;  %v9619_v14 = vadd.f32 %v13655_v62, %v13640_v31  ;;  %v4283_v31 = vadd.f32 %v13682_v52, %v17102_v61  ;;  %v9625_v62 = vadd.f32 %v13703_v24, %v13692_v7 }
 0xc2f   :  { %v13727_v36 = vadd.f32 %v4402_v20, %v4331_v26  ;;  %v9653_v40 = vadd.f32 %v9652_v15, %v9651_v0  ;;  %v4410_v27 = vpop.f32.mrf.mxu1  ;;  %v13729_v8 = vadd.f32 %v4480_v30, %v4479_v63  ;;  %v4494_v42 = vrot.slane %v4493_v5, 1  ;;  %v17100_v0 = vld [vmem:[#allocation48_spill] sm:$0xff] }
 0xc30   :  { %v9654_v55 = vpop.f32.mrf.mxu0  ;;  %v4275_v26 = vadd.f32 %v13631_v49, %v17100_v0  ;;  %v17104_v0 = vld [vmem:[#allocation52_spill] sm:$0xff] }
 0xc31   :  { %v4334_v17 = vadd.f32 %v9653_v40, %v4262_v22  ;;  %v10020_v1 = vpop.f32.mrf.mxu1  ;;  %4532 = vrot.lane.b32.xlu0 %v13729_v8, %s10977_s5  ;;  %v13733_v12 = vadd.f32 %v4494_v42, %v4493_v5  ;;  %v17101_v42 = vld [vmem:[#allocation49_spill] sm:$0xff]  ;;  %v4291_v7 = vadd.f32 %v13715_v10, %v17104_v0 }
 0xc32   :  { %v9655_v34 = vpop.f32.mrf.mxu0 }
 0xc33   :  { %v13739_v16 = vadd.f32 %v4405_v38, %v4334_v17  ;;  %v9656_v20 = vadd.f32 %v9655_v34, %v9654_v55  ;;  %v4413_v21 = vpop.f32.mrf.mxu1  ;;  %4538 = vrot.lane.b32.xlu1 %v13733_v12, %s10977_s5  ;;  %v4278_v55 = vadd.f32 %v9619_v14, %v17101_v42  ;;  %v4496_v42 = vsel %vm254_vm3, %v13727_v36, 0.0 }
 0xc34   :  { %v9657_v51 = vpop.f32.mrf.mxu0 }
 0xc35   :  { %v4339_v3 = vadd.f32 %v9656_v20, %v4267_v47  ;;  %v10021_v18 = vpop.f32.mrf.mxu1 }
 0xc36   :  { %v9658_v41 = vpop.f32.mrf.mxu0 }
 0xc37   :  { %v13744_v29 = vadd.f32 %v4410_v27, %v4339_v3  ;;  %v9659_v43 = vadd.f32 %v9658_v41, %v9657_v51  ;;  %v4418_v54 = vpop.f32.mrf.mxu1 }
 0xc38   :  { %v9660_v60 = vpop.f32.mrf.mxu0 }
 0xc39   :  { %v4342_v63 = vadd.f32 %v9659_v43, %v4270_v58  ;;  %v10024_v46 = vpop.f32.mrf.mxu1  ;;  %v4286_v58 = vadd.f32 %v9625_v62, %v17103_v59  ;;  %v17105_v59 = vld [vmem:[#allocation71_spill] sm:$0xff] }
 0xc3a   :  { %v9661_v38 = vpop.f32.mrf.mxu0 }
 0xc3b   :  { %v13750_v30 = vadd.f32 %v4413_v21, %v4342_v63  ;;  %v9662_v5 = vadd.f32 %v9661_v38, %v9660_v60  ;;  %v4421_v2 = vpop.f32.mrf.mxu1 }
 0xc3c   :  { %v9663_v22 = vpop.f32.mrf.mxu0 }
 0xc3d   :  { %v4347_v15 = vadd.f32 %v9662_v5, %v4275_v26  ;;  %v10025_v40 = vpop.f32.mrf.mxu1 }
 0xc3e   :  { %v9664_v27 = vpop.f32.mrf.mxu0 }
 0xc3f   :  { %v13753_v17 = vadd.f32 %v4418_v54, %v4347_v15  ;;  %v9665_v1 = vadd.f32 %v9664_v27, %v9663_v22  ;;  %v4426_v34 = vpop.f32.mrf.mxu1  ;;  %v4497_v27 = vsel %vm254_vm3, %v13739_v16, 0.0 }
 0xc40   :  { %v9666_v33 = vpop.f32.mrf.mxu0  ;;  %v4498_v10 = vadd.f32 %v4497_v27, %v4496_v42 }
 0xc41   :  { %v4350_v32 = vadd.f32 %v9665_v1, %v4278_v55  ;;  %v10028_v49 = vpop.f32.mrf.mxu1  ;;  %v4499_v55 = vsel %vm254_vm3, %v13744_v29, 0.0  ;;  %v4501_v1 = vsel %vm254_vm3, %v13750_v30, 0.0 }
 0xc42   :  { %v9667_v47 = vpop.f32.mrf.mxu0 }
 0xc43   :  { %v13759_v9 = vadd.f32 %v4421_v2, %v4350_v32  ;;  %v9668_v20 = vadd.f32 %v9667_v47, %v9666_v33  ;;  %v4429_v21 = vpop.f32.mrf.mxu1  ;;  %v4503_v33 = vsel %vm254_vm3, %v13753_v17, 0.0 }
 0xc44   :  { %v9669_v51 = vpop.f32.mrf.mxu0 }
 0xc45   :  { %v4355_v3 = vadd.f32 %v9668_v20, %v4283_v31  ;;  %v10029_v18 = vpop.f32.mrf.mxu1  ;;  %v4505_v49 = vsel %vm254_vm3, %v13759_v9, 0.0 }
 0xc46   :  { %v9670_v41 = vpop.f32.mrf.mxu0  ;;  %v4521_v18 = vpop.permute.xlu0 %4520 }
 0xc47   :  { %v13762_v43 = vadd.f32 %v4426_v34, %v4355_v3  ;;  %v9671_v54 = vadd.f32 %v9670_v41, %v9669_v51  ;;  %v4434_v60 = vpop.f32.mrf.mxu1  ;;  %v4500_v34 = vadd.f32 %v4499_v55, %v4498_v10 }
 0xc48   :  { %v9672_v63 = vpop.f32.mrf.mxu0 }
 0xc49   :  { %v4358_v46 = vadd.f32 %v9671_v54, %v4286_v58  ;;  %v10032_v52 = vpop.f32.mrf.mxu1  ;;  %v4502_v32 = vadd.f32 %v4501_v1, %v4500_v34  ;;  %v4507_v61 = vsel %vm254_vm3, %v13762_v43, 0.0  ;;  %v4523_v58 = vadd.f32 %v4521_v18, %v17105_v59  ;;  %v17107_v34 = vld [vmem:[#allocation3_spill] sm:$0xff]  ;;  %v17113_v18 = vld [vmem:[#allocation57_spill] sm:$0xff] }
 0xc4a   :  { %v9673_v38 = vpop.f32.mrf.mxu0  ;;  %v4527_v52 = vpop.permute.xlu1 %4526 }
 0xc4b   :  { %v13766_v24 = vadd.f32 %v4429_v21, %v4358_v46  ;;  %v9674_v26 = vadd.f32 %v9673_v38, %v9672_v63  ;;  %v4437_v14 = vpop.f32.mrf.mxu1  ;;  %v4504_v47 = vadd.f32 %v4503_v33, %v4502_v32  ;;  %v17108_v33 = vld [vmem:[#allocation58_spill] sm:$0xff] }
 0xc4c   :  { %v9675_v5 = vpop.f32.mrf.mxu0 }
 0xc4d   :  { %v4363_v2 = vadd.f32 %v9674_v26, %v4291_v7  ;;  %v10033_v22 = vpop.f32.mrf.mxu1  ;;  %v4506_v31 = vadd.f32 %v4505_v49, %v4504_v47  ;;  %v4509_v62 = vsel %vm254_vm3, %v13766_v24, 0.0  ;;  %v17110_v47 = vld [vmem:[#allocation56_spill] sm:$0xff] }
 0xc4e   :  { %v9676_v15 = vpop.f32.mrf.mxu0 }
 0xc4f   :  { %v13768_v40 = vadd.f32 %v4434_v60, %v4363_v2  ;;  %v4508_v20 = vadd.f32 %v4507_v61, %v4506_v31  ;;  %v17106_v60 = vld [vmem:[#allocation72_spill] sm:$0xff] }
 0xc50   :  { %v4524_v63 = vadd.f32 %v4523_v58, %v17106_v60  ;;  %v17118_v58 = vld [vmem:[#allocation60_spill] sm:$0xff] }
 0xc51   :  { %v4511_v21 = vsel %vm254_vm3, %v13768_v40, 0.0  ;;  %v4510_v51 = vadd.f32 %v4509_v62, %v4508_v20  ;;  %v17111_v20 = vld [vmem:[#allocation54_spill] sm:$0xff] }
 0xc52   :  { %v4529_v38 = vadd.f32 %v4527_v52, %v4524_v63  ;;  %v17121_v52 = vld [vmem:[#allocation62_spill] sm:$0xff] }
 0xc53   :  { %v4512_v3 = vadd.f32 %v4511_v21, %v4510_v51 }
 0xc54   :  { %v4530_v7 = vadd.f32 %v4529_v38, %v13729_v8 }
 0xc55   :  { %v4513_v41 = vrot.slane %v4512_v3, 4 }
 0xc57   :  { %v4514_v54 = vadd.f32 %v4513_v41, %v4512_v3  ;;  %v17114_v41 = vld [vmem:[#allocation59_spill] sm:$0xff] }
 0xc59   :  { %v4515_v46 = vrot.slane %v4514_v54, 2 }
 0xc5b   :  { %v4516_v0 = vadd.f32 %v4515_v46, %v4514_v54  ;;  %v17119_v54 = vld [vmem:[#allocation61_spill] sm:$0xff] }
 0xc5d   :  { %v4517_v5 = vrot.slane %v4516_v0, 1 }
 0xc5f   :  { %v4518_v15 = vadd.f32 %v4517_v5, %v4516_v0  ;;  %v17122_v0 = vld [vmem:[#allocation63_spill] sm:$0xff]  ;;  %v17125_v5 = vld [vmem:[#allocation65_spill] sm:$0xff] }
 0xca3   :  { %v4533_v26 = vpop.permute.xlu0 %4532 }
 0xca4   :  { %v4535_v14 = vadd.f32 %v4533_v26, %v4530_v7  ;;  %v17124_v26 = vld [vmem:[#allocation64_spill] sm:$0xff] }
 0xca5   :  { %v4539_v22 = vpop.permute.xlu1 %4538 }
 0xca6   :  { %v4536_v2 = vadd.f32 %v4535_v14, %v13733_v12  ;;  %v17109_v12 = vld [vmem:[#allocation55_spill] sm:$0xff] }
 0xca8   :  { %v4541_v27 = vadd.f32 %v4539_v22, %v4536_v2 }
 0xcaa   :  { %v4542_v42 = vadd.f32 %v4541_v27, %v4518_v15  ;;  %v17127_v27 = vld [vmem:[#allocation66_spill] sm:$0xff] }
 0xcac   :  { %v13792_v55 = vmul.f32 0.0015432099, %v4542_v42 }
 0xcae   :  { %4545 = vrot.lane.b32.xlu0 %v13792_v55, %s10977_s5 }
 0xd20   :  { %v4546_v10 = vpop.permute.xlu0 %4545 }
 0xd21   :  { %v4548_v1 = vsel %vm254_vm3, %v13792_v55, %v4546_v10  ;;  %v17128_v10 = vld [vmem:[#allocation67_spill] sm:$0xff] }
 0xd22   :  { %v13799_v8 = vrot.slane %v4548_v1, %v17107_v34 }
 0xd24   :  { %v13803_v32 = vsub.f32 %v17108_v33, %v13799_v8  ;;  %v13807_v49 = vsub.f32 %v17109_v12, %v13799_v8  ;;  %v13811_v61 = vsub.f32 %v17110_v47, %v13799_v8  ;;  %v13815_v31 = vsub.f32 %v13633_v11, %v13799_v8 }
 0xd25   :  { %v13819_v62 = vsub.f32 %v13647_v28, %v13799_v8  ;;  %v13823_v21 = vsub.f32 %v17111_v20, %v13799_v8  ;;  %v13827_v51 = vsub.f32 %v13624_v23, %v13799_v8  ;;  %v13831_v3 = vsub.f32 %v13635_v39, %v13799_v8 }
 0xd26   :  { %v13835_v11 = vsub.f32 %v17113_v18, %v13799_v8  ;;  %v13839_v28 = vsub.f32 %v17114_v41, %v13799_v8  ;;  %v13843_v59 = vsub.f32 %v13637_v50, %v13799_v8  ;;  %v13847_v23 = vsub.f32 %v13651_v45, %v13799_v8 }
 0xd27   :  { %17112 = vst [vmem:[#allocation28_spill] sm:$0xff] %v13827_v51  ;;  %v13851_v39 = vsub.f32 %v17118_v58, %v13799_v8  ;;  %v13855_v60 = vsub.f32 %v17119_v54, %v13799_v8  ;;  %v13859_v63 = vsub.f32 %v13653_v37, %v13799_v8  ;;  %v13863_v50 = vsub.f32 %v13666_v53, %v13799_v8 }
 0xd28   :  { %17115 = vst [vmem:[#allocation29_spill] sm:$0xff] %v13839_v28  ;;  %17116 = vst [vmem:[#allocation31_spill] sm:$0xff] %v13843_v59  ;;  %v4603_v45 = vmul.f32 %v13803_v32, %v13803_v32  ;;  %v4608_v46 = vmul.f32 %v13807_v49, %v13807_v49  ;;  %v13871_v38 = vsub.f32 %v17121_v52, %v13799_v8  ;;  %v17131_v52 = vld [vmem:[#allocation53_spill] sm:$0xff] }
 0xd29   :  { %17117 = vst [vmem:[#allocation32_spill] sm:$0xff] %v13847_v23  ;;  %17120 = vst [vmem:[#allocation34_spill] sm:$0xff] %v13855_v60  ;;  %v13875_v7 = vsub.f32 %v17122_v0, %v13799_v8  ;;  %v13879_v37 = vsub.f32 %v13668_v4, %v13799_v8  ;;  %v13883_v53 = vsub.f32 %v13676_v6, %v13799_v8 }
 0xd2a   :  { %v13887_v14 = vsub.f32 %v17124_v26, %v13799_v8  ;;  %v13891_v2 = vsub.f32 %v17125_v5, %v13799_v8  ;;  %v4613_v22 = vmul.f32 %v13839_v28, %v13839_v28  ;;  %v4661_v15 = vadd.f32 %v4608_v46, %v4603_v45  ;;  %v17130_v45 = vld [vmem:[#allocation68_spill] sm:$0xff] }
 0xd2b   :  { %17123 = vst [vmem:[#allocation36_spill] sm:$0xff] %v13875_v7  ;;  %v13897_v4 = vsub.f32 %v13678_v25, %v13799_v8  ;;  %v13901_v6 = vsub.f32 %v13688_v44, %v13799_v8  ;;  %v13905_v42 = vsub.f32 %v17127_v27, %v13799_v8  ;;  %v13909_v1 = vsub.f32 %v17128_v10, %v13799_v8  ;;  %v17134_v27 = vld [vmem:[#allocation70_spill] sm:$0xff] }
 0xd2c   :  { %17126 = vst [vmem:[#allocation33_spill] sm:$0xff] %v13891_v2  ;;  %v13913_v33 = vsub.f32 %v13690_v19, %v13799_v8  ;;  %v13917_v25 = vsub.f32 %v13699_v48, %v13799_v8  ;;  %v4618_v44 = vmul.f32 %v13855_v60, %v13855_v60  ;;  %v4662_v12 = vadd.f32 %v4661_v15, %v4613_v22  ;;  %v17133_v22 = vld [vmem:[#allocation69_spill] sm:$0xff] }
 0xd2d   :  { %17129 = vst [vmem:[#allocation35_spill] sm:$0xff] %v13909_v1  ;;  %v4623_v47 = vmul.f32 %v13875_v7, %v13875_v7  ;;  %v4602_v20 = vmul.f32 %v13811_v61, %v13811_v61  ;;  %v4604_v18 = vmul.f32 %v13815_v31, %v13815_v31  ;;  %v4605_v19 = vmul.f32 %v13819_v62, %v13819_v62 }
 0xd2e   :  { %v4663_v41 = vadd.f32 %v4662_v12, %v4618_v44  ;;  %v4607_v48 = vmul.f32 %v13823_v21, %v13823_v21  ;;  %v4609_v58 = vmul.f32 %v13827_v51, %v13827_v51  ;;  %v4610_v54 = vmul.f32 %v13831_v3, %v13831_v3 }
 0xd2f   :  { %v13937_v46 = vsub.f32 %v17130_v45, %v13799_v8  ;;  %v13941_v0 = vsub.f32 %v17131_v52, %v13799_v8  ;;  %v13945_v26 = vsub.f32 %v13701_v13, %v13799_v8  ;;  %v13949_v5 = vsub.f32 %v13707_v35, %v13799_v8 }
 0xd30   :  { %v13953_v15 = vsub.f32 %v17133_v22, %v13799_v8  ;;  %v13957_v10 = vsub.f32 %v17134_v27, %v13799_v8  ;;  %v4628_v44 = vmul.f32 %v13891_v2, %v13891_v2  ;;  %v4664_v12 = vadd.f32 %v4663_v41, %v4623_v47 }
 0xd31   :  { %17132 = vst [vmem:[#allocation38_spill] sm:$0xff] %v13945_v26  ;;  %v4633_v13 = vmul.f32 %v13909_v1, %v13909_v1  ;;  %v4612_v45 = vmul.f32 %v13835_v11, %v13835_v11  ;;  %v4614_v35 = vmul.f32 %v13843_v59, %v13843_v59  ;;  %v4615_v52 = vmul.f32 %v13847_v23, %v13847_v23 }
 0xd32   :  { %17135 = vst [vmem:[#allocation23_spill] sm:$0xff] %v13957_v10  ;;  %v4665_v22 = vadd.f32 %v4664_v12, %v4628_v44  ;;  %v4647_v7 = vadd.f32 %v4607_v48, %v4602_v20  ;;  %v4675_v27 = vadd.f32 %v4609_v58, %v4604_v18  ;;  %v4689_v60 = vadd.f32 %v4610_v54, %v4605_v19 }
 0xd33   :  { %v4638_v2 = vmul.f32 %v13941_v0, %v13941_v0  ;;  %v4617_v47 = vmul.f32 %v13851_v39, %v13851_v39  ;;  %v4619_v41 = vmul.f32 %v13859_v63, %v13859_v63  ;;  %v4620_v1 = vmul.f32 %v13863_v50, %v13863_v50 }
 0xd34   :  { %v4666_v59 = vadd.f32 %v4665_v22, %v4633_v13  ;;  %v4648_v28 = vadd.f32 %v4647_v7, %v4612_v45  ;;  %v4690_v51 = vadd.f32 %v4689_v60, %v4615_v52  ;;  %v4676_v23 = vadd.f32 %v4675_v27, %v4614_v35 }
 0xd35   :  { %v4643_v20 = vmul.f32 %v13957_v10, %v13957_v10  ;;  %v4622_v18 = vmul.f32 %v13871_v38, %v13871_v38  ;;  %v4624_v19 = vmul.f32 %v13879_v37, %v13879_v37  ;;  %v4625_v48 = vmul.f32 %v13883_v53, %v13883_v53 }
 0xd36   :  { %v4667_v58 = vadd.f32 %v4666_v59, %v4638_v2  ;;  %v4649_v54 = vadd.f32 %v4648_v28, %v4617_v47  ;;  %v4691_v44 = vadd.f32 %v4690_v51, %v4620_v1  ;;  %v4677_v12 = vadd.f32 %v4676_v23, %v4619_v41 }
 0xd37   :  { %v13987_v60 = vsub.f32 %v13712_v56, %v13799_v8  ;;  %v4627_v7 = vmul.f32 %v13887_v14, %v13887_v14  ;;  %v4629_v13 = vmul.f32 %v13897_v4, %v13897_v4  ;;  %v4630_v45 = vmul.f32 %v13901_v6, %v13901_v6 }
 0xd38   :  { %v4668_v35 = vadd.f32 %v4667_v58, %v4643_v20  ;;  %v4650_v52 = vadd.f32 %v4649_v54, %v4622_v18  ;;  %v4692_v22 = vadd.f32 %v4691_v44, %v4625_v48  ;;  %v4678_v59 = vadd.f32 %v4677_v12, %v4624_v19 }
 0xd39   :  { %17136 = vst [vmem:[#allocation37_spill] sm:$0xff] %v13987_v60  ;;  %v13997_v51 = vsub.f32 %v13719_v57, %v13799_v8  ;;  %v4632_v56 = vmul.f32 %v13905_v42, %v13905_v42  ;;  %v4634_v28 = vmul.f32 %v13913_v33, %v13913_v33  ;;  %v4635_v23 = vmul.f32 %v13917_v25, %v13917_v25 }
 0xd3a   :  { %v4669_v2 = vrot.slane %v4668_v35, 4  ;;  %v4651_v1 = vadd.f32 %v4650_v52, %v4627_v7  ;;  %v4693_v27 = vadd.f32 %v4692_v22, %v4630_v45  ;;  %v4679_v47 = vadd.f32 %v4678_v59, %v4629_v13 }
 0xd3b   :  { %17137 = vst [vmem:[#allocation24_spill] sm:$0xff] %v13997_v51  ;;  %v4637_v41 = vmul.f32 %v13937_v46, %v13937_v46  ;;  %v4639_v57 = vmul.f32 %v13945_v26, %v13945_v26  ;;  %v4640_v8 = vmul.f32 %v13949_v5, %v13949_v5  ;;  %v4642_v58 = vmul.f32 %v13953_v15, %v13953_v15 }
 0xd3c   :  { %v4670_v20 = vadd.f32 %v4669_v2, %v4668_v35  ;;  %v4652_v18 = vadd.f32 %v4651_v1, %v4632_v56  ;;  %v4694_v19 = vadd.f32 %v4693_v27, %v4635_v23  ;;  %v4680_v48 = vadd.f32 %v4679_v47, %v4634_v28 }
 0xd3d   :  { %v4644_v54 = vmul.f32 %v13987_v60, %v13987_v60  ;;  %v4645_v44 = vmul.f32 %v13997_v51, %v13997_v51 }
 0xd3e   :  { %v4671_v12 = vrot.slane %v4670_v20, 2  ;;  %v4653_v7 = vadd.f32 %v4652_v18, %v4637_v41  ;;  %v4695_v13 = vadd.f32 %v4694_v19, %v4640_v8  ;;  %v4681_v45 = vadd.f32 %v4680_v48, %v4639_v57 }
 0xd40   :  { %v4672_v52 = vadd.f32 %v4671_v12, %v4670_v20  ;;  %v4654_v22 = vadd.f32 %v4653_v7, %v4642_v58  ;;  %v4696_v59 = vadd.f32 %v4695_v13, %v4645_v44  ;;  %v4682_v35 = vadd.f32 %v4681_v45, %v4644_v54 }
 0xd41   :  { %v4556_v44 = vrot.slane %v13792_v55, %v17107_v34 }
 0xd42   :  { %v4673_v56 = vrot.slane %v4672_v52, 1  ;;  %v4655_v23 = vrot.slane %v4654_v22, 4  ;;  %v4697_v28 = vrot.slane %v4696_v59, 4  ;;  %v4683_v2 = vrot.slane %v4682_v35, 4 }
 0xd43   :  { %v14024_v12 = vsub.f32 %v13727_v36, %v4556_v44  ;;  %v4576_v55 = vsub.f32 %v13750_v30, %v4556_v44 }
 0xd44   :  { %v4674_v1 = vadd.f32 %v4673_v56, %v4672_v52  ;;  %v4656_v27 = vadd.f32 %v4655_v23, %v4654_v22  ;;  %v4698_v47 = vadd.f32 %v4697_v28, %v4696_v59  ;;  %v4684_v10 = vadd.f32 %v4683_v2, %v4682_v35 }
 0xd45   :  { %v14038_v52 = vsub.f32 %v13753_v17, %v4556_v44  ;;  %v4586_v35 = vsub.f32 %v13759_v9, %v4556_v44  ;;  %v4591_v28 = vsub.f32 %v13762_v43, %v4556_v44  ;;  %v4596_v17 = vsub.f32 %v13766_v24, %v4556_v44 }
 0xd46   :  { %4733 = vrot.lane.b32.xlu0 %v4674_v1, %s10977_s5  ;;  %v4657_v60 = vrot.slane %v4656_v27, 2  ;;  %v4699_v51 = vrot.slane %v4698_v47, 2  ;;  %v4685_v26 = vrot.slane %v4684_v10, 2  ;;  %v14050_v9 = vsub.f32 %v13768_v40, %v4556_v44 }
 0xd47   :  { %v4631_v30 = vmul.f32 %v4586_v35, %v4586_v35 }
 0xd48   :  { %v4658_v41 = vadd.f32 %v4657_v60, %v4656_v27  ;;  %v4700_v8 = vadd.f32 %v4699_v51, %v4698_v47  ;;  %v4686_v57 = vadd.f32 %v4685_v26, %v4684_v10  ;;  %v14027_v26 = vsub.f32 %v13739_v16, %v4556_v44 }
 0xd49   :  { %v4606_v10 = vmul.f32 %v14024_v12, %v14024_v12  ;;  %v4571_v51 = vsub.f32 %v13744_v29, %v4556_v44  ;;  %v4621_v16 = vmul.f32 %v4576_v55, %v4576_v55  ;;  %v4626_v29 = vmul.f32 %v14038_v52, %v14038_v52 }
 0xd4a   :  { %v4659_v20 = vrot.slane %v4658_v41, 1  ;;  %v4701_v18 = vrot.slane %v4700_v8, 1  ;;  %v4687_v58 = vrot.slane %v4686_v57, 1  ;;  %v4611_v60 = vmul.f32 %v14027_v26, %v14027_v26 }
 0xd4b   :  { %v4703_v7 = vsel %vm254_vm3, %v4606_v10, 0.0  ;;  %v4616_v45 = vmul.f32 %v4571_v51, %v4571_v51  ;;  %v4708_v56 = vsel %vm254_vm3, %v4621_v16, 0.0  ;;  %v4710_v2 = vsel %vm254_vm3, %v4626_v29, 0.0 }
 0xd4c   :  { %v4660_v19 = vadd.f32 %v4659_v20, %v4658_v41  ;;  %v4702_v48 = vadd.f32 %v4701_v18, %v4700_v8  ;;  %v4688_v54 = vadd.f32 %v4687_v58, %v4686_v57  ;;  %v4704_v13 = vsel %vm254_vm3, %v4611_v60, 0.0 }
 0xd4d   :  { %v4705_v36 = vadd.f32 %v4704_v13, %v4703_v7  ;;  %v4706_v22 = vsel %vm254_vm3, %v4616_v45, 0.0  ;;  %v4636_v47 = vmul.f32 %v4591_v28, %v4591_v28  ;;  %v4712_v41 = vsel %vm254_vm3, %v4631_v30, 0.0 }
 0xd4e   :  { %4727 = vrot.lane.b32.xlu1 %v4660_v19, %s10977_s5  ;;  %4745 = vrot.lane.b32.xlu0 %v4702_v48, %s10977_s5  ;;  %v4641_v57 = vmul.f32 %v4596_v17, %v4596_v17  ;;  %v4646_v43 = vmul.f32 %v14050_v9, %v14050_v9 }
 0xd4f   :  { %v4707_v59 = vadd.f32 %v4706_v22, %v4705_v36  ;;  %v4714_v20 = vsel %vm254_vm3, %v4636_v47, 0.0 }
 0xd50   :  { %v4716_v58 = vsel %vm254_vm3, %v4641_v57, 0.0  ;;  %v4718_v60 = vsel %vm254_vm3, %v4646_v43, 0.0  ;;  %v17138_v43 = vld [vmem:[#allocation22_spill] sm:$0xff] }
 0xd51   :  { %v4709_v23 = vadd.f32 %v4708_v56, %v4707_v59 }
 0xd52   :  { %4739 = vrot.lane.b32.xlu1 %v4688_v54, %s10977_s5 }
 0xd53   :  { %v4711_v27 = vadd.f32 %v4710_v2, %v4709_v23 }
 0xd55   :  { %v4713_v8 = vadd.f32 %v4712_v41, %v4711_v27 }
 0xd57   :  { %v4715_v18 = vadd.f32 %v4714_v20, %v4713_v8 }
 0xd59   :  { %v4717_v10 = vadd.f32 %v4716_v58, %v4715_v18 }
 0xd5b   :  { %v4719_v24 = vadd.f32 %v4718_v60, %v4717_v10 }
 0xd5d   :  { %v4720_v7 = vrot.slane %v4719_v24, 4 }
 0xd5f   :  { %v4721_v13 = vadd.f32 %v4720_v7, %v4719_v24 }
 0xd61   :  { %v4722_v16 = vrot.slane %v4721_v13, 2 }
 0xd63   :  { %v4723_v59 = vadd.f32 %v4722_v16, %v4721_v13 }
 0xd65   :  { %v4724_v23 = vrot.slane %v4723_v59, 1 }
 0xd67   :  { %v4725_v47 = vadd.f32 %v4724_v23, %v4723_v59 }
 0xdb8   :  { %v4734_v44 = vpop.permute.xlu0 %4733 }
 0xdc0   :  { %v4728_v45 = vpop.permute.xlu1 %4727  ;;  %v4746_v27 = vpop.permute.xlu0 %4745 }
 0xdc1   :  { %v4730_v36 = vadd.f32 %v4728_v45, %v4660_v19  ;;  %v4751_v19 = vld [vmem:[%s16772_s15] sm:$0x1] }
 0xdc3   :  { %v4731_v40 = vadd.f32 %v4730_v36, %v4674_v1 }
 0xdc4   :  { %v4740_v56 = vpop.permute.xlu1 %4739 }
 0xdc5   :  { %v4736_v22 = vadd.f32 %v4734_v44, %v4731_v40 }
 0xdc7   :  { %v4737_v29 = vadd.f32 %v4736_v22, %v4688_v54  ;;  %v14063_v54 = vld [vmem:[%s16773_s16] sm:$0x1f] }
 0xdc8   :  { %v14073_v58 = vrot.slane %v14063_v54, %v17138_v43 }
 0xdc9   :  { %v4742_v30 = vadd.f32 %v4740_v56, %v4737_v29 }
 0xdcb   :  { %v4743_v2 = vadd.f32 %v4742_v30, %v4702_v48 }
 0xdcd   :  { %v4748_v41 = vadd.f32 %v4746_v27, %v4743_v2 }
 0xdcf   :  { %v4749_v8 = vadd.f32 %v4748_v41, %v4725_v47 }
 0xdd1   :  { %v4750_v57 = vmul.f32 0.0015432099, %v4749_v8  ;;  %v10552_v8 = vld [vmem:[%s16774_s18 + $0xa8] ss:$12 sps:$4 sm:$0xff]  }
 0xdd3   :  { %v4752_v20 = vadd.f32 1e-05, %v4750_v57  ;;  %v10554_v57 = vld [vmem:[%s16774_s18 + $0xac] ss:$12 sps:$4 sm:$0xff]  }
 0xdd4   :  { %5367 = vmatprep.subr.bf16.mxu0 %v10554_v57  ;;  %v10567_v57 = vld [vmem:[%s16774_s18 + $0x48] ss:$12 sps:$4 sm:$0xff]  }
 0xdd5   :  { %10968 = vrsqrt.f32 %v4752_v20  ;;  %v10557_v20 = vld [vmem:[%s16774_s18 + $0x94] ss:$12 sps:$4 sm:$0xff]   ;;  %5368 = vmatpush1.bf16.msra.mxu0 %v10552_v8 }
 0xdd6   :  { %5369 = vmatprep.subr.bf16.mxu0 %v10557_v20  ;;  %v10570_v8 = vld [vmem:[%s16774_s18 + $0x68] ss:$12 sps:$4 sm:$0xff]   ;;  %v10571_v20 = vld [vmem:[%s16774_s18 + $0x50] ss:$12 sps:$4 sm:$0xff]  }
 0xde2   :  { %v10969_v1 = vpop.eup %10968 }
 0xde3   :  { %v14065_v18 = vmul.f32 %v10969_v1, %v4751_v19  ;;  %v10558_v19 = vld [vmem:[%s16774_s18 + $0xb0] ss:$12 sps:$4 sm:$0xff]  }
 0xde4   :  { %v10555_v1 = vld [vmem:[%s16774_s18 + $0x90] ss:$12 sps:$4 sm:$0xff]   ;;  %10035 = vmatpush3.bf16.msra.mxu1 %v10558_v19  ;;  %v10574_v19 = vld [vmem:[%s16774_s18 + $0x34] ss:$12 sps:$4 sm:$0xff]  }
 0xde5   :  { %v14069_v48 = vrot.slane %v14065_v18, %v17107_v34  ;;  %5370 = vmatpush1.bf16.msra.mxu0 %v10555_v1  ;;  %v10572_v1 = vld [vmem:[%s16774_s18 + $0x30] ss:$12 sps:$4 sm:$0xff]  }
 0xde7   :  { %4760 = vrot.lane.b32.xlu1 %v14069_v48, %s10977_s5  ;;  %v4781_v10 = vmul.f32 %v14069_v48, %v14027_v26  ;;  %v4786_v60 = vmul.f32 %v14069_v48, %v4571_v51  ;;  %v4791_v24 = vmul.f32 %v14069_v48, %v4576_v55  ;;  %v4776_v7 = vmul.f32 %v14069_v48, %v14024_v12 }
 0xde8   :  { %v4806_v13 = vmul.f32 %v14069_v48, %v4591_v28  ;;  %v4811_v45 = vmul.f32 %v14069_v48, %v4596_v17  ;;  %v4801_v51 = vmul.f32 %v14069_v48, %v4586_v35  ;;  %v4796_v23 = vmul.f32 %v14069_v48, %v14038_v52 }
 0xde9   :  { %v14086_v36 = vadd.f32 %v14073_v58, %v4781_v10  ;;  %v14089_v16 = vadd.f32 %v14073_v58, %v4776_v7  ;;  %v14092_v40 = vadd.f32 %v14073_v58, %v4786_v60  ;;  %v14095_v26 = vadd.f32 %v14073_v58, %v4791_v24  ;;  %v10561_v10 = vld [vmem:[%s16774_s18 + $0x7c] ss:$12 sps:$4 sm:$0xff]   ;;  %v10562_v60 = vld [vmem:[%s16774_s18 + $0x98] ss:$12 sps:$4 sm:$0xff]  }
 0xdea   :  { %v14101_v28 = vadd.f32 %v14073_v58, %v4806_v13  ;;  %v14104_v17 = vadd.f32 %v14073_v58, %v4811_v45  ;;  %v14114_v35 = vadd.f32 %v14073_v58, %v4801_v51  ;;  %v14123_v2 = vadd.f32 %v14073_v58, %v4796_v23  ;;  %v10559_v7 = vld [vmem:[%s16774_s18 + $0x78] ss:$12 sps:$4 sm:$0xff]   ;;  %5371 = vmatprep.subr.bf16.mxu0 %v10561_v10  ;;  %v10566_v45 = vld [vmem:[%s16774_s18 + $0x80] ss:$12 sps:$4 sm:$0xff]  }
 0xdeb   :  { %v16909_v12 = vmax.f32 %v14086_v36, 0.0  ;;  %v16908_v55 = vmax.f32 %v14089_v16, 0.0  ;;  %v16907_v22 = vmax.f32 %v14092_v40, 0.0  ;;  %v16906_v59 = vmax.f32 %v14095_v26, 0.0  ;;  %v10565_v13 = vld [vmem:[%s16774_s18 + $0x64] ss:$12 sps:$4 sm:$0xff]   ;;  %5372 = vmatpush1.bf16.msra.mxu0 %v10559_v7 }
 0xdec   :  { %v16903_v29 = vmax.f32 %v14101_v28, 0.0  ;;  %v16902_v56 = vmax.f32 %v14104_v17, 0.0  ;;  %v16905_v30 = vmax.f32 %v14114_v35, 0.0  ;;  %v16904_v41 = vmax.f32 %v14123_v2, 0.0  ;;  %v10563_v51 = vld [vmem:[%s16774_s18 + $0x60] ss:$12 sps:$4 sm:$0xff]   ;;  %5373 = vmatprep.subr.bf16.mxu0 %v10565_v13 }
 0xded   :  { %v14110_v44 = vpack.c.bf16 %v16909_v12, %v16908_v55  ;;  %v14129_v27 = vpack.c.bf16 %v16906_v59, %v16907_v22  ;;  %v17140_v24 = vmov 0.0   ;;  %v10569_v23 = vld [vmem:[%s16774_s18 + $0x4c] ss:$12 sps:$4 sm:$0xff]  }
 0xdee   :  { %v14135_v47 = vpack.c.bf16 %v16902_v56, %v16903_v29  ;;  %v14142_v52 = vpack.c.bf16 %v16905_v30, %v16904_v41  ;;  %10036 = vmatprep.subr.bf16.mxu1 %v17140_v24  ;;  %v10575_v10 = vld [vmem:[%s16774_s18 + $0x38] ss:$12 sps:$4 sm:$0xff]   ;;  %v10579_v13 = vld [vmem:[%s16774_s18 + $0x20] ss:$12 sps:$4 sm:$0xff]  }
 0xdef   :  { %10037 = vmatpush3.bf16.msra.mxu1 %v10562_v60  ;;  %5374 = vmatpush1.bf16.msra.mxu0 %v10563_v51  ;;  %v10578_v60 = vld [vmem:[%s16774_s18 + $0x1c] ss:$12 sps:$4 sm:$0xff]   ;;  %v10576_v7 = vld [vmem:[%s16774_s18 + $0x18] ss:$12 sps:$4 sm:$0xff]  }
 0xdf0   :  { %17139 = vst [vmem:[#allocation39_spill] sm:$0xff] %v14135_v47  ;;  %10038 = vmatprep.subr.bf16.mxu1 %v17140_v24  ;;  %5375 = vmatprep.subr.bf16.mxu0 %v10569_v23  ;;  %v17143_v41 = vld [vmem:[#allocation7_spill] sm:$0xff] }
 0xdf3   :  { %10039 = vmatpush3.bf16.msra.mxu1 %v10566_v45  ;;  %5376 = vmatpush1.bf16.msra.mxu0 %v10567_v57 }
 0xdf4   :  { %10040 = vmatprep.subr.bf16.mxu1 %v17140_v24  ;;  %5377 = vmatprep.subr.bf16.mxu0 %v10574_v19 }
 0xdf7   :  { %10041 = vmatpush3.bf16.msra.mxu1 %v10570_v8  ;;  %5378 = vmatpush1.bf16.msra.mxu0 %v10572_v1  ;;  %v4822_v8 = vrot.slane %v14063_v54, %v17107_v34 }
 0xdf8   :  { %10042 = vmatprep.subr.bf16.mxu1 %v17140_v24  ;;  %5379 = vmatprep.subr.bf16.mxu0 %v10578_v60 }
 0xdfb   :  { %10043 = vmatpush3.bf16.msra.mxu1 %v10571_v20  ;;  %5380 = vmatpush1.bf16.msra.mxu0 %v10576_v7 }
 0xdfc   :  { %10044 = vmatprep.subr.bf16.mxu1 %v17140_v24 }
 0xdff   :  { %10045 = vmatpush3.bf16.msra.mxu1 %v10575_v10 }
 0xe00   :  { %10046 = vmatprep.subr.bf16.mxu1 %v17140_v24 }
 0xe03   :  { %10047 = vmatpush3.bf16.msra.mxu1 %v10579_v13 }
 0xe04   :  { %10048 = vmatprep.subr.bf16.mxu1 %v17140_v24 }
 0xe59   :  { %v4761_v45 = vpop.permute.xlu1 %4760 }
 0xe5a   :  { %v4763_v51 = vsel %vm254_vm3, %v14065_v18, %v4761_v45 }
 0xe5b   :  { %v14217_v23 = vrot.slane %v4763_v51, %v17107_v34 }
 0xe5d   :  { %v4782_v57 = vmul.f32 %v14217_v23, %v13835_v11  ;;  %v4787_v20 = vmul.f32 %v14217_v23, %v13851_v39  ;;  %v4792_v19 = vmul.f32 %v14217_v23, %v13871_v38  ;;  %v4772_v1 = vmul.f32 %v14217_v23, %v13811_v61 }
 0xe5e   :  { %v4777_v18 = vmul.f32 %v14217_v23, %v13823_v21  ;;  %v4797_v11 = vmul.f32 %v14217_v23, %v13887_v14  ;;  %v4802_v39 = vmul.f32 %v14217_v23, %v13905_v42  ;;  %v4807_v51 = vmul.f32 %v14217_v23, %v13937_v46  ;;  %v10580_v42 = vld [vmem:[%s16774_s18] ss:$12 sps:$4 sm:$0xff]   ;;  %v10583_v46 = vld [vmem:[%s16774_s18 + $0x8] ss:$12 sps:$4 sm:$0xff]  }
 0xe5f   :  { %v14231_v10 = vadd.f32 %v4822_v8, %v4782_v57  ;;  %v14233_v60 = vadd.f32 %v4822_v8, %v4787_v20  ;;  %v14235_v7 = vadd.f32 %v4822_v8, %v4792_v19  ;;  %v4844_v13 = vadd.f32 %v4822_v8, %v4772_v1  ;;  %v10582_v1 = vld [vmem:[%s16774_s18 + $0x4] ss:$12 sps:$4 sm:$0xff]   ;;  %10049 = vmatpush3.bf16.msra.mxu1 %v10583_v46 }
 0xe60   :  { %v4849_v21 = vadd.f32 %v4822_v8, %v4777_v18  ;;  %v4812_v57 = vmul.f32 %v14217_v23, %v13953_v15  ;;  %v4869_v56 = vadd.f32 %v4822_v8, %v4797_v11  ;;  %v4874_v29 = vadd.f32 %v4822_v8, %v4802_v39  ;;  %v17142_v11 = vld [vmem:[#allocation6_spill] sm:$0xff]  ;;  %5381 = vmatprep.subr.bf16.mxu0 %v10582_v1 }
 0xe61   :  { %v4899_v38 = vmax.f32 %v14231_v10, 0.0  ;;  %v4904_v61 = vmax.f32 %v14233_v60, 0.0  ;;  %v4909_v45 = vmax.f32 %v14235_v7, 0.0  ;;  %v4889_v60 = vmax.f32 %v4844_v13, 0.0  ;;  %5382 = vmatpush1.bf16.msra.mxu0 %v10580_v42 }
 0xe62   :  { %v4894_v7 = vmax.f32 %v4849_v21, 0.0  ;;  %v4879_v59 = vadd.f32 %v4822_v8, %v4807_v51  ;;  %v4884_v22 = vadd.f32 %v4822_v8, %v4812_v57  ;;  %v4914_v34 = vmax.f32 %v4869_v56, 0.0  ;;  %v17145_v51 = vld [vmem:[#allocation4_spill] sm:$0xff]  ;;  %v10586_v56 = vld [vmem:[%s16775_s17 + $0xac] ss:$12 sps:$4 sm:$0xff]  }
 0xe63   :  { %v5132_v20 = vrot.slane %v4899_v38, 1  ;;  %v5133_v19 = vrot.slane %v4904_v61, 1  ;;  %v5134_v14 = vrot.slane %v4909_v45, 1  ;;  %v5130_v55 = vrot.slane %v4889_v60, 1  ;;  %6111 = vmatprep.subr.bf16.mxu0 %v10586_v56  ;;  %v17150_v56 = vld [vmem:[#allocation12_spill] sm:$0xff] }
 0xe64   :  { %v5131_v12 = vrot.slane %v4894_v7, 1  ;;  %v4919_v21 = vmax.f32 %v4874_v29, 0.0  ;;  %v4924_v46 = vmax.f32 %v4879_v59, 0.0  ;;  %v14270_v8 = vmax.f32 %v4884_v22, 0.0 }
 0xe65   :  { %v5143_v15 = vsel %vm503_vm4, %v5133_v19, %v5134_v14  ;;  %v5144_v10 = vsel %vm503_vm4, %v5132_v20, %v5133_v19  ;;  %v17144_v19 = vld [vmem:[#allocation5_spill] sm:$0xff]  ;;  %v14272_v57 = vpack.c.bf16 %v4894_v7, %v4889_v60  ;;  %v17147_v7 = vld [vmem:[#allocation8_spill] sm:$0xff] }
 0xe66   :  { %v5150_v39 = vmul.f32 %v5144_v10, %v17142_v11  ;;  %v5151_v30 = vmul.f32 %v5143_v15, %v17143_v41  ;;  %v5145_v47 = vsel %vm503_vm4, %v5131_v12, %v5132_v20  ;;  %v5146_v13 = vsel %vm503_vm4, %v5130_v55, %v5131_v12  ;;  %v17146_v10 = vld [vmem:[#allocation10_spill] sm:$0xff] }
 0xe67   :  { %v5148_v41 = vmul.f32 %v5146_v13, %v17144_v19  ;;  %v5149_v1 = vmul.f32 %v5145_v47, %v17145_v51  ;;  %v5137_v42 = vrot.slane %v4924_v46, 1  ;;  %v5135_v12 = vrot.slane %v4914_v34, 1  ;;  %v17149_v19 = vld [vmem:[#allocation11_spill] sm:$0xff] }
 0xe68   :  { %v10175_v43 = vpack.i.bf16 %v5151_v30, %v5150_v39  ;;  %v5136_v30 = vrot.slane %v4919_v21, 1  ;;  %v5138_v29 = vrot.slane %v14270_v8, 1  ;;  %v17148_v39 = vld [vmem:[#allocation9_spill] sm:$0xff] }
 0xe69   :  { %v10170_v20 = vpack.i.bf16 %v5149_v1, %v5148_v41  ;;  %v5142_v47 = vsel %vm503_vm4, %v5134_v14, %v5135_v12  ;;  %v14297_v14 = vpack.c.bf16 %v4904_v61, %v4899_v38  ;;  %v17151_v38 = vmax.f32 %v14086_v36, 0.0 }
 0xe6a   :  { %10176 = vrot.lane.b32.xlu1 %v10175_v43, %s10977_s5  ;;  %v10589_v43 = vld [vmem:[%s16775_s17 + $0x22c] ss:$12 sps:$4 sm:$0xff]   ;;  %v5140_v22 = vsel %vm503_vm4, %v5136_v30, %v5137_v42  ;;  %v5141_v59 = vsel %vm503_vm4, %v5135_v12, %v5136_v30  ;;  %v5139_v15 = vsel %vm503_vm4, %v5137_v42, %v5138_v29  ;;  %v5152_v11 = vmul.f32 %v5142_v47, %v17147_v7 }
 0xe6b   :  { %10171 = vrot.lane.b32.xlu0 %v10170_v20, %s10977_s5  ;;  %v5154_v60 = vmul.f32 %v5140_v22, %v17146_v10  ;;  %v5153_v13 = vmul.f32 %v5141_v59, %v17148_v39  ;;  %6192 = vmatprep.subr.bf16.mxu1 %v10589_v43  ;;  %v5155_v41 = vmul.f32 %v5139_v15, %v17149_v19  ;;  %v5104_v61 = vrot.slane %v17151_v38, 7  ;;  %v17155_v15 = vld [vmem:[#allocation13_spill] sm:$0xff]  ;;  %v17158_v38 = vld [vmem:[#allocation16_spill] sm:$0xff] }
 0xe6c   :  { %v5147_v30 = vsel %vm503_vm4, %v5138_v29, %v5130_v55  ;;  %v14301_v42 = vpack.c.bf16 %v4914_v34, %v4909_v45  ;;  %v14304_v12 = vpack.c.bf16 %v4924_v46, %v4919_v21  ;;  %v4816_v43 = vmul.f32 %v14069_v48, %v14050_v9 }
 0xe6d   :  { %v10180_v51 = vpack.i.bf16 %v5153_v13, %v5152_v11  ;;  %v10185_v1 = vpack.i.bf16 %v5155_v41, %v5154_v60  ;;  %v5156_v20 = vmul.f32 %v5147_v30, %v17150_v56  ;;  %v17152_v29 = vmax.f32 %v14089_v16, 0.0  ;;  %v17156_v60 = vld [vmem:[#allocation14_spill] sm:$0xff] }
 0xe6e   :  { %v4888_v22 = vadd.f32 %v14073_v58, %v4816_v43  ;;  %v17153_v48 = vmax.f32 %v14092_v40, 0.0  ;;  %v17154_v21 = vmax.f32 %v14095_v26, 0.0  ;;  %v10584_v40 = vld [vmem:[%s16775_s17 + $0xa8] ss:$12 sps:$4 sm:$0xff]  }
 0xe6f   :  { %10181 = vrot.lane.b32.xlu0 %v10180_v51, %s10977_s5  ;;  %10186 = vrot.lane.b32.xlu1 %v10185_v1, %s10977_s5  ;;  %v5103_v59 = vrot.slane %v17152_v29, 7  ;;  %v10587_v26 = vld [vmem:[%s16775_s17 + $0x228] ss:$12 sps:$4 sm:$0xff]  }
 0xe70   :  { %v14309_v55 = vmax.f32 %v4888_v22, 0.0  ;;  %v5105_v58 = vrot.slane %v17153_v48, 7  ;;  %v5106_v36 = vrot.slane %v17154_v21, 7  ;;  %v10592_v1 = vld [vmem:[%s16775_s17 + $0x94] ss:$12 sps:$4 sm:$0xff]   ;;  %v17157_v43 = vld [vmem:[#allocation15_spill] sm:$0xff] }
 0xe71   :  { %v5119_v45 = vsel %vm430_vm5, %v5103_v59, %v5104_v61  ;;  %v10595_v30 = vld [vmem:[%s16775_s17 + $0x214] ss:$12 sps:$4 sm:$0xff]   ;;  %v17160_v48 = vmax.f32 %v14123_v2, 0.0  ;;  %v10598_v21 = vld [vmem:[%s16775_s17 + $0x7c] ss:$12 sps:$4 sm:$0xff]  }
 0xe72   :  { %v5111_v34 = vrot.slane %v14309_v55, 7  ;;  %v5122_v7 = vmul.f32 %v5119_v45, %v17156_v60  ;;  %v5117_v19 = vsel %vm430_vm5, %v5105_v58, %v5106_v36  ;;  %v5118_v41 = vsel %vm430_vm5, %v5104_v61, %v5105_v58  ;;  %v10590_v61 = vld [vmem:[%s16775_s17 + $0x90] ss:$12 sps:$4 sm:$0xff]   ;;  %v10596_v2 = vld [vmem:[%s16775_s17 + $0x78] ss:$12 sps:$4 sm:$0xff]  }
 0xe73   :  { %5182 = vrot.lane.b32.xlu0 %v5156_v20, %s10977_s5  ;;  %v5123_v22 = vmul.f32 %v5118_v41, %v17157_v43  ;;  %v5124_v29 = vmul.f32 %v5117_v19, %v17158_v38  ;;  %v17159_v45 = vmax.f32 %v14114_v35, 0.0  ;;  %v5107_v58 = vrot.slane %v17160_v48, 7  ;;  %v17162_v19 = vld [vmem:[#allocation17_spill] sm:$0xff] }
 0xe74   :  { %v5120_v9 = vsel %vm430_vm5, %v5111_v34, %v5103_v59  ;;  %v10593_v59 = vld [vmem:[%s16775_s17 + $0x210] ss:$12 sps:$4 sm:$0xff]   ;;  %v17165_v43 = vmax.f32 %v14104_v17, 0.0  ;;  %v10610_v38 = vld [vmem:[%s16775_s17 + $0x4c] ss:$12 sps:$4 sm:$0xff]  }
 0xe75   :  { %v5121_v10 = vmul.f32 %v5120_v9, %v17155_v15  ;;  %v5108_v9 = vrot.slane %v17159_v45, 7  ;;  %v17161_v15 = vmov 0   ;;  %v10608_v17 = vld [vmem:[%s16775_s17 + $0x48] ss:$12 sps:$4 sm:$0xff]  }
 0xe76   :  { %v10611_v45 = vld [vmem:[%s16775_s17 + $0x1c8] ss:$12 sps:$4 sm:$0xff]  }
 0xedc   :  { %v10177_v11 = vpop.permute.xlu1 %10176 }
 0xedd   :  { %v10172_v46 = vpop.permute.xlu0 %10171  ;;  %v10179_v56 = vunpack.i.h.bf16 %v10177_v11  ;;  %v10178_v20 = vunpack.i.l.bf16 %v10177_v11  ;;  %v5116_v11 = vsel %vm430_vm5, %v5106_v36, %v5107_v58  ;;  %v10602_v36 = vld [vmem:[%s16775_s17 + $0x60] ss:$12 sps:$4 sm:$0xff]  }
 0xede   :  { %v10174_v47 = vunpack.i.h.bf16 %v10172_v46  ;;  %v10173_v16 = vunpack.i.l.bf16 %v10172_v46  ;;  %v10601_v46 = vld [vmem:[%s16775_s17 + $0x1fc] ss:$12 sps:$4 sm:$0xff]   ;;  %v5125_v41 = vmul.f32 %v5116_v11, %v17162_v19  ;;  %v4773_v19 = vmul.f32 %v14217_v23, %v13803_v32 }
 0xedf   :  { %v10617_v11 = vld [vmem:[%s16775_s17 + $0x1b0] ss:$12 sps:$4 sm:$0xff]  }
 0xee0   :  { %v5193_v39 = vsel %vm254_vm3, %v5121_v10, %v10173_v16  ;;  %v5194_v13 = vsel %vm254_vm3, %v5122_v7, %v10174_v47  ;;  %v5195_v47 = vsel %vm254_vm3, %v5123_v22, %v10178_v20  ;;  %v5196_v16 = vsel %vm254_vm3, %v5124_v29, %v10179_v56  ;;  %v10599_v10 = vld [vmem:[%s16775_s17 + $0x1f8] ss:$12 sps:$4 sm:$0xff]  }
 0xee1   :  { %v5202_v51 = vpack.c.bf16 %v5194_v13, %v5193_v39  ;;  %v10182_v35 = vpop.permute.xlu0 %10181  ;;  %v5203_v60 = vpack.c.bf16 %v5196_v16, %v5195_v47  ;;  %v5115_v7 = vsel %vm430_vm5, %v5107_v58, %v5108_v9  ;;  %v10604_v39 = vld [vmem:[%s16775_s17 + $0x64] ss:$12 sps:$4 sm:$0xff]   ;;  %v17164_v56 = vmax.f32 %v14101_v28, 0.0  ;;  %v10613_v29 = vld [vmem:[%s16775_s17 + $0x1cc] ss:$12 sps:$4 sm:$0xff]   ;;  %v10187_v28 = vpop.permute.xlu1 %10186 }
 0xee2   :  { %v10607_v13 = vld [vmem:[%s16775_s17 + $0x1e4] ss:$12 sps:$4 sm:$0xff]   ;;  %v5110_v22 = vrot.slane %v17165_v43, 7  ;;  %v10619_v47 = vld [vmem:[%s16775_s17 + $0x1b4] ss:$12 sps:$4 sm:$0xff]   ;;  %v10189_v16 = vunpack.i.h.bf16 %v10187_v28 }
 0xee3   :  { %5400 = vmatmul.mubr.bf16.vlgmr.msra.gmra.mxu0 %v5202_v51  ;;  %10051 = vmatmul.mubr.bf16.vlgmr.msra.gmra.mxu1 %v5202_v51  ;;  %v17163_v51 = vld [vmem:[#allocation18_spill] sm:$0xff]  ;;  %v5109_v20 = vrot.slane %v17164_v56, 7 }
 0xee4   :  { %6112 = vmatpush1.bf16.msra.mxu0 %v10584_v40  ;;  %6193 = vmatpush1.bf16.msra.mxu1 %v10587_v26  ;;  %v10184_v40 = vunpack.i.h.bf16 %v10182_v35  ;;  %v10183_v26 = vunpack.i.l.bf16 %v10182_v35  ;;  %v10188_v35 = vunpack.i.l.bf16 %v10187_v28  ;;  %v17169_v56 = vld [vmem:[#allocation26_spill] sm:$0xff] }
 0xee5   :  { %6113 = vmatprep.subr.bf16.mxu0 %v10592_v1  ;;  %6194 = vmatprep.subr.bf16.mxu1 %v10595_v30  ;;  %v5126_v1 = vmul.f32 %v5115_v7, %v17163_v51  ;;  %v10605_v30 = vld [vmem:[%s16775_s17 + $0x1e0] ss:$12 sps:$4 sm:$0xff]   ;;  %v5113_v48 = vsel %vm430_vm5, %v5109_v20, %v5110_v22  ;;  %v5114_v58 = vsel %vm430_vm5, %v5108_v9, %v5109_v20  ;;  %v10614_v9 = vld [vmem:[%s16775_s17 + $0x30] ss:$12 sps:$4 sm:$0xff]   ;;  %v10620_v20 = vld [vmem:[%s16775_s17 + $0x18] ss:$12 sps:$4 sm:$0xff]  }
 0xee6   :  { %5409 = vmatprep.mubr.bf16.mxu0 %v17161_v15  ;;  %10054 = vmatprep.mubr.msk.bf16.mxu1 %vm10975_vm0, %v17140_v24  ;;  %v14457_v32 = vrot.slane %v14063_v54, %v17169_v56 }
 0xee8   :  { %6114 = vmatpush1.bf16.msra.mxu0 %v10590_v61  ;;  %6195 = vmatpush1.bf16.msra.mxu1 %v10593_v59  ;;  %v5197_v61 = vsel %vm254_vm3, %v5125_v41, %v10183_v26  ;;  %v5198_v59 = vsel %vm254_vm3, %v5126_v1, %v10184_v40  ;;  %v17168_v40 = vld [vmem:[#allocation25_spill] sm:$0xff]  ;;  %v4775_v1 = vmul.f32 %v14217_v23, %v13819_v62 }
 0xee9   :  { %6115 = vmatprep.subr.bf16.mxu0 %v10598_v21  ;;  %6196 = vmatprep.subr.bf16.mxu1 %v10601_v46  ;;  %v5204_v21 = vpack.c.bf16 %v5198_v59, %v5197_v61  ;;  %v10616_v46 = vld [vmem:[%s16775_s17 + $0x34] ss:$12 sps:$4 sm:$0xff]   ;;  %v14440_v26 = vrot.slane %v14063_v54, %v17168_v40  ;;  %v10623_v62 = vld [vmem:[%s16775_s17 + $0x198] ss:$12 sps:$4 sm:$0xff]  }
 0xeea   :  { %v10631_v54 = vld [vmem:[%s16775_s17 + $0x184] ss:$12 sps:$4 sm:$0xff]   ;;  %v4847_v59 = vadd.f32 %v14457_v32, %v4775_v1 }
 0xeeb   :  { %5410 = vmatmul.mubr.bf16.gmra.mxu0 %v5203_v60  ;;  %10055 = vmatmul.mubr.bf16.gmra.mxu1 %v5203_v60  ;;  %v17167_v60 = vld [vmem:[#allocation19_spill] sm:$0xff]  ;;  %v10644_v1 = vld [vmem:[%s16775_s17 + $0x138] ss:$12 sps:$4 sm:$0xff]  }
 0xeec   :  { %6116 = vmatpush1.bf16.msra.mxu0 %v10596_v2  ;;  %6197 = vmatpush1.bf16.msra.mxu1 %v10599_v10  ;;  %v17166_v2 = vld [vmem:[#allocation20_spill] sm:$0xff]  ;;  %v5128_v7 = vmul.f32 %v5113_v48, %v17167_v60  ;;  %v10634_v48 = vld [vmem:[%s16775_s17 + $0x16c] ss:$12 sps:$4 sm:$0xff]  }
 0xeed   :  { %6117 = vmatprep.subr.bf16.mxu0 %v10604_v39  ;;  %6198 = vmatprep.subr.bf16.mxu1 %v10607_v13  ;;  %v5127_v10 = vmul.f32 %v5114_v58, %v17166_v2  ;;  %v10622_v39 = vld [vmem:[%s16775_s17 + $0x1c] ss:$12 sps:$4 sm:$0xff]   ;;  %v10637_v58 = vld [vmem:[%s16775_s17 + $0x2ec] ss:$12 sps:$4 sm:$0xff]  }
 0xeee   :  { %5419 = vmatprep.mubr.bf16.mxu0 %v17161_v15  ;;  %10058 = vmatprep.mubr.msk.bf16.mxu1 %vm10975_vm0, %v17140_v24  ;;  %v10625_v13 = vld [vmem:[%s16775_s17 + $0x19c] ss:$12 sps:$4 sm:$0xff]   ;;  %v5200_v51 = vsel %vm254_vm3, %v5128_v7, %v10189_v16  ;;  %v4892_v16 = vmax.f32 %v4847_v59, 0.0  ;;  %v10640_v7 = vld [vmem:[%s16775_s17 + $0x154] ss:$12 sps:$4 sm:$0xff]  }
 0xeef   :  { %v5199_v41 = vsel %vm254_vm3, %v5127_v10, %v10188_v35  ;;  %v10632_v2 = vld [vmem:[%s16775_s17 + $0x168] ss:$12 sps:$4 sm:$0xff]   ;;  %v10662_v59 = vld [vmem:[%s16775_s17 + $0xf0] ss:$12 sps:$4 sm:$0xff]  }
 0xef0   :  { %6118 = vmatpush1.bf16.msra.mxu0 %v10602_v36  ;;  %6199 = vmatpush1.bf16.msra.mxu1 %v10605_v30  ;;  %v4778_v36 = vmul.f32 %v14217_v23, %v13807_v49  ;;  %v4780_v30 = vmul.f32 %v14217_v23, %v13831_v3  ;;  %v5205_v43 = vpack.c.bf16 %v5200_v51, %v5199_v41  ;;  %v10628_v3 = vld [vmem:[%s16775_s17 + $0x4] ss:$12 sps:$4 sm:$0xff]   ;;  %v10635_v10 = vld [vmem:[%s16775_s17 + $0x2e8] ss:$12 sps:$4 sm:$0xff]  }
 0xef1   :  { %6119 = vmatprep.subr.bf16.mxu0 %v10610_v38  ;;  %6200 = vmatprep.subr.bf16.mxu1 %v10613_v29  ;;  %v5112_v49 = vsel %vm430_vm5, %v5110_v22, %v5111_v34  ;;  %v4845_v38 = vadd.f32 %v14440_v26, %v4773_v19  ;;  %v5183_v29 = vpop.permute.xlu0 %5182  ;;  %v17170_v22 = vld [vmem:[#allocation21_spill] sm:$0xff] }
 0xef2   :  { %v4850_v61 = vadd.f32 %v14440_v26, %v4778_v36  ;;  %v4852_v34 = vadd.f32 %v14457_v32, %v4780_v30  ;;  %v5129_v28 = vmul.f32 %v5112_v49, %v17170_v22  ;;  %v10641_v19 = vld [vmem:[%s16775_s17 + $0x2d0] ss:$12 sps:$4 sm:$0xff]   ;;  %v10647_v36 = vld [vmem:[%s16775_s17 + $0x2b8] ss:$12 sps:$4 sm:$0xff]  }
 0xef3   :  { %5420 = vmatmul.mubr.bf16.gmra.mxu0 %v5204_v21  ;;  %10059 = vmatmul.mubr.bf16.gmra.mxu1 %v5204_v21  ;;  %v10646_v41 = vld [vmem:[%s16775_s17 + $0x13c] ss:$12 sps:$4 sm:$0xff]   ;;  %v10652_v30 = vld [vmem:[%s16775_s17 + $0x124] ss:$12 sps:$4 sm:$0xff]   ;;  %v10658_v49 = vld [vmem:[%s16775_s17 + $0x10c] ss:$12 sps:$4 sm:$0xff]  }
 0xef4   :  { %6120 = vmatpush1.bf16.msra.mxu0 %v10608_v17  ;;  %6201 = vmatpush1.bf16.msra.mxu1 %v10611_v45  ;;  %v10626_v17 = vld [vmem:[%s16775_s17] ss:$12 sps:$4 sm:$0xff]   ;;  %v5201_v21 = vsel %vm254_vm3, %v5129_v28, %v5183_v29  ;;  %v4897_v35 = vmax.f32 %v4852_v34, 0.0  ;;  %v10649_v51 = vld [vmem:[%s16775_s17 + $0x2bc] ss:$12 sps:$4 sm:$0xff]  }
 0xef5   :  { %6121 = vmatprep.subr.bf16.mxu0 %v10616_v46  ;;  %6202 = vmatprep.subr.bf16.mxu1 %v10619_v47  ;;  %v10629_v45 = vld [vmem:[%s16775_s17 + $0x180] ss:$12 sps:$4 sm:$0xff]   ;;  %v4890_v46 = vmax.f32 %v4845_v38, 0.0  ;;  %v4895_v47 = vmax.f32 %v4850_v61, 0.0  ;;  %v5206_v60 = vpack.c.bf16 %v5201_v21, %v5201_v21  ;;  %v10659_v38 = vld [vmem:[%s16775_s17 + $0x288] ss:$12 sps:$4 sm:$0xff]  }
 0xef6   :  { %5429 = vmatprep.mubr.bf16.mxu0 %v17161_v15  ;;  %10062 = vmatprep.mubr.msk.bf16.mxu1 %vm10975_vm0, %v17140_v24  ;;  %v10664_v29 = vld [vmem:[%s16775_s17 + $0xf4] ss:$12 sps:$4 sm:$0xff]   ;;  %v10665_v34 = vld [vmem:[%s16775_s17 + $0x270] ss:$12 sps:$4 sm:$0xff]   ;;  %v17171_v28 = vld [vmem:[#allocation27_spill] sm:$0xff] }
 0xef7   :  { %v10667_v61 = vld [vmem:[%s16775_s17 + $0x274] ss:$12 sps:$4 sm:$0xff]   ;;  %v10670_v21 = vld [vmem:[%s16775_s17 + $0xdc] ss:$12 sps:$4 sm:$0xff]  }
 0xef8   :  { %6122 = vmatpush1.bf16.msra.mxu0 %v10614_v9  ;;  %6203 = vmatpush1.bf16.msra.mxu1 %v10617_v11  ;;  %v10643_v9 = vld [vmem:[%s16775_s17 + $0x2d4] ss:$12 sps:$4 sm:$0xff]   ;;  %v14508_v11 = vpack.c.bf16 %v4895_v47, %v4890_v46  ;;  %v10673_v46 = vld [vmem:[%s16775_s17 + $0x25c] ss:$12 sps:$4 sm:$0xff]  }
 0xef9   :  { %6123 = vmatprep.subr.bf16.mxu0 %v10622_v39  ;;  %6204 = vmatprep.subr.bf16.mxu1 %v10625_v13  ;;  %v14510_v39 = vpack.c.bf16 %v4897_v35, %v4892_v16  ;;  %v10638_v13 = vld [vmem:[%s16775_s17 + $0x150] ss:$12 sps:$4 sm:$0xff]   ;;  %v10973_v22 = vld [vmem:[%s16773_s16] sm:$0x1f] }
 0xefa   :  { %v17173_v47 = vld [vmem:[#allocation29_spill] sm:$0xff]  ;;  %v17174_v35 = vld [vmem:[#allocation32_spill] sm:$0xff] }
 0xefb   :  { %5430 = vmatmul.mubr.bf16.gmra.mxu0 %v5205_v43  ;;  %10063 = vmatmul.mubr.bf16.gmra.mxu1 %v5205_v43  ;;  %v10653_v43 = vld [vmem:[%s16775_s17 + $0x2a0] ss:$12 sps:$4 sm:$0xff]   ;;  %v4783_v16 = vmul.f32 %v14217_v23, %v17173_v47 }
 0xefc   :  { %6124 = vmatpush1.bf16.msra.mxu0 %v10620_v20  ;;  %6205 = vmatpush1.bf16.msra.mxu1 %v10623_v62  ;;  %v10655_v20 = vld [vmem:[%s16775_s17 + $0x2a4] ss:$12 sps:$4 sm:$0xff]   ;;  %v10650_v62 = vld [vmem:[%s16775_s17 + $0x120] ss:$12 sps:$4 sm:$0xff]  }
 0xefd   :  { %6125 = vmatprep.subr.bf16.mxu0 %v10628_v3  ;;  %6206 = vmatprep.subr.bf16.mxu1 %v10631_v54  ;;  %v10661_v3 = vld [vmem:[%s16775_s17 + $0x28c] ss:$12 sps:$4 sm:$0xff]   ;;  %v10656_v54 = vld [vmem:[%s16775_s17 + $0x108] ss:$12 sps:$4 sm:$0xff]  }
 0xefe   :  { %5439 = vmatprep.mubr.bf16.mxu0 %v17161_v15  ;;  %10066 = vmatprep.mubr.msk.bf16.mxu1 %vm10975_vm0, %v17140_v24 }
 0xf00   :  { %6126 = vmatpush1.bf16.msra.mxu0 %v10626_v17  ;;  %6207 = vmatpush1.bf16.msra.mxu1 %v10629_v45  ;;  %v14572_v17 = vrot.slane %v10973_v22, %v17171_v28  ;;  %v4774_v45 = vmul.f32 %v14217_v23, %v13815_v31  ;;  %v17175_v31 = vld [vmem:[#allocation34_spill] sm:$0xff] }
 0xf01   :  { %6127 = vmatprep.subr.bf16.mxu0 %v10634_v48  ;;  %6208 = vmatprep.subr.bf16.mxu1 %v10637_v58  ;;  %v17172_v48 = vld [vmem:[#allocation28_spill] sm:$0xff] }
 0xf02   :  { %v4779_v58 = vmul.f32 %v14217_v23, %v17172_v48 }
 0xf03   :  { %5440 = vmatmul.mubr.bf16.gmra.mxu0 %v5206_v60  ;;  %10067 = vmatmul.mubr.bf16.gmra.mxu1 %v5206_v60  ;;  %v4790_v60 = vmul.f32 %v14217_v23, %v13863_v50  ;;  %v10676_v50 = vld [vmem:[%s16775_s17 + $0xc4] ss:$12 sps:$4 sm:$0xff]  }
 0xf04   :  { %6128 = vmatpush2.bf16.msra.mxu0 %v10632_v2  ;;  %6209 = vmatpush2.bf16.msra.mxu1 %v10635_v10  ;;  %v4785_v2 = vmul.f32 %v14217_v23, %v17174_v35  ;;  %v4788_v10 = vmul.f32 %v14217_v23, %v17175_v31  ;;  %v10680_v35 = vld [vmem:[%s16775_s17 + $0x348] ss:$12 sps:$4 sm:$0xff]  }
 0xf05   :  { %6143 = vmatprep.mubr.bf16.mxu0 %v14508_v11  ;;  %6224 = vmatprep.mubr.bf16.mxu1 %v14510_v39 }
 0xf06   :  { %6129 = vmatprep.subr.bf16.mxu0 %v10640_v7  ;;  %6210 = vmatprep.subr.bf16.mxu1 %v10643_v9  ;;  %v10668_v7 = vld [vmem:[%s16775_s17 + $0xd8] ss:$12 sps:$4 sm:$0xff]  }
 0xf07   :  { %v10671_v9 = vld [vmem:[%s16775_s17 + $0x258] ss:$12 sps:$4 sm:$0xff]  }
 0xf08   :  { %6130 = vmatpush2.bf16.msra.mxu0 %v10638_v13  ;;  %6211 = vmatpush2.bf16.msra.mxu1 %v10641_v19  ;;  %v4846_v13 = vadd.f32 %v14572_v17, %v4774_v45  ;;  %v4851_v19 = vadd.f32 %v14572_v17, %v4779_v58  ;;  %v10683_v45 = vld [vmem:[%s16775_s17 + $0x170] ss:$12 sps:$4 sm:$0xff]  }
 0xf09   :  { %6131 = vmatprep.subr.bf16.mxu0 %v10646_v41  ;;  %6212 = vmatprep.subr.bf16.mxu1 %v10649_v51  ;;  %v10679_v41 = vld [vmem:[%s16775_s17 + $0x244] ss:$12 sps:$4 sm:$0xff]   ;;  %v4855_v51 = vadd.f32 %v14440_v26, %v4783_v16 }
 0xf0a   :  { %v4896_v22 = vmax.f32 %v4851_v19, 0.0  ;;  %v10687_v19 = vld [vmem:[%s16775_s17 + $0x334] ss:$12 sps:$4 sm:$0xff]  }
 0xf0b   :  { %v4900_v48 = vmax.f32 %v4855_v51, 0.0  ;;  %v4799_v51 = vmul.f32 %v14217_v23, %v13897_v4  ;;  %v10685_v4 = vld [vmem:[%s16775_s17 + $0x330] ss:$12 sps:$4 sm:$0xff]  }
 0xf0c   :  { %6132 = vmatpush2.bf16.msra.mxu0 %v10644_v1  ;;  %6213 = vmatpush2.bf16.msra.mxu1 %v10647_v36  ;;  %v4860_v1 = vadd.f32 %v14440_v26, %v4788_v10  ;;  %v4857_v36 = vadd.f32 %v14457_v32, %v4785_v2  ;;  %v10684_v10 = vld [vmem:[%s16775_s17 + $0xb0] ss:$12 sps:$4 sm:$0xff]  }
 0xf0d   :  { %6133 = vmatprep.subr.bf16.mxu0 %v10652_v30  ;;  %6214 = vmatprep.subr.bf16.mxu1 %v10655_v20  ;;  %v4862_v30 = vadd.f32 %v14457_v32, %v4790_v60  ;;  %v17176_v20 = vld [vmem:[#allocation31_spill] sm:$0xff] }
 0xf0e   :  { %v4905_v58 = vmax.f32 %v4860_v1, 0.0  ;;  %v17179_v1 = vld [vmem:[#allocation35_spill] sm:$0xff] }
 0xf10   :  { %6134 = vmatpush2.bf16.msra.mxu0 %v10650_v62  ;;  %6215 = vmatpush2.bf16.msra.mxu1 %v10653_v43  ;;  %v4784_v62 = vmul.f32 %v14217_v23, %v17176_v20  ;;  %v4789_v43 = vmul.f32 %v14217_v23, %v13859_v63  ;;  %v4800_v63 = vmul.f32 %v14217_v23, %v13901_v6 }
 0xf11   :  { %6135 = vmatprep.subr.bf16.mxu0 %v10658_v49  ;;  %6216 = vmatprep.subr.bf16.mxu1 %v10661_v3  ;;  %v17177_v49 = vld [vmem:[#allocation36_spill] sm:$0xff]  ;;  %v14646_v60 = vpack.c.bf16 %v4905_v58, %v4900_v48 }
 0xf12   :  { %v4793_v3 = vmul.f32 %v14217_v23, %v17177_v49  ;;  %v4856_v47 = vadd.f32 %v14572_v17, %v4784_v62  ;;  %v4861_v6 = vadd.f32 %v14572_v17, %v4789_v43  ;;  %v4805_v62 = vmul.f32 %v14217_v23, %v13917_v25 }
 0xf14   :  { %6136 = vmatpush2.bf16.msra.mxu0 %v10656_v54  ;;  %6217 = vmatpush2.bf16.msra.mxu1 %v10659_v38  ;;  %v4795_v54 = vmul.f32 %v14217_v23, %v13883_v53  ;;  %v10674_v38 = vld [vmem:[%s16775_s17 + $0xc0] ss:$12 sps:$4 sm:$0xff]   ;;  %v4865_v2 = vadd.f32 %v14440_v26, %v4793_v3  ;;  %v4906_v20 = vmax.f32 %v4861_v6, 0.0  ;;  %v10689_v3 = vld [vmem:[%s16775_s17 + $0x98] ss:$12 sps:$4 sm:$0xff]   ;;  %v4804_v6 = vmul.f32 %v14217_v23, %v13913_v33 }
 0xf15   :  { %6137 = vmatprep.subr.bf16.mxu0 %v10664_v29  ;;  %6218 = vmatprep.subr.bf16.mxu1 %v10667_v61  ;;  %v10677_v29 = vld [vmem:[%s16775_s17 + $0x240] ss:$12 sps:$4 sm:$0xff]   ;;  %v17178_v61 = vld [vmem:[#allocation33_spill] sm:$0xff]  ;;  %v10696_v33 = vld [vmem:[%s16775_s17 + $0x68] ss:$12 sps:$4 sm:$0xff]  }
 0xf16   :  { %v10682_v53 = vld [vmem:[%s16775_s17 + $0x34c] ss:$12 sps:$4 sm:$0xff]   ;;  %v4910_v43 = vmax.f32 %v4865_v2, 0.0 }
 0xf18   :  { %6138 = vmatpush2.bf16.msra.mxu0 %v10662_v59  ;;  %6219 = vmatpush2.bf16.msra.mxu1 %v10665_v34  ;;  %v4798_v59 = vmul.f32 %v14217_v23, %v17178_v61  ;;  %v4891_v34 = vmax.f32 %v4846_v13, 0.0  ;;  %v4872_v13 = vadd.f32 %v14457_v32, %v4800_v63 }
 0xf19   :  { %6139 = vmatprep.subr.bf16.mxu0 %v10670_v21  ;;  %6220 = vmatprep.subr.bf16.mxu1 %v10673_v46  ;;  %v4902_v21 = vmax.f32 %v4857_v36, 0.0  ;;  %v4907_v46 = vmax.f32 %v4862_v30, 0.0  ;;  %v4803_v36 = vmul.f32 %v14217_v23, %v17179_v1  ;;  %v4901_v30 = vmax.f32 %v4856_v47, 0.0  ;;  %v10703_v47 = vld [vmem:[%s16775_s17 + $0x304] ss:$12 sps:$4 sm:$0xff]  }
 0xf1a   :  { %v14636_v16 = vpack.c.bf16 %v4896_v22, %v4891_v34  ;;  %v4870_v31 = vadd.f32 %v14440_v26, %v4798_v59  ;;  %v4917_v25 = vmax.f32 %v4872_v13, 0.0  ;;  %v4871_v59 = vadd.f32 %v14572_v17, %v4799_v51  ;;  %v17182_v51 = vld [vmem:[#allocation24_spill] sm:$0xff] }
 0xf1b   :  { %v14688_v63 = vpack.c.bf16 %v4906_v20, %v4901_v30  ;;  %v4877_v22 = vadd.f32 %v14457_v32, %v4805_v62  ;;  %v4815_v1 = vmul.f32 %v14217_v23, %v17182_v51  ;;  %v10697_v20 = vld [vmem:[%s16775_s17 + $0x110] ss:$12 sps:$4 sm:$0xff]   ;;  %v10720_v51 = vld [vmem:[%s16775_s17 + $0x1b8] ss:$12 sps:$4 sm:$0xff]  }
 0xf1c   :  { %6140 = vmatpush2.bf16.msra.mxu0 %v10668_v7  ;;  %6221 = vmatpush2.bf16.msra.mxu1 %v10671_v9  ;;  %v14648_v7 = vpack.c.bf16 %v4907_v46, %v4902_v21  ;;  %v4867_v9 = vadd.f32 %v14457_v32, %v4795_v54  ;;  %v4915_v49 = vmax.f32 %v4870_v31, 0.0  ;;  %v4810_v54 = vmul.f32 %v14217_v23, %v13949_v5  ;;  %v10695_v46 = vld [vmem:[%s16775_s17 + $0x128] ss:$12 sps:$4 sm:$0xff]   ;;  %v17180_v31 = vld [vmem:[#allocation38_spill] sm:$0xff]  ;;  %v10708_v62 = vld [vmem:[%s16775_s17 + $0x2f0] ss:$12 sps:$4 sm:$0xff]  }
 0xf1d   :  { %6141 = vmatprep.subr.bf16.mxu0 %v10676_v50  ;;  %6222 = vmatprep.subr.bf16.mxu1 %v10679_v41  ;;  %v10688_v50 = vld [vmem:[%s16775_s17 + $0x158] ss:$12 sps:$4 sm:$0xff]   ;;  %v4794_v41 = vmul.f32 %v14217_v23, %v13879_v37  ;;  %v4808_v37 = vmul.f32 %v14217_v23, %v13941_v0  ;;  %v10690_v0 = vld [vmem:[%s16775_s17 + $0x140] ss:$12 sps:$4 sm:$0xff]   ;;  %v4875_v5 = vadd.f32 %v14440_v26, %v4803_v36  ;;  %v4916_v2 = vmax.f32 %v4871_v59, 0.0 }
 0xf1e   :  { %v14699_v48 = vpack.c.bf16 %v4915_v49, %v4910_v43  ;;  %v4882_v21 = vadd.f32 %v14457_v32, %v4810_v54  ;;  %v4922_v36 = vmax.f32 %v4877_v22, 0.0  ;;  %v10704_v22 = vld [vmem:[%s16775_s17 + $0xe0] ss:$12 sps:$4 sm:$0xff]  }
 0xf1f   :  { %v4866_v61 = vadd.f32 %v14572_v17, %v4794_v41  ;;  %v4880_v34 = vadd.f32 %v14440_v26, %v4808_v37  ;;  %v10701_v41 = vld [vmem:[%s16775_s17 + $0x300] ss:$12 sps:$4 sm:$0xff]   ;;  %v4876_v37 = vadd.f32 %v14572_v17, %v4804_v6  ;;  %v10707_v6 = vld [vmem:[%s16775_s17 + $0x8] ss:$12 sps:$4 sm:$0xff]  }
 0xf20   :  { %6142 = vmatpush2.bf16.msra.mxu0 %v10674_v38  ;;  %6223 = vmatpush2.bf16.msra.mxu1 %v10677_v29  ;;  %v4912_v38 = vmax.f32 %v4867_v9, 0.0  ;;  %v10694_v29 = vld [vmem:[%s16775_s17 + $0x31c] ss:$12 sps:$4 sm:$0xff]   ;;  %v4927_v30 = vmax.f32 %v4882_v21, 0.0 }
 0xf21   :  { %6281 = vmatprep.subr.bf16.mxu0 %v10682_v53  ;;  %9700 = vmatprep.subr.bf16.mxu1 %v10683_v45  ;;  %v10691_v53 = vld [vmem:[%s16775_s17 + $0x80] ss:$12 sps:$4 sm:$0xff]   ;;  %v10692_v45 = vld [vmem:[%s16775_s17 + $0x318] ss:$12 sps:$4 sm:$0xff]  }
 0xf22   :  { %v14701_v58 = vpack.c.bf16 %v4917_v25, %v4912_v38  ;;  %v17181_v9 = vld [vmem:[#allocation23_spill] sm:$0xff]  ;;  %v14744_v38 = vpack.c.bf16 %v4927_v30, %v4922_v36  ;;  %v4887_v25 = vadd.f32 %v14457_v32, %v4815_v1  ;;  %v10700_v32 = vld [vmem:[%s16775_s17 + $0x38] ss:$12 sps:$4 sm:$0xff]  }
 0xf23   :  { %6144 = vmatmul.mubr.bf16.vlgmr.msra.gmra.mxu0 %v14272_v57  ;;  %6225 = vmatmul.mubr.bf16.vlgmr.msra.gmra.mxu1 %v14636_v16  ;;  %v4813_v13 = vmul.f32 %v14217_v23, %v17181_v9  ;;  %v10721_v9 = vld [vmem:[%s16775_s17 + $0x338] ss:$12 sps:$4 sm:$0xff]   ;;  %v10722_v1 = vld [vmem:[%s16775_s17 + $0x260] ss:$12 sps:$4 sm:$0xff]  }
 0xf24   :  { %6153 = vmatprep.mubr.bf16.mxu0 %v14646_v60  ;;  %6234 = vmatprep.mubr.bf16.mxu1 %v14648_v7  ;;  %v10723_v36 = vld [vmem:[%s16775_s17 + $0x1a0] ss:$12 sps:$4 sm:$0xff]  }
 0xf25   :  { %6282 = vmatpush1.bf16.msra.mxu0 %v10680_v35  ;;  %9701 = vmatpush3.bf16.msra.mxu1 %v10684_v10  ;;  %v4911_v35 = vmax.f32 %v4866_v61, 0.0  ;;  %v4809_v10 = vmul.f32 %v14217_v23, %v17180_v31  ;;  %v4921_v61 = vmax.f32 %v4876_v37, 0.0  ;;  %v10709_v31 = vld [vmem:[%s16775_s17 + $0x230] ss:$12 sps:$4 sm:$0xff]   ;;  %v17184_v30 = vld [vmem:[#allocation39_spill] sm:$0xff] }
 0xf26   :  { %6283 = vmatprep.subr.bf16.mxu0 %v10687_v19  ;;  %9702 = vmatprep.subr.bf16.mxu1 %v10688_v50  ;;  %v4920_v19 = vmax.f32 %v4875_v5, 0.0  ;;  %v4925_v50 = vmax.f32 %v4880_v34, 0.0  ;;  %v4932_v34 = vmax.f32 %v4887_v25, 0.0 }
 0xf27   :  { %v4881_v43 = vadd.f32 %v14572_v17, %v4809_v10  ;;  %v14736_v49 = vpack.c.bf16 %v4916_v2, %v4911_v35  ;;  %v14784_v35 = vpack.c.bf16 %v14270_v8, %v14270_v8  ;;  %v10718_v8 = vld [vmem:[%s16775_s17 + $0x350] ss:$12 sps:$4 sm:$0xff]   ;;  %v10710_v10 = vld [vmem:[%s16775_s17 + $0x2d8] ss:$12 sps:$4 sm:$0xff]  }
 0xf28   :  { %v14742_v54 = vpack.c.bf16 %v4925_v50, %v4920_v19  ;;  %v10714_v19 = vld [vmem:[%s16775_s17 + $0x2a8] ss:$12 sps:$4 sm:$0xff]  }
 0xf29   :  { %6284 = vmatpush1.bf16.msra.mxu0 %v10685_v4  ;;  %9703 = vmatpush3.bf16.msra.mxu1 %v10689_v3  ;;  %v4885_v4 = vadd.f32 %v14440_v26, %v4813_v13  ;;  %v10698_v3 = vld [vmem:[%s16775_s17 + $0x50] ss:$12 sps:$4 sm:$0xff]   ;;  %v4926_v59 = vmax.f32 %v4881_v43, 0.0  ;;  %v10712_v13 = vld [vmem:[%s16775_s17 + $0x2c0] ss:$12 sps:$4 sm:$0xff]  }
 0xf2a   :  { %9704 = vmatprep.subr.bf16.mxu1 %v10690_v0  ;;  %6285 = vmatprep.subr.bf16.mxu0 %v10694_v29  ;;  %v10699_v0 = vld [vmem:[%s16775_s17 + $0xf8] ss:$12 sps:$4 sm:$0xff]   ;;  %v10715_v50 = vld [vmem:[%s16775_s17 + $0x1e8] ss:$12 sps:$4 sm:$0xff]  }
 0xf2b   :  { %6154 = vmatmul.mubr.bf16.gmra.mxu0 %v14297_v14  ;;  %6235 = vmatmul.mubr.bf16.gmra.mxu1 %v14688_v63  ;;  %v17183_v26 = vld [vmem:[#allocation37_spill] sm:$0xff]  ;;  %v4930_v5 = vmax.f32 %v4885_v4, 0.0 }
 0xf2c   :  { %6163 = vmatprep.mubr.bf16.mxu0 %v14699_v48  ;;  %6244 = vmatprep.mubr.bf16.mxu1 %v14701_v58  ;;  %v4814_v29 = vmul.f32 %v14217_v23, %v17183_v26  ;;  %v10705_v23 = vld [vmem:[%s16775_s17 + $0x20] ss:$12 sps:$4 sm:$0xff]  }
 0xf2d   :  { %9705 = vmatpush3.bf16.msra.mxu1 %v10691_v53  ;;  %6286 = vmatpush1.bf16.msra.mxu0 %v10692_v45  ;;  %v14763_v45 = vpack.c.bf16 %v4926_v59, %v4921_v61  ;;  %v14768_v21 = vpack.c.bf16 %v4930_v5, %v4930_v5 }
 0xf2e   :  { %9706 = vmatprep.subr.bf16.mxu1 %v10695_v46  ;;  %6287 = vmatprep.subr.bf16.mxu0 %v10703_v47  ;;  %v4886_v53 = vadd.f32 %v14572_v17, %v4814_v29  ;;  %v14770_v46 = vpack.c.bf16 %v4932_v34, %v4932_v34  ;;  %v10706_v47 = vld [vmem:[%s16775_s17 + $0xc8] ss:$12 sps:$4 sm:$0xff]  }
 0xf30   :  { %v4931_v17 = vmax.f32 %v4886_v53, 0.0 }
 0xf31   :  { %9707 = vmatpush3.bf16.msra.mxu1 %v10696_v33  ;;  %6288 = vmatpush1.bf16.msra.mxu0 %v10701_v41  ;;  %v10727_v33 = vld [vmem:[%s16775_s17 + $0x308] ss:$12 sps:$4 sm:$0xff]   ;;  %v10716_v41 = vld [vmem:[%s16775_s17 + $0x290] ss:$12 sps:$4 sm:$0xff]  }
 0xf32   :  { %9708 = vmatprep.subr.bf16.mxu1 %v10697_v20  ;;  %9746 = vmatprep.subr.bf16.mxu0 %v10708_v62  ;;  %v14786_v2 = vpack.c.bf16 %v4931_v17, %v4931_v17  ;;  %v10726_v20 = vld [vmem:[%s16775_s17 + $0x188] ss:$12 sps:$4 sm:$0xff]   ;;  %v4958_v62 = vpack.c.bf16 %v14309_v55, %v14309_v55 }
 0xf33   :  { %6164 = vmatmul.mubr.bf16.gmra.mxu0 %v14301_v42  ;;  %6245 = vmatmul.mubr.bf16.gmra.mxu1 %v14736_v49 }
 0xf34   :  { %6173 = vmatprep.mubr.bf16.mxu0 %v14742_v54  ;;  %6254 = vmatprep.mubr.bf16.mxu1 %v14744_v38 }
 0xf35   :  { %9709 = vmatpush3.bf16.msra.mxu1 %v10698_v3 }
 0xf36   :  { %9710 = vmatprep.subr.bf16.mxu1 %v10699_v0 }
 0xf39   :  { %9711 = vmatpush3.bf16.msra.mxu1 %v10700_v32 }
 0xf3a   :  { %9712 = vmatprep.subr.bf16.mxu1 %v10704_v22 }
 0xf3b   :  { %6174 = vmatmul.mubr.bf16.gmra.mxu0 %v14304_v12  ;;  %6255 = vmatmul.mubr.bf16.gmra.mxu1 %v14763_v45 }
 0xf3c   :  { %6183 = vmatprep.mubr.bf16.mxu0 %v14768_v21  ;;  %6264 = vmatprep.mubr.bf16.mxu1 %v14770_v46 }
 0xf3d   :  { %9713 = vmatpush3.bf16.msra.mxu1 %v10705_v23 }
 0xf3e   :  { %9714 = vmatprep.subr.bf16.mxu1 %v10706_v47 }
 0xf41   :  { %9715 = vmatpush3.bf16.msra.mxu1 %v10707_v6 }
 0xf42   :  { %10070 = vmatprep.subr.bf16.mxu1 %v17140_v24 }
 0xf43   :  { %6184 = vmatmul.mubr.bf16.gmra.mxu0 %v14784_v35  ;;  %6265 = vmatmul.mubr.bf16.gmra.mxu1 %v14786_v2 }
 0xf44   :  { %6386 = vmatprep.mubr.bf16.mxu1 %v14508_v11  ;;  %6305 = vmatprep.mubr.bf16.mxu0 %v17161_v15  ;;  %v10711_v11 = vld [vmem:[%s16775_s17 + $0x218] ss:$12 sps:$4 sm:$0xff]  }
 0xf4b   :  { %9337 = vmatmul.mubr.msk.bf16.vlgmr.msra.gmra.mxu0 %vm254_vm3, %v14110_v44  ;;  %6387 = vmatmul.mubr.bf16.vlgmr.msra.gmra.mxu1 %v14272_v57  ;;  %v10713_v57 = vld [vmem:[%s16775_s17 + $0x200] ss:$12 sps:$4 sm:$0xff]  }
 0xf4c   :  { %6394 = vmatprep.mubr.bf16.mxu1 %v14646_v60  ;;  %6315 = vmatprep.mubr.bf16.mxu0 %v17161_v15  ;;  %v10724_v60 = vld [vmem:[%s16775_s17 + $0x320] ss:$12 sps:$4 sm:$0xff]  }
 0xf4d   :  { %9747 = vmatpush3.bf16.msra.mxu0 %v10709_v31  ;;  %10071 = vmatpush3.bf16.msra.mxu1 %v10718_v8 }
 0xf4e   :  { %9748 = vmatprep.subr.bf16.mxu0 %v10710_v10  ;;  %10072 = vmatprep.subr.bf16.mxu1 %v17140_v24 }
 0xf51   :  { %9749 = vmatpush3.bf16.msra.mxu0 %v10711_v11  ;;  %10073 = vmatpush3.bf16.msra.mxu1 %v10721_v9 }
 0xf52   :  { %9750 = vmatprep.subr.bf16.mxu0 %v10712_v13  ;;  %10074 = vmatprep.subr.bf16.mxu1 %v17140_v24 }
 0xf53   :  { %9338 = vmatmul.mubr.msk.bf16.gmra.mxu0 %vm254_vm3, %v14129_v27  ;;  %6395 = vmatmul.mubr.bf16.gmra.mxu1 %v14297_v14  ;;  %v10717_v14 = vld [vmem:[%s16775_s17 + $0x1d0] ss:$12 sps:$4 sm:$0xff]  }
 0xf54   :  { %6402 = vmatprep.mubr.bf16.mxu1 %v14699_v48  ;;  %6325 = vmatprep.mubr.bf16.mxu0 %v17161_v15  ;;  %v10719_v48 = vld [vmem:[%s16775_s17 + $0x278] ss:$12 sps:$4 sm:$0xff]  }
 0xf55   :  { %9751 = vmatpush3.bf16.msra.mxu0 %v10713_v57  ;;  %10075 = vmatpush3.bf16.msra.mxu1 %v10724_v60 }
 0xf56   :  { %9752 = vmatprep.subr.bf16.mxu0 %v10714_v19  ;;  %10076 = vmatprep.subr.bf16.mxu1 %v17140_v24 }
 0xf59   :  { %9753 = vmatpush3.bf16.msra.mxu0 %v10715_v50  ;;  %10077 = vmatpush3.bf16.msra.mxu1 %v10727_v33 }
 0xf5a   :  { %9754 = vmatprep.subr.bf16.mxu0 %v10716_v41 }
 0xf5b   :  { %9339 = vmatmul.mubr.msk.bf16.gmra.mxu0 %vm254_vm3, %v14142_v52  ;;  %6403 = vmatmul.mubr.bf16.gmra.mxu1 %v14301_v42  ;;  %v10725_v42 = vld [vmem:[%s16775_s17 + $0x248] ss:$12 sps:$4 sm:$0xff]  }
 0xf5c   :  { %6410 = vmatprep.mubr.bf16.mxu1 %v14742_v54  ;;  %6335 = vmatprep.mubr.bf16.mxu0 %v17161_v15 }
 0xf5d   :  { %9755 = vmatpush3.bf16.msra.mxu0 %v10717_v14 }
 0xf5e   :  { %9756 = vmatprep.subr.bf16.mxu0 %v10719_v48 }
 0xf61   :  { %9757 = vmatpush3.bf16.msra.mxu0 %v10720_v51 }
 0xf62   :  { %9758 = vmatprep.subr.bf16.mxu0 %v10722_v1 }
 0xf63   :  { %9340 = vmatmul.mubr.msk.bf16.gmra.mxu0 %vm254_vm3, %v17184_v30  ;;  %6411 = vmatmul.mubr.bf16.gmra.mxu1 %v14304_v12 }
 0xf64   :  { %6418 = vmatprep.mubr.bf16.mxu1 %v14768_v21  ;;  %6345 = vmatprep.mubr.bf16.mxu0 %v17161_v15 }
 0xf65   :  { %9759 = vmatpush3.bf16.msra.mxu0 %v10723_v36 }
 0xf66   :  { %9760 = vmatprep.subr.bf16.mxu0 %v10725_v42 }
 0xf69   :  { %9761 = vmatpush3.bf16.msra.mxu0 %v10726_v20 }
 0xf6b   :  { %9341 = vmatmul.mubr.msk.bf16.gmra.mxu0 %vm254_vm3, %v4958_v62  ;;  %6419 = vmatmul.mubr.bf16.gmra.mxu1 %v14784_v35 }
 0xf6c   :  { %6458 = vmatprep.mubr.bf16.mxu0 %v14510_v39  ;;  %10078 = vmatprep.mubr.msk.bf16.mxu1 %vm10975_vm0, %v17140_v24 }
 0xf73   :  { %6459 = vmatmul.mubr.bf16.vlgmr.msra.gmra.mxu0 %v14636_v16  ;;  %10079 = vmatmul.mubr.msk.bf16.vlgmr.msra.gmra.mxu1 %vm254_vm3, %v14110_v44 }
 0xf74   :  { %6466 = vmatprep.mubr.bf16.mxu0 %v14648_v7  ;;  %10082 = vmatprep.mubr.msk.bf16.mxu1 %vm10975_vm0, %v17140_v24 }
 0xf7b   :  { %6467 = vmatmul.mubr.bf16.gmra.mxu0 %v14688_v63  ;;  %10083 = vmatmul.mubr.msk.bf16.gmra.mxu1 %vm254_vm3, %v14129_v27 }
 0xf7c   :  { %6474 = vmatprep.mubr.bf16.mxu0 %v14701_v58  ;;  %10086 = vmatprep.mubr.msk.bf16.mxu1 %vm10975_vm0, %v17140_v24 }
 0xf83   :  { %6475 = vmatmul.mubr.bf16.gmra.mxu0 %v14736_v49  ;;  %10087 = vmatmul.mubr.msk.bf16.gmra.mxu1 %vm254_vm3, %v14142_v52 }
 0xf84   :  { %6482 = vmatprep.mubr.bf16.mxu0 %v14744_v38  ;;  %10090 = vmatprep.mubr.msk.bf16.mxu1 %vm10975_vm0, %v17140_v24 }
 0xf8b   :  { %6483 = vmatmul.mubr.bf16.gmra.mxu0 %v14763_v45  ;;  %10091 = vmatmul.mubr.msk.bf16.gmra.mxu1 %vm254_vm3, %v17184_v30 }
 0xf8c   :  { %6490 = vmatprep.mubr.bf16.mxu0 %v14770_v46  ;;  %10094 = vmatprep.mubr.msk.bf16.mxu1 %vm10975_vm0, %v17140_v24 }
 0xf93   :  { %6491 = vmatmul.mubr.bf16.gmra.mxu0 %v14786_v2  ;;  %10095 = vmatmul.mubr.msk.bf16.gmra.mxu1 %vm254_vm3, %v4958_v62 }
 0xf94   :  { %8132 = vmatprep.mubr.bf16.mxu1 %v17161_v15 }
 0xfa3   :  { %v14907_v44 = vpop.f32.mrf.mxu0  ;;  %v14909_v27 = vpop.f32.mrf.mxu1 }
 0xfa4   :  { %17185 = vst [vmem:[#allocation40_spill] sm:$0xff] %v14909_v27 }
 0xfa5   :  { %v14911_v52 = vpop.f32.mrf.mxu0  ;;  %v10052_v12 = vpop.f32.mrf.mxu1 }
 0xfa7   :  { %v14913_v55 = vpop.f32.mrf.mxu0  ;;  %v14915_v39 = vpop.f32.mrf.mxu1 }
 0xfa8   :  { %17186 = vst [vmem:[#allocation41_spill] sm:$0xff] %v14915_v39 }
 0xfa9   :  { %v14917_v16 = vpop.f32.mrf.mxu0  ;;  %v10053_v7 = vpop.f32.mrf.mxu1 }
 0xfab   :  { %v14919_v63 = vpop.f32.mrf.mxu0  ;;  %v14921_v58 = vpop.f32.mrf.mxu1 }
 0xfac   :  { %17187 = vst [vmem:[#allocation42_spill] sm:$0xff] %v14921_v58 }
 0xfad   :  { %v14923_v37 = vpop.f32.mrf.mxu0  ;;  %v10056_v43 = vpop.f32.mrf.mxu1 }
 0xfaf   :  { %v14925_v49 = vpop.f32.mrf.mxu0  ;;  %v14927_v4 = vpop.f32.mrf.mxu1 }
 0xfb0   :  { %17188 = vst [vmem:[#allocation43_spill] sm:$0xff] %v14927_v4 }
 0xfb1   :  { %v14929_v3 = vpop.f32.mrf.mxu0  ;;  %v10057_v54 = vpop.f32.mrf.mxu1 }
 0xfb3   :  { %v14931_v38 = vpop.f32.mrf.mxu0  ;;  %v14933_v25 = vpop.f32.mrf.mxu1 }
 0xfb4   :  { %17189 = vst [vmem:[#allocation44_spill] sm:$0xff] %v14933_v25 }
 0xfb5   :  { %v14935_v0 = vpop.f32.mrf.mxu0  ;;  %v10060_v26 = vpop.f32.mrf.mxu1 }
 0xfb7   :  { %v14937_v29 = vpop.f32.mrf.mxu0  ;;  %v14939_v61 = vpop.f32.mrf.mxu1 }
 0xfb8   :  { %17190 = vst [vmem:[#allocation73_spill] sm:$0xff] %v14939_v61 }
 0xfb9   :  { %v14941_v59 = vpop.f32.mrf.mxu0  ;;  %v10061_v32 = vpop.f32.mrf.mxu1 }
 0xfbb   :  { %v14943_v5 = vpop.f32.mrf.mxu0  ;;  %v14945_v34 = vpop.f32.mrf.mxu1 }
 0xfbc   :  { %17191 = vst [vmem:[#allocation45_spill] sm:$0xff] %v14945_v34 }
 0xfbd   :  { %v14947_v22 = vpop.f32.mrf.mxu0  ;;  %v10064_v53 = vpop.f32.mrf.mxu1 }
 0xfbf   :  { %v14949_v45 = vpop.f32.mrf.mxu0  ;;  %v14951_v23 = vpop.f32.mrf.mxu1 }
 0xfc0   :  { %17192 = vst [vmem:[#allocation46_spill] sm:$0xff] %v14951_v23 }
 0xfc1   :  { %v14953_v21 = vpop.f32.mrf.mxu0  ;;  %v10065_v46 = vpop.f32.mrf.mxu1 }
 0xfc3   :  { %v14955_v47 = vpop.f32.mrf.mxu0  ;;  %v14957_v17 = vpop.f32.mrf.mxu1 }
 0xfc4   :  { %17193 = vst [vmem:[#allocation74_spill] sm:$0xff] %v14955_v47  ;;  %17194 = vst [vmem:[#allocation30_spill] sm:$0xff] %v14957_v17 }
 0xfc5   :  { %v14959_v6 = vpop.f32.mrf.mxu0  ;;  %v10068_v35 = vpop.f32.mrf.mxu1 }
 0xfc6   :  { %17195 = vst [vmem:[#allocation47_spill] sm:$0xff] %v14959_v6 }
 0xfc7   :  { %v5445_v2 = vpop.f32.mrf.mxu0  ;;  %v5517_v31 = vpop.f32.mrf.mxu1 }
 0xfc9   :  { %v5446_v8 = vpop.f32.mrf.mxu0  ;;  %v10069_v10 = vpop.f32.mrf.mxu1 }
 0xfe3   :  { %v6145_v11 = vpop.f32.mrf.mxu0  ;;  %v14961_v9 = vpop.f32.mrf.mxu1 }
 0xfe5   :  { %v6147_v13 = vpop.f32.mrf.mxu0  ;;  %v14963_v57 = vpop.f32.mrf.mxu1 }
 0xfe7   :  { %v6149_v60 = vpop.f32.mrf.mxu0  ;;  %v6230_v19 = vpop.f32.mrf.mxu1 }
 0xfe9   :  { %v6151_v50 = vpop.f32.mrf.mxu0  ;;  %v6232_v33 = vpop.f32.mrf.mxu1 }
 0xfeb   :  { %v6155_v41 = vpop.f32.mrf.mxu0  ;;  %v14965_v14 = vpop.f32.mrf.mxu1 }
 0xfed   :  { %v6157_v48 = vpop.f32.mrf.mxu0  ;;  %v14967_v51 = vpop.f32.mrf.mxu1 }
 0xfef   :  { %v6159_v1 = vpop.f32.mrf.mxu0  ;;  %v14969_v36 = vpop.f32.mrf.mxu1 }
 0xff1   :  { %v6161_v42 = vpop.f32.mrf.mxu0  ;;  %v14971_v30 = vpop.f32.mrf.mxu1 }
 0xff3   :  { %v6165_v20 = vpop.f32.mrf.mxu0  ;;  %v14973_v62 = vpop.f32.mrf.mxu1 }
 0xff5   :  { %v6167_v12 = vpop.f32.mrf.mxu0  ;;  %v14975_v7 = vpop.f32.mrf.mxu1 }
 0xff7   :  { %v6169_v43 = vpop.f32.mrf.mxu0  ;;  %v14977_v54 = vpop.f32.mrf.mxu1 }
 0xff9   :  { %v14979_v26 = vpop.f32.mrf.mxu0  ;;  %v14981_v32 = vpop.f32.mrf.mxu1 }
 0xffb   :  { %v14983_v53 = vpop.f32.mrf.mxu0  ;;  %v14985_v46 = vpop.f32.mrf.mxu1 }
 0xffc   :  { %17196 = vst [vmem:[#allocation48_spill] sm:$0xff] %v14985_v46 }
 0xffd   :  { %v14987_v35 = vpop.f32.mrf.mxu0  ;;  %v14989_v2 = vpop.f32.mrf.mxu1 }
 0xffe   :  { %17197 = vst [vmem:[#allocation49_spill] sm:$0xff] %v14989_v2 }
 0xfff   :  { %v14991_v31 = vpop.f32.mrf.mxu0  ;;  %v14993_v8 = vpop.f32.mrf.mxu1 }
0x1000   :  { %17198 = vst [vmem:[#allocation50_spill] sm:$0xff] %v14993_v8  ;;  %v6160_v8 = vadd.f32 %v6159_v1, %v14925_v49 }
0x1001   :  { %v14995_v10 = vpop.f32.mrf.mxu0  ;;  %v14997_v18 = vpop.f32.mrf.mxu1 }
0x1002   :  { %17199 = vst [vmem:[#allocation51_spill] sm:$0xff] %v14997_v18 }
0x1003   :  { %v14999_v56 = vpop.f32.mrf.mxu0  ;;  %v15001_v24 = vpop.f32.mrf.mxu1 }
0x1004   :  { %17200 = vst [vmem:[#allocation52_spill] sm:$0xff] %v14999_v56  ;;  %17201 = vst [vmem:[#allocation71_spill] sm:$0xff] %v15001_v24 }
0x1005   :  { %v15003_v40 = vpop.f32.mrf.mxu0  ;;  %v15005_v15 = vpop.f32.mrf.mxu1 }
0x1006   :  { %17202 = vst [vmem:[#allocation72_spill] sm:$0xff] %v15003_v40  ;;  %17203 = vst [vmem:[#allocation58_spill] sm:$0xff] %v15005_v15 }
0x1007   :  { %v6189_v28 = vpop.f32.mrf.mxu0  ;;  %v6270_v17 = vpop.f32.mrf.mxu1 }
0x1008   :  { %v6150_v28 = vadd.f32 %v6149_v60, %v14913_v55  ;;  %v6152_v17 = vadd.f32 %v6151_v50, %v14917_v16  ;;  %v6162_v55 = vadd.f32 %v6161_v42, %v14929_v3 }
0x1009   :  { %v6190_v23 = vpop.f32.mrf.mxu0  ;;  %v6271_v34 = vpop.f32.mrf.mxu1 }
0x100a   :  { %v6146_v34 = vadd.f32 %v6145_v11, %v14907_v44  ;;  %v6233_v44 = vadd.f32 %v6232_v33, %v6152_v17  ;;  %v6170_v33 = vadd.f32 %v6169_v43, %v14937_v29  ;;  %v17207_v43 = vld [vmem:[#allocation48_spill] sm:$0xff] }
0x100b   :  { %v6307_v61 = vpop.f32.mrf.mxu0  ;;  %v9716_v25 = vpop.f32.mrf.mxu1 }
0x100d   :  { %v6309_v4 = vpop.f32.mrf.mxu0  ;;  %v9717_v58 = vpop.f32.mrf.mxu1 }
0x100e   :  { %v15007_v39 = vadd.f32 %v9717_v58, %v9716_v25 }
0x100f   :  { %v6311_v27 = vpop.f32.mrf.mxu0  ;;  %v15009_v6 = vpop.f32.mrf.mxu1 }
0x1010   :  { %17204 = vst [vmem:[#allocation55_spill] sm:$0xff] %v15007_v39  ;;  %17205 = vst [vmem:[#allocation56_spill] sm:$0xff] %v15009_v6  ;;  %v6148_v39 = vadd.f32 %v6147_v13, %v14911_v52  ;;  %v6156_v6 = vadd.f32 %v6155_v41, %v14919_v63  ;;  %v6166_v63 = vadd.f32 %v6165_v20, %v14931_v38 }
0x1011   :  { %v6313_v18 = vpop.f32.mrf.mxu0  ;;  %v15011_v56 = vpop.f32.mrf.mxu1  ;;  %v6241_v13 = vadd.f32 %v14969_v36, %v6160_v8  ;;  %v6251_v36 = vadd.f32 %v14977_v54, %v6170_v33 }
0x1012   :  { %17206 = vst [vmem:[#allocation54_spill] sm:$0xff] %v15011_v56  ;;  %v6158_v56 = vadd.f32 %v6157_v48, %v14923_v37  ;;  %v6229_v60 = vadd.f32 %v14963_v57, %v6148_v39  ;;  %v6237_v52 = vadd.f32 %v14965_v14, %v6156_v6  ;;  %v6247_v29 = vadd.f32 %v14973_v62, %v6166_v63 }
0x1013   :  { %v6317_v24 = vpop.f32.mrf.mxu0  ;;  %v9722_v40 = vpop.f32.mrf.mxu1 }
0x1014   :  { %v6239_v49 = vadd.f32 %v14967_v51, %v6158_v56  ;;  %v15041_v39 = vadd.f32 %v6317_v24, %v6237_v52  ;;  %v6172_v56 = vadd.f32 %v14979_v26, %v14941_v59  ;;  %v15048_v38 = vadd.f32 %v6309_v4, %v6229_v60  ;;  %v17214_v60 = vld [vmem:[#allocation72_spill] sm:$0xff] }
0x1015   :  { %v6319_v47 = vpop.f32.mrf.mxu0  ;;  %v9723_v15 = vpop.f32.mrf.mxu1  ;;  %v6176_v24 = vadd.f32 %v14983_v53, %v14943_v5  ;;  %v6178_v59 = vadd.f32 %v14987_v35, %v14947_v22  ;;  %v6180_v4 = vadd.f32 %v14991_v31, %v14949_v45  ;;  %v6182_v45 = vadd.f32 %v14995_v10, %v14953_v21  ;;  %v17208_v35 = vld [vmem:[#allocation49_spill] sm:$0xff]  ;;  %v17209_v31 = vld [vmem:[#allocation50_spill] sm:$0xff] }
0x1016   :  { %v15014_v23 = vadd.f32 %v9723_v15, %v9722_v40  ;;  %v6231_v15 = vadd.f32 %v6230_v19, %v6150_v28  ;;  %v6227_v40 = vadd.f32 %v14961_v9, %v6146_v34  ;;  %v6168_v19 = vadd.f32 %v6167_v12, %v14935_v0  ;;  %v17211_v28 = vld [vmem:[#allocation52_spill] sm:$0xff] }
0x1017   :  { %v6321_v58 = vpop.f32.mrf.mxu0  ;;  %v15018_v25 = vpop.f32.mrf.mxu1  ;;  %v15036_v9 = vadd.f32 %v6313_v18, %v6233_v44  ;;  %v15050_v0 = vadd.f32 %v6319_v47, %v6239_v49  ;;  %v6253_v22 = vadd.f32 %v14981_v32, %v6172_v56  ;;  %v6257_v26 = vadd.f32 %v17207_v43, %v6176_v24  ;;  %v17210_v32 = vld [vmem:[#allocation74_spill] sm:$0xff]  ;;  %v17215_v56 = vld [vmem:[#allocation71_spill] sm:$0xff] }
0x1018   :  { %v15031_v37 = vadd.f32 %v6311_v27, %v6231_v15  ;;  %v15039_v41 = vadd.f32 %v6307_v61, %v6227_v40  ;;  %v6243_v27 = vadd.f32 %v14971_v30, %v6162_v55  ;;  %v15059_v14 = vadd.f32 %v6321_v58, %v6241_v13  ;;  %v17212_v55 = vld [vmem:[#allocation51_spill] sm:$0xff] }
0x1019   :  { %v6323_v2 = vpop.f32.mrf.mxu0  ;;  %v15024_v46 = vpop.f32.mrf.mxu1  ;;  %v6584_v47 = vadd.f32 %v15036_v9, %v15048_v38  ;;  %v6249_v5 = vadd.f32 %v14975_v7, %v6168_v19  ;;  %v6261_v8 = vadd.f32 %v17209_v31, %v6180_v4  ;;  %v6186_v34 = vadd.f32 %v17211_v28, %v17210_v32 }
0x101a   :  { %v6570_v61 = vadd.f32 %v15031_v37, %v15039_v41  ;;  %v15067_v48 = vadd.f32 %v6323_v2, %v6243_v27  ;;  %v6259_v2 = vadd.f32 %v17208_v35, %v6178_v59 }
0x101b   :  { %v6327_v16 = vpop.f32.mrf.mxu0  ;;  %v9728_v11 = vpop.f32.mrf.mxu1  ;;  %v6585_v20 = vadd.f32 %v6584_v47, %v15050_v0  ;;  %v17216_v47 = vld [vmem:[#allocation58_spill] sm:$0xff] }
0x101c   :  { %v6571_v42 = vadd.f32 %v6570_v61, %v15041_v39  ;;  %v15074_v30 = vadd.f32 %v6327_v16, %v6247_v29  ;;  %v6263_v16 = vadd.f32 %v17212_v55, %v6182_v45  ;;  %v17218_v55 = vld [vmem:[#allocation54_spill] sm:$0xff] }
0x101d   :  { %v6329_v50 = vpop.f32.mrf.mxu0  ;;  %v9729_v3 = vpop.f32.mrf.mxu1  ;;  %v6586_v21 = vadd.f32 %v6585_v20, %v15067_v48 }
0x101e   :  { %v15043_v6 = vadd.f32 %v9729_v3, %v9728_v11  ;;  %v6572_v53 = vadd.f32 %v6571_v42, %v15059_v14  ;;  %v15082_v7 = vadd.f32 %v6329_v50, %v6249_v5  ;;  %v17213_v11 = vld [vmem:[#allocation47_spill] sm:$0xff] }
0x101f   :  { %v6331_v18 = vpop.f32.mrf.mxu0  ;;  %v15052_v57 = vpop.f32.mrf.mxu1  ;;  %v6188_v52 = vadd.f32 %v17214_v60, %v17213_v11 }
0x1020   :  { %v15084_v54 = vadd.f32 %v6331_v18, %v6251_v36  ;;  %v6573_v58 = vadd.f32 %v6572_v53, %v15074_v30  ;;  %v6587_v13 = vadd.f32 %v6586_v21, %v15082_v7  ;;  %v6267_v18 = vadd.f32 %v17215_v56, %v6186_v34 }
0x1021   :  { %v6333_v51 = vpop.f32.mrf.mxu0  ;;  %v15069_v1 = vpop.f32.mrf.mxu1 }
0x1022   :  { %v15092_v15 = vadd.f32 %v6333_v51, %v6253_v22  ;;  %v6574_v19 = vadd.f32 %v6573_v58, %v15084_v54  ;;  %v6269_v51 = vadd.f32 %v17216_v47, %v6188_v52  ;;  %v17217_v58 = vld [vmem:[#allocation56_spill] sm:$0xff]  ;;  %v17221_v47 = vld [vmem:[#allocation41_spill] sm:$0xff] }
0x1023   :  { %v6337_v62 = vpop.f32.mrf.mxu0  ;;  %v9734_v12 = vpop.f32.mrf.mxu1  ;;  %v17219_v52 = vld [vmem:[#allocation40_spill] sm:$0xff] }
0x1024   :  { %v15094_v40 = vadd.f32 %v6337_v62, %v6257_v26  ;;  %v6588_v29 = vadd.f32 %v6587_v13, %v15092_v15 }
0x1025   :  { %v6339_v10 = vpop.f32.mrf.mxu0  ;;  %v9735_v17 = vpop.f32.mrf.mxu1 }
0x1026   :  { %v15096_v44 = vadd.f32 %v9735_v17, %v9734_v12  ;;  %v15105_v50 = vadd.f32 %v6339_v10, %v6259_v2  ;;  %v6575_v24 = vadd.f32 %v6574_v19, %v15094_v40 }
0x1027   :  { %v6341_v63 = vpop.f32.mrf.mxu0  ;;  %v15101_v49 = vpop.f32.mrf.mxu1 }
0x1028   :  { %v15107_v3 = vadd.f32 %v6341_v63, %v6261_v8  ;;  %v6589_v5 = vadd.f32 %v6588_v29, %v15105_v50  ;;  %v17220_v63 = vld [vmem:[#allocation55_spill] sm:$0xff] }
0x1029   :  { %v6343_v33 = vpop.f32.mrf.mxu0  ;;  %v15109_v27 = vpop.f32.mrf.mxu1  ;;  %v6389_v13 = vadd.f32 %v17220_v63, %v17219_v52 }
0x102a   :  { %v15114_v61 = vadd.f32 %v6343_v33, %v6263_v16  ;;  %v6576_v36 = vadd.f32 %v6575_v24, %v15107_v3  ;;  %v9721_v16 = vadd.f32 %v17218_v55, %v17217_v58 }
0x102b   :  { %v6347_v59 = vpop.f32.mrf.mxu0  ;;  %v9740_v4 = vpop.f32.mrf.mxu1 }
0x102c   :  { %v15119_v42 = vadd.f32 %v6347_v59, %v6267_v18  ;;  %v6590_v20 = vadd.f32 %v6589_v5, %v15114_v61 }
0x102d   :  { %v6349_v22 = vpop.f32.mrf.mxu0  ;;  %v9741_v45 = vpop.f32.mrf.mxu1 }
0x102e   :  { %v6577_v62 = vadd.f32 %v6576_v36, %v15119_v42  ;;  %v15123_v12 = vadd.f32 %v6349_v22, %v6269_v51  ;;  %v15125_v43 = vadd.f32 %v9741_v45, %v9740_v4  ;;  %v6392_v51 = vadd.f32 %v9721_v16, %v17221_v47 }
0x102f   :  { %v6351_v26 = vpop.f32.mrf.mxu0  ;;  %v9743_v53 = vpop.f32.mrf.mxu1 }
0x1030   :  { %v6578_v35 = vrot.slane %v6577_v62, 4  ;;  %v6591_v2 = vadd.f32 %v6590_v20, %v15123_v12 }
0x1031   :  { %v6352_v31 = vpop.f32.mrf.mxu0  ;;  %v9744_v8 = vpop.f32.mrf.mxu1 }
0x1032   :  { %v6579_v32 = vadd.f32 %v6578_v35, %v6577_v62  ;;  %v6592_v28 = vrot.slane %v6591_v2, 4 }
0x1033   :  { %v9762_v34 = vpop.f32.mrf.mxu0  ;;  %v6532_v21 = vpop.f32.mrf.mxu1 }
0x1034   :  { %v6580_v10 = vrot.slane %v6579_v32, 2  ;;  %v6593_v17 = vadd.f32 %v6592_v28, %v6591_v2  ;;  %v17222_v2 = vld [vmem:[#allocation42_spill] sm:$0xff]  ;;  %v9727_v28 = vadd.f32 %v15024_v46, %v15018_v25 }
0x1035   :  { %v9763_v11 = vpop.f32.mrf.mxu0  ;;  %v10080_v60 = vpop.f32.mrf.mxu1  ;;  %v6397_v31 = vadd.f32 %v15014_v23, %v17222_v2 }
0x1036   :  { %v6581_v19 = vadd.f32 %v6580_v10, %v6579_v32  ;;  %v6594_v33 = vrot.slane %v6593_v17, 2  ;;  %v9764_v56 = vadd.f32 %v9763_v11, %v9762_v34  ;;  %v17223_v11 = vld [vmem:[#allocation43_spill] sm:$0xff] }
0x1037   :  { %v9765_v18 = vpop.f32.mrf.mxu0  ;;  %v6535_v29 = vpop.f32.mrf.mxu1  ;;  %v6400_v60 = vadd.f32 %v9727_v28, %v17223_v11  ;;  %v17227_v11 = vld [vmem:[#allocation46_spill] sm:$0xff] }
0x1038   :  { %v6582_v24 = vrot.slane %v6581_v19, 1  ;;  %v6595_v59 = vadd.f32 %v6594_v33, %v6593_v17  ;;  %v6461_v4 = vadd.f32 %v9764_v56, %v6389_v13  ;;  %v17224_v56 = vld [vmem:[#allocation44_spill] sm:$0xff] }
0x1039   :  { %v9766_v5 = vpop.f32.mrf.mxu0  ;;  %v10081_v36 = vpop.f32.mrf.mxu1 }
0x103a   :  { %v6596_v22 = vrot.slane %v6595_v59, 1  ;;  %v15133_v45 = vadd.f32 %v6532_v21, %v6461_v4  ;;  %v9767_v20 = vadd.f32 %v9766_v5, %v9765_v18  ;;  %v15135_v62 = vadd.f32 %v6582_v24, %v6581_v19 }
0x103b   :  { %v9768_v26 = vpop.f32.mrf.mxu0  ;;  %v6540_v53 = vpop.f32.mrf.mxu1  ;;  %v6405_v18 = vadd.f32 %v15043_v6, %v17224_v56  ;;  %v17228_v56 = vld [vmem:[#allocation30_spill] sm:$0xff] }
0x103c   :  { %v6464_v35 = vadd.f32 %v9767_v20, %v6392_v51  ;;  %6626 = vrot.lane.b32.xlu0 %v15135_v62, %s10977_s5  ;;  %6622 = vrot.lane.b32.xlu1 %v15135_v62, %s10976_s6  ;;  %v15147_v10 = vadd.f32 %v6596_v22, %v6595_v59  ;;  %v17225_v22 = vld [vmem:[#allocation73_spill] sm:$0xff] }
0x103d   :  { %v9769_v8 = vpop.f32.mrf.mxu0  ;;  %v10084_v32 = vpop.f32.mrf.mxu1 }
0x103e   :  { %v15145_v34 = vadd.f32 %v6535_v29, %v6464_v35  ;;  %v9770_v21 = vadd.f32 %v9769_v8, %v9768_v26  ;;  %v9733_v29 = vadd.f32 %v15069_v1, %v15052_v57  ;;  %v17226_v32 = vld [vmem:[#allocation45_spill] sm:$0xff]  ;;  %v9739_v1 = vadd.f32 %v15109_v27, %v15101_v49 }
0x103f   :  { %v9771_v17 = vpop.f32.mrf.mxu0  ;;  %v6543_v58 = vpop.f32.mrf.mxu1  ;;  %v6413_v57 = vadd.f32 %v15096_v44, %v17226_v32  ;;  %v6421_v49 = vadd.f32 %v15125_v43, %v17228_v56 }
0x1040   :  { %v6469_v55 = vadd.f32 %v9770_v21, %v6397_v31  ;;  %6636 = vrot.lane.b32.xlu0 %v15147_v10, %s10976_s6  ;;  %6630 = vrot.lane.b32.xlu1 %v15135_v62, %s10978_s28  ;;  %v6408_v20 = vadd.f32 %v9733_v29, %v17225_v22  ;;  %v6598_v22 = vsel %vm123_vm1, %v15133_v45, 0.0 }
0x1041   :  { %v9772_v23 = vpop.f32.mrf.mxu0  ;;  %v10085_v16 = vpop.f32.mrf.mxu1 }
0x1042   :  { %v15154_v52 = vadd.f32 %v6540_v53, %v6469_v55  ;;  %v9773_v46 = vadd.f32 %v9772_v23, %v9771_v17 }
0x1043   :  { %v9774_v25 = vpop.f32.mrf.mxu0  ;;  %v6548_v63 = vpop.f32.mrf.mxu1 }
0x1044   :  { %v6472_v13 = vadd.f32 %v9773_v46, %v6400_v60  ;;  %6644 = vrot.lane.b32.xlu0 %v15147_v10, %s10978_s28  ;;  %6640 = vrot.lane.b32.xlu1 %v15147_v10, %s10977_s5  ;;  %v6416_v60 = vadd.f32 %v9739_v1, %v17227_v11 }
0x1045   :  { %v9775_v19 = vpop.f32.mrf.mxu0  ;;  %v10088_v33 = vpop.f32.mrf.mxu1 }
0x1046   :  { %v15164_v24 = vadd.f32 %v6543_v58, %v6472_v13  ;;  %v9776_v59 = vadd.f32 %v9775_v19, %v9774_v25 }
0x1047   :  { %v9777_v4 = vpop.f32.mrf.mxu0  ;;  %v6551_v47 = vpop.f32.mrf.mxu1 }
0x1048   :  { %v6477_v51 = vadd.f32 %v9776_v59, %v6405_v18 }
0x1049   :  { %v9778_v5 = vpop.f32.mrf.mxu0  ;;  %v10089_v36 = vpop.f32.mrf.mxu1 }
0x104a   :  { %v15167_v26 = vadd.f32 %v6548_v63, %v6477_v51  ;;  %v9779_v53 = vadd.f32 %v9778_v5, %v9777_v4  ;;  %v6599_v36 = vsel %vm123_vm1, %v15145_v34, 0.0 }
0x104b   :  { %v9780_v35 = vpop.f32.mrf.mxu0  ;;  %v6556_v2 = vpop.f32.mrf.mxu1  ;;  %v6600_v43 = vadd.f32 %v6599_v36, %v6598_v22 }
0x104c   :  { %v6480_v31 = vadd.f32 %v9779_v53, %v6408_v20  ;;  %v6601_v20 = vsel %vm123_vm1, %v15154_v52, 0.0  ;;  %v6603_v53 = vsel %vm123_vm1, %v15164_v24, 0.0 }
0x104d   :  { %v9781_v6 = vpop.f32.mrf.mxu0  ;;  %v10092_v8 = vpop.f32.mrf.mxu1 }
0x104e   :  { %v15173_v28 = vadd.f32 %v6551_v47, %v6480_v31  ;;  %v9782_v21 = vadd.f32 %v9781_v6, %v9780_v35  ;;  %v6602_v35 = vadd.f32 %v6601_v20, %v6600_v43 }
0x104f   :  { %v9783_v17 = vpop.f32.mrf.mxu0  ;;  %v6559_v58 = vpop.f32.mrf.mxu1 }
0x1050   :  { %v6485_v55 = vadd.f32 %v9782_v21, %v6413_v57  ;;  %v6604_v31 = vadd.f32 %v6603_v53, %v6602_v35  ;;  %v6607_v6 = vsel %vm123_vm1, %v15173_v28, 0.0 }
0x1051   :  { %v9784_v23 = vpop.f32.mrf.mxu0  ;;  %v10093_v16 = vpop.f32.mrf.mxu1 }
0x1052   :  { %v15176_v46 = vadd.f32 %v6556_v2, %v6485_v55  ;;  %v9785_v25 = vadd.f32 %v9784_v23, %v9783_v17  ;;  %v6605_v2 = vsel %vm123_vm1, %v15167_v26, 0.0 }
0x1053   :  { %v9786_v63 = vpop.f32.mrf.mxu0  ;;  %v6564_v13 = vpop.f32.mrf.mxu1  ;;  %v6606_v8 = vadd.f32 %v6605_v2, %v6604_v31  ;;  %v17229_v31 = vld [vmem:[#allocation3_spill] sm:$0xff] }
0x1054   :  { %v6488_v19 = vadd.f32 %v9785_v25, %v6416_v60  ;;  %v6609_v32 = vsel %vm123_vm1, %v15176_v46, 0.0 }
0x1055   :  { %v9787_v44 = vpop.f32.mrf.mxu0  ;;  %v10096_v33 = vpop.f32.mrf.mxu1  ;;  %v6608_v57 = vadd.f32 %v6607_v6, %v6606_v8 }
0x1056   :  { %v15180_v27 = vadd.f32 %v6559_v58, %v6488_v19  ;;  %v9788_v18 = vadd.f32 %v9787_v44, %v9786_v63 }
0x1057   :  { %v9789_v29 = vpop.f32.mrf.mxu0  ;;  %v6567_v59 = vpop.f32.mrf.mxu1  ;;  %v6610_v21 = vadd.f32 %v6609_v32, %v6608_v57 }
0x1058   :  { %v6493_v4 = vadd.f32 %v9788_v18, %v6421_v49  ;;  %v6611_v1 = vsel %vm123_vm1, %v15180_v27, 0.0 }
0x1059   :  { %v9790_v47 = vpop.f32.mrf.mxu0  ;;  %v10097_v51 = vpop.f32.mrf.mxu1  ;;  %v6612_v58 = vadd.f32 %v6611_v1, %v6610_v21 }
0x105a   :  { %v15182_v5 = vadd.f32 %v6564_v13, %v6493_v4 }
0x105c   :  { %v6613_v17 = vsel %vm123_vm1, %v15182_v5, 0.0 }
0x105d   :  { %v6614_v55 = vadd.f32 %v6613_v17, %v6612_v58 }
0x105f   :  { %v6615_v23 = vrot.slane %v6614_v55, 4 }
0x1061   :  { %v6616_v16 = vadd.f32 %v6615_v23, %v6614_v55 }
0x1063   :  { %v6617_v63 = vrot.slane %v6616_v16, 2 }
0x1065   :  { %v6618_v33 = vadd.f32 %v6617_v63, %v6616_v16 }
0x1067   :  { %v6619_v18 = vrot.slane %v6618_v33, 1 }
0x1069   :  { %v6620_v51 = vadd.f32 %v6619_v18, %v6618_v33 }
0x10ae   :  { %v6627_v11 = vpop.permute.xlu0 %6626  ;;  %v6623_v60 = vpop.permute.xlu1 %6622 }
0x10af   :  { %v6625_v25 = vadd.f32 %v6623_v60, %v15135_v62 }
0x10b1   :  { %v6629_v13 = vadd.f32 %v6627_v11, %v6625_v25 }
0x10b2   :  { %v6631_v19 = vpop.permute.xlu1 %6630  ;;  %v6637_v56 = vpop.permute.xlu0 %6636 }
0x10b3   :  { %v6633_v44 = vadd.f32 %v6631_v19, %v6629_v13 }
0x10b5   :  { %v6634_v49 = vadd.f32 %v6633_v44, %v15147_v10 }
0x10b6   :  { %v6641_v59 = vpop.permute.xlu1 %6640  ;;  %v6645_v47 = vpop.permute.xlu0 %6644 }
0x10b7   :  { %v6639_v29 = vadd.f32 %v6637_v56, %v6634_v49 }
0x10b9   :  { %v6643_v4 = vadd.f32 %v6641_v59, %v6639_v29 }
0x10bb   :  { %v6647_v36 = vadd.f32 %v6645_v47, %v6643_v4 }
0x10bd   :  { %v6648_v22 = vadd.f32 %v6647_v36, %v6620_v51 }
0x10bf   :  { %v15204_v20 = vmul.f32 0.0015432099, %v6648_v22 }
0x10c1   :  { %6654 = vrot.lane.b32.xlu0 %v15204_v20, %s10977_s5  ;;  %6651 = vrot.lane.b32.xlu1 %v15204_v20, %s10978_s28 }
0x10c5   :  { %6657 = vrot.lane.b32.xlu1 %v15204_v20, %s10976_s6 }
0x1133   :  { %v6652_v62 = vpop.permute.xlu1 %6651  ;;  %v6655_v10 = vpop.permute.xlu0 %6654 }
0x1134   :  { %v6660_v43 = vsel %vm123_vm1, %v15204_v20, %v6652_v62 }
0x1135   :  { %v6661_v53 = vsel %vm254_vm3, %v6660_v43, %v6655_v10 }
0x1137   :  { %v6658_v35 = vpop.permute.xlu1 %6657 }
0x1138   :  { %v6662_v2 = vsel %vm211_vm2, %v6661_v53, %v6658_v35 }
0x1139   :  { %v6666_v6 = vrot.slane %v6662_v2, %v17229_v31 }
0x113b   :  { %v15218_v8 = vsub.f32 %v15039_v41, %v6666_v6  ;;  %v15221_v32 = vsub.f32 %v15031_v37, %v6666_v6  ;;  %v15224_v57 = vsub.f32 %v15041_v39, %v6666_v6  ;;  %v15227_v1 = vsub.f32 %v15059_v14, %v6666_v6 }
0x113c   :  { %v15234_v58 = vsub.f32 %v15074_v30, %v6666_v6  ;;  %v15239_v55 = vsub.f32 %v15048_v38, %v6666_v6  ;;  %v15242_v39 = vsub.f32 %v15036_v9, %v6666_v6  ;;  %v15245_v14 = vsub.f32 %v15050_v0, %v6666_v6 }
0x113d   :  { %v6698_v21 = vmul.f32 %v15218_v8, %v15218_v8  ;;  %v6701_v17 = vmul.f32 %v15221_v32, %v15221_v32  ;;  %v6704_v41 = vmul.f32 %v15224_v57, %v15224_v57  ;;  %v15248_v23 = vsub.f32 %v15084_v54, %v6666_v6 }
0x113e   :  { %v6707_v30 = vmul.f32 %v15227_v1, %v15227_v1  ;;  %v15253_v11 = vsub.f32 %v15067_v48, %v6666_v6  ;;  %v6699_v38 = vmul.f32 %v15239_v55, %v15239_v55  ;;  %v6702_v9 = vmul.f32 %v15242_v39, %v15242_v39 }
0x113f   :  { %v6725_v37 = vadd.f32 %v6701_v17, %v6698_v21  ;;  %v15260_v60 = vsub.f32 %v15094_v40, %v6666_v6  ;;  %v6710_v0 = vmul.f32 %v15234_v58, %v15234_v58  ;;  %v15265_v25 = vsub.f32 %v15082_v7, %v6666_v6 }
0x1140   :  { %v6705_v48 = vmul.f32 %v15245_v14, %v15245_v14  ;;  %v6739_v63 = vadd.f32 %v6702_v9, %v6699_v38  ;;  %v15270_v13 = vsub.f32 %v15107_v3, %v6666_v6  ;;  %v6713_v19 = vmul.f32 %v15248_v23, %v15248_v23 }
0x1141   :  { %v6726_v16 = vadd.f32 %v6725_v37, %v6704_v41  ;;  %v15275_v40 = vsub.f32 %v15092_v15, %v6666_v6  ;;  %v6708_v33 = vmul.f32 %v15253_v11, %v15253_v11  ;;  %v15280_v7 = vsub.f32 %v15119_v42, %v6666_v6 }
0x1142   :  { %v6740_v56 = vadd.f32 %v6739_v63, %v6705_v48  ;;  %v6716_v49 = vmul.f32 %v15260_v60, %v15260_v60  ;;  %v15285_v3 = vsub.f32 %v15105_v50, %v6666_v6  ;;  %v6711_v29 = vmul.f32 %v15265_v25, %v15265_v25  ;;  %v10728_v63 = vld [vmem:[%s16776_s21 + $0x4c8] ss:$36 sps:$4 sm:$0xff]  }
0x1143   :  { %v6727_v54 = vadd.f32 %v6726_v16, %v6707_v30  ;;  %v6719_v15 = vmul.f32 %v15270_v13, %v15270_v13  ;;  %v15292_v47 = vsub.f32 %v15114_v61, %v6666_v6  ;;  %v6714_v42 = vmul.f32 %v15275_v40, %v15275_v40 }
0x1144   :  { %v6741_v59 = vadd.f32 %v6740_v56, %v6708_v33  ;;  %v6722_v36 = vmul.f32 %v15280_v7, %v15280_v7  ;;  %v15299_v22 = vsub.f32 %v15123_v12, %v6666_v6  ;;  %v6717_v62 = vmul.f32 %v15285_v3, %v15285_v3  ;;  %v10733_v33 = vld [vmem:[%s16776_s21 + $0x484] ss:$36 sps:$4 sm:$0xff]  }
0x1145   :  { %v6728_v44 = vadd.f32 %v6727_v54, %v6710_v0  ;;  %v6720_v61 = vmul.f32 %v15292_v47, %v15292_v47  ;;  %v15337_v56 = vrot.slane %v15204_v20, %v17229_v31  ;;  %v10739_v20 = vld [vmem:[%s16776_s21 + $0x204] ss:$36 sps:$4 sm:$0xff]  }
0x1146   :  { %v6742_v51 = vadd.f32 %v6741_v59, %v6711_v29  ;;  %v6723_v2 = vmul.f32 %v15299_v22, %v15299_v22  ;;  %v10734_v29 = vld [vmem:[%s16776_s21 + $0x1f8] ss:$36 sps:$4 sm:$0xff]  }
0x1147   :  { %v6729_v18 = vadd.f32 %v6728_v44, %v6713_v19  ;;  %v10730_v19 = vld [vmem:[%s16776_s21 + $0x4cc] ss:$36 sps:$4 sm:$0xff]   ;;  %v10731_v44 = vld [vmem:[%s16776_s21 + $0x480] ss:$36 sps:$4 sm:$0xff]  }
0x1148   :  { %v6743_v10 = vadd.f32 %v6742_v51, %v6714_v42  ;;  %8112 = vmatprep.subr.bf16.mxu1 %v10730_v19  ;;  %v10736_v59 = vld [vmem:[%s16776_s21 + $0x1fc] ss:$36 sps:$4 sm:$0xff]   ;;  %v10748_v42 = vld [vmem:[%s16776_s21 + $0x16c] ss:$36 sps:$4 sm:$0xff]   ;;  %v15371_v51 = vsub.f32 %v15154_v52, %v15337_v56 }
0x1149   :  { %v6730_v4 = vadd.f32 %v6729_v18, %v6716_v49  ;;  %8113 = vmatpush1.bf16.msra.mxu1 %v10728_v63  ;;  %v15341_v49 = vsub.f32 %v15133_v45, %v15337_v56  ;;  %v15345_v18 = vsub.f32 %v15145_v34, %v15337_v56  ;;  %v10742_v45 = vld [vmem:[%s16776_s21 + $0x1b4] ss:$36 sps:$4 sm:$0xff]   ;;  %8019 = vmatprep.subr.bf16.mxu0 %v10736_v59  ;;  %v10770_v19 = vld [vmem:[%s16776_s21 + $0x48] ss:$36 sps:$4 sm:$0xff]  }
0x114a   :  { %v6744_v53 = vadd.f32 %v6743_v10, %v6717_v62  ;;  %8114 = vmatprep.subr.bf16.mxu1 %v10733_v33  ;;  %8020 = vmatpush1.bf16.msra.mxu0 %v10734_v29  ;;  %v10746_v62 = vld [vmem:[%s16776_s21 + $0x168] ss:$36 sps:$4 sm:$0xff]   ;;  %v6706_v52 = vmul.f32 %v15371_v51, %v15371_v51 }
0x114b   :  { %v6731_v50 = vadd.f32 %v6730_v4, %v6719_v15  ;;  %v6700_v34 = vmul.f32 %v15341_v49, %v15341_v49  ;;  %v6703_v15 = vmul.f32 %v15345_v18, %v15345_v18  ;;  %v10740_v4 = vld [vmem:[%s16776_s21 + $0x1b0] ss:$36 sps:$4 sm:$0xff]   ;;  %8021 = vmatprep.subr.bf16.mxu0 %v10742_v45  ;;  %v10754_v10 = vld [vmem:[%s16776_s21 + $0x124] ss:$36 sps:$4 sm:$0xff]  }
0x114c   :  { %v6745_v21 = vadd.f32 %v6744_v53, %v6720_v61  ;;  %v10752_v53 = vld [vmem:[%s16776_s21 + $0x120] ss:$36 sps:$4 sm:$0xff]  }
0x114d   :  { %v6732_v43 = vadd.f32 %v6731_v50, %v6722_v36  ;;  %8115 = vmatpush1.bf16.msra.mxu1 %v10731_v44  ;;  %v6753_v36 = vsel %vm123_vm1, %v6700_v34, 0.0  ;;  %v6754_v50 = vsel %vm123_vm1, %v6703_v15, 0.0  ;;  %v10778_v33 = vld [vmem:[%s16776_s21 + $0x4] ss:$36 sps:$4 sm:$0xff]   ;;  %v10784_v15 = vld [vmem:[%s16776_s21 + $0x43c] ss:$36 sps:$4 sm:$0xff]  }
0x114e   :  { %v6746_v41 = vadd.f32 %v6745_v21, %v6723_v2  ;;  %8181 = vmatprep.subr.bf16.mxu1 %v10739_v20  ;;  %8022 = vmatpush1.bf16.msra.mxu0 %v10740_v4  ;;  %v6755_v61 = vadd.f32 %v6754_v50, %v6753_v36  ;;  %v15395_v2 = vsub.f32 %v15167_v26, %v15337_v56  ;;  %v6756_v21 = vsel %vm123_vm1, %v6706_v52, 0.0  ;;  %v10766_v26 = vld [vmem:[%s16776_s21 + $0x94] ss:$36 sps:$4 sm:$0xff]   ;;  %v10776_v45 = vld [vmem:[%s16776_s21] ss:$36 sps:$4 sm:$0xff]  }
0x114f   :  { %v6733_v35 = vrot.slane %v6732_v43, 4  ;;  %8023 = vmatprep.subr.bf16.mxu0 %v10748_v42  ;;  %v15451_v4 = vsub.f32 %v15182_v5, %v15337_v56  ;;  %v10782_v42 = vld [vmem:[%s16776_s21 + $0x438] ss:$36 sps:$4 sm:$0xff]  }
0x1150   :  { %v6747_v30 = vrot.slane %v6746_v41, 4  ;;  %v10790_v50 = vld [vmem:[%s16776_s21 + $0x3f4] ss:$36 sps:$4 sm:$0xff]  }
0x1151   :  { %v6734_v17 = vadd.f32 %v6733_v35, %v6732_v43  ;;  %v15383_v43 = vsub.f32 %v15164_v24, %v15337_v56  ;;  %v10760_v35 = vld [vmem:[%s16776_s21 + $0xdc] ss:$36 sps:$4 sm:$0xff]  }
0x1152   :  { %v6748_v6 = vadd.f32 %v6747_v30, %v6746_v41  ;;  %8024 = vmatpush1.bf16.msra.mxu0 %v10746_v62  ;;  %v15402_v41 = vsub.f32 %v15173_v28, %v15337_v56  ;;  %v15412_v30 = vsub.f32 %v15176_v46, %v15337_v56  ;;  %v6712_v28 = vmul.f32 %v15395_v2, %v15395_v2  ;;  %v10772_v46 = vld [vmem:[%s16776_s21 + $0x4c] ss:$36 sps:$4 sm:$0xff]  }
0x1153   :  { %v6735_v37 = vrot.slane %v6734_v17, 2  ;;  %8025 = vmatprep.subr.bf16.mxu0 %v10754_v10  ;;  %v6709_v24 = vmul.f32 %v15383_v43, %v15383_v43  ;;  %v6724_v62 = vmul.f32 %v15451_v4, %v15451_v4  ;;  %v10788_v10 = vld [vmem:[%s16776_s21 + $0x3f0] ss:$36 sps:$4 sm:$0xff]  }
0x1154   :  { %v6749_v38 = vrot.slane %v6748_v6, 2  ;;  %v6760_v63 = vsel %vm123_vm1, %v6712_v28, 0.0 }
0x1155   :  { %v6736_v12 = vadd.f32 %v6735_v37, %v6734_v17  ;;  %v6757_v17 = vadd.f32 %v6756_v21, %v6755_v61  ;;  %v10758_v37 = vld [vmem:[%s16776_s21 + $0xd8] ss:$36 sps:$4 sm:$0xff]   ;;  %v6768_v52 = vsel %vm123_vm1, %v6724_v62, 0.0  ;;  %v10800_v21 = vld [vmem:[%s16776_s21 + $0x360] ss:$36 sps:$4 sm:$0xff]  }
0x1156   :  { %v6750_v0 = vadd.f32 %v6749_v38, %v6748_v6  ;;  %8026 = vmatpush1.bf16.msra.mxu0 %v10752_v53  ;;  %v6758_v6 = vsel %vm123_vm1, %v6709_v24, 0.0  ;;  %v10794_v53 = vld [vmem:[%s16776_s21 + $0x3a8] ss:$36 sps:$4 sm:$0xff]  }
0x1157   :  { %v6737_v16 = vrot.slane %v6736_v12, 1  ;;  %8027 = vmatprep.subr.bf16.mxu0 %v10760_v35  ;;  %v6759_v38 = vadd.f32 %v6758_v6, %v6757_v17  ;;  %v10802_v35 = vld [vmem:[%s16776_s21 + $0x364] ss:$36 sps:$4 sm:$0xff]   ;;  %v10820_v62 = vld [vmem:[%s16776_s21 + $0x28c] ss:$36 sps:$4 sm:$0xff]  }
0x1158   :  { %v6751_v54 = vrot.slane %v6750_v0, 1 }
0x1159   :  { %v15307_v9 = vadd.f32 %v6737_v16, %v6736_v12  ;;  %v15416_v12 = vsub.f32 %v15180_v27, %v15337_v56  ;;  %v10764_v16 = vld [vmem:[%s16776_s21 + $0x90] ss:$36 sps:$4 sm:$0xff]   ;;  %v6718_v27 = vmul.f32 %v15412_v30, %v15412_v30  ;;  %v6761_v44 = vadd.f32 %v6760_v63, %v6759_v38 }
0x115a   :  { %v15313_v48 = vadd.f32 %v6751_v54, %v6750_v0  ;;  %v6715_v0 = vmul.f32 %v15402_v41, %v15402_v41  ;;  %8028 = vmatpush1.bf16.msra.mxu0 %v10758_v37  ;;  %v10796_v56 = vld [vmem:[%s16776_s21 + $0x3ac] ss:$36 sps:$4 sm:$0xff]  }
0x115b   :  { %6781 = vrot.lane.b32.xlu1 %v15307_v9, %s10977_s5  ;;  %6777 = vrot.lane.b32.xlu0 %v15307_v9, %s10976_s6  ;;  %v6721_v54 = vmul.f32 %v15416_v12, %v15416_v12  ;;  %v6764_v59 = vsel %vm123_vm1, %v6718_v27, 0.0 }
0x115c   :  { %8029 = vmatprep.subr.bf16.mxu0 %v10766_v26  ;;  %v6762_v29 = vsel %vm123_vm1, %v6715_v0, 0.0 }
0x115d   :  { %v6766_v20 = vsel %vm123_vm1, %v6721_v54, 0.0  ;;  %v6763_v34 = vadd.f32 %v6762_v29, %v6761_v44 }
0x115e   :  { %8030 = vmatpush1.bf16.msra.mxu0 %v10764_v16 }
0x115f   :  { %6785 = vrot.lane.b32.xlu0 %v15307_v9, %s10978_s28  ;;  %6791 = vrot.lane.b32.xlu1 %v15313_v48, %s10976_s6  ;;  %v6765_v36 = vadd.f32 %v6764_v59, %v6763_v34 }
0x1160   :  { %8031 = vmatprep.subr.bf16.mxu0 %v10772_v46 }
0x1161   :  { %v6767_v5 = vadd.f32 %v6766_v20, %v6765_v36  ;;  %v10814_v36 = vld [vmem:[%s16776_s21 + $0x2d4] ss:$36 sps:$4 sm:$0xff]  }
0x1162   :  { %8032 = vmatpush1.bf16.msra.mxu0 %v10770_v19 }
0x1163   :  { %6795 = vrot.lane.b32.xlu0 %v15313_v48, %s10977_s5  ;;  %6799 = vrot.lane.b32.xlu1 %v15313_v48, %s10978_s28  ;;  %v6769_v61 = vadd.f32 %v6768_v52, %v6767_v5  ;;  %v15500_v5 = vld [vmem:[%s16778_s20] sm:$0x7] }
0x1164   :  { %8033 = vmatprep.subr.bf16.mxu0 %v10778_v33 }
0x1165   :  { %v6770_v24 = vrot.slane %v6769_v61, 4 }
0x1166   :  { %8034 = vmatpush1.bf16.msra.mxu0 %v10776_v45 }
0x1167   :  { %8035 = vmatprep.subr.bf16.mxu0 %v10784_v15  ;;  %v6771_v17 = vadd.f32 %v6770_v24, %v6769_v61  ;;  %v10826_v61 = vld [vmem:[%s16776_s21 + $0x244] ss:$36 sps:$4 sm:$0xff]  }
0x1169   :  { %v6772_v6 = vrot.slane %v6771_v17, 2 }
0x116a   :  { %8036 = vmatpush2.bf16.msra.mxu0 %v10782_v42  ;;  %v10808_v42 = vld [vmem:[%s16776_s21 + $0x31c] ss:$36 sps:$4 sm:$0xff]  }
0x116b   :  { %8037 = vmatprep.subr.bf16.mxu0 %v10790_v50  ;;  %v6773_v0 = vadd.f32 %v6772_v6, %v6771_v17  ;;  %v6805_v50 = vld [vmem:[%s16777_s19] sm:$0x1] }
0x116d   :  { %v6774_v19 = vrot.slane %v6773_v0, 1 }
0x116e   :  { %8038 = vmatpush2.bf16.msra.mxu0 %v10788_v10 }
0x116f   :  { %8039 = vmatprep.subr.bf16.mxu0 %v10796_v56  ;;  %v6775_v59 = vadd.f32 %v6774_v19, %v6773_v0  ;;  %v10818_v56 = vld [vmem:[%s16776_s21 + $0x288] ss:$36 sps:$4 sm:$0xff]  }
0x1172   :  { %8040 = vmatpush2.bf16.msra.mxu0 %v10794_v53 }
0x1173   :  { %8041 = vmatprep.subr.bf16.mxu0 %v10802_v35  ;;  %v17230_v35 = vld [vmem:[#allocation27_spill] sm:$0xff] }
0x1174   :  { %v15516_v24 = vrot.slane %v15500_v5, %v17230_v35 }
0x1176   :  { %8042 = vmatpush2.bf16.msra.mxu0 %v10800_v21  ;;  %v10824_v21 = vld [vmem:[%s16776_s21 + $0x240] ss:$36 sps:$4 sm:$0xff]  }
0x1177   :  { %8043 = vmatprep.subr.bf16.mxu0 %v10808_v42 }
0x11cd   :  { %v6782_v37 = vpop.permute.xlu1 %6781  ;;  %v6778_v26 = vpop.permute.xlu0 %6777 }
0x11ce   :  { %v6780_v28 = vadd.f32 %v6778_v26, %v15307_v9  ;;  %v10806_v9 = vld [vmem:[%s16776_s21 + $0x318] ss:$36 sps:$4 sm:$0xff]  }
0x11cf   :  { %8044 = vmatpush2.bf16.msra.mxu0 %v10806_v9 }
0x11d0   :  { %v6784_v16 = vadd.f32 %v6782_v37, %v6780_v28  ;;  %8045 = vmatprep.subr.bf16.mxu0 %v10814_v36 }
0x11d1   :  { %v6786_v38 = vpop.permute.xlu0 %6785  ;;  %v6792_v27 = vpop.permute.xlu1 %6791 }
0x11d2   :  { %v6788_v46 = vadd.f32 %v6786_v38, %v6784_v16  ;;  %v10832_v38 = vld [vmem:[%s16776_s21 + $0x4d4] ss:$36 sps:$4 sm:$0xff]  }
0x11d4   :  { %v6789_v54 = vadd.f32 %v6788_v46, %v15313_v48  ;;  %v10812_v48 = vld [vmem:[%s16776_s21 + $0x2d0] ss:$36 sps:$4 sm:$0xff]   ;;  %v10737_v46 = vld [vmem:[%s16776_s21 + $0x200] ss:$36 sps:$4 sm:$0xff]  }
0x11d5   :  { %v6796_v44 = vpop.permute.xlu0 %6795  ;;  %v6800_v29 = vpop.permute.xlu1 %6799  ;;  %8046 = vmatpush2.bf16.msra.mxu0 %v10812_v48 }
0x11d6   :  { %v6794_v63 = vadd.f32 %v6792_v27, %v6789_v54  ;;  %8047 = vmatprep.subr.bf16.mxu0 %v10820_v62  ;;  %v10745_v27 = vld [vmem:[%s16776_s21 + $0x1bc] ss:$36 sps:$4 sm:$0xff]   ;;  %v17231_v54 = vmov 0  }
0x11d7   :  { %v10761_v62 = vld [vmem:[%s16776_s21 + $0xe0] ss:$36 sps:$4 sm:$0xff]  }
0x11d8   :  { %v6798_v33 = vadd.f32 %v6796_v44, %v6794_v63  ;;  %v10743_v63 = vld [vmem:[%s16776_s21 + $0x1b8] ss:$36 sps:$4 sm:$0xff]  }
0x11d9   :  { %8048 = vmatpush2.bf16.msra.mxu0 %v10818_v56 }
0x11da   :  { %v6802_v20 = vadd.f32 %v6800_v29, %v6798_v33  ;;  %8049 = vmatprep.subr.bf16.mxu0 %v10826_v61 }
0x11dc   :  { %v6803_v45 = vadd.f32 %v6802_v20, %v6775_v59  ;;  %v10751_v59 = vld [vmem:[%s16776_s21 + $0x174] ss:$36 sps:$4 sm:$0xff]  }
0x11dd   :  { %8050 = vmatpush2.bf16.msra.mxu0 %v10824_v21  ;;  %v10749_v20 = vld [vmem:[%s16776_s21 + $0x170] ss:$36 sps:$4 sm:$0xff]  }
0x11de   :  { %v6804_v34 = vmul.f32 0.0015432099, %v6803_v45  ;;  %8274 = vmatprep.subr.bf16.mxu0 %v10832_v38  ;;  %v10781_v38 = vld [vmem:[%s16776_s21 + $0xc] ss:$36 sps:$4 sm:$0xff]  }
0x11e0   :  { %v6806_v15 = vadd.f32 1e-05, %v6804_v34 }
0x11e2   :  { %10970 = vrsqrt.f32 %v6806_v15 }
0x11ef   :  { %v10971_v10 = vpop.eup %10970 }
0x11f0   :  { %v15505_v52 = vmul.f32 %v10971_v10, %v6805_v50  ;;  %v10763_v50 = vld [vmem:[%s16776_s21 + $0xe4] ss:$36 sps:$4 sm:$0xff]  }
0x11f2   :  { %v15512_v53 = vrot.slane %v15505_v52, %v17229_v31 }
0x11f4   :  { %6817 = vrot.lane.b32.xlu1 %v15512_v53, %s10977_s5  ;;  %6814 = vrot.lane.b32.xlu0 %v15512_v53, %s10978_s28  ;;  %v6836_v17 = vmul.f32 %v15512_v53, %v15341_v49  ;;  %v6839_v37 = vmul.f32 %v15512_v53, %v15345_v18  ;;  %v6842_v6 = vmul.f32 %v15512_v53, %v15371_v51 }
0x11f5   :  { %v6845_v16 = vmul.f32 %v15512_v53, %v15383_v43  ;;  %v6848_v33 = vmul.f32 %v15512_v53, %v15395_v2  ;;  %v6851_v29 = vmul.f32 %v15512_v53, %v15402_v41  ;;  %v10757_v2 = vld [vmem:[%s16776_s21 + $0x12c] ss:$36 sps:$4 sm:$0xff]   ;;  %v6854_v48 = vmul.f32 %v15512_v53, %v15412_v30  ;;  %v10769_v30 = vld [vmem:[%s16776_s21 + $0x9c] ss:$36 sps:$4 sm:$0xff]  }
0x11f6   :  { %v6880_v26 = vadd.f32 %v15516_v24, %v6836_v17  ;;  %v6883_v28 = vadd.f32 %v15516_v24, %v6839_v37  ;;  %v6886_v51 = vadd.f32 %v15516_v24, %v6842_v6  ;;  %v10755_v41 = vld [vmem:[%s16776_s21 + $0x128] ss:$36 sps:$4 sm:$0xff]   ;;  %v6857_v36 = vmul.f32 %v15512_v53, %v15416_v12  ;;  %v10767_v12 = vld [vmem:[%s16776_s21 + $0x98] ss:$36 sps:$4 sm:$0xff]  }
0x11f7   :  { %v6889_v43 = vadd.f32 %v15516_v24, %v6845_v16  ;;  %v6892_v34 = vadd.f32 %v15516_v24, %v6848_v33  ;;  %v6895_v15 = vadd.f32 %v15516_v24, %v6851_v29  ;;  %v6898_v56 = vadd.f32 %v15516_v24, %v6854_v48  ;;  %v10809_v33 = vld [vmem:[%s16776_s21 + $0x320] ss:$36 sps:$4 sm:$0xff]  }
0x11f8   :  { %6820 = vrot.lane.b32.xlu0 %v15512_v53, %s10976_s6  ;;  %v6907_v49 = vmax.f32 %v6880_v26, 0.0  ;;  %v6910_v18 = vmax.f32 %v6883_v28, 0.0  ;;  %v6913_v19 = vmax.f32 %v6886_v51, 0.0  ;;  %v6901_v61 = vadd.f32 %v15516_v24, %v6857_v36  ;;  %v10775_v26 = vld [vmem:[%s16776_s21 + $0x54] ss:$36 sps:$4 sm:$0xff]  }
0x11f9   :  { %v6916_v44 = vmax.f32 %v6889_v43, 0.0  ;;  %v6919_v9 = vmax.f32 %v6892_v34, 0.0  ;;  %v6922_v42 = vmax.f32 %v6895_v15, 0.0  ;;  %v6925_v21 = vmax.f32 %v6898_v56, 0.0  ;;  %v10773_v28 = vld [vmem:[%s16776_s21 + $0x50] ss:$36 sps:$4 sm:$0xff]  }
0x11fa   :  { %v15543_v0 = vpack.c.bf16 %v6910_v18, %v6907_v49  ;;  %v6928_v17 = vmax.f32 %v6901_v61, 0.0  ;;  %v6860_v37 = vmul.f32 %v15512_v53, %v15451_v4  ;;  %v10779_v4 = vld [vmem:[%s16776_s21 + $0x8] ss:$36 sps:$4 sm:$0xff]   ;;  %v10785_v49 = vld [vmem:[%s16776_s21 + $0x440] ss:$36 sps:$4 sm:$0xff]   ;;  %v17232_v61 = vld [vmem:[#allocation25_spill] sm:$0xff] }
0x11fb   :  { %v15566_v45 = vpack.c.bf16 %v6916_v44, %v6913_v19  ;;  %v15589_v10 = vpack.c.bf16 %v6922_v42, %v6919_v9  ;;  %v10791_v51 = vld [vmem:[%s16776_s21 + $0x3f8] ss:$36 sps:$4 sm:$0xff]   ;;  %v10803_v19 = vld [vmem:[%s16776_s21 + $0x368] ss:$36 sps:$4 sm:$0xff]   ;;  %v10821_v34 = vld [vmem:[%s16776_s21 + $0x290] ss:$36 sps:$4 sm:$0xff]  }
0x11fc   :  { %9510 = vmatmul.mubr.msk.bf16.vlgmr.msra.gmra.mxu1 %vm123_vm1, %v15543_v0  ;;  %v15610_v6 = vpack.c.bf16 %v6928_v17, %v6925_v21  ;;  %v6904_v16 = vadd.f32 %v15516_v24, %v6860_v37  ;;  %v10787_v24 = vld [vmem:[%s16776_s21 + $0x444] ss:$36 sps:$4 sm:$0xff]   ;;  %v10799_v43 = vld [vmem:[%s16776_s21 + $0x3b4] ss:$36 sps:$4 sm:$0xff]   ;;  %v10817_v29 = vld [vmem:[%s16776_s21 + $0x2dc] ss:$36 sps:$4 sm:$0xff]  }
0x11fd   :  { %8142 = vmatprep.mubr.bf16.mxu1 %v17231_v54  ;;  %8182 = vmatpush1.bf16.msra.mxu1 %v10737_v46  ;;  %v10793_v46 = vld [vmem:[%s16776_s21 + $0x3fc] ss:$36 sps:$4 sm:$0xff]   ;;  %v10811_v44 = vld [vmem:[%s16776_s21 + $0x324] ss:$36 sps:$4 sm:$0xff]   ;;  %v10829_v15 = vld [vmem:[%s16776_s21 + $0x24c] ss:$36 sps:$4 sm:$0xff]  }
0x11fe   :  { %8183 = vmatprep.subr.bf16.mxu1 %v10745_v27  ;;  %v6931_v53 = vmax.f32 %v6904_v16, 0.0  ;;  %v10797_v27 = vld [vmem:[%s16776_s21 + $0x3b0] ss:$36 sps:$4 sm:$0xff]  }
0x1200   :  { %v15628_v18 = vpack.c.bf16 %v6931_v53, %v6931_v53 }
0x1201   :  { %8184 = vmatpush1.bf16.msra.mxu1 %v10743_v63  ;;  %v10805_v63 = vld [vmem:[%s16776_s21 + $0x36c] ss:$36 sps:$4 sm:$0xff]  }
0x1202   :  { %8185 = vmatprep.subr.bf16.mxu1 %v10751_v59  ;;  %v10815_v59 = vld [vmem:[%s16776_s21 + $0x2d8] ss:$36 sps:$4 sm:$0xff]  }
0x1204   :  { %9511 = vmatmul.mubr.msk.bf16.gmra.mxu1 %vm123_vm1, %v15566_v45 }
0x1205   :  { %8152 = vmatprep.mubr.bf16.mxu1 %v17231_v54  ;;  %8186 = vmatpush1.bf16.msra.mxu1 %v10749_v20  ;;  %v10823_v20 = vld [vmem:[%s16776_s21 + $0x294] ss:$36 sps:$4 sm:$0xff]  }
0x1206   :  { %8187 = vmatprep.subr.bf16.mxu1 %v10757_v2  ;;  %v10827_v2 = vld [vmem:[%s16776_s21 + $0x248] ss:$36 sps:$4 sm:$0xff]  }
0x1209   :  { %8188 = vmatpush1.bf16.msra.mxu1 %v10755_v41  ;;  %v10838_v41 = vld [vmem:[%s16776_s21 + $0x4dc] ss:$36 sps:$4 sm:$0xff]  }
0x120a   :  { %8189 = vmatprep.subr.bf16.mxu1 %v10763_v50 }
0x120c   :  { %9512 = vmatmul.mubr.msk.bf16.gmra.mxu1 %vm123_vm1, %v15589_v10 }
0x120d   :  { %8162 = vmatprep.mubr.bf16.mxu1 %v17231_v54  ;;  %8190 = vmatpush1.bf16.msra.mxu1 %v10761_v62 }
0x120e   :  { %8191 = vmatprep.subr.bf16.mxu1 %v10769_v30  ;;  %v15686_v30 = vrot.slane %v15500_v5, %v17232_v61 }
0x1211   :  { %8192 = vmatpush1.bf16.msra.mxu1 %v10767_v12  ;;  %v15690_v12 = vrot.slane %v15500_v5, %v17229_v31 }
0x1212   :  { %8193 = vmatprep.subr.bf16.mxu1 %v10775_v26 }
0x1214   :  { %9513 = vmatmul.mubr.msk.bf16.gmra.mxu1 %vm123_vm1, %v15610_v6 }
0x1215   :  { %8172 = vmatprep.mubr.bf16.mxu1 %v17231_v54  ;;  %8194 = vmatpush1.bf16.msra.mxu1 %v10773_v28 }
0x1216   :  { %8195 = vmatprep.subr.bf16.mxu1 %v10781_v38 }
0x1219   :  { %8196 = vmatpush1.bf16.msra.mxu1 %v10779_v4 }
0x121a   :  { %8197 = vmatprep.subr.bf16.mxu1 %v10787_v24 }
0x121c   :  { %9514 = vmatmul.mubr.msk.bf16.gmra.mxu1 %vm123_vm1, %v15628_v18 }
0x121d   :  { %8198 = vmatpush2.bf16.msra.mxu1 %v10785_v49 }
0x121e   :  { %8199 = vmatprep.subr.bf16.mxu1 %v10793_v46 }
0x1221   :  { %8200 = vmatpush2.bf16.msra.mxu1 %v10791_v51 }
0x1222   :  { %8201 = vmatprep.subr.bf16.mxu1 %v10799_v43 }
0x1225   :  { %8202 = vmatpush2.bf16.msra.mxu1 %v10797_v27 }
0x1226   :  { %8203 = vmatprep.subr.bf16.mxu1 %v10805_v63 }
0x1229   :  { %8204 = vmatpush2.bf16.msra.mxu1 %v10803_v19 }
0x122a   :  { %8205 = vmatprep.subr.bf16.mxu1 %v10811_v44  ;;  %v10836_v44 = vld [vmem:[%s16776_s21 + $0x4d8] ss:$36 sps:$4 sm:$0xff]  }
0x122d   :  { %8206 = vmatpush2.bf16.msra.mxu1 %v10809_v33 }
0x122e   :  { %8207 = vmatprep.subr.bf16.mxu1 %v10817_v29  ;;  %v10835_v29 = vld [vmem:[%s16776_s21 + $0x48c] ss:$36 sps:$4 sm:$0xff]  }
0x1231   :  { %8208 = vmatpush2.bf16.msra.mxu1 %v10815_v59  ;;  %v10841_v59 = vld [vmem:[%s16776_s21 + $0x494] ss:$36 sps:$4 sm:$0xff]  }
0x1232   :  { %8209 = vmatprep.subr.bf16.mxu1 %v10823_v20 }
0x1235   :  { %8210 = vmatpush2.bf16.msra.mxu1 %v10821_v34 }
0x1236   :  { %8211 = vmatprep.subr.bf16.mxu1 %v10829_v15 }
0x1239   :  { %8212 = vmatpush2.bf16.msra.mxu1 %v10827_v2 }
0x123a   :  { %8436 = vmatprep.subr.bf16.mxu1 %v10838_v41  ;;  %v10833_v41 = vld [vmem:[%s16776_s21 + $0x488] ss:$36 sps:$4 sm:$0xff]  }
0x1266   :  { %v6815_v9 = vpop.permute.xlu0 %6814  ;;  %v6818_v42 = vpop.permute.xlu1 %6817 }
0x1267   :  { %v6823_v48 = vsel %vm123_vm1, %v15505_v52, %v6815_v9  ;;  %v10839_v9 = vld [vmem:[%s16776_s21 + $0x490] ss:$36 sps:$4 sm:$0xff]  }
0x1268   :  { %v6824_v36 = vsel %vm254_vm3, %v6823_v48, %v6818_v42 }
0x126a   :  { %v6821_v50 = vpop.permute.xlu0 %6820 }
0x126b   :  { %v6825_v62 = vsel %vm211_vm2, %v6824_v36, %v6821_v50  ;;  %v10847_v50 = vld [vmem:[%s16776_s21 + $0x214] ss:$36 sps:$4 sm:$0xff]  }
0x126c   :  { %v15682_v56 = vrot.slane %v6825_v62, %v17229_v31 }
0x126e   :  { %v6835_v21 = vmul.f32 %v15682_v56, %v15239_v55  ;;  %v6838_v52 = vmul.f32 %v15682_v56, %v15242_v39  ;;  %v6834_v17 = vmul.f32 %v15682_v56, %v15218_v8  ;;  %v6837_v37 = vmul.f32 %v15682_v56, %v15221_v32 }
0x126f   :  { %v6841_v26 = vmul.f32 %v15682_v56, %v15245_v14  ;;  %v6844_v28 = vmul.f32 %v15682_v56, %v15253_v11  ;;  %v6840_v32 = vmul.f32 %v15682_v56, %v15224_v57  ;;  %v6843_v14 = vmul.f32 %v15682_v56, %v15227_v1  ;;  %v10830_v57 = vld [vmem:[%s16776_s21 + $0x4d0] ss:$36 sps:$4 sm:$0xff]  }
0x1270   :  { %v6879_v5 = vadd.f32 %v15686_v30, %v6835_v21  ;;  %v6882_v16 = vadd.f32 %v15686_v30, %v6838_v52  ;;  %v6878_v55 = vadd.f32 %v15690_v12, %v6834_v17  ;;  %v6881_v39 = vadd.f32 %v15690_v12, %v6837_v37 }
0x1271   :  { %v6885_v38 = vadd.f32 %v15686_v30, %v6841_v26  ;;  %v6888_v8 = vadd.f32 %v15686_v30, %v6844_v28  ;;  %v6847_v27 = vmul.f32 %v15682_v56, %v15265_v25  ;;  %v6850_v63 = vmul.f32 %v15682_v56, %v15275_v40 }
0x1272   :  { %v6906_v4 = vmax.f32 %v6879_v5, 0.0  ;;  %v6909_v11 = vmax.f32 %v6882_v16, 0.0  ;;  %v6905_v53 = vmax.f32 %v6878_v55, 0.0  ;;  %v6908_v24 = vmax.f32 %v6881_v39, 0.0 }
0x1273   :  { %v6912_v49 = vmax.f32 %v6885_v38, 0.0  ;;  %v6915_v46 = vmax.f32 %v6888_v8, 0.0  ;;  %v6884_v1 = vadd.f32 %v15690_v12, %v6840_v32  ;;  %v6887_v19 = vadd.f32 %v15690_v12, %v6843_v14 }
0x1274   :  { %v15714_v51 = vpack.c.bf16 %v6909_v11, %v6906_v4  ;;  %v15716_v43 = vpack.c.bf16 %v6908_v24, %v6905_v53  ;;  %v6891_v40 = vadd.f32 %v15686_v30, %v6847_v27  ;;  %v6894_v33 = vadd.f32 %v15686_v30, %v6850_v63  ;;  %v10853_v27 = vld [vmem:[%s16776_s21 + $0x1cc] ss:$36 sps:$4 sm:$0xff]   ;;  %v10848_v63 = vld [vmem:[%s16776_s21 + $0x1c0] ss:$36 sps:$4 sm:$0xff]  }
0x1275   :  { %v15732_v25 = vpack.c.bf16 %v6915_v46, %v6912_v49  ;;  %v6911_v20 = vmax.f32 %v6884_v1, 0.0  ;;  %v6914_v34 = vmax.f32 %v6887_v19, 0.0  ;;  %v6846_v15 = vmul.f32 %v15682_v56, %v15234_v58  ;;  %v10856_v1 = vld [vmem:[%s16776_s21 + $0x17c] ss:$36 sps:$4 sm:$0xff]   ;;  %v10859_v19 = vld [vmem:[%s16776_s21 + $0x184] ss:$36 sps:$4 sm:$0xff]  }
0x1276   :  { %8051 = vmatprep.mubr.bf16.mxu0 %v15714_v51  ;;  %8213 = vmatprep.mubr.bf16.mxu1 %v15714_v51  ;;  %v6849_v2 = vmul.f32 %v15682_v56, %v15248_v23  ;;  %v6918_v42 = vmax.f32 %v6891_v40, 0.0  ;;  %v6921_v48 = vmax.f32 %v6894_v33, 0.0  ;;  %v6853_v36 = vmul.f32 %v15682_v56, %v15285_v3  ;;  %v10844_v23 = vld [vmem:[%s16776_s21 + $0x20c] ss:$36 sps:$4 sm:$0xff]   ;;  %v10857_v40 = vld [vmem:[%s16776_s21 + $0x180] ss:$36 sps:$4 sm:$0xff]  }
0x1277   :  { %8052 = vmatmul.mubr.bf16.vlgmr.msra.gmra.mxu0 %v15716_v43  ;;  %8214 = vmatmul.mubr.bf16.vlgmr.msra.gmra.mxu1 %v15716_v43  ;;  %v6856_v58 = vmul.f32 %v15682_v56, %v15292_v47  ;;  %v15766_v62 = vpack.c.bf16 %v6914_v34, %v6911_v20  ;;  %v6890_v21 = vadd.f32 %v15690_v12, %v6846_v15  ;;  %v10862_v33 = vld [vmem:[%s16776_s21 + $0x134] ss:$36 sps:$4 sm:$0xff]   ;;  %v10868_v34 = vld [vmem:[%s16776_s21 + $0xec] ss:$36 sps:$4 sm:$0xff]  }
0x1278   :  { %8061 = vmatprep.mubr.bf16.mxu0 %v15732_v25  ;;  %8223 = vmatprep.mubr.bf16.mxu1 %v15732_v25  ;;  %v6893_v52 = vadd.f32 %v15690_v12, %v6849_v2  ;;  %v15770_v3 = vpack.c.bf16 %v6921_v48, %v6918_v42  ;;  %v6897_v47 = vadd.f32 %v15686_v30, %v6853_v36  ;;  %v10863_v20 = vld [vmem:[%s16776_s21 + $0x138] ss:$36 sps:$4 sm:$0xff]   ;;  %v10866_v2 = vld [vmem:[%s16776_s21 + $0xe8] ss:$36 sps:$4 sm:$0xff]   ;;  %v10872_v48 = vld [vmem:[%s16776_s21 + $0xa0] ss:$36 sps:$4 sm:$0xff]  }
0x1279   :  { %8275 = vmatpush1.bf16.msra.mxu0 %v10830_v57  ;;  %8437 = vmatpush1.bf16.msra.mxu1 %v10836_v44  ;;  %v6900_v17 = vadd.f32 %v15686_v30, %v6856_v58  ;;  %v6917_v37 = vmax.f32 %v6890_v21, 0.0  ;;  %v6852_v28 = vmul.f32 %v15682_v56, %v15260_v60  ;;  %v6855_v5 = vmul.f32 %v15682_v56, %v15270_v13  ;;  %v10851_v57 = vld [vmem:[%s16776_s21 + $0x1c8] ss:$36 sps:$4 sm:$0xff]   ;;  %v10854_v44 = vld [vmem:[%s16776_s21 + $0x178] ss:$36 sps:$4 sm:$0xff]  }
0x127a   :  { %8276 = vmatprep.subr.bf16.mxu0 %v10835_v29  ;;  %8438 = vmatprep.subr.bf16.mxu1 %v10841_v59  ;;  %v6920_v26 = vmax.f32 %v6893_v52, 0.0  ;;  %v6924_v16 = vmax.f32 %v6897_v47, 0.0  ;;  %v6859_v39 = vmul.f32 %v15682_v56, %v15299_v22  ;;  %v6858_v22 = vmul.f32 %v15682_v56, %v15280_v7  ;;  %v10842_v7 = vld [vmem:[%s16776_s21 + $0x208] ss:$36 sps:$4 sm:$0xff]   ;;  %v10845_v56 = vld [vmem:[%s16776_s21 + $0x210] ss:$36 sps:$4 sm:$0xff]  }
0x127b   :  { %v6927_v55 = vmax.f32 %v6900_v17, 0.0  ;;  %v6896_v8 = vadd.f32 %v15690_v12, %v6852_v28  ;;  %v6899_v32 = vadd.f32 %v15690_v12, %v6855_v5  ;;  %v10865_v29 = vld [vmem:[%s16776_s21 + $0x13c] ss:$36 sps:$4 sm:$0xff]   ;;  %v10860_v59 = vld [vmem:[%s16776_s21 + $0x130] ss:$36 sps:$4 sm:$0xff]  }
0x127c   :  { %v15784_v38 = vpack.c.bf16 %v6920_v26, %v6917_v37  ;;  %v6903_v4 = vadd.f32 %v15686_v30, %v6859_v39  ;;  %v6902_v24 = vadd.f32 %v15690_v12, %v6858_v22  ;;  %v10850_v12 = vld [vmem:[%s16776_s21 + $0x1c4] ss:$36 sps:$4 sm:$0xff]   ;;  %v10871_v15 = vld [vmem:[%s16776_s21 + $0xf4] ss:$36 sps:$4 sm:$0xff]   ;;  %v10877_v42 = vld [vmem:[%s16776_s21 + $0xac] ss:$36 sps:$4 sm:$0xff]  }
0x127d   :  { %8277 = vmatpush1.bf16.msra.mxu0 %v10833_v41  ;;  %8439 = vmatpush1.bf16.msra.mxu1 %v10839_v9  ;;  %v15788_v14 = vpack.c.bf16 %v6927_v55, %v6924_v16  ;;  %v6923_v60 = vmax.f32 %v6896_v8, 0.0  ;;  %v6926_v13 = vmax.f32 %v6899_v32, 0.0  ;;  %v10869_v41 = vld [vmem:[%s16776_s21 + $0xf0] ss:$36 sps:$4 sm:$0xff]   ;;  %v10874_v9 = vld [vmem:[%s16776_s21 + $0xa4] ss:$36 sps:$4 sm:$0xff]  }
0x127e   :  { %8343 = vmatprep.subr.bf16.mxu0 %v10844_v23  ;;  %8505 = vmatprep.subr.bf16.mxu1 %v10847_v50  ;;  %v6930_v11 = vmax.f32 %v6903_v4, 0.0  ;;  %v6929_v30 = vmax.f32 %v6902_v24, 0.0  ;;  %v10875_v36 = vld [vmem:[%s16776_s21 + $0xa8] ss:$36 sps:$4 sm:$0xff]   ;;  %v10880_v58 = vld [vmem:[%s16776_s21 + $0x5c] ss:$36 sps:$4 sm:$0xff]  }
0x127f   :  { %8062 = vmatmul.mubr.bf16.gmra.mxu0 %v15766_v62  ;;  %8224 = vmatmul.mubr.bf16.gmra.mxu1 %v15766_v62  ;;  %v15797_v53 = vpack.c.bf16 %v6926_v13, %v6923_v60  ;;  %v10883_v23 = vld [vmem:[%s16776_s21 + $0x64] ss:$36 sps:$4 sm:$0xff]   ;;  %v10878_v50 = vld [vmem:[%s16776_s21 + $0x58] ss:$36 sps:$4 sm:$0xff]   ;;  %v10884_v17 = vld [vmem:[%s16776_s21 + $0x10] ss:$36 sps:$4 sm:$0xff]  }
0x1280   :  { %8071 = vmatprep.mubr.bf16.mxu0 %v15770_v3  ;;  %8233 = vmatprep.mubr.bf16.mxu1 %v15770_v3  ;;  %v15800_v49 = vpack.c.bf16 %v6930_v11, %v6930_v11  ;;  %v15806_v46 = vpack.c.bf16 %v6929_v30, %v6929_v30  ;;  %v10881_v21 = vld [vmem:[%s16776_s21 + $0x60] ss:$36 sps:$4 sm:$0xff]   ;;  %v10886_v52 = vld [vmem:[%s16776_s21 + $0x14] ss:$36 sps:$4 sm:$0xff]   ;;  %v10892_v26 = vld [vmem:[%s16776_s21 + $0x44c] ss:$36 sps:$4 sm:$0xff]  }
0x1281   :  { %v10889_v47 = vld [vmem:[%s16776_s21 + $0x1c] ss:$36 sps:$4 sm:$0xff]   ;;  %v10895_v28 = vld [vmem:[%s16776_s21 + $0x454] ss:$36 sps:$4 sm:$0xff]   ;;  %v10890_v16 = vld [vmem:[%s16776_s21 + $0x448] ss:$36 sps:$4 sm:$0xff]  }
0x1282   :  { %v10887_v37 = vld [vmem:[%s16776_s21 + $0x18] ss:$36 sps:$4 sm:$0xff]   ;;  %v10893_v55 = vld [vmem:[%s16776_s21 + $0x450] ss:$36 sps:$4 sm:$0xff]   ;;  %v10898_v8 = vld [vmem:[%s16776_s21 + $0x404] ss:$36 sps:$4 sm:$0xff]  }
0x1283   :  { %v10901_v32 = vld [vmem:[%s16776_s21 + $0x40c] ss:$36 sps:$4 sm:$0xff]   ;;  %v10896_v60 = vld [vmem:[%s16776_s21 + $0x400] ss:$36 sps:$4 sm:$0xff]  }
0x1284   :  { %v10899_v13 = vld [vmem:[%s16776_s21 + $0x408] ss:$36 sps:$4 sm:$0xff]   ;;  %v10904_v22 = vld [vmem:[%s16776_s21 + $0x3bc] ss:$36 sps:$4 sm:$0xff]  }
0x1285   :  { %v10907_v11 = vld [vmem:[%s16776_s21 + $0x3c4] ss:$36 sps:$4 sm:$0xff]  }
0x1287   :  { %8072 = vmatmul.mubr.bf16.gmra.mxu0 %v15784_v38  ;;  %8234 = vmatmul.mubr.bf16.gmra.mxu1 %v15784_v38 }
0x1288   :  { %8081 = vmatprep.mubr.bf16.mxu0 %v15788_v14  ;;  %8243 = vmatprep.mubr.bf16.mxu1 %v15788_v14 }
0x128f   :  { %8082 = vmatmul.mubr.bf16.gmra.mxu0 %v15797_v53  ;;  %8244 = vmatmul.mubr.bf16.gmra.mxu1 %v15797_v53 }
0x1290   :  { %8091 = vmatprep.mubr.bf16.mxu0 %v15800_v49  ;;  %8253 = vmatprep.mubr.bf16.mxu1 %v15800_v49 }
0x1297   :  { %8092 = vmatmul.mubr.bf16.gmra.mxu0 %v15806_v46  ;;  %8254 = vmatmul.mubr.bf16.gmra.mxu1 %v15806_v46 }
0x1298   :  { %8294 = vmatprep.mubr.bf16.mxu0 %v17231_v54  ;;  %8456 = vmatprep.mubr.bf16.mxu1 %v17231_v54 }
0x129f   :  { %9515 = vmatmul.mubr.msk.bf16.vlgmr.msra.gmra.mxu0 %vm123_vm1, %v15543_v0  ;;  %9520 = vmatmul.mubr.msk.bf16.vlgmr.msra.gmra.mxu1 %vm123_vm1, %v15543_v0 }
0x12a0   :  { %8344 = vmatpush1.bf16.msra.mxu0 %v10842_v7  ;;  %8506 = vmatpush1.bf16.msra.mxu1 %v10845_v56  ;;  %v10902_v7 = vld [vmem:[%s16776_s21 + $0x3b8] ss:$36 sps:$4 sm:$0xff]   ;;  %v10905_v56 = vld [vmem:[%s16776_s21 + $0x3c0] ss:$36 sps:$4 sm:$0xff]  }
0x12a1   :  { %8345 = vmatprep.subr.bf16.mxu0 %v10850_v12  ;;  %8507 = vmatprep.subr.bf16.mxu1 %v10853_v27  ;;  %v10910_v12 = vld [vmem:[%s16776_s21 + $0x374] ss:$36 sps:$4 sm:$0xff]   ;;  %v10913_v27 = vld [vmem:[%s16776_s21 + $0x37c] ss:$36 sps:$4 sm:$0xff]  }
0x12a2   :  { %8304 = vmatprep.mubr.bf16.mxu0 %v17231_v54  ;;  %8466 = vmatprep.mubr.bf16.mxu1 %v17231_v54 }
0x12a4   :  { %8346 = vmatpush1.bf16.msra.mxu0 %v10848_v63  ;;  %8508 = vmatpush1.bf16.msra.mxu1 %v10851_v57 }
0x12a5   :  { %8347 = vmatprep.subr.bf16.mxu0 %v10856_v1  ;;  %8509 = vmatprep.subr.bf16.mxu1 %v10859_v19  ;;  %v10908_v1 = vld [vmem:[%s16776_s21 + $0x370] ss:$36 sps:$4 sm:$0xff]   ;;  %v10911_v19 = vld [vmem:[%s16776_s21 + $0x378] ss:$36 sps:$4 sm:$0xff]  }
0x12a7   :  { %9516 = vmatmul.mubr.msk.bf16.gmra.mxu0 %vm123_vm1, %v15566_v45  ;;  %9521 = vmatmul.mubr.msk.bf16.gmra.mxu1 %vm123_vm1, %v15566_v45 }
0x12a8   :  { %8348 = vmatpush1.bf16.msra.mxu0 %v10854_v44  ;;  %8510 = vmatpush1.bf16.msra.mxu1 %v10857_v40  ;;  %v10916_v44 = vld [vmem:[%s16776_s21 + $0x32c] ss:$36 sps:$4 sm:$0xff]   ;;  %v10919_v40 = vld [vmem:[%s16776_s21 + $0x334] ss:$36 sps:$4 sm:$0xff]  }
0x12a9   :  { %8349 = vmatprep.subr.bf16.mxu0 %v10862_v33  ;;  %8511 = vmatprep.subr.bf16.mxu1 %v10865_v29 }
0x12aa   :  { %8314 = vmatprep.mubr.bf16.mxu0 %v17231_v54  ;;  %8476 = vmatprep.mubr.bf16.mxu1 %v17231_v54 }
0x12ac   :  { %8350 = vmatpush1.bf16.msra.mxu0 %v10860_v59  ;;  %8512 = vmatpush1.bf16.msra.mxu1 %v10863_v20  ;;  %v10914_v59 = vld [vmem:[%s16776_s21 + $0x328] ss:$36 sps:$4 sm:$0xff]   ;;  %v10917_v20 = vld [vmem:[%s16776_s21 + $0x330] ss:$36 sps:$4 sm:$0xff]  }
0x12ad   :  { %8351 = vmatprep.subr.bf16.mxu0 %v10868_v34  ;;  %8513 = vmatprep.subr.bf16.mxu1 %v10871_v15  ;;  %v10922_v34 = vld [vmem:[%s16776_s21 + $0x2e4] ss:$36 sps:$4 sm:$0xff]   ;;  %v10925_v15 = vld [vmem:[%s16776_s21 + $0x2ec] ss:$36 sps:$4 sm:$0xff]  }
0x12af   :  { %9517 = vmatmul.mubr.msk.bf16.gmra.mxu0 %vm123_vm1, %v15589_v10  ;;  %9522 = vmatmul.mubr.msk.bf16.gmra.mxu1 %vm123_vm1, %v15589_v10 }
0x12b0   :  { %8352 = vmatpush1.bf16.msra.mxu0 %v10866_v2  ;;  %8514 = vmatpush1.bf16.msra.mxu1 %v10869_v41 }
0x12b1   :  { %8353 = vmatprep.subr.bf16.mxu0 %v10874_v9  ;;  %8515 = vmatprep.subr.bf16.mxu1 %v10877_v42  ;;  %v10920_v9 = vld [vmem:[%s16776_s21 + $0x2e0] ss:$36 sps:$4 sm:$0xff]   ;;  %v10923_v42 = vld [vmem:[%s16776_s21 + $0x2e8] ss:$36 sps:$4 sm:$0xff]  }
0x12b2   :  { %8324 = vmatprep.mubr.bf16.mxu0 %v17231_v54  ;;  %8486 = vmatprep.mubr.bf16.mxu1 %v17231_v54 }
0x12b4   :  { %8354 = vmatpush1.bf16.msra.mxu0 %v10872_v48  ;;  %8516 = vmatpush1.bf16.msra.mxu1 %v10875_v36  ;;  %v10928_v48 = vld [vmem:[%s16776_s21 + $0x29c] ss:$36 sps:$4 sm:$0xff]   ;;  %v10931_v36 = vld [vmem:[%s16776_s21 + $0x2a4] ss:$36 sps:$4 sm:$0xff]  }
0x12b5   :  { %8355 = vmatprep.subr.bf16.mxu0 %v10880_v58  ;;  %8517 = vmatprep.subr.bf16.mxu1 %v10883_v23 }
0x12b7   :  { %9518 = vmatmul.mubr.msk.bf16.gmra.mxu0 %vm123_vm1, %v15610_v6  ;;  %9523 = vmatmul.mubr.msk.bf16.gmra.mxu1 %vm123_vm1, %v15610_v6 }
0x12b8   :  { %8356 = vmatpush1.bf16.msra.mxu0 %v10878_v50  ;;  %8518 = vmatpush1.bf16.msra.mxu1 %v10881_v21  ;;  %v10926_v50 = vld [vmem:[%s16776_s21 + $0x298] ss:$36 sps:$4 sm:$0xff]   ;;  %v10929_v21 = vld [vmem:[%s16776_s21 + $0x2a0] ss:$36 sps:$4 sm:$0xff]  }
0x12b9   :  { %8357 = vmatprep.subr.bf16.mxu0 %v10886_v52  ;;  %8519 = vmatprep.subr.bf16.mxu1 %v10889_v47  ;;  %v10934_v52 = vld [vmem:[%s16776_s21 + $0x254] ss:$36 sps:$4 sm:$0xff]   ;;  %v10937_v47 = vld [vmem:[%s16776_s21 + $0x25c] ss:$36 sps:$4 sm:$0xff]  }
0x12ba   :  { %8334 = vmatprep.mubr.bf16.mxu0 %v17231_v54  ;;  %8496 = vmatprep.mubr.bf16.mxu1 %v17231_v54 }
0x12bc   :  { %8358 = vmatpush1.bf16.msra.mxu0 %v10884_v17  ;;  %8520 = vmatpush1.bf16.msra.mxu1 %v10887_v37  ;;  %v15932_v5 = vpop.f32.mrf.mxu1 }
0x12bd   :  { %8359 = vmatprep.subr.bf16.mxu0 %v10892_v26  ;;  %8521 = vmatprep.subr.bf16.mxu1 %v10895_v28  ;;  %v10932_v26 = vld [vmem:[%s16776_s21 + $0x250] ss:$36 sps:$4 sm:$0xff]   ;;  %v10935_v28 = vld [vmem:[%s16776_s21 + $0x258] ss:$36 sps:$4 sm:$0xff]  }
0x12be   :  { %v15940_v39 = vpop.f32.mrf.mxu1 }
0x12bf   :  { %9519 = vmatmul.mubr.msk.bf16.gmra.mxu0 %vm123_vm1, %v15628_v18  ;;  %9524 = vmatmul.mubr.msk.bf16.gmra.mxu1 %vm123_vm1, %v15628_v18 }
0x12c0   :  { %8360 = vmatpush2.bf16.msra.mxu0 %v10890_v16  ;;  %8522 = vmatpush2.bf16.msra.mxu1 %v10893_v55  ;;  %v15952_v4 = vpop.f32.mrf.mxu1  ;;  %v10940_v16 = vld [vmem:[%s16776_s21 + $0x4e4] ss:$36 sps:$4 sm:$0xff]  }
0x12c1   :  { %8375 = vmatprep.mubr.bf16.mxu0 %v15714_v51  ;;  %8537 = vmatprep.mubr.bf16.mxu1 %v15714_v51 }
0x12c2   :  { %v15968_v24 = vpop.f32.mrf.mxu1  ;;  %8361 = vmatprep.subr.bf16.mxu0 %v10898_v8  ;;  %8523 = vmatprep.subr.bf16.mxu1 %v10901_v32  ;;  %v10938_v32 = vld [vmem:[%s16776_s21 + $0x4e0] ss:$36 sps:$4 sm:$0xff]  }
0x12c4   :  { %8362 = vmatpush2.bf16.msra.mxu0 %v10896_v60  ;;  %8524 = vmatpush2.bf16.msra.mxu1 %v10899_v13  ;;  %v15970_v30 = vpop.f32.mrf.mxu1  ;;  %v17233_v60 = vmov 0.0   ;;  %v10944_v13 = vld [vmem:[%s16776_s21 + $0x4e8] ss:$36 sps:$4 sm:$0xff]  }
0x12c5   :  { %8363 = vmatprep.subr.bf16.mxu0 %v10904_v22  ;;  %8525 = vmatprep.subr.bf16.mxu1 %v10907_v11  ;;  %v10943_v11 = vld [vmem:[%s16776_s21 + $0x49c] ss:$36 sps:$4 sm:$0xff]  }
0x12c6   :  { %v15984_v63 = vpop.f32.mrf.mxu1 }
0x12c8   :  { %8364 = vmatpush2.bf16.msra.mxu0 %v10902_v7  ;;  %8526 = vmatpush2.bf16.msra.mxu1 %v10905_v56  ;;  %v15986_v57 = vpop.f32.mrf.mxu1  ;;  %v10941_v56 = vld [vmem:[%s16776_s21 + $0x498] ss:$36 sps:$4 sm:$0xff]  }
0x12c9   :  { %8365 = vmatprep.subr.bf16.mxu0 %v10910_v12  ;;  %8527 = vmatprep.subr.bf16.mxu1 %v10913_v27  ;;  %v10945_v12 = vld [vmem:[%s16776_s21 + $0x4a0] ss:$36 sps:$4 sm:$0xff]  }
0x12ca   :  { %v16000_v33 = vpop.f32.mrf.mxu1 }
0x12cc   :  { %8366 = vmatpush2.bf16.msra.mxu0 %v10908_v1  ;;  %8528 = vmatpush2.bf16.msra.mxu1 %v10911_v19  ;;  %v16002_v29 = vpop.f32.mrf.mxu1  ;;  %v10946_v1 = vld [vmem:[%s16776_s21 + $0x458] ss:$36 sps:$4 sm:$0xff]  }
0x12cd   :  { %8367 = vmatprep.subr.bf16.mxu0 %v10916_v44  ;;  %8529 = vmatprep.subr.bf16.mxu1 %v10919_v40  ;;  %v10947_v19 = vld [vmem:[%s16776_s21 + $0x218] ss:$36 sps:$4 sm:$0xff]   ;;  %v10948_v44 = vld [vmem:[%s16776_s21 + $0x410] ss:$36 sps:$4 sm:$0xff]  }
0x12ce   :  { %v16016_v2 = vpop.f32.mrf.mxu1  ;;  %v10949_v40 = vld [vmem:[%s16776_s21 + $0x1d0] ss:$36 sps:$4 sm:$0xff]  }
0x12d0   :  { %8368 = vmatpush2.bf16.msra.mxu0 %v10914_v59  ;;  %8530 = vmatpush2.bf16.msra.mxu1 %v10917_v20  ;;  %v16018_v41 = vpop.f32.mrf.mxu1  ;;  %v10950_v59 = vld [vmem:[%s16776_s21 + $0x3c8] ss:$36 sps:$4 sm:$0xff]   ;;  %v10952_v20 = vld [vmem:[%s16776_s21 + $0x380] ss:$36 sps:$4 sm:$0xff]  }
0x12d1   :  { %8369 = vmatprep.subr.bf16.mxu0 %v10922_v34  ;;  %8531 = vmatprep.subr.bf16.mxu1 %v10925_v15  ;;  %v10953_v34 = vld [vmem:[%s16776_s21 + $0x140] ss:$36 sps:$4 sm:$0xff]   ;;  %v10954_v15 = vld [vmem:[%s16776_s21 + $0x338] ss:$36 sps:$4 sm:$0xff]  }
0x12d2   :  { %v16032_v58 = vpop.f32.mrf.mxu1 }
0x12d4   :  { %8370 = vmatpush2.bf16.msra.mxu0 %v10920_v9  ;;  %8532 = vmatpush2.bf16.msra.mxu1 %v10923_v42  ;;  %v16034_v23 = vpop.f32.mrf.mxu1  ;;  %v10956_v9 = vld [vmem:[%s16776_s21 + $0x2f0] ss:$36 sps:$4 sm:$0xff]  }
0x12d5   :  { %8371 = vmatprep.subr.bf16.mxu0 %v10928_v48  ;;  %8533 = vmatprep.subr.bf16.mxu1 %v10931_v36  ;;  %v10957_v42 = vld [vmem:[%s16776_s21 + $0xb0] ss:$36 sps:$4 sm:$0xff]   ;;  %v10958_v48 = vld [vmem:[%s16776_s21 + $0x2a8] ss:$36 sps:$4 sm:$0xff]   ;;  %v10960_v36 = vld [vmem:[%s16776_s21 + $0x260] ss:$36 sps:$4 sm:$0xff]  }
0x12d6   :  { %v16048_v17 = vpop.f32.mrf.mxu1 }
0x12d8   :  { %8372 = vmatpush2.bf16.msra.mxu0 %v10926_v50  ;;  %8534 = vmatpush2.bf16.msra.mxu1 %v10929_v21  ;;  %v16050_v37 = vpop.f32.mrf.mxu1  ;;  %v10961_v50 = vld [vmem:[%s16776_s21 + $0x20] ss:$36 sps:$4 sm:$0xff]  }
0x12d9   :  { %8373 = vmatprep.subr.bf16.mxu0 %v10934_v52  ;;  %8535 = vmatprep.subr.bf16.mxu1 %v10937_v47 }
0x12da   :  { %v16061_v55 = vpop.f32.mrf.mxu1 }
0x12dc   :  { %8374 = vmatpush2.bf16.msra.mxu0 %v10932_v26  ;;  %8536 = vmatpush2.bf16.msra.mxu1 %v10935_v28  ;;  %v16063_v8 = vpop.f32.mrf.mxu1 }
0x12dd   :  { %8598 = vmatprep.subr.bf16.mxu0 %v10940_v16  ;;  %10098 = vmatprep.subr.bf16.mxu1 %v17233_v60 }
0x12de   :  { %v16072_v22 = vpop.f32.mrf.mxu1 }
0x12df   :  { %8376 = vmatmul.mubr.bf16.vlgmr.msra.gmra.mxu0 %v15716_v43  ;;  %8538 = vmatmul.mubr.bf16.vlgmr.msra.gmra.mxu1 %v15716_v43 }
0x12e0   :  { %8385 = vmatprep.mubr.bf16.mxu0 %v15732_v25  ;;  %8547 = vmatprep.mubr.bf16.mxu1 %v15732_v25  ;;  %v8178_v7 = vpop.f32.mrf.mxu1 }
0x12e1   :  { %8599 = vmatpush1.bf16.msra.mxu0 %v10938_v32  ;;  %10099 = vmatpush3.bf16.msra.mxu1 %v10944_v13 }
0x12e2   :  { %v8179_v27 = vpop.f32.mrf.mxu1  ;;  %8600 = vmatprep.subr.bf16.mxu0 %v10943_v11  ;;  %10100 = vmatprep.subr.bf16.mxu1 %v17233_v60 }
0x12e5   :  { %8601 = vmatpush1.bf16.msra.mxu0 %v10941_v56  ;;  %10101 = vmatpush3.bf16.msra.mxu1 %v10945_v12 }
0x12e6   :  { %9801 = vmatprep.subr.bf16.mxu0 %v10946_v1 }
0x12e7   :  { %8386 = vmatmul.mubr.bf16.gmra.mxu0 %v15766_v62  ;;  %8548 = vmatmul.mubr.bf16.gmra.mxu1 %v15766_v62 }
0x12e8   :  { %8395 = vmatprep.mubr.bf16.mxu0 %v15770_v3  ;;  %8557 = vmatprep.mubr.bf16.mxu1 %v15770_v3 }
0x12ef   :  { %8396 = vmatmul.mubr.bf16.gmra.mxu0 %v15784_v38  ;;  %8558 = vmatmul.mubr.bf16.gmra.mxu1 %v15784_v38 }
0x12f0   :  { %8405 = vmatprep.mubr.bf16.mxu0 %v15788_v14  ;;  %8567 = vmatprep.mubr.bf16.mxu1 %v15788_v14 }
0x12f7   :  { %8406 = vmatmul.mubr.bf16.gmra.mxu0 %v15797_v53  ;;  %8568 = vmatmul.mubr.bf16.gmra.mxu1 %v15797_v53 }
0x12f8   :  { %8415 = vmatprep.mubr.bf16.mxu0 %v15800_v49  ;;  %8577 = vmatprep.mubr.bf16.mxu1 %v15800_v49 }
0x12ff   :  { %8416 = vmatmul.mubr.bf16.gmra.mxu0 %v15806_v46  ;;  %8578 = vmatmul.mubr.bf16.gmra.mxu1 %v15806_v46 }
0x1300   :  { %8618 = vmatprep.mubr.bf16.mxu0 %v17231_v54  ;;  %10102 = vmatprep.mubr.msk.bf16.mxu1 %vm10975_vm0, %v17233_v60 }
0x1307   :  { %9525 = vmatmul.mubr.msk.bf16.vlgmr.msra.gmra.mxu0 %vm123_vm1, %v15543_v0  ;;  %10103 = vmatmul.mubr.msk.bf16.vlgmr.msra.gmra.mxu1 %vm123_vm1, %v15543_v0  ;;  %v10951_v0 = vld [vmem:[%s16776_s21 + $0x188] ss:$36 sps:$4 sm:$0xff]  }
0x1308   :  { %9802 = vmatpush3.bf16.msra.mxu0 %v10947_v19  ;;  %8628 = vmatprep.mubr.bf16.mxu0 %v17231_v54 }
0x1309   :  { %9803 = vmatprep.subr.bf16.mxu0 %v10948_v44  ;;  %10106 = vmatprep.mubr.msk.bf16.mxu1 %vm10975_vm0, %v17233_v60 }
0x130c   :  { %9804 = vmatpush3.bf16.msra.mxu0 %v10949_v40 }
0x130d   :  { %9805 = vmatprep.subr.bf16.mxu0 %v10950_v59 }
0x130f   :  { %9526 = vmatmul.mubr.msk.bf16.gmra.mxu0 %vm123_vm1, %v15566_v45  ;;  %10107 = vmatmul.mubr.msk.bf16.gmra.mxu1 %vm123_vm1, %v15566_v45  ;;  %v10955_v45 = vld [vmem:[%s16776_s21 + $0xf8] ss:$36 sps:$4 sm:$0xff]  }
0x1310   :  { %9806 = vmatpush3.bf16.msra.mxu0 %v10951_v0  ;;  %8638 = vmatprep.mubr.bf16.mxu0 %v17231_v54 }
0x1311   :  { %9807 = vmatprep.subr.bf16.mxu0 %v10952_v20  ;;  %10110 = vmatprep.mubr.msk.bf16.mxu1 %vm10975_vm0, %v17233_v60 }
0x1314   :  { %9808 = vmatpush3.bf16.msra.mxu0 %v10953_v34 }
0x1315   :  { %9809 = vmatprep.subr.bf16.mxu0 %v10954_v15 }
0x1317   :  { %9527 = vmatmul.mubr.msk.bf16.gmra.mxu0 %vm123_vm1, %v15589_v10  ;;  %10111 = vmatmul.mubr.msk.bf16.gmra.mxu1 %vm123_vm1, %v15589_v10  ;;  %v10959_v10 = vld [vmem:[%s16776_s21 + $0x68] ss:$36 sps:$4 sm:$0xff]  }
0x1318   :  { %9810 = vmatpush3.bf16.msra.mxu0 %v10955_v45  ;;  %8648 = vmatprep.mubr.bf16.mxu0 %v17231_v54 }
0x1319   :  { %10114 = vmatprep.mubr.msk.bf16.mxu1 %vm10975_vm0, %v17233_v60  ;;  %9811 = vmatprep.subr.bf16.mxu0 %v10956_v9 }
0x131c   :  { %9812 = vmatpush3.bf16.msra.mxu0 %v10957_v42 }
0x131d   :  { %9813 = vmatprep.subr.bf16.mxu0 %v10958_v48 }
0x131f   :  { %9528 = vmatmul.mubr.msk.bf16.gmra.mxu0 %vm123_vm1, %v15610_v6  ;;  %10115 = vmatmul.mubr.msk.bf16.gmra.mxu1 %vm123_vm1, %v15610_v6 }
0x1320   :  { %8658 = vmatprep.mubr.bf16.mxu0 %v17231_v54  ;;  %9814 = vmatpush3.bf16.msra.mxu0 %v10959_v10  ;;  %v16191_v54 = vld [vmem:[%s16779_s22] sm:$0xff] }
0x1321   :  { %10118 = vmatprep.mubr.msk.bf16.mxu1 %vm10975_vm0, %v17233_v60  ;;  %9815 = vmatprep.subr.bf16.mxu0 %v10960_v36  ;;  %v16195_v6 = vrot.slane %v16191_v54, %v17229_v31  ;;  %v16199_v21 = vrot.slane %v16191_v54, %v17232_v61 }
0x1324   :  { %9816 = vmatpush3.bf16.msra.mxu0 %v10961_v50 }
0x1327   :  { %9529 = vmatmul.mubr.msk.bf16.gmra.mxu0 %vm123_vm1, %v15628_v18  ;;  %10119 = vmatmul.mubr.msk.bf16.gmra.mxu1 %vm123_vm1, %v15628_v18 }
0x1328   :  { %8699 = vmatprep.mubr.bf16.mxu0 %v15714_v51 }
0x132f   :  { %8700 = vmatmul.mubr.bf16.vlgmr.msra.gmra.mxu0 %v15716_v43 }
0x1330   :  { %8707 = vmatprep.mubr.bf16.mxu0 %v15732_v25 }
0x1337   :  { %8708 = vmatmul.mubr.bf16.gmra.mxu0 %v15766_v62  ;;  %v8053_v18 = vpop.f32.mrf.mxu0  ;;  %v16202_v51 = vpop.f32.mrf.mxu1 }
0x1338   :  { %v8054_v43 = vadd.f32 %v8053_v18, %v16195_v6  ;;  %8715 = vmatprep.mubr.bf16.mxu0 %v15770_v3 }
0x1339   :  { %v8055_v25 = vpop.f32.mrf.mxu0  ;;  %v16206_v52 = vpop.f32.mrf.mxu1 }
0x133a   :  { %v8135_v47 = vadd.f32 %v15932_v5, %v8054_v43  ;;  %v8056_v31 = vadd.f32 %v8055_v25, %v16199_v21 }
0x133b   :  { %v8057_v26 = vpop.f32.mrf.mxu0  ;;  %v16210_v28 = vpop.f32.mrf.mxu1 }
0x133c   :  { %8811 = vst [vmem:[%s16780_s23] sm:$0xff] %v8135_v47  ;;  %v8137_v61 = vadd.f32 %v15940_v39, %v8056_v31  ;;  %v8058_v62 = vadd.f32 %v8057_v26, %v16195_v6 }
0x133d   :  { %v8059_v16 = vpop.f32.mrf.mxu0  ;;  %v16217_v3 = vpop.f32.mrf.mxu1 }
0x133e   :  { %8812 = vst [vmem:[%s16780_s23 + $0x8] sm:$0xff] %v8137_v61  ;;  %v8139_v5 = vadd.f32 %v15952_v4, %v8058_v62  ;;  %v8060_v32 = vadd.f32 %v8059_v16, %v16199_v21 }
0x133f   :  { %8716 = vmatmul.mubr.bf16.gmra.mxu0 %v15784_v38  ;;  %v8063_v60 = vpop.f32.mrf.mxu0  ;;  %v16225_v13 = vpop.f32.mrf.mxu1 }
0x1340   :  { %8820 = vst [vmem:[%s16780_s23 + $0x48] sm:$0xff] %v8139_v5  ;;  %v8141_v39 = vadd.f32 %v15968_v24, %v8060_v32  ;;  %v8064_v11 = vadd.f32 %v8063_v60, %v16195_v6  ;;  %8723 = vmatprep.mubr.bf16.mxu0 %v15788_v14 }
0x1341   :  { %v8065_v7 = vpop.f32.mrf.mxu0  ;;  %v16233_v56 = vpop.f32.mrf.mxu1 }
0x1342   :  { %8821 = vst [vmem:[%s16780_s23 + $0x50] sm:$0xff] %v8141_v39  ;;  %v8145_v38 = vadd.f32 %v15970_v30, %v8064_v11  ;;  %v8066_v4 = vadd.f32 %v8065_v7, %v16199_v21  ;;  %v16324_v11 = vrot.slane %v16191_v54, %v17230_v35 }
0x1343   :  { %v8067_v12 = vpop.f32.mrf.mxu0  ;;  %v16240_v27 = vpop.f32.mrf.mxu1 }
0x1344   :  { %8829 = vst [vmem:[%s16780_s23 + $0x90] sm:$0xff] %v8145_v38  ;;  %v8147_v14 = vadd.f32 %v15984_v63, %v8066_v4  ;;  %v8068_v24 = vadd.f32 %v8067_v12, %v16195_v6 }
0x1345   :  { %v8069_v1 = vpop.f32.mrf.mxu0  ;;  %v16247_v19 = vpop.f32.mrf.mxu1 }
0x1346   :  { %8830 = vst [vmem:[%s16780_s23 + $0x98] sm:$0xff] %v8147_v14  ;;  %v8149_v30 = vadd.f32 %v15986_v57, %v8068_v24  ;;  %v8070_v44 = vadd.f32 %v8069_v1, %v16199_v21  ;;  %v8216_v24 = vadd.f32 %v16202_v51, %v16324_v11 }
0x1347   :  { %8724 = vmatmul.mubr.bf16.gmra.mxu0 %v15797_v53  ;;  %v8073_v40 = vpop.f32.mrf.mxu0  ;;  %v16255_v59 = vpop.f32.mrf.mxu1 }
0x1348   :  { %8838 = vst [vmem:[%s16780_s23 + $0xd8] sm:$0xff] %v8149_v30  ;;  %v8151_v63 = vadd.f32 %v16000_v33, %v8070_v44  ;;  %v8074_v0 = vadd.f32 %v8073_v40, %v16195_v6  ;;  %8731 = vmatprep.mubr.bf16.mxu0 %v15800_v49 }
0x1349   :  { %v8075_v20 = vpop.f32.mrf.mxu0  ;;  %v16263_v34 = vpop.f32.mrf.mxu1 }
0x134a   :  { %8839 = vst [vmem:[%s16780_s23 + $0xe0] sm:$0xff] %v8151_v63  ;;  %v8155_v53 = vadd.f32 %v16002_v29, %v8074_v0  ;;  %v8076_v57 = vadd.f32 %v8075_v20, %v16199_v21 }
0x134b   :  { %v8077_v15 = vpop.f32.mrf.mxu0  ;;  %v16270_v45 = vpop.f32.mrf.mxu1 }
0x134c   :  { %8847 = vst [vmem:[%s16780_s23 + $0x120] sm:$0xff] %v8155_v53  ;;  %v8157_v49 = vadd.f32 %v16016_v2, %v8076_v57  ;;  %v8078_v33 = vadd.f32 %v8077_v15, %v16195_v6 }
0x134d   :  { %v8079_v9 = vpop.f32.mrf.mxu0  ;;  %v16277_v42 = vpop.f32.mrf.mxu1 }
0x134e   :  { %8848 = vst [vmem:[%s16780_s23 + $0x128] sm:$0xff] %v8157_v49  ;;  %v8159_v29 = vadd.f32 %v16018_v41, %v8078_v33  ;;  %v8080_v48 = vadd.f32 %v8079_v9, %v16199_v21 }
0x134f   :  { %8732 = vmatmul.mubr.bf16.gmra.mxu0 %v15806_v46  ;;  %v8083_v10 = vpop.f32.mrf.mxu0  ;;  %v16285_v36 = vpop.f32.mrf.mxu1 }
0x1350   :  { %8856 = vst [vmem:[%s16780_s23 + $0x168] sm:$0xff] %v8159_v29  ;;  %v8161_v2 = vadd.f32 %v16032_v58, %v8080_v48  ;;  %v8084_v50 = vadd.f32 %v8083_v10, %v16195_v6 }
0x1351   :  { %v8085_v18 = vpop.f32.mrf.mxu0  ;;  %v16292_v43 = vpop.f32.mrf.mxu1 }
0x1352   :  { %8857 = vst [vmem:[%s16780_s23 + $0x170] sm:$0xff] %v8161_v2  ;;  %v8165_v46 = vadd.f32 %v16034_v23, %v8084_v50  ;;  %v8086_v41 = vadd.f32 %v8085_v18, %v16199_v21 }
0x1353   :  { %v8087_v25 = vpop.f32.mrf.mxu0  ;;  %v16299_v47 = vpop.f32.mrf.mxu1 }
0x1354   :  { %8865 = vst [vmem:[%s16780_s23 + $0x1b0] sm:$0xff] %v8165_v46  ;;  %v8167_v58 = vadd.f32 %v16048_v17, %v8086_v41  ;;  %v8088_v31 = vadd.f32 %v8087_v25, %v16195_v6 }
0x1355   :  { %v8089_v26 = vpop.f32.mrf.mxu0  ;;  %v16306_v61 = vpop.f32.mrf.mxu1 }
0x1356   :  { %8866 = vst [vmem:[%s16780_s23 + $0x1b8] sm:$0xff] %v8167_v58  ;;  %v8169_v23 = vadd.f32 %v16050_v37, %v8088_v31  ;;  %v8090_v62 = vadd.f32 %v8089_v26, %v16199_v21 }
0x1357   :  { %v8093_v16 = vpop.f32.mrf.mxu0  ;;  %v16313_v5 = vpop.f32.mrf.mxu1 }
0x1358   :  { %8874 = vst [vmem:[%s16780_s23 + $0x1f8] sm:$0xff] %v8169_v23  ;;  %v8171_v17 = vadd.f32 %v16061_v55, %v8090_v62  ;;  %v8094_v32 = vadd.f32 %v8093_v16, %v16195_v6  ;;  %v17234_v55 = vld [vmem:[#allocation26_spill] sm:$0xff] }
0x1359   :  { %v8095_v60 = vpop.f32.mrf.mxu0  ;;  %v16320_v39 = vpop.f32.mrf.mxu1  ;;  %v16333_v6 = vrot.slane %v16191_v54, %v17234_v55 }
0x135a   :  { %8875 = vst [vmem:[%s16780_s23 + $0x200] sm:$0xff] %v8171_v17  ;;  %v8175_v37 = vadd.f32 %v16063_v8, %v8094_v32  ;;  %v8096_v7 = vadd.f32 %v8095_v60, %v16199_v21 }
0x135b   :  { %v8097_v38 = vpop.f32.mrf.mxu0  ;;  %v8259_v4 = vpop.f32.mrf.mxu1  ;;  %v8218_v1 = vadd.f32 %v16206_v52, %v16333_v6  ;;  %v8222_v20 = vadd.f32 %v16217_v3, %v16333_v6  ;;  %v8228_v3 = vadd.f32 %v16233_v56, %v16333_v6  ;;  %v8232_v56 = vadd.f32 %v16247_v19, %v16333_v6 }
0x135c   :  { %8883 = vst [vmem:[%s16780_s23 + $0x240] sm:$0xff] %v8175_v37  ;;  %v8177_v35 = vadd.f32 %v16072_v22, %v8096_v7  ;;  %v8220_v22 = vadd.f32 %v16210_v28, %v16324_v11  ;;  %v8226_v28 = vadd.f32 %v16225_v13, %v16324_v11  ;;  %v8230_v13 = vadd.f32 %v16240_v27, %v16324_v11 }
0x135d   :  { %v8098_v12 = vpop.f32.mrf.mxu0  ;;  %v8260_v14 = vpop.f32.mrf.mxu1  ;;  %v8236_v27 = vadd.f32 %v16255_v59, %v16324_v11  ;;  %v8238_v19 = vadd.f32 %v16263_v34, %v16333_v6  ;;  %v8240_v59 = vadd.f32 %v16270_v45, %v16324_v11  ;;  %v8242_v34 = vadd.f32 %v16277_v42, %v16333_v6 }
0x135e   :  { %8884 = vst [vmem:[%s16780_s23 + $0x248] sm:$0xff] %v8177_v35  ;;  %v8246_v45 = vadd.f32 %v16285_v36, %v16324_v11  ;;  %v8248_v42 = vadd.f32 %v16292_v43, %v16333_v6  ;;  %v8250_v36 = vadd.f32 %v16299_v47, %v16324_v11  ;;  %v8252_v43 = vadd.f32 %v16306_v61, %v16333_v6 }
0x135f   :  { %v8296_v8 = vpop.f32.mrf.mxu0  ;;  %v16344_v21 = vpop.f32.mrf.mxu1  ;;  %v8256_v47 = vadd.f32 %v16313_v5, %v16324_v11  ;;  %v8258_v61 = vadd.f32 %v16320_v39, %v16333_v6 }
0x1360   :  { %v8297_v30 = vadd.f32 %v8296_v8, %v8216_v24 }
0x1361   :  { %v8298_v44 = vpop.f32.mrf.mxu0  ;;  %v16348_v40 = vpop.f32.mrf.mxu1 }
0x1362   :  { %8813 = vst [vmem:[%s16780_s23 + $0x10] sm:$0xff] %v8297_v30  ;;  %v8299_v51 = vadd.f32 %v8298_v44, %v8218_v1 }
0x1363   :  { %v8300_v63 = vpop.f32.mrf.mxu0  ;;  %v16355_v0 = vpop.f32.mrf.mxu1 }
0x1364   :  { %8814 = vst [vmem:[%s16780_s23 + $0x18] sm:$0xff] %v8299_v51  ;;  %v8301_v52 = vadd.f32 %v8300_v63, %v8220_v22 }
0x1365   :  { %v8302_v53 = vpop.f32.mrf.mxu0  ;;  %v16362_v57 = vpop.f32.mrf.mxu1 }
0x1366   :  { %8822 = vst [vmem:[%s16780_s23 + $0x58] sm:$0xff] %v8301_v52  ;;  %v8303_v15 = vadd.f32 %v8302_v53, %v8222_v20 }
0x1367   :  { %v8306_v49 = vpop.f32.mrf.mxu0  ;;  %v16369_v33 = vpop.f32.mrf.mxu1 }
0x1368   :  { %8823 = vst [vmem:[%s16780_s23 + $0x60] sm:$0xff] %v8303_v15  ;;  %v8307_v9 = vadd.f32 %v8306_v49, %v8226_v28  ;;  %v17235_v49 = vld [vmem:[#allocation2_spill] sm:$0xff] }
0x1369   :  { %v8308_v29 = vpop.f32.mrf.mxu0  ;;  %v16376_v48 = vpop.f32.mrf.mxu1 }
0x136a   :  { %8831 = vst [vmem:[%s16780_s23 + $0xa0] sm:$0xff] %v8307_v9  ;;  %v8309_v10 = vadd.f32 %v8308_v29, %v8228_v3  ;;  %v7153_v3 = vsub.s32 5, %v17235_v49  ;;  %v17236_v9 = vld [vmem:[#allocation22_spill] sm:$0xff] }
0x136b   :  { %v8310_v2 = vpop.f32.mrf.mxu0  ;;  %v16383_v50 = vpop.f32.mrf.mxu1  ;;  %v16471_v29 = vrot.slane %v16191_v54, %v17236_v9 }
0x136c   :  { %8832 = vst [vmem:[%s16780_s23 + $0xa8] sm:$0xff] %v8309_v10  ;;  %v8311_v18 = vadd.f32 %v8310_v2, %v8230_v13  ;;  %v16474_v13 = vrot.slane %v16191_v54, %v7153_v3 }
0x136d   :  { %v8312_v46 = vpop.f32.mrf.mxu0  ;;  %v16390_v41 = vpop.f32.mrf.mxu1 }
0x136e   :  { %8840 = vst [vmem:[%s16780_s23 + $0xe8] sm:$0xff] %v8311_v18  ;;  %v8313_v25 = vadd.f32 %v8312_v46, %v8232_v56 }
0x136f   :  { %v8316_v58 = vpop.f32.mrf.mxu0  ;;  %v16397_v31 = vpop.f32.mrf.mxu1 }
0x1370   :  { %8841 = vst [vmem:[%s16780_s23 + $0xf0] sm:$0xff] %v8313_v25  ;;  %v8317_v26 = vadd.f32 %v8316_v58, %v8236_v27 }
0x1371   :  { %v8318_v23 = vpop.f32.mrf.mxu0  ;;  %v16404_v62 = vpop.f32.mrf.mxu1 }
0x1372   :  { %8849 = vst [vmem:[%s16780_s23 + $0x130] sm:$0xff] %v8317_v26  ;;  %v8319_v16 = vadd.f32 %v8318_v23, %v8238_v19 }
0x1373   :  { %v8320_v17 = vpop.f32.mrf.mxu0  ;;  %v16411_v32 = vpop.f32.mrf.mxu1 }
0x1374   :  { %8850 = vst [vmem:[%s16780_s23 + $0x138] sm:$0xff] %v8319_v16  ;;  %v8321_v60 = vadd.f32 %v8320_v17, %v8240_v59 }
0x1375   :  { %v8322_v37 = vpop.f32.mrf.mxu0  ;;  %v16418_v7 = vpop.f32.mrf.mxu1 }
0x1376   :  { %8858 = vst [vmem:[%s16780_s23 + $0x178] sm:$0xff] %v8321_v60  ;;  %v8323_v38 = vadd.f32 %v8322_v37, %v8242_v34 }
0x1377   :  { %v8326_v4 = vpop.f32.mrf.mxu0  ;;  %v16425_v55 = vpop.f32.mrf.mxu1 }
0x1378   :  { %8859 = vst [vmem:[%s16780_s23 + $0x180] sm:$0xff] %v8323_v38  ;;  %v8327_v35 = vadd.f32 %v8326_v4, %v8246_v45 }
0x1379   :  { %v8328_v12 = vpop.f32.mrf.mxu0  ;;  %v16432_v14 = vpop.f32.mrf.mxu1 }
0x137a   :  { %8867 = vst [vmem:[%s16780_s23 + $0x1c0] sm:$0xff] %v8327_v35  ;;  %v8329_v24 = vadd.f32 %v8328_v12, %v8248_v42 }
0x137b   :  { %v8330_v8 = vpop.f32.mrf.mxu0  ;;  %v16439_v1 = vpop.f32.mrf.mxu1 }
0x137c   :  { %8868 = vst [vmem:[%s16780_s23 + $0x1c8] sm:$0xff] %v8329_v24  ;;  %v8331_v30 = vadd.f32 %v8330_v8, %v8250_v36 }
0x137d   :  { %v8332_v44 = vpop.f32.mrf.mxu0  ;;  %v16446_v22 = vpop.f32.mrf.mxu1 }
0x137e   :  { %8876 = vst [vmem:[%s16780_s23 + $0x208] sm:$0xff] %v8331_v30  ;;  %v8333_v51 = vadd.f32 %v8332_v44, %v8252_v43 }
0x137f   :  { %v8336_v63 = vpop.f32.mrf.mxu0  ;;  %v16453_v20 = vpop.f32.mrf.mxu1 }
0x1380   :  { %8877 = vst [vmem:[%s16780_s23 + $0x210] sm:$0xff] %v8333_v51  ;;  %v8337_v52 = vadd.f32 %v8336_v63, %v8256_v47 }
0x1381   :  { %v8338_v53 = vpop.f32.mrf.mxu0  ;;  %v16460_v28 = vpop.f32.mrf.mxu1 }
0x1382   :  { %8885 = vst [vmem:[%s16780_s23 + $0x250] sm:$0xff] %v8337_v52  ;;  %v8339_v5 = vadd.f32 %v8338_v53, %v8258_v61 }
0x1383   :  { %v8340_v11 = vpop.f32.mrf.mxu0  ;;  %v8502_v15 = vpop.f32.mrf.mxu1 }
0x1384   :  { %8886 = vst [vmem:[%s16780_s23 + $0x258] sm:$0xff] %v8339_v5 }
0x1385   :  { %v8341_v39 = vpop.f32.mrf.mxu0  ;;  %v8503_v6 = vpop.f32.mrf.mxu1 }
0x139f   :  { %v8377_v10 = vpop.f32.mrf.mxu0  ;;  %v16476_v2 = vpop.f32.mrf.mxu1 }
0x13a0   :  { %v8378_v56 = vadd.f32 %v8377_v10, %v16471_v29 }
0x13a1   :  { %v8379_v18 = vpop.f32.mrf.mxu0  ;;  %v16479_v46 = vpop.f32.mrf.mxu1 }
0x13a2   :  { %v8459_v27 = vadd.f32 %v16344_v21, %v8378_v56  ;;  %v8380_v25 = vadd.f32 %v8379_v18, %v16474_v13 }
0x13a3   :  { %v8381_v58 = vpop.f32.mrf.mxu0  ;;  %v16483_v19 = vpop.f32.mrf.mxu1 }
0x13a4   :  { %8815 = vst [vmem:[%s16780_s23 + $0x20] sm:$0xff] %v8459_v27  ;;  %v8461_v26 = vadd.f32 %v16348_v40, %v8380_v25  ;;  %v8382_v23 = vadd.f32 %v8381_v58, %v16471_v29 }
0x13a5   :  { %v8383_v59 = vpop.f32.mrf.mxu0  ;;  %v16490_v16 = vpop.f32.mrf.mxu1 }
0x13a6   :  { %8816 = vst [vmem:[%s16780_s23 + $0x28] sm:$0xff] %v8461_v26  ;;  %v8463_v21 = vadd.f32 %v16355_v0, %v8382_v23  ;;  %v8384_v17 = vadd.f32 %v8383_v59, %v16474_v13  ;;  %v7157_v23 = vsub.s32 6, %v17235_v49 }
0x13a7   :  { %v8387_v34 = vpop.f32.mrf.mxu0  ;;  %v16497_v60 = vpop.f32.mrf.mxu1 }
0x13a8   :  { %8824 = vst [vmem:[%s16780_s23 + $0x68] sm:$0xff] %v8463_v21  ;;  %v8465_v40 = vadd.f32 %v16362_v57, %v8384_v17  ;;  %v8388_v37 = vadd.f32 %v8387_v34, %v16471_v29 }
0x13a9   :  { %v8389_v45 = vpop.f32.mrf.mxu0  ;;  %v16504_v38 = vpop.f32.mrf.mxu1 }
0x13aa   :  { %8825 = vst [vmem:[%s16780_s23 + $0x70] sm:$0xff] %v8465_v40  ;;  %v8469_v0 = vadd.f32 %v16369_v33, %v8388_v37  ;;  %v8390_v4 = vadd.f32 %v8389_v45, %v16474_v13 }
0x13ab   :  { %v8391_v42 = vpop.f32.mrf.mxu0  ;;  %v16511_v35 = vpop.f32.mrf.mxu1 }
0x13ac   :  { %8833 = vst [vmem:[%s16780_s23 + $0xb0] sm:$0xff] %v8469_v0  ;;  %v8471_v57 = vadd.f32 %v16376_v48, %v8390_v4  ;;  %v8392_v12 = vadd.f32 %v8391_v42, %v16471_v29 }
0x13ad   :  { %v8393_v36 = vpop.f32.mrf.mxu0  ;;  %v16518_v24 = vpop.f32.mrf.mxu1 }
0x13ae   :  { %8834 = vst [vmem:[%s16780_s23 + $0xb8] sm:$0xff] %v8471_v57  ;;  %v8473_v33 = vadd.f32 %v16383_v50, %v8392_v12  ;;  %v8394_v8 = vadd.f32 %v8393_v36, %v16474_v13 }
0x13af   :  { %v8397_v43 = vpop.f32.mrf.mxu0  ;;  %v16525_v30 = vpop.f32.mrf.mxu1 }
0x13b0   :  { %8842 = vst [vmem:[%s16780_s23 + $0xf8] sm:$0xff] %v8473_v33  ;;  %v8475_v48 = vadd.f32 %v16390_v41, %v8394_v8  ;;  %v8398_v44 = vadd.f32 %v8397_v43, %v16471_v29 }
0x13b1   :  { %v8399_v47 = vpop.f32.mrf.mxu0  ;;  %v16532_v51 = vpop.f32.mrf.mxu1 }
0x13b2   :  { %8843 = vst [vmem:[%s16780_s23 + $0x100] sm:$0xff] %v8475_v48  ;;  %v8479_v50 = vadd.f32 %v16397_v31, %v8398_v44  ;;  %v8400_v63 = vadd.f32 %v8399_v47, %v16474_v13 }
0x13b3   :  { %v8401_v61 = vpop.f32.mrf.mxu0  ;;  %v16539_v52 = vpop.f32.mrf.mxu1 }
0x13b4   :  { %8851 = vst [vmem:[%s16780_s23 + $0x140] sm:$0xff] %v8479_v50  ;;  %v8481_v41 = vadd.f32 %v16404_v62, %v8400_v63  ;;  %v8402_v53 = vadd.f32 %v8401_v61, %v16471_v29 }
0x13b5   :  { %v8403_v5 = vpop.f32.mrf.mxu0  ;;  %v16546_v11 = vpop.f32.mrf.mxu1 }
0x13b6   :  { %8852 = vst [vmem:[%s16780_s23 + $0x148] sm:$0xff] %v8481_v41  ;;  %v8483_v31 = vadd.f32 %v16411_v32, %v8402_v53  ;;  %v8404_v15 = vadd.f32 %v8403_v5, %v16474_v13 }
0x13b7   :  { %v8407_v39 = vpop.f32.mrf.mxu0  ;;  %v16553_v6 = vpop.f32.mrf.mxu1 }
0x13b8   :  { %8860 = vst [vmem:[%s16780_s23 + $0x188] sm:$0xff] %v8483_v31  ;;  %v8485_v62 = vadd.f32 %v16418_v7, %v8404_v15  ;;  %v8408_v3 = vadd.f32 %v8407_v39, %v16471_v29 }
0x13b9   :  { %v8409_v9 = vpop.f32.mrf.mxu0  ;;  %v16560_v10 = vpop.f32.mrf.mxu1 }
0x13ba   :  { %8861 = vst [vmem:[%s16780_s23 + $0x190] sm:$0xff] %v8485_v62  ;;  %v8489_v32 = vadd.f32 %v16425_v55, %v8408_v3  ;;  %v8410_v56 = vadd.f32 %v8409_v9, %v16474_v13 }
0x13bb   :  { %v8411_v18 = vpop.f32.mrf.mxu0  ;;  %v16567_v27 = vpop.f32.mrf.mxu1 }
0x13bc   :  { %8869 = vst [vmem:[%s16780_s23 + $0x1d0] sm:$0xff] %v8489_v32  ;;  %v8491_v7 = vadd.f32 %v16432_v14, %v8410_v56  ;;  %v8412_v25 = vadd.f32 %v8411_v18, %v16471_v29  ;;  %v7161_v14 = vsub.s32 7, %v17235_v49 }
0x13bd   :  { %v8413_v58 = vpop.f32.mrf.mxu0  ;;  %v16574_v26 = vpop.f32.mrf.mxu1 }
0x13be   :  { %8870 = vst [vmem:[%s16780_s23 + $0x1d8] sm:$0xff] %v8491_v7  ;;  %v8493_v55 = vadd.f32 %v16439_v1, %v8412_v25  ;;  %v8414_v59 = vadd.f32 %v8413_v58, %v16474_v13  ;;  %v16593_v1 = vrot.slane %v16191_v54, %v7157_v23 }
0x13bf   :  { %v8417_v21 = vpop.f32.mrf.mxu0  ;;  %v16582_v17 = vpop.f32.mrf.mxu1 }
0x13c0   :  { %8878 = vst [vmem:[%s16780_s23 + $0x218] sm:$0xff] %v8493_v55  ;;  %v8495_v34 = vadd.f32 %v16446_v22, %v8414_v59  ;;  %v8418_v40 = vadd.f32 %v8417_v21, %v16471_v29  ;;  %v16601_v22 = vrot.slane %v16191_v54, %v7161_v14  ;;  %v8540_v36 = vadd.f32 %v16476_v2, %v16593_v1 }
0x13c1   :  { %v8419_v37 = vpop.f32.mrf.mxu0  ;;  %v16590_v45 = vpop.f32.mrf.mxu1 }
0x13c2   :  { %8879 = vst [vmem:[%s16780_s23 + $0x220] sm:$0xff] %v8495_v34  ;;  %v8499_v49 = vadd.f32 %v16453_v20, %v8418_v40  ;;  %v8420_v0 = vadd.f32 %v8419_v37, %v16474_v13  ;;  %v8542_v54 = vadd.f32 %v16479_v46, %v16601_v22  ;;  %v8546_v47 = vadd.f32 %v16490_v16, %v16601_v22 }
0x13c3   :  { %v8421_v4 = vpop.f32.mrf.mxu0  ;;  %v8583_v42 = vpop.f32.mrf.mxu1  ;;  %v8552_v16 = vadd.f32 %v16504_v38, %v16601_v22  ;;  %v8556_v38 = vadd.f32 %v16518_v24, %v16601_v22  ;;  %v8562_v24 = vadd.f32 %v16532_v51, %v16601_v22  ;;  %v8566_v51 = vadd.f32 %v16546_v11, %v16601_v22 }
0x13c4   :  { %8887 = vst [vmem:[%s16780_s23 + $0x260] sm:$0xff] %v8499_v49  ;;  %v8501_v29 = vadd.f32 %v16460_v28, %v8420_v0  ;;  %v8544_v28 = vadd.f32 %v16483_v19, %v16593_v1  ;;  %v8550_v19 = vadd.f32 %v16497_v60, %v16593_v1  ;;  %v8554_v60 = vadd.f32 %v16511_v35, %v16593_v1 }
0x13c5   :  { %v8422_v57 = vpop.f32.mrf.mxu0  ;;  %v8584_v12 = vpop.f32.mrf.mxu1  ;;  %v8560_v35 = vadd.f32 %v16525_v30, %v16593_v1  ;;  %v8564_v30 = vadd.f32 %v16539_v52, %v16593_v1  ;;  %v8570_v52 = vadd.f32 %v16553_v6, %v16593_v1  ;;  %v8572_v11 = vadd.f32 %v16560_v10, %v16601_v22 }
0x13c6   :  { %8888 = vst [vmem:[%s16780_s23 + $0x268] sm:$0xff] %v8501_v29  ;;  %v8574_v6 = vadd.f32 %v16567_v27, %v16593_v1  ;;  %v8576_v10 = vadd.f32 %v16574_v26, %v16601_v22  ;;  %v8580_v27 = vadd.f32 %v16582_v17, %v16593_v1  ;;  %v8582_v26 = vadd.f32 %v16590_v45, %v16601_v22 }
0x13c7   :  { %v8620_v20 = vpop.f32.mrf.mxu0  ;;  %v16612_v13 = vpop.f32.mrf.mxu1 }
0x13c8   :  { %v8621_v33 = vadd.f32 %v8620_v20, %v8540_v36 }
0x13c9   :  { %v8622_v8 = vpop.f32.mrf.mxu0  ;;  %v10104_v43 = vpop.f32.mrf.mxu1 }
0x13ca   :  { %8817 = vst [vmem:[%s16780_s23 + $0x30] sm:$0xff] %v8621_v33  ;;  %v8623_v2 = vadd.f32 %v8622_v8, %v8542_v54 }
0x13cb   :  { %v8624_v48 = vpop.f32.mrf.mxu0  ;;  %v16621_v44 = vpop.f32.mrf.mxu1 }
0x13cc   :  { %8818 = vst [vmem:[%s16780_s23 + $0x38] sm:$0xff] %v8623_v2  ;;  %v8625_v46 = vadd.f32 %v8624_v48, %v8544_v28 }
0x13cd   :  { %v8626_v50 = vpop.f32.mrf.mxu0  ;;  %v10105_v63 = vpop.f32.mrf.mxu1 }
0x13ce   :  { %8826 = vst [vmem:[%s16780_s23 + $0x78] sm:$0xff] %v8625_v46  ;;  %v8627_v61 = vadd.f32 %v8626_v50, %v8546_v47 }
0x13cf   :  { %v8630_v41 = vpop.f32.mrf.mxu0  ;;  %v16633_v53 = vpop.f32.mrf.mxu1 }
0x13d0   :  { %8827 = vst [vmem:[%s16780_s23 + $0x80] sm:$0xff] %v8627_v61  ;;  %v8631_v5 = vadd.f32 %v8630_v41, %v8550_v19  ;;  %v9347_v19 = vld [vmem:[%s16779_s22 + $0x8] ss:$0 sm:$0xff] }
0x13d1   :  { %v8632_v31 = vpop.f32.mrf.mxu0  ;;  %v10108_v15 = vpop.f32.mrf.mxu1 }
0x13d2   :  { %8835 = vst [vmem:[%s16780_s23 + $0xc0] sm:$0xff] %v8631_v5  ;;  %v8633_v39 = vadd.f32 %v8632_v31, %v8552_v16 }
0x13d3   :  { %v8634_v62 = vpop.f32.mrf.mxu0  ;;  %v16645_v3 = vpop.f32.mrf.mxu1 }
0x13d4   :  { %8836 = vst [vmem:[%s16780_s23 + $0xc8] sm:$0xff] %v8633_v39  ;;  %v8635_v9 = vadd.f32 %v8634_v62, %v8554_v60 }
0x13d5   :  { %v8636_v32 = vpop.f32.mrf.mxu0  ;;  %v10109_v56 = vpop.f32.mrf.mxu1 }
0x13d6   :  { %8844 = vst [vmem:[%s16780_s23 + $0x108] sm:$0xff] %v8635_v9  ;;  %v8637_v18 = vadd.f32 %v8636_v32, %v8556_v38 }
0x13d7   :  { %v8640_v7 = vpop.f32.mrf.mxu0  ;;  %v16657_v25 = vpop.f32.mrf.mxu1 }
0x13d8   :  { %8845 = vst [vmem:[%s16780_s23 + $0x110] sm:$0xff] %v8637_v18  ;;  %v8641_v58 = vadd.f32 %v8640_v7, %v8560_v35 }
0x13d9   :  { %v8642_v23 = vpop.f32.mrf.mxu0  ;;  %v10112_v55 = vpop.f32.mrf.mxu1 }
0x13da   :  { %8853 = vst [vmem:[%s16780_s23 + $0x150] sm:$0xff] %v8641_v58  ;;  %v8643_v59 = vadd.f32 %v8642_v23, %v8562_v24 }
0x13db   :  { %v8644_v21 = vpop.f32.mrf.mxu0  ;;  %v16669_v14 = vpop.f32.mrf.mxu1 }
0x13dc   :  { %8854 = vst [vmem:[%s16780_s23 + $0x158] sm:$0xff] %v8643_v59  ;;  %v8645_v34 = vadd.f32 %v8644_v21, %v8564_v30 }
0x13dd   :  { %v8646_v40 = vpop.f32.mrf.mxu0  ;;  %v10113_v37 = vpop.f32.mrf.mxu1 }
0x13de   :  { %8862 = vst [vmem:[%s16780_s23 + $0x198] sm:$0xff] %v8645_v34  ;;  %v8647_v49 = vadd.f32 %v8646_v40, %v8566_v51 }
0x13df   :  { %v8650_v0 = vpop.f32.mrf.mxu0  ;;  %v16681_v4 = vpop.f32.mrf.mxu1 }
0x13e0   :  { %8863 = vst [vmem:[%s16780_s23 + $0x1a0] sm:$0xff] %v8647_v49  ;;  %v8651_v42 = vadd.f32 %v8650_v0, %v8570_v52 }
0x13e1   :  { %v8652_v29 = vpop.f32.mrf.mxu0  ;;  %v10116_v57 = vpop.f32.mrf.mxu1 }
0x13e2   :  { %8871 = vst [vmem:[%s16780_s23 + $0x1e0] sm:$0xff] %v8651_v42  ;;  %v8653_v12 = vadd.f32 %v8652_v29, %v8572_v11 }
0x13e3   :  { %v8654_v36 = vpop.f32.mrf.mxu0  ;;  %v16693_v20 = vpop.f32.mrf.mxu1 }
0x13e4   :  { %8872 = vst [vmem:[%s16780_s23 + $0x1e8] sm:$0xff] %v8653_v12  ;;  %v8655_v54 = vadd.f32 %v8654_v36, %v8574_v6 }
0x13e5   :  { %v8656_v33 = vpop.f32.mrf.mxu0  ;;  %v10117_v8 = vpop.f32.mrf.mxu1 }
0x13e6   :  { %8880 = vst [vmem:[%s16780_s23 + $0x228] sm:$0xff] %v8655_v54  ;;  %v8657_v43 = vadd.f32 %v8656_v33, %v8576_v10 }
0x13e7   :  { %v8660_v28 = vpop.f32.mrf.mxu0  ;;  %v16705_v2 = vpop.f32.mrf.mxu1 }
0x13e8   :  { %8881 = vst [vmem:[%s16780_s23 + $0x230] sm:$0xff] %v8657_v43  ;;  %v8661_v48 = vadd.f32 %v8660_v28, %v8580_v27 }
0x13e9   :  { %v8662_v47 = vpop.f32.mrf.mxu0  ;;  %v10120_v46 = vpop.f32.mrf.mxu1 }
0x13ea   :  { %8889 = vst [vmem:[%s16780_s23 + $0x270] sm:$0xff] %v8661_v48  ;;  %v8663_v17 = vadd.f32 %v8662_v47, %v8582_v26 }
0x13eb   :  { %v8664_v1 = vpop.f32.mrf.mxu0  ;;  %v8808_v50 = vpop.f32.mrf.mxu1 }
0x13ec   :  { %8890 = vst [vmem:[%s16780_s23 + $0x278] sm:$0xff] %v8663_v17 }
0x13ed   :  { %v8665_v63 = vpop.f32.mrf.mxu0  ;;  %v10121_v45 = vpop.f32.mrf.mxu1 }
0x13ef   :  { %v9817_v22 = vpop.f32.mrf.mxu0 }
0x13f1   :  { %v9818_v61 = vpop.f32.mrf.mxu0 }
0x13f2   :  { %v9819_v41 = vadd.f32 %v9818_v61, %v9817_v22 }
0x13f3   :  { %v9820_v16 = vpop.f32.mrf.mxu0 }
0x13f4   :  { %v8702_v5 = vadd.f32 %v9819_v41, %v9347_v19 }
0x13f5   :  { %v9821_v31 = vpop.f32.mrf.mxu0 }
0x13f6   :  { %v8774_v15 = vadd.f32 %v16612_v13, %v8702_v5  ;;  %v9822_v60 = vadd.f32 %v9821_v31, %v9820_v16 }
0x13f7   :  { %v9823_v39 = vpop.f32.mrf.mxu0 }
0x13f8   :  { %8819 = vst [vmem:[%s16780_s23 + $0x40] sm:$0xff] %v8774_v15  ;;  %v8705_v62 = vadd.f32 %v9822_v60, %v9347_v19 }
0x13f9   :  { %v9824_v38 = vpop.f32.mrf.mxu0 }
0x13fa   :  { %v8777_v9 = vadd.f32 %v16621_v44, %v8705_v62  ;;  %v9825_v32 = vadd.f32 %v9824_v38, %v9823_v39 }
0x13fb   :  { %v9826_v56 = vpop.f32.mrf.mxu0 }
0x13fc   :  { %8828 = vst [vmem:[%s16780_s23 + $0x88] sm:$0xff] %v8777_v9  ;;  %v8710_v35 = vadd.f32 %v9825_v32, %v9347_v19 }
0x13fd   :  { %v9827_v18 = vpop.f32.mrf.mxu0 }
0x13fe   :  { %v8782_v13 = vadd.f32 %v16633_v53, %v8710_v35  ;;  %v9828_v7 = vadd.f32 %v9827_v18, %v9826_v56 }
0x13ff   :  { %v9829_v24 = vpop.f32.mrf.mxu0 }
0x1400   :  { %8837 = vst [vmem:[%s16780_s23 + $0xd0] sm:$0xff] %v8782_v13  ;;  %v8713_v58 = vadd.f32 %v9828_v7, %v9347_v19 }
0x1401   :  { %v9830_v23 = vpop.f32.mrf.mxu0 }
0x1402   :  { %v8785_v44 = vadd.f32 %v16645_v3, %v8713_v58  ;;  %v9831_v55 = vadd.f32 %v9830_v23, %v9829_v24 }
0x1403   :  { %v9832_v30 = vpop.f32.mrf.mxu0 }
0x1404   :  { %8846 = vst [vmem:[%s16780_s23 + $0x118] sm:$0xff] %v8785_v44  ;;  %v8718_v59 = vadd.f32 %v9831_v55, %v9347_v19 }
0x1405   :  { %v9833_v21 = vpop.f32.mrf.mxu0 }
0x1406   :  { %v8790_v53 = vadd.f32 %v16657_v25, %v8718_v59  ;;  %v9834_v51 = vadd.f32 %v9833_v21, %v9832_v30 }
0x1407   :  { %v9835_v34 = vpop.f32.mrf.mxu0 }
0x1408   :  { %8855 = vst [vmem:[%s16780_s23 + $0x160] sm:$0xff] %v8790_v53  ;;  %v8721_v40 = vadd.f32 %v9834_v51, %v9347_v19 }
0x1409   :  { %v9836_v37 = vpop.f32.mrf.mxu0 }
0x140a   :  { %v8793_v3 = vadd.f32 %v16669_v14, %v8721_v40  ;;  %v9837_v52 = vadd.f32 %v9836_v37, %v9835_v34 }
0x140b   :  { %v9838_v49 = vpop.f32.mrf.mxu0 }
0x140c   :  { %8864 = vst [vmem:[%s16780_s23 + $0x1a8] sm:$0xff] %v8793_v3  ;;  %v8726_v0 = vadd.f32 %v9837_v52, %v9347_v19 }
0x140d   :  { %v9839_v11 = vpop.f32.mrf.mxu0 }
0x140e   :  { %v8798_v25 = vadd.f32 %v16681_v4, %v8726_v0  ;;  %v9840_v42 = vadd.f32 %v9839_v11, %v9838_v49 }
0x140f   :  { %v9841_v29 = vpop.f32.mrf.mxu0 }
0x1410   :  { %8873 = vst [vmem:[%s16780_s23 + $0x1f0] sm:$0xff] %v8798_v25  ;;  %v8729_v57 = vadd.f32 %v9840_v42, %v9347_v19 }
0x1411   :  { %v9842_v6 = vpop.f32.mrf.mxu0 }
0x1412   :  { %v8801_v14 = vadd.f32 %v16693_v20, %v8729_v57  ;;  %v9843_v12 = vadd.f32 %v9842_v6, %v9841_v29 }
0x1413   :  { %v9844_v36 = vpop.f32.mrf.mxu0 }
0x1414   :  { %8882 = vst [vmem:[%s16780_s23 + $0x238] sm:$0xff] %v8801_v14  ;;  %v8734_v10 = vadd.f32 %v9843_v12, %v9347_v19 }
0x1415   :  { %v9845_v54 = vpop.f32.mrf.mxu0 }
0x1416   :  { %v8806_v4 = vadd.f32 %v16705_v2, %v8734_v10 }
0x1418   :  { %8891 = vst [vmem:[%s16780_s23 + $0x280] sm:$0xff] %v8806_v4 }

</bundles_post_ra>
